<compile_context>
chip_gen: v6e
topology: v6e:2x2x1
jax: 0.10.0
libtpu: 0.0.40
codegen_flags: <defaults>
</compile_context>

<pallas_src>
import math
from functools import partial

import jax
import jax.numpy as jnp
from jax import lax
from jax.experimental import pallas as pl
from jax.experimental.pallas import tpu as pltpu

_INV_SQRT2 = 1.0 / math.sqrt(2.0)
_BN_EPS = 1e-5
_NEG_INF = float("-inf")


def _round8(n):
    return ((n + 7) // 8) * 8


def _gelu(y):
    # exact GELU (PyTorch nn.GELU default): 0.5 * y * (1 + erf(y / sqrt(2)))
    return 0.5 * y * (1.0 + lax.erf(y * _INV_SQRT2))


def _out_len(L, K, stride, pad):
    return (L + 2 * pad - K) // stride + 1


# --------------------------- branch configuration ----------------------------

# conv1 = (K, stride, pad, Cout)  (Ci == 1, strided; im2col'd in glue)
# pool* = (K, stride, pad)
# conv2/conv3 = (K, pad, Cout)    (stride 1; 2-tap packed shift-and-matmul in kernel)
_BRANCH1 = ((50, 6, 24, 64), (8, 2, 4), (8, 4, 128), (8, 4, 128), (4, 4, 2))
_BRANCH2 = ((400, 50, 200, 64), (4, 2, 2), (7, 3, 128), (7, 3, 128), (2, 2, 1))


def _branch_config(L_in, conv1, pool1, conv2, conv3, pool2):
    K1, s1, p1, C1 = conv1
    L1 = _out_len(L_in, K1, s1, p1)
    Kp1, sp1, pp1 = pool1
    Lp1 = _out_len(L1, Kp1, sp1, pp1)
    K2, p2, C2 = conv2
    L2 = _out_len(Lp1, K2, 1, p2)
    K3, p3, C3 = conv3
    L3 = _out_len(L2, K3, 1, p3)
    Kp2, sp2, pp2 = pool2
    Lp2 = _out_len(L3, Kp2, sp2, pp2)
    return dict(
        K1=K1, s1=s1, p1=p1, C1=C1, L1=L1,
        Kp1=Kp1, sp1=sp1, pp1=pp1, Lp1=Lp1,
        K2=K2, p2=p2, C2=C2, L2=L2, n2=(K2 + 1) // 2,
        K3=K3, p3=p3, C3=C3, L3=L3, n3=(K3 + 1) // 2,
        Kp2=Kp2, sp2=sp2, pp2=pp2, Lp2=Lp2,
    )


# ----------------------------- fused two-branch kernel ------------------------

def _make_mrcnn_kernel(cfg1, cfg2):

    def kernel(xcol1_ref, xcol2_ref,
               w1a_ref, b1a_ref, w2a_ref, b2a_ref, w3a_ref, b3a_ref,
               w1b_ref, b1b_ref, w2b_ref, b2b_ref, w3b_ref, b3b_ref,
               o_ref,
               pool64_ref, pool128_ref, stage64_ref, stage128_ref,
               pb_ref, cb_ref):

        def maxpool(pad_ref, stage_ref, h, L_in, K, stride, pad, Lout, C):
            """-inf pad rows only + K-1 unit-shift max passes + one strided subsample."""
            neg = jnp.full((pad, C), _NEG_INF, dtype=jnp.float32)
            pad_ref[0:pad, :] = neg                                  # leading pad rows
            pad_ref[pad + L_in:L_in + 2 * pad, :] = neg              # trailing pad rows
            pad_ref[pad:pad + L_in, :] = h                           # interior (overwrites stale)
            n = (Lout - 1) * stride + 1                              # window-start rows
            m = pad_ref[0:n, :]
            for k in range(1, K):                                    # contiguous shifted maxima
                m = jnp.maximum(m, pad_ref[k:k + n, :])
            stage_ref[0:n, :] = m
            return stage_ref[pl.ds(0, Lout, stride=stride), :]       # single strided subsample

        def conv_packed(buf_ref, w_ref, b_ref, x_bf16, L_in, pad, n_pairs, C, L_out):
            """stride-1 conv as 2-tap packed shift-and-matmul (bf16 scratch, f32 acc)."""
            rows = 2 * (n_pairs - 1) + L_out                         # last row ever read + 1
            buf_ref[0:pad, :] = jnp.zeros((pad, 2 * C), dtype=jnp.bfloat16)
            buf_ref[pad + L_in - 1:rows, :] = jnp.zeros(
                (rows - (pad + L_in - 1), 2 * C), dtype=jnp.bfloat16)
            # buf[l, 0:C] = P[l], buf[l, C:2C] = P[l+1]  (P = zero-padded activation)
            buf_ref[pad:pad + L_in, 0:C] = x_bf16
            buf_ref[pad - 1:pad - 1 + L_in, C:2 * C] = x_bf16
            acc = None
            for p in range(n_pairs):                                 # 128/256-deep contractions
                contrib = jnp.dot(buf_ref[2 * p:2 * p + L_out, :],
                                  w_ref[p * 2 * C:(p + 1) * 2 * C, :],
                                  preferred_element_type=jnp.float32)
                acc = contrib if acc is None else acc + contrib
            return _gelu(acc + b_ref[...])                           # folded-BN shift + GELU

        def branch(cfg, xcol_ref, w1_ref, b1_ref, w2_ref, b2_ref, w3_ref, b3_ref, row0):
            # conv1 (strided, Ci=1; im2col in glue) + BN + GELU : one MXU matmul
            h1 = _gelu(jnp.dot(xcol_ref[...], w1_ref[...],
                               preferred_element_type=jnp.float32) + b1_ref[...])
            # maxpool1 -> (Lp1, 64)
            pooled = maxpool(pool64_ref, stage64_ref, h1, cfg["L1"],
                             cfg["Kp1"], cfg["sp1"], cfg["pp1"], cfg["Lp1"], cfg["C1"])
            # conv2 (2-tap packed, 128-deep) + BN + GELU
            h2 = conv_packed(pb_ref, w2_ref, b2_ref, pooled.astype(jnp.bfloat16),
                             cfg["Lp1"], cfg["p2"], cfg["n2"], cfg["C1"], cfg["L2"])
            # conv3 (2-tap packed, 256-deep) + BN + GELU
            h3 = conv_packed(cb_ref, w3_ref, b3_ref, h2.astype(jnp.bfloat16),
                             cfg["L2"], cfg["p3"], cfg["n3"], cfg["C2"], cfg["L3"])
            # maxpool2 -> lane-dense rows of the merged (80, 128) output block
            out = maxpool(pool128_ref, stage128_ref, h3, cfg["L3"],
                          cfg["Kp2"], cfg["sp2"], cfg["pp2"], cfg["Lp2"], cfg["C3"])
            o_ref[row0:row0 + cfg["Lp2"], :] = out

        branch(cfg1, xcol1_ref, w1a_ref, b1a_ref, w2a_ref, b2a_ref, w3a_ref, b3a_ref, 0)
        branch(cfg2, xcol2_ref, w1b_ref, b1b_ref, w2b_ref, b2b_ref, w3b_ref, b3b_ref,
               cfg1["Lp2"])

    return kernel


def _mrcnn_pallas(xcol1, xcol2, params, cfg1, cfg2):
    """xcol*: [B, L1, K1] bf16 im2col blocks.  Returns [B, 80, 128] f32 (time-major)."""
    B = xcol1.shape[0]
    pr1, pr2 = params["branch1"], params["branch2"]
    kernel = _make_mrcnn_kernel(cfg1, cfg2)
    Ltot = cfg1["Lp2"] + cfg2["Lp2"]

    pool64_rows = _round8(max(cfg1["L1"] + 2 * cfg1["pp1"], cfg2["L1"] + 2 * cfg2["pp1"]))
    pool128_rows = _round8(max(cfg1["L3"] + 2 * cfg1["pp2"], cfg2["L3"] + 2 * cfg2["pp2"]))
    stage64_rows = _round8(max((cfg1["Lp1"] - 1) * cfg1["sp1"] + 1,
                               (cfg2["Lp1"] - 1) * cfg2["sp1"] + 1))
    stage128_rows = _round8(max((cfg1["Lp2"] - 1) * cfg1["sp2"] + 1,
                                (cfg2["Lp2"] - 1) * cfg2["sp2"] + 1))
    pb_rows = _round8(max(2 * (cfg1["n2"] - 1) + cfg1["L2"],
                          2 * (cfg2["n2"] - 1) + cfg2["L2"]))
    cb_rows = _round8(max(2 * (cfg1["n3"] - 1) + cfg1["L3"],
                          2 * (cfg2["n3"] - 1) + cfg2["L3"]))

    def _whole(arr):  # grid-invariant parameter block (whole 2-D array in VMEM)
        return pl.BlockSpec(arr.shape, lambda b: (0,) * arr.ndim)

    return pl.pallas_call(
        kernel,
        out_shape=jax.ShapeDtypeStruct((B, Ltot, cfg1["C3"]), jnp.float32),
        grid=(B,),
        in_specs=[
            pl.BlockSpec((None, cfg1["L1"], cfg1["K1"]), lambda b: (b, 0, 0)),
            pl.BlockSpec((None, cfg2["L1"], cfg2["K1"]), lambda b: (b, 0, 0)),
            _whole(pr1["w1"]), _whole(pr1["b1"]), _whole(pr1["w2"]), _whole(pr1["b2"]),
            _whole(pr1["w3"]), _whole(pr1["b3"]),
            _whole(pr2["w1"]), _whole(pr2["b1"]), _whole(pr2["w2"]), _whole(pr2["b2"]),
            _whole(pr2["w3"]), _whole(pr2["b3"]),
        ],
        out_specs=pl.BlockSpec((None, Ltot, cfg1["C3"]), lambda b: (b, 0, 0)),
        scratch_shapes=[
            pltpu.VMEM((pool64_rows, 64), jnp.float32),     # pool1 padded input (-inf pads)
            pltpu.VMEM((pool128_rows, 128), jnp.float32),   # pool2 padded input (-inf pads)
            pltpu.VMEM((stage64_rows, 64), jnp.float32),    # pool1 running-max staging
            pltpu.VMEM((stage128_rows, 128), jnp.float32),  # pool2 running-max staging
            pltpu.VMEM((pb_rows, 128), jnp.bfloat16),       # conv2 2-tap packed input
            pltpu.VMEM((cb_rows, 256), jnp.bfloat16),       # conv3 2-tap packed input
        ],
        compiler_params=pltpu.CompilerParams(
            dimension_semantics=("parallel",),   # B=2 -> both TensorCores on v7x
        ),
    )(xcol1, xcol2,
      pr1["w1"], pr1["b1"], pr1["w2"], pr1["b2"], pr1["w3"], pr1["b3"],
      pr2["w1"], pr2["b1"], pr2["w2"], pr2["b2"], pr2["w3"], pr2["b3"])


# ------------------------------ parameters ------------------------------------

def _conv_bn_folded(key, Ci, Co, K, K_pad=None):
    """Random Conv1d(bias=False)+BatchNorm1d(eval) params; BN scale folded into the
    k-major/ci-minor [K_pad*Ci, Co] weight (zero taps appended if K is odd so the
    2-tap-packed kernel sees an even tap count).  Returns (bf16 weight, f32 shift)."""
    k1, k2, k3, k4, k5 = jax.random.split(key, 5)
    fan_in = Ci * K
    w = jax.random.normal(k1, (Co, Ci, K), jnp.float32) / math.sqrt(fan_in)
    gamma = 1.0 + 0.1 * jax.random.normal(k2, (Co,), jnp.float32)
    beta = 0.1 * jax.random.normal(k3, (Co,), jnp.float32)
    running_mean = 0.1 * jax.random.normal(k4, (Co,), jnp.float32)
    running_var = 1.0 + 0.1 * jax.random.uniform(k5, (Co,), jnp.float32)
    scale = gamma / jnp.sqrt(running_var + _BN_EPS)
    shift = beta - running_mean * scale
    w_col = jnp.transpose(w, (2, 1, 0)).reshape(K * Ci, Co)       # k-major, ci-minor
    if K_pad is not None and K_pad > K:
        w_col = jnp.concatenate(
            [w_col, jnp.zeros(((K_pad - K) * Ci, Co), jnp.float32)], axis=0)
    w_folded = (w_col * scale[None, :]).astype(jnp.bfloat16)      # fold BN scale
    return w_folded, shift.reshape(1, Co).astype(jnp.float32)


def init_mrcnn_params(key):
    keys = jax.random.split(key, 6)

    def branch(ks, c1, c2, c3):
        w1, b1 = _conv_bn_folded(ks[0], *c1)
        w2, b2 = _conv_bn_folded(ks[1], *c2)
        w3, b3 = _conv_bn_folded(ks[2], *c3)
        return {"w1": w1, "b1": b1, "w2": w2, "b2": b2, "w3": w3, "b3": b3}

    return {
        "branch1": branch(keys[0:3], (1, 64, 50, None), (64, 128, 8, 8), (128, 128, 8, 8)),
        "branch2": branch(keys[3:6], (1, 64, 400, None), (64, 128, 7, 8), (128, 128, 7, 8)),
    }


# ------------------------------- forward --------------------------------------

def _im2col_1ch(x_ncw, K, stride, pad):
    """x: [B, 1, L] -> bf16 [B, Lout, K] patches via the conv machinery (no XLA gather)."""
    patches = lax.conv_general_dilated_patches(
        x_ncw, filter_shape=(K,), window_strides=(stride,), padding=[(pad, pad)])
    # C==1 so the patch-channel index is exactly the filter tap index.
    return jnp.transpose(patches, (0, 2, 1)).astype(jnp.bfloat16)


def mrcnn_forward(x, params):
    """x: [B, 1, L] (NCW, PyTorch layout) -> [B, 128, 80] (NCW) for L=3000 (shhs=False)."""
    B, _, L = x.shape
    cfg1 = _branch_config(L, *_BRANCH1)
    cfg2 = _branch_config(L, *_BRANCH2)
    xcol1 = _im2col_1ch(x, cfg1["K1"], cfg1["s1"], cfg1["p1"])
    xcol2 = _im2col_1ch(x, cfg2["K1"], cfg2["s1"], cfg2["p1"])
    out = _mrcnn_pallas(xcol1, xcol2, params, cfg1, cfg2)   # [B, 80, 128] time-major
    # Dropout / last_dropout: identity in eval mode; branch concat done inside the kernel.
    return jnp.transpose(out, (0, 2, 1))                    # [B, 128, 80]


# --------------------------------- main ----------------------------------------

if __name__ == "__main__":
    # shhs=False configuration: output [B, 128, 80] requires input sample length 3000.
    B, L = 2, 3000
    key = jax.random.PRNGKey(0)
    k_param, k_x = jax.random.split(key)

    params = init_mrcnn_params(k_param)
    x = jax.random.normal(k_x, (B, 1, L), jnp.float32)

    fwd = jax.jit(partial(mrcnn_forward, params=params))
    out = fwd(x)
    out = jax.block_until_ready(out)

    assert out.shape == (B, 128, 80), out.shape
    assert out.dtype == jnp.float32
    assert bool(jnp.all(jnp.isfinite(out)))
    print("KERNEL_OK")
</pallas_src>

<mosaic_0001>
module attributes {stable_mosaic.version = 11 : i64} {
  func.func @kernel(%arg0: i32, %arg1: memref<1x500x50xbf16, #tpu.memory_space<vmem>>, %arg2: memref<1x61x400xbf16, #tpu.memory_space<vmem>>, %arg3: memref<50x64xbf16, #tpu.memory_space<vmem>>, %arg4: memref<1x64xf32, #tpu.memory_space<vmem>>, %arg5: memref<512x128xbf16, #tpu.memory_space<vmem>>, %arg6: memref<1x128xf32, #tpu.memory_space<vmem>>, %arg7: memref<1024x128xbf16, #tpu.memory_space<vmem>>, %arg8: memref<1x128xf32, #tpu.memory_space<vmem>>, %arg9: memref<400x64xbf16, #tpu.memory_space<vmem>>, %arg10: memref<1x64xf32, #tpu.memory_space<vmem>>, %arg11: memref<512x128xbf16, #tpu.memory_space<vmem>>, %arg12: memref<1x128xf32, #tpu.memory_space<vmem>>, %arg13: memref<1024x128xbf16, #tpu.memory_space<vmem>>, %arg14: memref<1x128xf32, #tpu.memory_space<vmem>>, %arg15: memref<1x80x128xf32, #tpu.memory_space<vmem>>, %arg16: memref<512x64xf32, #tpu.memory_space<vmem>>, %arg17: memref<264x128xf32, #tpu.memory_space<vmem>>, %arg18: memref<504x64xf32, #tpu.memory_space<vmem>>, %arg19: memref<256x128xf32, #tpu.memory_space<vmem>>, %arg20: memref<264x128xbf16, #tpu.memory_space<vmem>>, %arg21: memref<264x256xbf16, #tpu.memory_space<vmem>>) attributes {dimension_semantics = [#tpu.dimension_semantics<parallel>], iteration_bounds = array<i64: 2>, scalar_prefetch = 0 : i64, scratch_operands = 6 : i64, tpu.core_type = #tpu.core_type<tc>, window_params = [{transform_indices = @transform_0, window_bounds = array<i64: 1, 500, 50>}, {transform_indices = @transform_1, window_bounds = array<i64: 1, 61, 400>}, {pipeline_mode = #tpu.pipeline_mode<synchronous>, transform_indices = @transform_2, window_bounds = array<i64: 50, 64>}, {pipeline_mode = #tpu.pipeline_mode<synchronous>, transform_indices = @transform_3, window_bounds = array<i64: 1, 64>}, {pipeline_mode = #tpu.pipeline_mode<synchronous>, transform_indices = @transform_4, window_bounds = array<i64: 512, 128>}, {pipeline_mode = #tpu.pipeline_mode<synchronous>, transform_indices = @transform_5, window_bounds = array<i64: 1, 128>}, {pipeline_mode = #tpu.pipeline_mode<synchronous>, transform_indices = @transform_6, window_bounds = array<i64: 1024, 128>}, {pipeline_mode = #tpu.pipeline_mode<synchronous>, transform_indices = @transform_7, window_bounds = array<i64: 1, 128>}, {pipeline_mode = #tpu.pipeline_mode<synchronous>, transform_indices = @transform_8, window_bounds = array<i64: 400, 64>}, {pipeline_mode = #tpu.pipeline_mode<synchronous>, transform_indices = @transform_9, window_bounds = array<i64: 1, 64>}, {pipeline_mode = #tpu.pipeline_mode<synchronous>, transform_indices = @transform_10, window_bounds = array<i64: 512, 128>}, {pipeline_mode = #tpu.pipeline_mode<synchronous>, transform_indices = @transform_11, window_bounds = array<i64: 1, 128>}, {pipeline_mode = #tpu.pipeline_mode<synchronous>, transform_indices = @transform_12, window_bounds = array<i64: 1024, 128>}, {pipeline_mode = #tpu.pipeline_mode<synchronous>, transform_indices = @transform_13, window_bounds = array<i64: 1, 128>}, {transform_indices = @transform_14, window_bounds = array<i64: 1, 80, 128>}]} {
    %c0 = arith.constant 0 : index
    %c0_0 = arith.constant 0 : index
    %c0_1 = arith.constant 0 : index
    %0 = vector.load %arg1[%c0, %c0_0, %c0_1] : memref<1x500x50xbf16, #tpu.memory_space<vmem>>, vector<1x500x50xbf16>
    %1 = vector.shape_cast %0 : vector<1x500x50xbf16> to vector<500x50xbf16>
    %c0_2 = arith.constant 0 : index
    %c0_3 = arith.constant 0 : index
    %2 = vector.load %arg3[%c0_2, %c0_3] : memref<50x64xbf16, #tpu.memory_space<vmem>>, vector<50x64xbf16>
    %cst = arith.constant dense<0.000000e+00> : vector<500x64xf32>
    %3 = tpu.matmul %1, %2, %cst {dimension_numbers = #tpu.dot_dimension_numbers<[1], [0], [0], [1], [0, 0, 1, 1], [], []>} : vector<500x50xbf16>, vector<50x64xbf16>, vector<500x64xf32> -> vector<500x64xf32>
    %c0_4 = arith.constant 0 : index
    %c0_5 = arith.constant 0 : index
    %4 = vector.load %arg4[%c0_4, %c0_5] : memref<1x64xf32, #tpu.memory_space<vmem>>, vector<1x64xf32>
    %5 = vector.broadcast %4 : vector<1x64xf32> to vector<500x64xf32>
    %6 = arith.addf %3, %5 : vector<500x64xf32>
    %cst_6 = arith.constant 5.000000e-01 : f32
    %7 = vector.broadcast %cst_6 : f32 to vector<500x64xf32>
    %8 = arith.mulf %7, %6 : vector<500x64xf32>
    %cst_7 = arith.constant 0.707106769 : f32
    %9 = vector.broadcast %cst_7 : f32 to vector<500x64xf32>
    %10 = arith.mulf %6, %9 : vector<500x64xf32>
    %11 = math.erf %10 : vector<500x64xf32>
    %cst_8 = arith.constant 1.000000e+00 : f32
    %12 = vector.broadcast %cst_8 : f32 to vector<500x64xf32>
    %13 = arith.addf %12, %11 : vector<500x64xf32>
    %14 = arith.mulf %8, %13 : vector<500x64xf32>
    %cst_9 = arith.constant 0xFF800000 : f32
    %15 = vector.broadcast %cst_9 : f32 to vector<4x64xf32>
    %c0_10 = arith.constant 0 : index
    %c0_11 = arith.constant 0 : index
    %16 = vector.load %arg16[%c0_10, %c0_11] : memref<512x64xf32, #tpu.memory_space<vmem>>, vector<4x64xf32>
    tpu.vector_store %arg16[%c0_10, %c0_11], %15 {strides = array<i32>} : memref<512x64xf32, #tpu.memory_space<vmem>>, vector<4x64xf32>,
    %c504 = arith.constant 504 : index
    %c0_12 = arith.constant 0 : index
    %17 = vector.load %arg16[%c504, %c0_12] : memref<512x64xf32, #tpu.memory_space<vmem>>, vector<4x64xf32>
    tpu.vector_store %arg16[%c504, %c0_12], %15 {strides = array<i32>} : memref<512x64xf32, #tpu.memory_space<vmem>>, vector<4x64xf32>,
    %c4 = arith.constant 4 : index
    %c0_13 = arith.constant 0 : index
    %18 = vector.load %arg16[%c4, %c0_13] : memref<512x64xf32, #tpu.memory_space<vmem>>, vector<500x64xf32>
    tpu.vector_store %arg16[%c4, %c0_13], %14 {strides = array<i32>} : memref<512x64xf32, #tpu.memory_space<vmem>>, vector<500x64xf32>,
    %c0_14 = arith.constant 0 : index
    %c0_15 = arith.constant 0 : index
    %19 = vector.load %arg16[%c0_14, %c0_15] : memref<512x64xf32, #tpu.memory_space<vmem>>, vector<501x64xf32>
    %c1 = arith.constant 1 : index
    %c0_16 = arith.constant 0 : index
    %20 = vector.load %arg16[%c1, %c0_16] : memref<512x64xf32, #tpu.memory_space<vmem>>, vector<501x64xf32>
    %21 = arith.maximumf %19, %20 : vector<501x64xf32>
    %c2 = arith.constant 2 : index
    %c0_17 = arith.constant 0 : index
    %22 = vector.load %arg16[%c2, %c0_17] : memref<512x64xf32, #tpu.memory_space<vmem>>, vector<501x64xf32>
    %23 = arith.maximumf %21, %22 : vector<501x64xf32>
    %c3 = arith.constant 3 : index
    %c0_18 = arith.constant 0 : index
    %24 = vector.load %arg16[%c3, %c0_18] : memref<512x64xf32, #tpu.memory_space<vmem>>, vector<501x64xf32>
    %25 = arith.maximumf %23, %24 : vector<501x64xf32>
    %c4_19 = arith.constant 4 : index
    %c0_20 = arith.constant 0 : index
    %26 = vector.load %arg16[%c4_19, %c0_20] : memref<512x64xf32, #tpu.memory_space<vmem>>, vector<501x64xf32>
    %27 = arith.maximumf %25, %26 : vector<501x64xf32>
    %c5 = arith.constant 5 : index
    %c0_21 = arith.constant 0 : index
    %28 = vector.load %arg16[%c5, %c0_21] : memref<512x64xf32, #tpu.memory_space<vmem>>, vector<501x64xf32>
    %29 = arith.maximumf %27, %28 : vector<501x64xf32>
    %c6 = arith.constant 6 : index
    %c0_22 = arith.constant 0 : index
    %30 = vector.load %arg16[%c6, %c0_22] : memref<512x64xf32, #tpu.memory_space<vmem>>, vector<501x64xf32>
    %31 = arith.maximumf %29, %30 : vector<501x64xf32>
    %c7 = arith.constant 7 : index
    %c0_23 = arith.constant 0 : index
    %32 = vector.load %arg16[%c7, %c0_23] : memref<512x64xf32, #tpu.memory_space<vmem>>, vector<501x64xf32>
    %33 = arith.maximumf %31, %32 : vector<501x64xf32>
    %c0_24 = arith.constant 0 : index
    %c0_25 = arith.constant 0 : index
    %34 = vector.load %arg18[%c0_24, %c0_25] : memref<504x64xf32, #tpu.memory_space<vmem>>, vector<501x64xf32>
    tpu.vector_store %arg18[%c0_24, %c0_25], %33 {strides = array<i32>} : memref<504x64xf32, #tpu.memory_space<vmem>>, vector<501x64xf32>,
    %c0_26 = arith.constant 0 : index
    %c0_27 = arith.constant 0 : index
    %35 = tpu.strided_load %arg18[%c0_26, %c0_27] {strides = array<i32: 2, 1>} : memref<504x64xf32, #tpu.memory_space<vmem>>, vector<251x64xf32>
    %36 = arith.truncf %35 : vector<251x64xf32> to vector<251x64xbf16>
    %cst_28 = arith.constant 0.000000e+00 : bf16
    %37 = vector.broadcast %cst_28 : bf16 to vector<4x128xbf16>
    %c0_29 = arith.constant 0 : index
    %c0_30 = arith.constant 0 : index
    %38 = vector.load %arg20[%c0_29, %c0_30] : memref<264x128xbf16, #tpu.memory_space<vmem>>, vector<4x128xbf16>
    tpu.vector_store %arg20[%c0_29, %c0_30], %37 {strides = array<i32>} : memref<264x128xbf16, #tpu.memory_space<vmem>>, vector<4x128xbf16>,
    %cst_31 = arith.constant 0.000000e+00 : bf16
    %39 = vector.broadcast %cst_31 : bf16 to vector<4x128xbf16>
    %c254 = arith.constant 254 : index
    %c0_32 = arith.constant 0 : index
    %40 = vector.load %arg20[%c254, %c0_32] : memref<264x128xbf16, #tpu.memory_space<vmem>>, vector<4x128xbf16>
    tpu.vector_store %arg20[%c254, %c0_32], %39 {strides = array<i32>} : memref<264x128xbf16, #tpu.memory_space<vmem>>, vector<4x128xbf16>,
    %c4_33 = arith.constant 4 : index
    %c0_34 = arith.constant 0 : index
    %41 = vector.load %arg20[%c4_33, %c0_34] : memref<264x128xbf16, #tpu.memory_space<vmem>>, vector<251x64xbf16>
    tpu.vector_store %arg20[%c4_33, %c0_34], %36 {strides = array<i32>} : memref<264x128xbf16, #tpu.memory_space<vmem>>, vector<251x64xbf16>,
    %c3_35 = arith.constant 3 : index
    %c64 = arith.constant 64 : index
    %42 = vector.load %arg20[%c3_35, %c64] : memref<264x128xbf16, #tpu.memory_space<vmem>>, vector<251x64xbf16>
    tpu.vector_store %arg20[%c3_35, %c64], %36 {strides = array<i32>} : memref<264x128xbf16, #tpu.memory_space<vmem>>, vector<251x64xbf16>,
    %c0_36 = arith.constant 0 : index
    %c0_37 = arith.constant 0 : index
    %43 = vector.load %arg20[%c0_36, %c0_37] : memref<264x128xbf16, #tpu.memory_space<vmem>>, vector<252x128xbf16>
    %c0_38 = arith.constant 0 : index
    %c0_39 = arith.constant 0 : index
    %44 = vector.load %arg5[%c0_38, %c0_39] : memref<512x128xbf16, #tpu.memory_space<vmem>>, vector<128x128xbf16>
    %cst_40 = arith.constant dense<0.000000e+00> : vector<252x128xf32>
    %45 = tpu.matmul %43, %44, %cst_40 {dimension_numbers = #tpu.dot_dimension_numbers<[1], [0], [0], [1], [0, 0, 1, 1], [], []>} : vector<252x128xbf16>, vector<128x128xbf16>, vector<252x128xf32> -> vector<252x128xf32>
    %c2_41 = arith.constant 2 : index
    %c0_42 = arith.constant 0 : index
    %46 = vector.load %arg20[%c2_41, %c0_42] : memref<264x128xbf16, #tpu.memory_space<vmem>>, vector<252x128xbf16>
    %c128 = arith.constant 128 : index
    %c0_43 = arith.constant 0 : index
    %47 = vector.load %arg5[%c128, %c0_43] : memref<512x128xbf16, #tpu.memory_space<vmem>>, vector<128x128xbf16>
    %cst_44 = arith.constant dense<0.000000e+00> : vector<252x128xf32>
    %48 = tpu.matmul %46, %47, %cst_44 {dimension_numbers = #tpu.dot_dimension_numbers<[1], [0], [0], [1], [0, 0, 1, 1], [], []>} : vector<252x128xbf16>, vector<128x128xbf16>, vector<252x128xf32> -> vector<252x128xf32>
    %49 = arith.addf %45, %48 : vector<252x128xf32>
    %c4_45 = arith.constant 4 : index
    %c0_46 = arith.constant 0 : index
    %50 = vector.load %arg20[%c4_45, %c0_46] : memref<264x128xbf16, #tpu.memory_space<vmem>>, vector<252x128xbf16>
    %c256 = arith.constant 256 : index
    %c0_47 = arith.constant 0 : index
    %51 = vector.load %arg5[%c256, %c0_47] : memref<512x128xbf16, #tpu.memory_space<vmem>>, vector<128x128xbf16>
    %cst_48 = arith.constant dense<0.000000e+00> : vector<252x128xf32>
    %52 = tpu.matmul %50, %51, %cst_48 {dimension_numbers = #tpu.dot_dimension_numbers<[1], [0], [0], [1], [0, 0, 1, 1], [], []>} : vector<252x128xbf16>, vector<128x128xbf16>, vector<252x128xf32> -> vector<252x128xf32>
    %53 = arith.addf %49, %52 : vector<252x128xf32>
    %c6_49 = arith.constant 6 : index
    %c0_50 = arith.constant 0 : index
    %54 = vector.load %arg20[%c6_49, %c0_50] : memref<264x128xbf16, #tpu.memory_space<vmem>>, vector<252x128xbf16>
    %c384 = arith.constant 384 : index
    %c0_51 = arith.constant 0 : index
    %55 = vector.load %arg5[%c384, %c0_51] : memref<512x128xbf16, #tpu.memory_space<vmem>>, vector<128x128xbf16>
    %cst_52 = arith.constant dense<0.000000e+00> : vector<252x128xf32>
    %56 = tpu.matmul %54, %55, %cst_52 {dimension_numbers = #tpu.dot_dimension_numbers<[1], [0], [0], [1], [0, 0, 1, 1], [], []>} : vector<252x128xbf16>, vector<128x128xbf16>, vector<252x128xf32> -> vector<252x128xf32>
    %57 = arith.addf %53, %56 : vector<252x128xf32>
    %c0_53 = arith.constant 0 : index
    %c0_54 = arith.constant 0 : index
    %58 = vector.load %arg6[%c0_53, %c0_54] : memref<1x128xf32, #tpu.memory_space<vmem>>, vector<1x128xf32>
    %59 = vector.broadcast %58 : vector<1x128xf32> to vector<252x128xf32>
    %60 = arith.addf %57, %59 : vector<252x128xf32>
    %cst_55 = arith.constant 5.000000e-01 : f32
    %61 = vector.broadcast %cst_55 : f32 to vector<252x128xf32>
    %62 = arith.mulf %61, %60 : vector<252x128xf32>
    %cst_56 = arith.constant 0.707106769 : f32
    %63 = vector.broadcast %cst_56 : f32 to vector<252x128xf32>
    %64 = arith.mulf %60, %63 : vector<252x128xf32>
    %65 = math.erf %64 : vector<252x128xf32>
    %cst_57 = arith.constant 1.000000e+00 : f32
    %66 = vector.broadcast %cst_57 : f32 to vector<252x128xf32>
    %67 = arith.addf %66, %65 : vector<252x128xf32>
    %68 = arith.mulf %62, %67 : vector<252x128xf32>
    %69 = arith.truncf %68 : vector<252x128xf32> to vector<252x128xbf16>
    %cst_58 = arith.constant 0.000000e+00 : bf16
    %70 = vector.broadcast %cst_58 : bf16 to vector<4x256xbf16>
    %c0_59 = arith.constant 0 : index
    %c0_60 = arith.constant 0 : index
    %71 = vector.load %arg21[%c0_59, %c0_60] : memref<264x256xbf16, #tpu.memory_space<vmem>>, vector<4x256xbf16>
    tpu.vector_store %arg21[%c0_59, %c0_60], %70 {strides = array<i32>} : memref<264x256xbf16, #tpu.memory_space<vmem>>, vector<4x256xbf16>,
    %cst_61 = arith.constant 0.000000e+00 : bf16
    %72 = vector.broadcast %cst_61 : bf16 to vector<4x256xbf16>
    %c255 = arith.constant 255 : index
    %c0_62 = arith.constant 0 : index
    %73 = vector.load %arg21[%c255, %c0_62] : memref<264x256xbf16, #tpu.memory_space<vmem>>, vector<4x256xbf16>
    tpu.vector_store %arg21[%c255, %c0_62], %72 {strides = array<i32>} : memref<264x256xbf16, #tpu.memory_space<vmem>>, vector<4x256xbf16>,
    %c4_63 = arith.constant 4 : index
    %c0_64 = arith.constant 0 : index
    %74 = vector.load %arg21[%c4_63, %c0_64] : memref<264x256xbf16, #tpu.memory_space<vmem>>, vector<252x128xbf16>
    tpu.vector_store %arg21[%c4_63, %c0_64], %69 {strides = array<i32>} : memref<264x256xbf16, #tpu.memory_space<vmem>>, vector<252x128xbf16>,
    %c3_65 = arith.constant 3 : index
    %c128_66 = arith.constant 128 : index
    %75 = vector.load %arg21[%c3_65, %c128_66] : memref<264x256xbf16, #tpu.memory_space<vmem>>, vector<252x128xbf16>
    tpu.vector_store %arg21[%c3_65, %c128_66], %69 {strides = array<i32>} : memref<264x256xbf16, #tpu.memory_space<vmem>>, vector<252x128xbf16>,
    %c0_67 = arith.constant 0 : index
    %c0_68 = arith.constant 0 : index
    %76 = vector.load %arg21[%c0_67, %c0_68] : memref<264x256xbf16, #tpu.memory_space<vmem>>, vector<253x256xbf16>
    %c0_69 = arith.constant 0 : index
    %c0_70 = arith.constant 0 : index
    %77 = vector.load %arg7[%c0_69, %c0_70] : memref<1024x128xbf16, #tpu.memory_space<vmem>>, vector<256x128xbf16>
    %cst_71 = arith.constant dense<0.000000e+00> : vector<253x128xf32>
    %78 = tpu.matmul %76, %77, %cst_71 {dimension_numbers = #tpu.dot_dimension_numbers<[1], [0], [0], [1], [0, 0, 1, 1], [], []>} : vector<253x256xbf16>, vector<256x128xbf16>, vector<253x128xf32> -> vector<253x128xf32>
    %c2_72 = arith.constant 2 : index
    %c0_73 = arith.constant 0 : index
    %79 = vector.load %arg21[%c2_72, %c0_73] : memref<264x256xbf16, #tpu.memory_space<vmem>>, vector<253x256xbf16>
    %c256_74 = arith.constant 256 : index
    %c0_75 = arith.constant 0 : index
    %80 = vector.load %arg7[%c256_74, %c0_75] : memref<1024x128xbf16, #tpu.memory_space<vmem>>, vector<256x128xbf16>
    %cst_76 = arith.constant dense<0.000000e+00> : vector<253x128xf32>
    %81 = tpu.matmul %79, %80, %cst_76 {dimension_numbers = #tpu.dot_dimension_numbers<[1], [0], [0], [1], [0, 0, 1, 1], [], []>} : vector<253x256xbf16>, vector<256x128xbf16>, vector<253x128xf32> -> vector<253x128xf32>
    %82 = arith.addf %78, %81 : vector<253x128xf32>
    %c4_77 = arith.constant 4 : index
    %c0_78 = arith.constant 0 : index
    %83 = vector.load %arg21[%c4_77, %c0_78] : memref<264x256xbf16, #tpu.memory_space<vmem>>, vector<253x256xbf16>
    %c512 = arith.constant 512 : index
    %c0_79 = arith.constant 0 : index
    %84 = vector.load %arg7[%c512, %c0_79] : memref<1024x128xbf16, #tpu.memory_space<vmem>>, vector<256x128xbf16>
    %cst_80 = arith.constant dense<0.000000e+00> : vector<253x128xf32>
    %85 = tpu.matmul %83, %84, %cst_80 {dimension_numbers = #tpu.dot_dimension_numbers<[1], [0], [0], [1], [0, 0, 1, 1], [], []>} : vector<253x256xbf16>, vector<256x128xbf16>, vector<253x128xf32> -> vector<253x128xf32>
    %86 = arith.addf %82, %85 : vector<253x128xf32>
    %c6_81 = arith.constant 6 : index
    %c0_82 = arith.constant 0 : index
    %87 = vector.load %arg21[%c6_81, %c0_82] : memref<264x256xbf16, #tpu.memory_space<vmem>>, vector<253x256xbf16>
    %c768 = arith.constant 768 : index
    %c0_83 = arith.constant 0 : index
    %88 = vector.load %arg7[%c768, %c0_83] : memref<1024x128xbf16, #tpu.memory_space<vmem>>, vector<256x128xbf16>
    %cst_84 = arith.constant dense<0.000000e+00> : vector<253x128xf32>
    %89 = tpu.matmul %87, %88, %cst_84 {dimension_numbers = #tpu.dot_dimension_numbers<[1], [0], [0], [1], [0, 0, 1, 1], [], []>} : vector<253x256xbf16>, vector<256x128xbf16>, vector<253x128xf32> -> vector<253x128xf32>
    %90 = arith.addf %86, %89 : vector<253x128xf32>
    %c0_85 = arith.constant 0 : index
    %c0_86 = arith.constant 0 : index
    %91 = vector.load %arg8[%c0_85, %c0_86] : memref<1x128xf32, #tpu.memory_space<vmem>>, vector<1x128xf32>
    %92 = vector.broadcast %91 : vector<1x128xf32> to vector<253x128xf32>
    %93 = arith.addf %90, %92 : vector<253x128xf32>
    %cst_87 = arith.constant 5.000000e-01 : f32
    %94 = vector.broadcast %cst_87 : f32 to vector<253x128xf32>
    %95 = arith.mulf %94, %93 : vector<253x128xf32>
    %cst_88 = arith.constant 0.707106769 : f32
    %96 = vector.broadcast %cst_88 : f32 to vector<253x128xf32>
    %97 = arith.mulf %93, %96 : vector<253x128xf32>
    %98 = math.erf %97 : vector<253x128xf32>
    %cst_89 = arith.constant 1.000000e+00 : f32
    %99 = vector.broadcast %cst_89 : f32 to vector<253x128xf32>
    %100 = arith.addf %99, %98 : vector<253x128xf32>
    %101 = arith.mulf %95, %100 : vector<253x128xf32>
    %cst_90 = arith.constant 0xFF800000 : f32
    %102 = vector.broadcast %cst_90 : f32 to vector<2x128xf32>
    %c0_91 = arith.constant 0 : index
    %c0_92 = arith.constant 0 : index
    %103 = vector.load %arg17[%c0_91, %c0_92] : memref<264x128xf32, #tpu.memory_space<vmem>>, vector<2x128xf32>
    tpu.vector_store %arg17[%c0_91, %c0_92], %102 {strides = array<i32>} : memref<264x128xf32, #tpu.memory_space<vmem>>, vector<2x128xf32>,
    %c255_93 = arith.constant 255 : index
    %c0_94 = arith.constant 0 : index
    %104 = vector.load %arg17[%c255_93, %c0_94] : memref<264x128xf32, #tpu.memory_space<vmem>>, vector<2x128xf32>
    tpu.vector_store %arg17[%c255_93, %c0_94], %102 {strides = array<i32>} : memref<264x128xf32, #tpu.memory_space<vmem>>, vector<2x128xf32>,
    %c2_95 = arith.constant 2 : index
    %c0_96 = arith.constant 0 : index
    %105 = vector.load %arg17[%c2_95, %c0_96] : memref<264x128xf32, #tpu.memory_space<vmem>>, vector<253x128xf32>
    tpu.vector_store %arg17[%c2_95, %c0_96], %101 {strides = array<i32>} : memref<264x128xf32, #tpu.memory_space<vmem>>, vector<253x128xf32>,
    %c0_97 = arith.constant 0 : index
    %c0_98 = arith.constant 0 : index
    %106 = vector.load %arg17[%c0_97, %c0_98] : memref<264x128xf32, #tpu.memory_space<vmem>>, vector<253x128xf32>
    %c1_99 = arith.constant 1 : index
    %c0_100 = arith.constant 0 : index
    %107 = vector.load %arg17[%c1_99, %c0_100] : memref<264x128xf32, #tpu.memory_space<vmem>>, vector<253x128xf32>
    %108 = arith.maximumf %106, %107 : vector<253x128xf32>
    %c2_101 = arith.constant 2 : index
    %c0_102 = arith.constant 0 : index
    %109 = vector.load %arg17[%c2_101, %c0_102] : memref<264x128xf32, #tpu.memory_space<vmem>>, vector<253x128xf32>
    %110 = arith.maximumf %108, %109 : vector<253x128xf32>
    %c3_103 = arith.constant 3 : index
    %c0_104 = arith.constant 0 : index
    %111 = vector.load %arg17[%c3_103, %c0_104] : memref<264x128xf32, #tpu.memory_space<vmem>>, vector<253x128xf32>
    %112 = arith.maximumf %110, %111 : vector<253x128xf32>
    %c0_105 = arith.constant 0 : index
    %c0_106 = arith.constant 0 : index
    %113 = vector.load %arg19[%c0_105, %c0_106] : memref<256x128xf32, #tpu.memory_space<vmem>>, vector<253x128xf32>
    tpu.vector_store %arg19[%c0_105, %c0_106], %112 {strides = array<i32>} : memref<256x128xf32, #tpu.memory_space<vmem>>, vector<253x128xf32>,
    %c0_107 = arith.constant 0 : index
    %c0_108 = arith.constant 0 : index
    %114 = tpu.strided_load %arg19[%c0_107, %c0_108] {strides = array<i32: 4, 1>} : memref<256x128xf32, #tpu.memory_space<vmem>>, vector<64x128xf32>
    %c0_109 = arith.constant 0 : index
    %c0_110 = arith.constant 0 : index
    %c0_111 = arith.constant 0 : index
    %115 = vector.load %arg15[%c0_109, %c0_110, %c0_111] : memref<1x80x128xf32, #tpu.memory_space<vmem>>, vector<1x64x128xf32>
    %116 = vector.shape_cast %115 : vector<1x64x128xf32> to vector<64x128xf32>
    %117 = vector.shape_cast %114 : vector<64x128xf32> to vector<1x64x128xf32>
    tpu.vector_store %arg15[%c0_109, %c0_110, %c0_111], %117 {strides = array<i32>} : memref<1x80x128xf32, #tpu.memory_space<vmem>>, vector<1x64x128xf32>,
    %c0_112 = arith.constant 0 : index
    %c0_113 = arith.constant 0 : index
    %c0_114 = arith.constant 0 : index
    %118 = vector.load %arg2[%c0_112, %c0_113, %c0_114] : memref<1x61x400xbf16, #tpu.memory_space<vmem>>, vector<1x61x400xbf16>
    %119 = vector.shape_cast %118 : vector<1x61x400xbf16> to vector<61x400xbf16>
    %c0_115 = arith.constant 0 : index
    %c0_116 = arith.constant 0 : index
    %120 = vector.load %arg9[%c0_115, %c0_116] : memref<400x64xbf16, #tpu.memory_space<vmem>>, vector<400x64xbf16>
    %cst_117 = arith.constant dense<0.000000e+00> : vector<61x64xf32>
    %121 = tpu.matmul %119, %120, %cst_117 {dimension_numbers = #tpu.dot_dimension_numbers<[1], [0], [0], [1], [0, 0, 1, 1], [], []>} : vector<61x400xbf16>, vector<400x64xbf16>, vector<61x64xf32> -> vector<61x64xf32>
    %c0_118 = arith.constant 0 : index
    %c0_119 = arith.constant 0 : index
    %122 = vector.load %arg10[%c0_118, %c0_119] : memref<1x64xf32, #tpu.memory_space<vmem>>, vector<1x64xf32>
    %123 = vector.broadcast %122 : vector<1x64xf32> to vector<61x64xf32>
    %124 = arith.addf %121, %123 : vector<61x64xf32>
    %cst_120 = arith.constant 5.000000e-01 : f32
    %125 = vector.broadcast %cst_120 : f32 to vector<61x64xf32>
    %126 = arith.mulf %125, %124 : vector<61x64xf32>
    %cst_121 = arith.constant 0.707106769 : f32
    %127 = vector.broadcast %cst_121 : f32 to vector<61x64xf32>
    %128 = arith.mulf %124, %127 : vector<61x64xf32>
    %129 = math.erf %128 : vector<61x64xf32>
    %cst_122 = arith.constant 1.000000e+00 : f32
    %130 = vector.broadcast %cst_122 : f32 to vector<61x64xf32>
    %131 = arith.addf %130, %129 : vector<61x64xf32>
    %132 = arith.mulf %126, %131 : vector<61x64xf32>
    %cst_123 = arith.constant 0xFF800000 : f32
    %133 = vector.broadcast %cst_123 : f32 to vector<2x64xf32>
    %c0_124 = arith.constant 0 : index
    %c0_125 = arith.constant 0 : index
    %134 = vector.load %arg16[%c0_124, %c0_125] : memref<512x64xf32, #tpu.memory_space<vmem>>, vector<2x64xf32>
    tpu.vector_store %arg16[%c0_124, %c0_125], %133 {strides = array<i32>} : memref<512x64xf32, #tpu.memory_space<vmem>>, vector<2x64xf32>,
    %c63 = arith.constant 63 : index
    %c0_126 = arith.constant 0 : index
    %135 = vector.load %arg16[%c63, %c0_126] : memref<512x64xf32, #tpu.memory_space<vmem>>, vector<2x64xf32>
    tpu.vector_store %arg16[%c63, %c0_126], %133 {strides = array<i32>} : memref<512x64xf32, #tpu.memory_space<vmem>>, vector<2x64xf32>,
    %c2_127 = arith.constant 2 : index
    %c0_128 = arith.constant 0 : index
    %136 = vector.load %arg16[%c2_127, %c0_128] : memref<512x64xf32, #tpu.memory_space<vmem>>, vector<61x64xf32>
    tpu.vector_store %arg16[%c2_127, %c0_128], %132 {strides = array<i32>} : memref<512x64xf32, #tpu.memory_space<vmem>>, vector<61x64xf32>,
    %c0_129 = arith.constant 0 : index
    %c0_130 = arith.constant 0 : index
    %137 = vector.load %arg16[%c0_129, %c0_130] : memref<512x64xf32, #tpu.memory_space<vmem>>, vector<61x64xf32>
    %c1_131 = arith.constant 1 : index
    %c0_132 = arith.constant 0 : index
    %138 = vector.load %arg16[%c1_131, %c0_132] : memref<512x64xf32, #tpu.memory_space<vmem>>, vector<61x64xf32>
    %139 = arith.maximumf %137, %138 : vector<61x64xf32>
    %c2_133 = arith.constant 2 : index
    %c0_134 = arith.constant 0 : index
    %140 = vector.load %arg16[%c2_133, %c0_134] : memref<512x64xf32, #tpu.memory_space<vmem>>, vector<61x64xf32>
    %141 = arith.maximumf %139, %140 : vector<61x64xf32>
    %c3_135 = arith.constant 3 : index
    %c0_136 = arith.constant 0 : index
    %142 = vector.load %arg16[%c3_135, %c0_136] : memref<512x64xf32, #tpu.memory_space<vmem>>, vector<61x64xf32>
    %143 = arith.maximumf %141, %142 : vector<61x64xf32>
    %c0_137 = arith.constant 0 : index
    %c0_138 = arith.constant 0 : index
    %144 = vector.load %arg18[%c0_137, %c0_138] : memref<504x64xf32, #tpu.memory_space<vmem>>, vector<61x64xf32>
    tpu.vector_store %arg18[%c0_137, %c0_138], %143 {strides = array<i32>} : memref<504x64xf32, #tpu.memory_space<vmem>>, vector<61x64xf32>,
    %c0_139 = arith.constant 0 : index
    %c0_140 = arith.constant 0 : index
    %145 = tpu.strided_load %arg18[%c0_139, %c0_140] {strides = array<i32: 2, 1>} : memref<504x64xf32, #tpu.memory_space<vmem>>, vector<31x64xf32>
    %146 = arith.truncf %145 : vector<31x64xf32> to vector<31x64xbf16>
    %cst_141 = arith.constant 0.000000e+00 : bf16
    %147 = vector.broadcast %cst_141 : bf16 to vector<3x128xbf16>
    %c0_142 = arith.constant 0 : index
    %c0_143 = arith.constant 0 : index
    %148 = vector.load %arg20[%c0_142, %c0_143] : memref<264x128xbf16, #tpu.memory_space<vmem>>, vector<3x128xbf16>
    tpu.vector_store %arg20[%c0_142, %c0_143], %147 {strides = array<i32>} : memref<264x128xbf16, #tpu.memory_space<vmem>>, vector<3x128xbf16>,
    %cst_144 = arith.constant 0.000000e+00 : bf16
    %149 = vector.broadcast %cst_144 : bf16 to vector<4x128xbf16>
    %c33 = arith.constant 33 : index
    %c0_145 = arith.constant 0 : index
    %150 = vector.load %arg20[%c33, %c0_145] : memref<264x128xbf16, #tpu.memory_space<vmem>>, vector<4x128xbf16>
    tpu.vector_store %arg20[%c33, %c0_145], %149 {strides = array<i32>} : memref<264x128xbf16, #tpu.memory_space<vmem>>, vector<4x128xbf16>,
    %c3_146 = arith.constant 3 : index
    %c0_147 = arith.constant 0 : index
    %151 = vector.load %arg20[%c3_146, %c0_147] : memref<264x128xbf16, #tpu.memory_space<vmem>>, vector<31x64xbf16>
    tpu.vector_store %arg20[%c3_146, %c0_147], %146 {strides = array<i32>} : memref<264x128xbf16, #tpu.memory_space<vmem>>, vector<31x64xbf16>,
    %c2_148 = arith.constant 2 : index
    %c64_149 = arith.constant 64 : index
    %152 = vector.load %arg20[%c2_148, %c64_149] : memref<264x128xbf16, #tpu.memory_space<vmem>>, vector<31x64xbf16>
    tpu.vector_store %arg20[%c2_148, %c64_149], %146 {strides = array<i32>} : memref<264x128xbf16, #tpu.memory_space<vmem>>, vector<31x64xbf16>,
    %c0_150 = arith.constant 0 : index
    %c0_151 = arith.constant 0 : index
    %153 = vector.load %arg20[%c0_150, %c0_151] : memref<264x128xbf16, #tpu.memory_space<vmem>>, vector<31x128xbf16>
    %c0_152 = arith.constant 0 : index
    %c0_153 = arith.constant 0 : index
    %154 = vector.load %arg11[%c0_152, %c0_153] : memref<512x128xbf16, #tpu.memory_space<vmem>>, vector<128x128xbf16>
    %cst_154 = arith.constant dense<0.000000e+00> : vector<31x128xf32>
    %155 = tpu.matmul %153, %154, %cst_154 {dimension_numbers = #tpu.dot_dimension_numbers<[1], [0], [0], [1], [0, 0, 1, 1], [], []>} : vector<31x128xbf16>, vector<128x128xbf16>, vector<31x128xf32> -> vector<31x128xf32>
    %c2_155 = arith.constant 2 : index
    %c0_156 = arith.constant 0 : index
    %156 = vector.load %arg20[%c2_155, %c0_156] : memref<264x128xbf16, #tpu.memory_space<vmem>>, vector<31x128xbf16>
    %c128_157 = arith.constant 128 : index
    %c0_158 = arith.constant 0 : index
    %157 = vector.load %arg11[%c128_157, %c0_158] : memref<512x128xbf16, #tpu.memory_space<vmem>>, vector<128x128xbf16>
    %cst_159 = arith.constant dense<0.000000e+00> : vector<31x128xf32>
    %158 = tpu.matmul %156, %157, %cst_159 {dimension_numbers = #tpu.dot_dimension_numbers<[1], [0], [0], [1], [0, 0, 1, 1], [], []>} : vector<31x128xbf16>, vector<128x128xbf16>, vector<31x128xf32> -> vector<31x128xf32>
    %159 = arith.addf %155, %158 : vector<31x128xf32>
    %c4_160 = arith.constant 4 : index
    %c0_161 = arith.constant 0 : index
    %160 = vector.load %arg20[%c4_160, %c0_161] : memref<264x128xbf16, #tpu.memory_space<vmem>>, vector<31x128xbf16>
    %c256_162 = arith.constant 256 : index
    %c0_163 = arith.constant 0 : index
    %161 = vector.load %arg11[%c256_162, %c0_163] : memref<512x128xbf16, #tpu.memory_space<vmem>>, vector<128x128xbf16>
    %cst_164 = arith.constant dense<0.000000e+00> : vector<31x128xf32>
    %162 = tpu.matmul %160, %161, %cst_164 {dimension_numbers = #tpu.dot_dimension_numbers<[1], [0], [0], [1], [0, 0, 1, 1], [], []>} : vector<31x128xbf16>, vector<128x128xbf16>, vector<31x128xf32> -> vector<31x128xf32>
    %163 = arith.addf %159, %162 : vector<31x128xf32>
    %c6_165 = arith.constant 6 : index
    %c0_166 = arith.constant 0 : index
    %164 = vector.load %arg20[%c6_165, %c0_166] : memref<264x128xbf16, #tpu.memory_space<vmem>>, vector<31x128xbf16>
    %c384_167 = arith.constant 384 : index
    %c0_168 = arith.constant 0 : index
    %165 = vector.load %arg11[%c384_167, %c0_168] : memref<512x128xbf16, #tpu.memory_space<vmem>>, vector<128x128xbf16>
    %cst_169 = arith.constant dense<0.000000e+00> : vector<31x128xf32>
    %166 = tpu.matmul %164, %165, %cst_169 {dimension_numbers = #tpu.dot_dimension_numbers<[1], [0], [0], [1], [0, 0, 1, 1], [], []>} : vector<31x128xbf16>, vector<128x128xbf16>, vector<31x128xf32> -> vector<31x128xf32>
    %167 = arith.addf %163, %166 : vector<31x128xf32>
    %c0_170 = arith.constant 0 : index
    %c0_171 = arith.constant 0 : index
    %168 = vector.load %arg12[%c0_170, %c0_171] : memref<1x128xf32, #tpu.memory_space<vmem>>, vector<1x128xf32>
    %169 = vector.broadcast %168 : vector<1x128xf32> to vector<31x128xf32>
    %170 = arith.addf %167, %169 : vector<31x128xf32>
    %cst_172 = arith.constant 5.000000e-01 : f32
    %171 = vector.broadcast %cst_172 : f32 to vector<31x128xf32>
    %172 = arith.mulf %171, %170 : vector<31x128xf32>
    %cst_173 = arith.constant 0.707106769 : f32
    %173 = vector.broadcast %cst_173 : f32 to vector<31x128xf32>
    %174 = arith.mulf %170, %173 : vector<31x128xf32>
    %175 = math.erf %174 : vector<31x128xf32>
    %cst_174 = arith.constant 1.000000e+00 : f32
    %176 = vector.broadcast %cst_174 : f32 to vector<31x128xf32>
    %177 = arith.addf %176, %175 : vector<31x128xf32>
    %178 = arith.mulf %172, %177 : vector<31x128xf32>
    %179 = arith.truncf %178 : vector<31x128xf32> to vector<31x128xbf16>
    %cst_175 = arith.constant 0.000000e+00 : bf16
    %180 = vector.broadcast %cst_175 : bf16 to vector<3x256xbf16>
    %c0_176 = arith.constant 0 : index
    %c0_177 = arith.constant 0 : index
    %181 = vector.load %arg21[%c0_176, %c0_177] : memref<264x256xbf16, #tpu.memory_space<vmem>>, vector<3x256xbf16>
    tpu.vector_store %arg21[%c0_176, %c0_177], %180 {strides = array<i32>} : memref<264x256xbf16, #tpu.memory_space<vmem>>, vector<3x256xbf16>,
    %cst_178 = arith.constant 0.000000e+00 : bf16
    %182 = vector.broadcast %cst_178 : bf16 to vector<4x256xbf16>
    %c33_179 = arith.constant 33 : index
    %c0_180 = arith.constant 0 : index
    %183 = vector.load %arg21[%c33_179, %c0_180] : memref<264x256xbf16, #tpu.memory_space<vmem>>, vector<4x256xbf16>
    tpu.vector_store %arg21[%c33_179, %c0_180], %182 {strides = array<i32>} : memref<264x256xbf16, #tpu.memory_space<vmem>>, vector<4x256xbf16>,
    %c3_181 = arith.constant 3 : index
    %c0_182 = arith.constant 0 : index
    %184 = vector.load %arg21[%c3_181, %c0_182] : memref<264x256xbf16, #tpu.memory_space<vmem>>, vector<31x128xbf16>
    tpu.vector_store %arg21[%c3_181, %c0_182], %179 {strides = array<i32>} : memref<264x256xbf16, #tpu.memory_space<vmem>>, vector<31x128xbf16>,
    %c2_183 = arith.constant 2 : index
    %c128_184 = arith.constant 128 : index
    %185 = vector.load %arg21[%c2_183, %c128_184] : memref<264x256xbf16, #tpu.memory_space<vmem>>, vector<31x128xbf16>
    tpu.vector_store %arg21[%c2_183, %c128_184], %179 {strides = array<i32>} : memref<264x256xbf16, #tpu.memory_space<vmem>>, vector<31x128xbf16>,
    %c0_185 = arith.constant 0 : index
    %c0_186 = arith.constant 0 : index
    %186 = vector.load %arg21[%c0_185, %c0_186] : memref<264x256xbf16, #tpu.memory_space<vmem>>, vector<31x256xbf16>
    %c0_187 = arith.constant 0 : index
    %c0_188 = arith.constant 0 : index
    %187 = vector.load %arg13[%c0_187, %c0_188] : memref<1024x128xbf16, #tpu.memory_space<vmem>>, vector<256x128xbf16>
    %cst_189 = arith.constant dense<0.000000e+00> : vector<31x128xf32>
    %188 = tpu.matmul %186, %187, %cst_189 {dimension_numbers = #tpu.dot_dimension_numbers<[1], [0], [0], [1], [0, 0, 1, 1], [], []>} : vector<31x256xbf16>, vector<256x128xbf16>, vector<31x128xf32> -> vector<31x128xf32>
    %c2_190 = arith.constant 2 : index
    %c0_191 = arith.constant 0 : index
    %189 = vector.load %arg21[%c2_190, %c0_191] : memref<264x256xbf16, #tpu.memory_space<vmem>>, vector<31x256xbf16>
    %c256_192 = arith.constant 256 : index
    %c0_193 = arith.constant 0 : index
    %190 = vector.load %arg13[%c256_192, %c0_193] : memref<1024x128xbf16, #tpu.memory_space<vmem>>, vector<256x128xbf16>
    %cst_194 = arith.constant dense<0.000000e+00> : vector<31x128xf32>
    %191 = tpu.matmul %189, %190, %cst_194 {dimension_numbers = #tpu.dot_dimension_numbers<[1], [0], [0], [1], [0, 0, 1, 1], [], []>} : vector<31x256xbf16>, vector<256x128xbf16>, vector<31x128xf32> -> vector<31x128xf32>
    %192 = arith.addf %188, %191 : vector<31x128xf32>
    %c4_195 = arith.constant 4 : index
    %c0_196 = arith.constant 0 : index
    %193 = vector.load %arg21[%c4_195, %c0_196] : memref<264x256xbf16, #tpu.memory_space<vmem>>, vector<31x256xbf16>
    %c512_197 = arith.constant 512 : index
    %c0_198 = arith.constant 0 : index
    %194 = vector.load %arg13[%c512_197, %c0_198] : memref<1024x128xbf16, #tpu.memory_space<vmem>>, vector<256x128xbf16>
    %cst_199 = arith.constant dense<0.000000e+00> : vector<31x128xf32>
    %195 = tpu.matmul %193, %194, %cst_199 {dimension_numbers = #tpu.dot_dimension_numbers<[1], [0], [0], [1], [0, 0, 1, 1], [], []>} : vector<31x256xbf16>, vector<256x128xbf16>, vector<31x128xf32> -> vector<31x128xf32>
    %196 = arith.addf %192, %195 : vector<31x128xf32>
    %c6_200 = arith.constant 6 : index
    %c0_201 = arith.constant 0 : index
    %197 = vector.load %arg21[%c6_200, %c0_201] : memref<264x256xbf16, #tpu.memory_space<vmem>>, vector<31x256xbf16>
    %c768_202 = arith.constant 768 : index
    %c0_203 = arith.constant 0 : index
    %198 = vector.load %arg13[%c768_202, %c0_203] : memref<1024x128xbf16, #tpu.memory_space<vmem>>, vector<256x128xbf16>
    %cst_204 = arith.constant dense<0.000000e+00> : vector<31x128xf32>
    %199 = tpu.matmul %197, %198, %cst_204 {dimension_numbers = #tpu.dot_dimension_numbers<[1], [0], [0], [1], [0, 0, 1, 1], [], []>} : vector<31x256xbf16>, vector<256x128xbf16>, vector<31x128xf32> -> vector<31x128xf32>
    %200 = arith.addf %196, %199 : vector<31x128xf32>
    %c0_205 = arith.constant 0 : index
    %c0_206 = arith.constant 0 : index
    %201 = vector.load %arg14[%c0_205, %c0_206] : memref<1x128xf32, #tpu.memory_space<vmem>>, vector<1x128xf32>
    %202 = vector.broadcast %201 : vector<1x128xf32> to vector<31x128xf32>
    %203 = arith.addf %200, %202 : vector<31x128xf32>
    %cst_207 = arith.constant 5.000000e-01 : f32
    %204 = vector.broadcast %cst_207 : f32 to vector<31x128xf32>
    %205 = arith.mulf %204, %203 : vector<31x128xf32>
    %cst_208 = arith.constant 0.707106769 : f32
    %206 = vector.broadcast %cst_208 : f32 to vector<31x128xf32>
    %207 = arith.mulf %203, %206 : vector<31x128xf32>
    %208 = math.erf %207 : vector<31x128xf32>
    %cst_209 = arith.constant 1.000000e+00 : f32
    %209 = vector.broadcast %cst_209 : f32 to vector<31x128xf32>
    %210 = arith.addf %209, %208 : vector<31x128xf32>
    %211 = arith.mulf %205, %210 : vector<31x128xf32>
    %cst_210 = arith.constant 0xFF800000 : f32
    %212 = vector.broadcast %cst_210 : f32 to vector<1x128xf32>
    %c0_211 = arith.constant 0 : index
    %c0_212 = arith.constant 0 : index
    %213 = vector.load %arg17[%c0_211, %c0_212] : memref<264x128xf32, #tpu.memory_space<vmem>>, vector<1x128xf32>
    tpu.vector_store %arg17[%c0_211, %c0_212], %212 {strides = array<i32>} : memref<264x128xf32, #tpu.memory_space<vmem>>, vector<1x128xf32>,
    %c32 = arith.constant 32 : index
    %c0_213 = arith.constant 0 : index
    %214 = vector.load %arg17[%c32, %c0_213] : memref<264x128xf32, #tpu.memory_space<vmem>>, vector<1x128xf32>
    tpu.vector_store %arg17[%c32, %c0_213], %212 {strides = array<i32>} : memref<264x128xf32, #tpu.memory_space<vmem>>, vector<1x128xf32>,
    %c1_214 = arith.constant 1 : index
    %c0_215 = arith.constant 0 : index
    %215 = vector.load %arg17[%c1_214, %c0_215] : memref<264x128xf32, #tpu.memory_space<vmem>>, vector<31x128xf32>
    tpu.vector_store %arg17[%c1_214, %c0_215], %211 {strides = array<i32>} : memref<264x128xf32, #tpu.memory_space<vmem>>, vector<31x128xf32>,
    %c0_216 = arith.constant 0 : index
    %c0_217 = arith.constant 0 : index
    %216 = vector.load %arg17[%c0_216, %c0_217] : memref<264x128xf32, #tpu.memory_space<vmem>>, vector<31x128xf32>
    %c1_218 = arith.constant 1 : index
    %c0_219 = arith.constant 0 : index
    %217 = vector.load %arg17[%c1_218, %c0_219] : memref<264x128xf32, #tpu.memory_space<vmem>>, vector<31x128xf32>
    %218 = arith.maximumf %216, %217 : vector<31x128xf32>
    %c0_220 = arith.constant 0 : index
    %c0_221 = arith.constant 0 : index
    %219 = vector.load %arg19[%c0_220, %c0_221] : memref<256x128xf32, #tpu.memory_space<vmem>>, vector<31x128xf32>
    tpu.vector_store %arg19[%c0_220, %c0_221], %218 {strides = array<i32>} : memref<256x128xf32, #tpu.memory_space<vmem>>, vector<31x128xf32>,
    %c0_222 = arith.constant 0 : index
    %c0_223 = arith.constant 0 : index
    %220 = tpu.strided_load %arg19[%c0_222, %c0_223] {strides = array<i32: 2, 1>} : memref<256x128xf32, #tpu.memory_space<vmem>>, vector<16x128xf32>
    %c0_224 = arith.constant 0 : index
    %c64_225 = arith.constant 64 : index
    %c0_226 = arith.constant 0 : index
    %221 = vector.load %arg15[%c0_224, %c64_225, %c0_226] : memref<1x80x128xf32, #tpu.memory_space<vmem>>, vector<1x16x128xf32>
    %222 = vector.shape_cast %221 : vector<1x16x128xf32> to vector<16x128xf32>
    %223 = vector.shape_cast %220 : vector<16x128xf32> to vector<1x16x128xf32>
    tpu.vector_store %arg15[%c0_224, %c64_225, %c0_226], %223 {strides = array<i32>} : memref<1x80x128xf32, #tpu.memory_space<vmem>>, vector<1x16x128xf32>,
    return
  }
  func.func @transform_0(%arg0: i32) -> (i32, i32, i32) {
    %c0_i32 = arith.constant 0 : i32
    %c0_i32_0 = arith.constant 0 : i32
    %c0_i32_1 = arith.constant 0 : i32
    return %arg0, %c0_i32, %c0_i32_0 : i32, i32, i32
  }
  func.func @transform_1(%arg0: i32) -> (i32, i32, i32) {
    %c0_i32 = arith.constant 0 : i32
    %c0_i32_0 = arith.constant 0 : i32
    %c0_i32_1 = arith.constant 0 : i32
    return %arg0, %c0_i32, %c0_i32_0 : i32, i32, i32
  }
  func.func @transform_2(%arg0: i32) -> (i32, i32) {
    %c0_i32 = arith.constant 0 : i32
    %c0_i32_0 = arith.constant 0 : i32
    %c0_i32_1 = arith.constant 0 : i32
    return %c0_i32, %c0_i32_0 : i32, i32
  }
  func.func @transform_3(%arg0: i32) -> (i32, i32) {
    %c0_i32 = arith.constant 0 : i32
    %c0_i32_0 = arith.constant 0 : i32
    %c0_i32_1 = arith.constant 0 : i32
    return %c0_i32, %c0_i32_0 : i32, i32
  }
  func.func @transform_4(%arg0: i32) -> (i32, i32) {
    %c0_i32 = arith.constant 0 : i32
    %c0_i32_0 = arith.constant 0 : i32
    %c0_i32_1 = arith.constant 0 : i32
    return %c0_i32, %c0_i32_0 : i32, i32
  }
  func.func @transform_5(%arg0: i32) -> (i32, i32) {
    %c0_i32 = arith.constant 0 : i32
    %c0_i32_0 = arith.constant 0 : i32
    %c0_i32_1 = arith.constant 0 : i32
    return %c0_i32, %c0_i32_0 : i32, i32
  }
  func.func @transform_6(%arg0: i32) -> (i32, i32) {
    %c0_i32 = arith.constant 0 : i32
    %c0_i32_0 = arith.constant 0 : i32
    %c0_i32_1 = arith.constant 0 : i32
    return %c0_i32, %c0_i32_0 : i32, i32
  }
  func.func @transform_7(%arg0: i32) -> (i32, i32) {
    %c0_i32 = arith.constant 0 : i32
    %c0_i32_0 = arith.constant 0 : i32
    %c0_i32_1 = arith.constant 0 : i32
    return %c0_i32, %c0_i32_0 : i32, i32
  }
  func.func @transform_8(%arg0: i32) -> (i32, i32) {
    %c0_i32 = arith.constant 0 : i32
    %c0_i32_0 = arith.constant 0 : i32
    %c0_i32_1 = arith.constant 0 : i32
    return %c0_i32, %c0_i32_0 : i32, i32
  }
  func.func @transform_9(%arg0: i32) -> (i32, i32) {
    %c0_i32 = arith.constant 0 : i32
    %c0_i32_0 = arith.constant 0 : i32
    %c0_i32_1 = arith.constant 0 : i32
    return %c0_i32, %c0_i32_0 : i32, i32
  }
  func.func @transform_10(%arg0: i32) -> (i32, i32) {
    %c0_i32 = arith.constant 0 : i32
    %c0_i32_0 = arith.constant 0 : i32
    %c0_i32_1 = arith.constant 0 : i32
    return %c0_i32, %c0_i32_0 : i32, i32
  }
  func.func @transform_11(%arg0: i32) -> (i32, i32) {
    %c0_i32 = arith.constant 0 : i32
    %c0_i32_0 = arith.constant 0 : i32
    %c0_i32_1 = arith.constant 0 : i32
    return %c0_i32, %c0_i32_0 : i32, i32
  }
  func.func @transform_12(%arg0: i32) -> (i32, i32) {
    %c0_i32 = arith.constant 0 : i32
    %c0_i32_0 = arith.constant 0 : i32
    %c0_i32_1 = arith.constant 0 : i32
    return %c0_i32, %c0_i32_0 : i32, i32
  }
  func.func @transform_13(%arg0: i32) -> (i32, i32) {
    %c0_i32 = arith.constant 0 : i32
    %c0_i32_0 = arith.constant 0 : i32
    %c0_i32_1 = arith.constant 0 : i32
    return %c0_i32, %c0_i32_0 : i32, i32
  }
  func.func @transform_14(%arg0: i32) -> (i32, i32, i32) {
    %c0_i32 = arith.constant 0 : i32
    %c0_i32_0 = arith.constant 0 : i32
    %c0_i32_1 = arith.constant 0 : i32
    return %arg0, %c0_i32, %c0_i32_0 : i32, i32, i32
  }
}

</mosaic_0001>

<bundles_post_ra>
// kernel: mrcnn_forward.1
= control target key start
LH: loop header
LB: loop body
LE: loop exit
PB: predicated region body
PF: predicated region fallthrough
CT: control target
= control target key end

     0   :  { %s17088_s0 = inlined_call_operand.vmem [shape: bf16[2,500,50], index: 0, kind: input, shape index: {}]   ;;  %s17089_s1 = inlined_call_operand.vmem [shape: bf16[2,61,400], index: 1, kind: input, shape index: {}]   ;;  %s17090_s2 = inlined_call_operand.vmem [shape: bf16[50,64], index: 2, kind: input, shape index: {}]   ;;  %s17091_s3 = inlined_call_operand.vmem [shape: f32[1,64], index: 3, kind: input, shape index: {}]   ;;  %s17092_s4 = inlined_call_operand.vmem [shape: bf16[512,128], index: 4, kind: input, shape index: {}]   ;;  %s17093_s5 = inlined_call_operand.vmem [shape: f32[1,128], index: 5, kind: input, shape index: {}]   ;;  %s17094_s6 = inlined_call_operand.vmem [shape: bf16[1024,128], index: 6, kind: input, shape index: {}]   ;;  %s17095_s7 = inlined_call_operand.vmem [shape: f32[1,128], index: 7, kind: input, shape index: {}]   ;;  %s17096_s8 = inlined_call_operand.vmem [shape: bf16[400,64], index: 8, kind: input, shape index: {}]   ;;  %s17097_s9 = inlined_call_operand.vmem [shape: f32[1,64], index: 9, kind: input, shape index: {}]   ;;  %s17098_s10 = inlined_call_operand.vmem [shape: bf16[512,128], index: 10, kind: input, shape index: {}]   ;;  %s17099_s11 = inlined_call_operand.vmem [shape: f32[1,128], index: 11, kind: input, shape index: {}]   ;;  %s17100_s12 = inlined_call_operand.vmem [shape: bf16[1024,128], index: 12, kind: input, shape index: {}]   ;;  %s17101_s13 = inlined_call_operand.vmem [shape: f32[1,128], index: 13, kind: input, shape index: {}]   ;;  %s17102_s14 = inlined_call_operand.hbm [shape: f32[2,80,128], index: 14, kind: output, shape index: {}]  }
   0x1   :  { %17134 = sst [smem:[#allocation41_spill]] %s17088_s0 }
   0x2   :  { %17135 = sst [smem:[#allocation42_spill]] %s17090_s2 }
   0x3   :  { %17136 = sst [smem:[#allocation43_spill]] %s17091_s3 }
   0x4   :  { %19 = vsyncpa [#allocation9], 0 }
   0x5   :  { %21 = vsyncpa [#allocation9 + $0x1], 0  ;;  %s12819_s29 = smov 0   ;;  %s12821_s30 = smov 0  }
   0x6   :  { %s12823_s15 = smov 0   ;;  %s12825_s16 = smov 0  }
   0x7 LB: > { %17137 = sst [smem:[#allocation11_spill]] %s12732_s15  ;;  %s12840_s17 = sadd.s32 4294967295, %s12736_s16   ;;  %s12736_s16 = sphi %s12825_s16, %s17297_s16   ;;  %s12732_s15 = sphi %s12823_s15, %s17294_s15   ;;  %s12728_s30 = sphi %s12821_s30, %s17296_s30   ;;  %s12724_s29 = sphi %s12819_s29, %s17295_s29  }
   0x8   : > { %s10232_s18 = sadd.s32 4294967294, %s12736_s16   ;;  %s12844_s19 = sadd.s32 1, %s12736_s16  }
   0x9   : > { %s338_s20 = sadd.s32 1, %s12732_s15  ;;  %s335_s21 = ssub.s32 %s12736_s16, %s12844_s19 }
   0xa   : > { %p348_p0 = scmp.ne.s32.totalorder %s12732_s15, %s12728_s30  ;;  %p336_p1 = scmp.eq.s32.totalorder %s335_s21, 0 }
   0xb   : > { %p349_p2 = scmp.eq.s32.totalorder %s12840_s17, 1  ;;  %p354_p3 = scmp.ne.s32.totalorder %s12728_s30, %s12724_s29 }
   0xc   : > { %p355_p4 = scmp.eq.s32.totalorder %s10232_s18, 1  ;;  %p10235_p7 = scmp.ge.s32.totalorder %s12736_s16, 1 }
   0xd   : > { %s12855_s22 = scalar_select %p336_p1, %s12732_s15, %s338_s20  }
   0xe   : > { %p12857_p5 = por %p349_p2, %p348_p0  ;;  %p12861_p6 = por %p355_p4, %p354_p3 }
   0xf   : > { %17138 = sst [smem:[#allocation12_spill]] %s12855_s22  ;;  %p425_p8 = scmp.lt.s32.totalorder %s12736_s16, 3 }
  0x11   : > { %p426_p9 = pnand %p10235_p7, %p425_p8 }
  0x13   : > { %429 = sbr.rel (%p426_p9) target bundleno = 2310 (0x906), region = 76 }
  0x18   : > { %s17141_s2 = sld [smem:[#allocation42_spill]]  ;;  %vm17111_vm0 = vcmask 1040384   ;;  %p476_p10 = scmp.lt.s32.totalorder %s12840_s17, 1  ;;  %vm743_vm1 = vcmask 408576   ;;  %vm1447_vm2 = vcmask 519168   ;;  %v17104_v30 = vmov -inf  }
  0x19   : > { %s17142_s0 = sld [smem:[#allocation41_spill]]  ;;  %1448 = vst.msk [vmem:[#allocation2] sm:$0xf] %vm1447_vm2, %v17104_v30  ;;  %1449 = vst.msk [vmem:[#allocation2 + $0x1f8] sm:$0xf] %vm1447_vm2, %v17104_v30  ;;  %vm1450_vm3 = vcmask 523264  }
  0x1a   : > { %s12880_s21 = scalar_select %p476_p10, %s12840_s17, 1  ;;  %7630 = vst [vmem:[#allocation3] sm:$0x3] %v17104_v30  ;;  %7631 = vst [vmem:[#allocation3 + $0xff] sm:$0x3] %v17104_v30  ;;  %vm8425_vm4 = vcmask 517120  }
  0x1b   : > { %s17143_s3 = sld [smem:[#allocation43_spill]]  ;;  %vm2852_vm5 = vsmask.f32 1280  ;;  %vm2853_vm6 = vsmask.f32 5392  ;;  %s17108_s25 = smov 64  }
  0x1c   : > { %s11951_s27 = smul.u32 252, %s12880_s21  ;;  %vm13297_vm7 = vmor %vm2852_vm5, %vm2853_vm6  ;;  %s17152_s20 = smov 64   ;;  %vm2814_vm8 = vcmask 519170   ;;  %vm17110_vm9 = vcmask 1043969   ;;  %vm3270_vm10 = vsmask.f32 7942 }
  0x1d   : > { %vm2685_vm11 = vcmask 1041408   ;;  %vm2686_vm12 = vcmask 1045508   ;;  %vm17123_vm14 = vcmask 1043968   ;;  %vm17112_vm15 = vcmask 520192   ;;  %s10760_s26 = sshll.u32 %s12880_s21, 7 }
  0x1e   : > { %v11997_v0 = vld [vmem:[%s17141_s2 + $0x18] ss:$0 sps:$4 sm:$0x11]   ;;  %v11998_v1 = vld [vmem:[%s17141_s2 + $0x10] sm:$0xff]   ;;  %v11999_v3 = vld [vmem:[%s17141_s2 + $0x8] sm:$0xff]   ;;  %s15881_s18 = scalar_lea.vmem %s17089_s1, %s10760_s26 }
  0x1f   : > { %11949 = vmatprep.subr.msk.bf16.mxu0 %vm17111_vm0, %v11997_v0  ;;  %v842_v2 = vsel %vm17111_vm0, %v11997_v0, 0  ;;  %v12000_v4 = vld [vmem:[%s17141_s2] sm:$0xff]   ;;  %s12889_s15 = scalar_lea.vmem %s17142_s0, %s11951_s27  ;;  %vm13916_vm13 = vmor %vm2685_vm11, %vm2686_vm12  ;;  %vm8510_vm6 = vsmask.f32 2306 }
  0x20   : > { %11606 = vmatpush3.bf16.msra.mxu0 %v842_v2  ;;  %v12001_v5 = vld [vmem:[%s12889_s15] sm:$0xff]   ;;  %v12002_v6 = vld [vmem:[%s12889_s15 + $0x8] sm:$0xff]   ;;  %v12003_v7 = vld [vmem:[%s12889_s15 + $0x10] sm:$0xff]  }
  0x21   : > { %11607 = vmatprep.subr.bf16.mxu0 %v11998_v1  ;;  %11613 = vmatprep.mubr.msk.bf16.mxu0 %vm743_vm1, %v12001_v5  ;;  %v12004_v8 = vld [vmem:[%s12889_s15 + $0x18] sm:$0xff]   ;;  %v12005_v9 = vld [vmem:[%s12889_s15 + $0x20] sm:$0xff]   ;;  %v12006_v10 = vld [vmem:[%s12889_s15 + $0x28] sm:$0xff]  }
  0x22   : > { %v12007_v11 = vld [vmem:[%s12889_s15 + $0x30] sm:$0xff]   ;;  %v12008_v12 = vld [vmem:[%s12889_s15 + $0x38] sm:$0xff]   ;;  %v12009_v13 = vld [vmem:[%s12889_s15 + $0x40] sm:$0xff]  }
  0x23   : > { %v12010_v14 = vld [vmem:[%s12889_s15 + $0x48] sm:$0xff]   ;;  %v12011_v15 = vld [vmem:[%s12889_s15 + $0x50] sm:$0xff]   ;;  %v12012_v16 = vld [vmem:[%s12889_s15 + $0x58] sm:$0xff]  }
  0x24   : > { %11608 = vmatpush3.bf16.msra.mxu0 %v11998_v1  ;;  %v12013_v17 = vld [vmem:[%s12889_s15 + $0x60] sm:$0xff]   ;;  %v12014_v18 = vld [vmem:[%s12889_s15 + $0x68] sm:$0xff]   ;;  %v12015_v19 = vld [vmem:[%s12889_s15 + $0x70] sm:$0xff]  }
  0x25   : > { %11609 = vmatprep.subr.bf16.mxu0 %v11999_v3  ;;  %v12016_v20 = vld [vmem:[%s12889_s15 + $0x78] sm:$0xff]   ;;  %v12017_v21 = vld [vmem:[%s12889_s15 + $0x80] sm:$0xff]   ;;  %v12018_v22 = vld [vmem:[%s12889_s15 + $0x88] sm:$0xff]  }
  0x26   : > { %v12019_v23 = vld [vmem:[%s12889_s15 + $0x90] sm:$0xff]   ;;  %v12020_v24 = vld [vmem:[%s12889_s15 + $0x98] sm:$0xff]   ;;  %v12021_v25 = vld [vmem:[%s12889_s15 + $0xa0] sm:$0xff]  }
  0x27   : > { %v12022_v26 = vld [vmem:[%s12889_s15 + $0xa8] sm:$0xff]   ;;  %v12023_v27 = vld [vmem:[%s12889_s15 + $0xb0] sm:$0xff]   ;;  %v12024_v28 = vld [vmem:[%s12889_s15 + $0xb8] sm:$0xff]  }
  0x28   : > { %11610 = vmatpush3.bf16.msra.mxu0 %v11999_v3  ;;  %v12025_v29 = vld [vmem:[%s12889_s15 + $0xc0] sm:$0xff]   ;;  %v12026_v31 = vld [vmem:[%s12889_s15 + $0xc8] sm:$0xff]   ;;  %v12027_v32 = vld [vmem:[%s12889_s15 + $0xd0] sm:$0xff]  }
  0x29   : > { %11611 = vmatprep.subr.bf16.mxu0 %v12000_v4  ;;  %v12028_v33 = vld [vmem:[%s12889_s15 + $0xd8] sm:$0xff]   ;;  %v12029_v34 = vld [vmem:[%s12889_s15 + $0xe0] sm:$0xff]   ;;  %v12030_v35 = vld [vmem:[%s12889_s15 + $0xe8] sm:$0xff]  }
  0x2a   : > { %v12031_v36 = vld [vmem:[%s12889_s15 + $0xf0] sm:$0xff]   ;;  %v12032_v37 = vld [vmem:[%s12889_s15 + $0xf8] ss:$0 sps:$4 sm:$0x33]   ;;  %v12964_v38 = vld [vmem:[%s17143_s3] ss:$0 sm:$0xff] }
  0x2b   : > { %s17133_s15 = sand.u32 1, %s12728_s30  }
  0x2c   : > { %11612 = vmatpush3.bf16.msra.mxu0 %v12000_v4  ;;  %s16218_s2 = smul.u32 80, %s17133_s15 }
  0x2e   : > { %s16246_s21 = scalar_lea.vmem [#allocation8], %s16218_s2 }
  0x2f   : > { %11614 = vmatmul.mubr.msk.bf16.vlgmr.msra.gmra.mxu0 %vm743_vm1, %v12002_v6  ;;  %s10158_s28 = sshll.u32 %s16246_s21, 4  ;;  %s17043_s28 = int_to_ptr.vmem [resolvable:$true] %s10158_s28 }
  0x30   : > { %11617 = vmatprep.mubr.msk.bf16.mxu0 %vm743_vm1, %v12003_v7  ;;  %s12676_s2 = scalar_lea.vmem %s17043_s28, 1280 }
  0x31   : > { %p12677_p11 = scmp.ne.s32.totalorder %s17043_s28, %s12676_s2 }
  0x33   : > { %p12678_p12 = pnand %p12677_p11, %p12857_p5 }
  0x35   : > { %p12679_p13 = pneg %p12678_p12 }
  0x37   : > { %11618 = vmatmul.mubr.msk.bf16.gmra.mxu0 %vm743_vm1, %v12004_v8 }
  0x38   : > { %11621 = vmatprep.mubr.msk.bf16.mxu0 %vm743_vm1, %v12005_v9 }
  0x3f   : > { %11622 = vmatmul.mubr.msk.bf16.gmra.mxu0 %vm743_vm1, %v12006_v10 }
  0x40   : > { %11625 = vmatprep.mubr.msk.bf16.mxu0 %vm743_vm1, %v12007_v11 }
  0x47   : > { %11626 = vmatmul.mubr.msk.bf16.gmra.mxu0 %vm743_vm1, %v12008_v12 }
  0x48   : > { %11629 = vmatprep.mubr.msk.bf16.mxu0 %vm743_vm1, %v12009_v13 }
  0x4f   : > { %11630 = vmatmul.mubr.msk.bf16.gmra.mxu0 %vm743_vm1, %v12010_v14 }
  0x50   : > { %11633 = vmatprep.mubr.msk.bf16.mxu0 %vm743_vm1, %v12011_v15 }
  0x57   : > { %11634 = vmatmul.mubr.msk.bf16.gmra.mxu0 %vm743_vm1, %v12012_v16 }
  0x58   : > { %11637 = vmatprep.mubr.msk.bf16.mxu0 %vm743_vm1, %v12013_v17 }
  0x5f   : > { %11638 = vmatmul.mubr.msk.bf16.gmra.mxu0 %vm743_vm1, %v12014_v18 }
  0x60   : > { %11641 = vmatprep.mubr.msk.bf16.mxu0 %vm743_vm1, %v12015_v19 }
  0x67   : > { %11642 = vmatmul.mubr.msk.bf16.gmra.mxu0 %vm743_vm1, %v12016_v20 }
  0x68   : > { %11645 = vmatprep.mubr.msk.bf16.mxu0 %vm743_vm1, %v12017_v21 }
  0x6f   : > { %11646 = vmatmul.mubr.msk.bf16.gmra.mxu0 %vm743_vm1, %v12018_v22 }
  0x70   : > { %11649 = vmatprep.mubr.msk.bf16.mxu0 %vm743_vm1, %v12019_v23 }
  0x77   : > { %11650 = vmatmul.mubr.msk.bf16.gmra.mxu0 %vm743_vm1, %v12020_v24 }
  0x78   : > { %11653 = vmatprep.mubr.msk.bf16.mxu0 %vm743_vm1, %v12021_v25 }
  0x7f   : > { %11654 = vmatmul.mubr.msk.bf16.gmra.mxu0 %vm743_vm1, %v12022_v26 }
  0x80   : > { %11657 = vmatprep.mubr.msk.bf16.mxu0 %vm743_vm1, %v12023_v27 }
  0x87   : > { %11658 = vmatmul.mubr.msk.bf16.gmra.mxu0 %vm743_vm1, %v12024_v28 }
  0x88   : > { %11661 = vmatprep.mubr.msk.bf16.mxu0 %vm743_vm1, %v12025_v29 }
  0x8f   : > { %11662 = vmatmul.mubr.msk.bf16.gmra.mxu0 %vm743_vm1, %v12026_v31 }
  0x90   : > { %11665 = vmatprep.mubr.msk.bf16.mxu0 %vm743_vm1, %v12027_v32 }
  0x97   : > { %11666 = vmatmul.mubr.msk.bf16.gmra.mxu0 %vm743_vm1, %v12028_v33 }
  0x98   : > { %11669 = vmatprep.mubr.msk.bf16.mxu0 %vm743_vm1, %v12029_v34 }
  0x9f   : > { %11670 = vmatmul.mubr.msk.bf16.gmra.mxu0 %vm743_vm1, %v12030_v35 }
  0xa0   : > { %11673 = vmatprep.mubr.msk.bf16.mxu0 %vm743_vm1, %v12031_v36 }
  0xa7   : > { %11674 = vmatmul.mubr.msk.bf16.gmra.mxu0 %vm743_vm1, %v12032_v37  ;;  %vm13940_vm1 = vmand %vm17110_vm9, %vm3270_vm10 }
  0xef   : > { %v11615_v39 = vpop.f32.mrf.mxu0 }
  0xf0   : > { %v887_v40 = vadd.f32 %v11615_v39, %v12964_v38 }
  0xf1   : > { %v878_v41 = vpop.f32.mrf.mxu0 }
  0xf2   : > { %v1197_v42 = vmul.f32 0.70710677, %v887_v40  ;;  %v879_v43 = vadd.f32 %v12964_v38, %v878_v41  ;;  %v1134_v3 = vmul.f32 0.5, %v887_v40 }
  0xf3   : > { %v11616_v44 = vpop.f32.mrf.mxu0 }
  0xf4   : > { %12383 = verf.f32 %v1197_v42  ;;  %v1195_v45 = vmul.f32 0.70710677, %v879_v43  ;;  %v890_v46 = vadd.f32 %v11616_v44, %v12964_v38  ;;  %v1132_v7 = vmul.f32 0.5, %v879_v43 }
  0xf5   : > { %v881_v47 = vpop.f32.mrf.mxu0 }
  0xf6   : > { %12385 = verf.f32 %v1195_v45  ;;  %v1198_v48 = vmul.f32 0.70710677, %v890_v46  ;;  %v882_v49 = vadd.f32 %v12964_v38, %v881_v47  ;;  %v1135_v17 = vmul.f32 0.5, %v890_v46 }
  0xf7   : > { %v11619_v50 = vpop.f32.mrf.mxu0 }
  0xf8   : > { %12387 = verf.f32 %v1198_v48  ;;  %v1196_v51 = vmul.f32 0.70710677, %v882_v49  ;;  %v903_v52 = vadd.f32 %v11619_v50, %v12964_v38  ;;  %v1133_v21 = vmul.f32 0.5, %v882_v49 }
  0xf9   : > { %v894_v53 = vpop.f32.mrf.mxu0 }
  0xfa   : > { %12389 = verf.f32 %v1196_v51  ;;  %v1201_v54 = vmul.f32 0.70710677, %v903_v52  ;;  %v895_v55 = vadd.f32 %v12964_v38, %v894_v53  ;;  %v1138_v28 = vmul.f32 0.5, %v903_v52 }
  0xfb   : > { %v11620_v56 = vpop.f32.mrf.mxu0 }
  0xfc   : > { %12391 = verf.f32 %v1201_v54  ;;  %v1199_v57 = vmul.f32 0.70710677, %v895_v55  ;;  %v906_v58 = vadd.f32 %v11620_v56, %v12964_v38  ;;  %v1136_v34 = vmul.f32 0.5, %v895_v55 }
  0xfd   : > { %v897_v59 = vpop.f32.mrf.mxu0 }
  0xfe   : > { %12393 = verf.f32 %v1199_v57  ;;  %v1202_v60 = vmul.f32 0.70710677, %v906_v58  ;;  %v898_v61 = vadd.f32 %v12964_v38, %v897_v59  ;;  %v1139_v37 = vmul.f32 0.5, %v906_v58 }
  0xff   : > { %v11623_v62 = vpop.f32.mrf.mxu0 }
 0x100   : > { %12395 = verf.f32 %v1202_v60  ;;  %v1200_v63 = vmul.f32 0.70710677, %v898_v61  ;;  %v919_v0 = vadd.f32 %v11623_v62, %v12964_v38  ;;  %v1137_v39 = vmul.f32 0.5, %v898_v61 }
 0x101   : > { %v12384_v1 = vpop.eup %12383  ;;  %v910_v2 = vpop.f32.mrf.mxu0 }
 0x102   : > { %v1323_v4 = vadd.f32 1.0, %v12384_v1  ;;  %12397 = verf.f32 %v1200_v63  ;;  %v1205_v5 = vmul.f32 0.70710677, %v919_v0  ;;  %v911_v8 = vadd.f32 %v12964_v38, %v910_v2 }
 0x103   : > { %v12386_v6 = vpop.eup %12385  ;;  %v11624_v9 = vpop.f32.mrf.mxu0  ;;  %v1142_v46 = vmul.f32 0.5, %v919_v0 }
 0x104   : > { %v1386_v10 = vmul.f32 %v1323_v4, %v1134_v3  ;;  %v1321_v11 = vadd.f32 1.0, %v12386_v6  ;;  %12399 = verf.f32 %v1205_v5  ;;  %v922_v12 = vadd.f32 %v11624_v9, %v12964_v38 }
 0x105   : > { %v12388_v13 = vpop.eup %12387  ;;  %v1203_v14 = vmul.f32 0.70710677, %v911_v8  ;;  %v913_v15 = vpop.f32.mrf.mxu0  ;;  %v12985_v47 = vmul.f32 0.5, %v911_v8 }
 0x106   : > { %1453 = vst.msk [vmem:[#allocation2 + $0x14] sm:$0xff] %vm1450_vm3, %v1386_v10  ;;  %v1384_v16 = vmul.f32 %v1321_v11, %v1132_v7  ;;  %v1324_v18 = vadd.f32 1.0, %v12388_v13  ;;  %v1206_v19 = vmul.f32 0.70710677, %v922_v12  ;;  %v914_v22 = vadd.f32 %v12964_v38, %v913_v15 }
 0x107   : > { %v12390_v20 = vpop.eup %12389  ;;  %12401 = verf.f32 %v1203_v14  ;;  %v11627_v23 = vpop.f32.mrf.mxu0  ;;  %v12987_v48 = vmul.f32 0.5, %v922_v12 }
 0x108   : > { %1451 = vst.msk [vmem:[#allocation2 + $0x4] sm:$0xff] %vm1450_vm3, %v1384_v16  ;;  %v1387_v24 = vmul.f32 %v1324_v18, %v1135_v17  ;;  %v1322_v25 = vadd.f32 1.0, %v12390_v20  ;;  %12403 = verf.f32 %v1206_v19  ;;  %v935_v26 = vadd.f32 %v11627_v23, %v12964_v38 }
 0x109   : > { %v12392_v27 = vpop.eup %12391  ;;  %v1204_v29 = vmul.f32 0.70710677, %v914_v22  ;;  %v926_v31 = vpop.f32.mrf.mxu0  ;;  %v12990_v53 = vmul.f32 0.5, %v914_v22 }
 0x10a   : > { %1454 = vst.msk [vmem:[#allocation2 + $0x1c] sm:$0xff] %vm1450_vm3, %v1387_v24  ;;  %v1385_v32 = vmul.f32 %v1322_v25, %v1133_v21  ;;  %v1327_v33 = vadd.f32 1.0, %v12392_v27  ;;  %v1209_v35 = vmul.f32 0.70710677, %v935_v26  ;;  %v927_v40 = vadd.f32 %v12964_v38, %v926_v31 }
 0x10b   : > { %v12394_v36 = vpop.eup %12393  ;;  %12405 = verf.f32 %v1204_v29  ;;  %v11628_v41 = vpop.f32.mrf.mxu0  ;;  %v12992_v58 = vmul.f32 0.5, %v935_v26 }
 0x10c   : > { %1452 = vst.msk [vmem:[#allocation2 + $0xc] sm:$0xff] %vm1450_vm3, %v1385_v32  ;;  %v1390_v42 = vmul.f32 %v1327_v33, %v1138_v28  ;;  %v1325_v43 = vadd.f32 1.0, %v12394_v36  ;;  %12407 = verf.f32 %v1209_v35  ;;  %v938_v44 = vadd.f32 %v11628_v41, %v12964_v38 }
 0x10d   : > { %v12396_v45 = vpop.eup %12395  ;;  %v1207_v49 = vmul.f32 0.70710677, %v927_v40  ;;  %v929_v50 = vpop.f32.mrf.mxu0  ;;  %v12994_v59 = vmul.f32 0.5, %v927_v40 }
 0x10e   : > { %1457 = vst.msk [vmem:[#allocation2 + $0x34] sm:$0xff] %vm1450_vm3, %v1390_v42  ;;  %v1388_v51 = vmul.f32 %v1325_v43, %v1136_v34  ;;  %v1328_v52 = vadd.f32 1.0, %v12396_v45  ;;  %v1210_v54 = vmul.f32 0.70710677, %v938_v44  ;;  %v930_v60 = vadd.f32 %v12964_v38, %v929_v50 }
 0x10f   : > { %v12398_v55 = vpop.eup %12397  ;;  %v1514_v56 = vld [vmem:[#allocation2] sm:$0xff]  ;;  %12409 = verf.f32 %v1207_v49  ;;  %v11631_v61 = vpop.f32.mrf.mxu0  ;;  %v13000_v5 = vmul.f32 0.5, %v938_v44 }
 0x110   : > { %v1577_v57 = vld [vmem:[#allocation2 + $0x1] sm:$0xff]  ;;  %1455 = vst.msk [vmem:[#allocation2 + $0x24] sm:$0xff] %vm1450_vm3, %v1388_v51  ;;  %v1391_v63 = vmul.f32 %v1328_v52, %v1139_v37  ;;  %v1326_v0 = vadd.f32 1.0, %v12398_v55  ;;  %12411 = verf.f32 %v1210_v54  ;;  %v1208_v6 = vmul.f32 0.70710677, %v930_v60 }
 0x111   : > { %v1640_v62 = vmax.f32 %v1514_v56, %v1577_v57  ;;  %8426 = vst.msk [vmem:[#allocation2] sm:$0x3] %vm8425_vm4, %v17104_v30  ;;  %v12400_v1 = vpop.eup %12399  ;;  %v1703_v2 = vld [vmem:[#allocation2 + $0x2] sm:$0xff]  ;;  %v1517_v3 = vld [vmem:[#allocation2 + $0x18] sm:$0xff]  ;;  %v951_v7 = vadd.f32 %v11631_v61, %v12964_v38  ;;  %v942_v8 = vpop.f32.mrf.mxu0  ;;  %v13004_v16 = vmul.f32 0.5, %v930_v60 }
 0x112   : > { %v1580_v4 = vld [vmem:[#allocation2 + $0x19] sm:$0xff]  ;;  %1458 = vst.msk [vmem:[#allocation2 + $0x3c] sm:$0xff] %vm1450_vm3, %v1391_v63  ;;  %v1389_v11 = vmul.f32 %v1326_v0, %v1137_v39  ;;  %v1331_v12 = vadd.f32 1.0, %v12400_v1  ;;  %v1829_v13 = vld [vmem:[#allocation2 + $0x3] sm:$0xff]  ;;  %12413 = verf.f32 %v1208_v6  ;;  %v943_v18 = vadd.f32 %v12964_v38, %v942_v8 }
 0x113   : > { %v1766_v9 = vmax.f32 %v1640_v62, %v1703_v2  ;;  %v1643_v10 = vmax.f32 %v1517_v3, %v1580_v4  ;;  %v1706_v14 = vld [vmem:[#allocation2 + $0x1a] sm:$0xff]  ;;  %v1515_v15 = vld [vmem:[#allocation2 + $0x8] sm:$0xff]  ;;  %v1213_v17 = vmul.f32 0.70710677, %v951_v7  ;;  %v11632_v19 = vpop.f32.mrf.mxu0  ;;  %v1516_v23 = vld [vmem:[#allocation2 + $0x10] sm:$0xff]  ;;  %v13008_v27 = vmul.f32 0.5, %v951_v7 }
 0x114   : > { %v12402_v20 = vpop.eup %12401  ;;  %v1578_v24 = vld [vmem:[#allocation2 + $0x9] sm:$0xff]  ;;  %v1579_v25 = vld [vmem:[#allocation2 + $0x11] sm:$0xff]  ;;  %1456 = vst.msk [vmem:[#allocation2 + $0x2c] sm:$0xff] %vm1450_vm3, %v1389_v11  ;;  %v1394_v26 = vmul.f32 %v1331_v12, %v1142_v46  ;;  %v1832_v31 = vld [vmem:[#allocation2 + $0x1b] sm:$0xff]  ;;  %v954_v42 = vadd.f32 %v11632_v19, %v12964_v38  ;;  %v1211_v50 = vmul.f32 0.70710677, %v943_v18 }
 0x115   : > { %v1892_v21 = vmax.f32 %v1766_v9, %v1829_v13  ;;  %v1769_v22 = vmax.f32 %v1643_v10, %v1706_v14  ;;  %v12404_v28 = vpop.eup %12403  ;;  %v1955_v29 = vld [vmem:[#allocation2 + $0x4] sm:$0xff]  ;;  %v1641_v32 = vmax.f32 %v1515_v15, %v1578_v24  ;;  %v1642_v33 = vmax.f32 %v1516_v23, %v1579_v25  ;;  %v13010_v35 = vpop.f32.mrf.mxu0  ;;  %v1705_v40 = vld [vmem:[#allocation2 + $0x12] sm:$0xff]  ;;  %v1958_v43 = vld [vmem:[#allocation2 + $0x1c] sm:$0xff] }
 0x116   : > { %v1329_v34 = vadd.f32 1.0, %v12402_v20  ;;  %12415 = verf.f32 %v1213_v17  ;;  %v1704_v39 = vld [vmem:[#allocation2 + $0xa] sm:$0xff]  ;;  %1461 = vst.msk [vmem:[#allocation2 + $0x54] sm:$0xff] %vm1450_vm3, %v1394_v26  ;;  %v1332_v41 = vadd.f32 1.0, %v12404_v28  ;;  %v1831_v56 = vld [vmem:[#allocation2 + $0x13] sm:$0xff]  ;;  %v13018_v61 = vmul.f32 0.5, %v943_v18 }
 0x117   : > { %v2018_v36 = vmax.f32 %v1892_v21, %v1955_v29  ;;  %v1895_v37 = vmax.f32 %v1769_v22, %v1832_v31  ;;  %v1767_v44 = vmax.f32 %v1641_v32, %v1704_v39  ;;  %v1768_v45 = vmax.f32 %v1642_v33, %v1705_v40  ;;  %v2081_v46 = vld [vmem:[#allocation2 + $0x5] sm:$0xff]  ;;  %v13015_v51 = vpop.f32.mrf.mxu0  ;;  %v1957_v6 = vld [vmem:[#allocation2 + $0x14] sm:$0xff]  ;;  %v2084_v10 = vld [vmem:[#allocation2 + $0x1d] sm:$0xff] }
 0x118   : > { %v1392_v49 = vmul.f32 %v1329_v34, %v12985_v47  ;;  %v12406_v52 = vpop.eup %12405  ;;  %v1830_v55 = vld [vmem:[#allocation2 + $0xb] sm:$0xff]  ;;  %v1395_v60 = vmul.f32 %v1332_v41, %v12987_v48  ;;  %v1518_v2 = vld [vmem:[#allocation2 + $0x20] sm:$0xff]  ;;  %12417 = verf.f32 %v1211_v50  ;;  %v1214_v11 = vmul.f32 0.70710677, %v954_v42  ;;  %v13024_v12 = vld [vmem:[#allocation2 + $0x15] sm:$0xff] }
 0x119   : > { %v2021_v54 = vmax.f32 %v1895_v37, %v1958_v43  ;;  %v2144_v57 = vmax.f32 %v2018_v36, %v2081_v46  ;;  %v12408_v62 = vpop.eup %12407  ;;  %v1893_v63 = vmax.f32 %v1767_v44, %v1830_v55  ;;  %v1894_v0 = vmax.f32 %v1768_v45, %v1831_v56  ;;  %v2207_v1 = vld [vmem:[#allocation2 + $0x6] sm:$0xff]  ;;  %v13021_v4 = vpop.f32.mrf.mxu0  ;;  %v1521_v19 = vld [vmem:[#allocation2 + $0x38] sm:$0xff]  ;;  %v2208_v33 = vld [vmem:[#allocation2 + $0xe] sm:$0xff] }
 0x11a   : > { %v1581_v3 = vld [vmem:[#allocation2 + $0x21] sm:$0xff]  ;;  %1459 = vst.msk [vmem:[#allocation2 + $0x44] sm:$0xff] %vm1450_vm3, %v1392_v49  ;;  %v1330_v47 = vadd.f32 1.0, %v12406_v52  ;;  %v1956_v7 = vld [vmem:[#allocation2 + $0xc] sm:$0xff]  ;;  %1462 = vst.msk [vmem:[#allocation2 + $0x5c] sm:$0xff] %vm1450_vm3, %v1395_v60  ;;  %v1335_v48 = vadd.f32 1.0, %v12408_v62  ;;  %12419 = verf.f32 %v1214_v11 }
 0x11b   : > { %v2270_v8 = vmax.f32 %v2144_v57, %v2207_v1  ;;  %v1644_v9 = vmax.f32 %v1518_v2, %v1581_v3  ;;  %v2019_v13 = vmax.f32 %v1893_v63, %v1956_v7  ;;  %v2020_v14 = vmax.f32 %v1894_v0, %v1957_v6  ;;  %v2333_v15 = vld [vmem:[#allocation2 + $0x7] sm:$0xff]  ;;  %v13027_v21 = vpop.f32.mrf.mxu0  ;;  %v2210_v26 = vld [vmem:[#allocation2 + $0x1e] sm:$0xff]  ;;  %v1520_v45 = vld [vmem:[#allocation2 + $0x30] sm:$0xff] }
 0x11c   : > { %v1707_v17 = vld [vmem:[#allocation2 + $0x22] sm:$0xff]  ;;  %v2147_v18 = vmax.f32 %v2021_v54, %v2084_v10  ;;  %v1393_v20 = vmul.f32 %v1330_v47, %v12990_v53  ;;  %v12410_v22 = vpop.eup %12409  ;;  %v2082_v23 = vld [vmem:[#allocation2 + $0xd] sm:$0xff]  ;;  %v1584_v28 = vld [vmem:[#allocation2 + $0x39] sm:$0xff]  ;;  %v1398_v29 = vmul.f32 %v1335_v48, %v12992_v58  ;;  %v13031_v53 = vmul.f32 0.5, %v954_v42 }
 0x11d   : > { %v2396_v24 = vmax.f32 %v2270_v8, %v2333_v15  ;;  %v1770_v25 = vmax.f32 %v1644_v9, %v1707_v17  ;;  %v12412_v31 = vpop.eup %12411  ;;  %v2145_v32 = vmax.f32 %v2019_v13, %v2082_v23  ;;  %v1833_v34 = vld [vmem:[#allocation2 + $0x23] sm:$0xff]  ;;  %v1647_v39 = vmax.f32 %v1521_v19, %v1584_v28  ;;  %v13033_v40 = vpop.f32.mrf.mxu0  ;;  %v1710_v58 = vld [vmem:[#allocation2 + $0x3a] sm:$0xff]  ;;  %v1583_v56 = vld [vmem:[#allocation2 + $0x31] sm:$0xff] }
 0x11e   : > { %v2273_v36 = vmax.f32 %v2147_v18, %v2210_v26  ;;  %v2336_v37 = vld [vmem:[#allocation2 + $0x1f] sm:$0xff]  ;;  %1460 = vst.msk [vmem:[#allocation2 + $0x4c] sm:$0xff] %vm1450_vm3, %v1393_v20  ;;  %v2146_v41 = vmax.f32 %v2020_v14, %v13024_v12  ;;  %v1519_v44 = vld [vmem:[#allocation2 + $0x28] sm:$0xff]  ;;  %1465 = vst.msk [vmem:[#allocation2 + $0x74] sm:$0xff] %vm1450_vm3, %v1398_v29  ;;  %v1333_v46 = vadd.f32 1.0, %v12410_v22  ;;  %v1336_v49 = vadd.f32 1.0, %v12412_v31 }
 0x11f   : > { %2459 = vst.msk [vmem:[#allocation4] sm:$0xff] %vm1450_vm3, %v2396_v24  ;;  %v1896_v43 = vmax.f32 %v1770_v25, %v1833_v34  ;;  %v2271_v50 = vmax.f32 %v2145_v32, %v2208_v33  ;;  %v1959_v52 = vld [vmem:[#allocation2 + $0x24] sm:$0xff]  ;;  %v1773_v55 = vmax.f32 %v1647_v39, %v1710_v58  ;;  %v13040_v57 = vadd.f32 %v12964_v38, %v13010_v35  ;;  %v13042_v60 = vpop.f32.mrf.mxu0  ;;  %v12414_v62 = vpop.eup %12413  ;;  %v2209_v63 = vld [vmem:[#allocation2 + $0x16] sm:$0xff]  ;;  %v1960_v33 = vld [vmem:[#allocation2 + $0x2c] sm:$0xff] }
 0x120   : > { %v2399_v54 = vmax.f32 %v2273_v36, %v2336_v37  ;;  %v1582_v42 = vld [vmem:[#allocation2 + $0x29] sm:$0xff]  ;;  %v1836_v2 = vld [vmem:[#allocation2 + $0x3b] sm:$0xff]  ;;  %v1646_v47 = vmax.f32 %v1520_v45, %v1583_v56  ;;  %v1396_v6 = vmul.f32 %v1333_v46, %v12994_v59  ;;  %v1709_v10 = vld [vmem:[#allocation2 + $0x32] sm:$0xff]  ;;  %v1399_v35 = vmul.f32 %v1336_v49, %v13000_v5 }
 0x121   : > { %v2334_v0 = vld [vmem:[#allocation2 + $0xf] sm:$0xff]  ;;  %v2022_v1 = vmax.f32 %v1896_v43, %v1959_v52  ;;  %v1645_v3 = vmax.f32 %v1519_v44, %v1582_v42  ;;  %v1899_v8 = vmax.f32 %v1773_v55, %v1836_v2  ;;  %v2085_v48 = vld [vmem:[#allocation2 + $0x25] sm:$0xff]  ;;  %v1334_v11 = vadd.f32 1.0, %v12414_v62  ;;  %v13047_v12 = vpop.f32.mrf.mxu0  ;;  %v1962_v15 = vld [vmem:[#allocation2 + $0x3c] sm:$0xff] }
 0x122   : > { %v2397_v7 = vmax.f32 %v2271_v50, %v2334_v0  ;;  %2462 = vst.msk [vmem:[#allocation4 + $0x18] sm:$0xff] %vm1450_vm3, %v2399_v54  ;;  %v1708_v9 = vld [vmem:[#allocation2 + $0x2a] sm:$0xff]  ;;  %v13049_v14 = vmax.f32 %v2146_v41, %v2209_v63  ;;  %v1772_v18 = vmax.f32 %v1646_v47, %v1709_v10  ;;  %1463 = vst.msk [vmem:[#allocation2 + $0x64] sm:$0xff] %vm1450_vm3, %v1396_v6  ;;  %v1961_v20 = vld [vmem:[#allocation2 + $0x34] sm:$0xff]  ;;  %v1212_v28 = vmul.f32 0.70710677, %v13040_v57 }
 0x123   : > { %v12416_v13 = vpop.eup %12415  ;;  %v1771_v17 = vmax.f32 %v1645_v3, %v1708_v9  ;;  %v1834_v19 = vld [vmem:[#allocation2 + $0x2b] sm:$0xff]  ;;  %v2148_v59 = vmax.f32 %v2022_v1, %v2085_v48  ;;  %v2025_v22 = vmax.f32 %v1899_v8, %v1962_v15  ;;  %v1835_v23 = vld [vmem:[#allocation2 + $0x33] sm:$0xff]  ;;  %v1522_v5 = vld [vmem:[#allocation2 + $0x40] sm:$0xff]  ;;  %1466 = vst.msk [vmem:[#allocation2 + $0x7c] sm:$0xff] %vm1450_vm3, %v1399_v35  ;;  %v1397_v25 = vmul.f32 %v1334_v11, %v13004_v16  ;;  %v13056_v29 = vpop.f32.mrf.mxu0 }
 0x124   : > { %2460 = vst.msk [vmem:[#allocation4 + $0x8] sm:$0xff] %vm1450_vm3, %v2397_v7  ;;  %v2211_v24 = vld [vmem:[#allocation2 + $0x26] sm:$0xff]  ;;  %v1339_v26 = vadd.f32 1.0, %v12416_v13  ;;  %v1898_v32 = vmax.f32 %v1772_v18, %v1835_v23  ;;  %v967_v39 = vadd.f32 %v13015_v51, %v12964_v38  ;;  %v2088_v58 = vld [vmem:[#allocation2 + $0x3d] sm:$0xff]  ;;  %12421 = verf.f32 %v1212_v28  ;;  %v2087_v62 = vld [vmem:[#allocation2 + $0x35] sm:$0xff] }
 0x125   : > { %v1897_v31 = vmax.f32 %v1771_v17, %v1834_v19  ;;  %v2274_v34 = vmax.f32 %v2148_v59, %v2211_v24  ;;  %v2337_v36 = vld [vmem:[#allocation2 + $0x27] sm:$0xff]  ;;  %v2214_v44 = vld [vmem:[#allocation2 + $0x3e] sm:$0xff]  ;;  %1464 = vst.msk [vmem:[#allocation2 + $0x6c] sm:$0xff] %vm1450_vm3, %v1397_v25  ;;  %v959_v45 = vadd.f32 %v12964_v38, %v13021_v4  ;;  %v13064_v46 = vpop.f32.mrf.mxu0  ;;  %v12418_v49 = vpop.eup %12417  ;;  %v2151_v51 = vmax.f32 %v2025_v22, %v2088_v58  ;;  %v1587_v24 = vld [vmem:[#allocation2 + $0x51] sm:$0xff] }
 0x126   : > { %v1585_v37 = vld [vmem:[#allocation2 + $0x41] sm:$0xff]  ;;  %v1402_v16 = vmul.f32 %v1339_v26, %v13008_v27  ;;  %v13066_v52 = vmax.f32 %v1898_v32, %v1961_v20  ;;  %v1525_v42 = vld [vmem:[#allocation2 + $0x58] sm:$0xff]  ;;  %v2086_v63 = vld [vmem:[#allocation2 + $0x2d] sm:$0xff]  ;;  %v1337_v4 = vadd.f32 1.0, %v12418_v49  ;;  %v13072_v1 = vmul.f32 0.5, %v13040_v57 }
 0x127   : > { %v1648_v41 = vmax.f32 %v1522_v5, %v1585_v37  ;;  %v1711_v43 = vld [vmem:[#allocation2 + $0x42] sm:$0xff]  ;;  %v2023_v50 = vmax.f32 %v1897_v31, %v1960_v33  ;;  %v2400_v54 = vmax.f32 %v2274_v34, %v2337_v36  ;;  %v1588_v56 = vld [vmem:[#allocation2 + $0x59] sm:$0xff]  ;;  %v13074_v2 = vpop.f32.mrf.mxu0  ;;  %v2212_v47 = vld [vmem:[#allocation2 + $0x2e] sm:$0xff]  ;;  %v2277_v7 = vmax.f32 %v2151_v51, %v2214_v44  ;;  %v12420_v48 = vpop.eup %12419 }
 0x128   : > { %v2340_v55 = vld [vmem:[#allocation2 + $0x3f] sm:$0xff]  ;;  %v1651_v27 = vmax.f32 %v1525_v42, %v1588_v56  ;;  %1469 = vst.msk [vmem:[#allocation2 + $0x94] sm:$0xff] %vm1450_vm3, %v1402_v16  ;;  %v13077_v9 = vmul.f32 0.5, %v967_v39  ;;  %v1217_v10 = vmul.f32 0.70710677, %v967_v39  ;;  %v2150_v35 = vmax.f32 %v13066_v52, %v2087_v62  ;;  %v1523_v15 = vld [vmem:[#allocation2 + $0x48] sm:$0xff] }
 0x129   : > { %v1774_v0 = vmax.f32 %v1648_v41, %v1711_v43  ;;  %8427 = vst.msk [vmem:[#allocation2 + $0x3f] sm:$0x3] %vm8425_vm4, %v17104_v30  ;;  %v2149_v3 = vmax.f32 %v2023_v50, %v2086_v63  ;;  %v1837_v6 = vld [vmem:[#allocation2 + $0x43] sm:$0xff]  ;;  %v1714_v8 = vld [vmem:[#allocation2 + $0x5a] sm:$0xff]  ;;  %v1524_v57 = vld [vmem:[#allocation2 + $0x50] sm:$0xff]  ;;  %v1400_v18 = vmul.f32 %v1337_v4, %v13018_v61  ;;  %v13081_v19 = vpop.f32.mrf.mxu0  ;;  %v2403_v22 = vmax.f32 %v2277_v7, %v2340_v55 }
 0x12a   : > { %2463 = vst.msk [vmem:[#allocation4 + $0x20] sm:$0xff] %vm1450_vm3, %v2400_v54  ;;  %v1777_v13 = vmax.f32 %v1651_v27, %v1714_v8  ;;  %v1586_v17 = vld [vmem:[#allocation2 + $0x49] sm:$0xff]  ;;  %v1840_v23 = vld [vmem:[#allocation2 + $0x5b] sm:$0xff]  ;;  %v13083_v25 = vmul.f32 0.5, %v959_v45  ;;  %v1650_v32 = vmax.f32 %v1524_v57, %v1587_v24  ;;  %v1340_v34 = vadd.f32 1.0, %v12420_v48  ;;  %v1713_v39 = vld [vmem:[#allocation2 + $0x52] sm:$0xff] }
 0x12b   : > { %v1900_v11 = vmax.f32 %v1774_v0, %v1837_v6  ;;  %v2275_v59 = vmax.f32 %v2149_v3, %v2212_v47  ;;  %v1963_v20 = vld [vmem:[#allocation2 + $0x44] sm:$0xff]  ;;  %v1649_v5 = vmax.f32 %v1523_v15, %v1586_v17  ;;  %v2338_v26 = vld [vmem:[#allocation2 + $0x2f] sm:$0xff]  ;;  %1467 = vst.msk [vmem:[#allocation2 + $0x84] sm:$0xff] %vm1450_vm3, %v1400_v18  ;;  %v13086_v36 = vpop.f32.mrf.mxu0  ;;  %2466 = vst.msk [vmem:[#allocation4 + $0x38] sm:$0xff] %vm1450_vm3, %v2403_v22  ;;  %12423 = verf.f32 %v1217_v10 }
 0x12c   : > { %v1903_v31 = vmax.f32 %v1777_v13, %v1840_v23  ;;  %v1712_v33 = vld [vmem:[#allocation2 + $0x4a] sm:$0xff]  ;;  %v1966_v37 = vld [vmem:[#allocation2 + $0x5c] sm:$0xff]  ;;  %v1215_v58 = vmul.f32 0.70710677, %v959_v45  ;;  %v1776_v49 = vmax.f32 %v1650_v32, %v1713_v39  ;;  %v1839_v52 = vld [vmem:[#allocation2 + $0x53] sm:$0xff]  ;;  %v1403_v51 = vmul.f32 %v1340_v34, %v13031_v53 }
 0x12d   : > { %v2026_v28 = vmax.f32 %v1900_v11, %v1963_v20  ;;  %v2401_v61 = vmax.f32 %v2275_v59, %v2338_v26  ;;  %v1775_v41 = vmax.f32 %v1649_v5, %v1712_v33  ;;  %v2089_v43 = vld [vmem:[#allocation2 + $0x45] sm:$0xff]  ;;  %v2213_v44 = vld [vmem:[#allocation2 + $0x36] sm:$0xff]  ;;  %v13090_v55 = vpop.f32.mrf.mxu0  ;;  %v970_v45 = vadd.f32 %v13027_v21, %v12964_v38  ;;  %v2090_v47 = vld [vmem:[#allocation2 + $0x4d] sm:$0xff] }
 0x12e   : > { %v2029_v16 = vmax.f32 %v1903_v31, %v1966_v37  ;;  %v1838_v50 = vld [vmem:[#allocation2 + $0x4b] sm:$0xff]  ;;  %v13092_v42 = vmax.f32 %v2150_v35, %v2213_v44  ;;  %v1526_v63 = vld [vmem:[#allocation2 + $0x60] sm:$0xff]  ;;  %12425 = verf.f32 %v1215_v58  ;;  %v1965_v27 = vld [vmem:[#allocation2 + $0x54] sm:$0xff]  ;;  %v1902_v4 = vmax.f32 %v1776_v49, %v1839_v52  ;;  %1470 = vst.msk [vmem:[#allocation2 + $0x9c] sm:$0xff] %vm1450_vm3, %v1403_v51 }
 0x12f   : > { %v2152_v54 = vmax.f32 %v2026_v28, %v2089_v43  ;;  %2464 = vst.msk [vmem:[#allocation4 + $0x28] sm:$0xff] %vm1450_vm3, %v2401_v61  ;;  %v1901_v56 = vmax.f32 %v1775_v41, %v1838_v50  ;;  %v2215_v62 = vld [vmem:[#allocation2 + $0x46] sm:$0xff]  ;;  %v962_v7 = vadd.f32 %v12964_v38, %v13033_v40  ;;  %v13100_v8 = vpop.f32.mrf.mxu0  ;;  %v2092_v11 = vld [vmem:[#allocation2 + $0x5d] sm:$0xff]  ;;  %v13102_v13 = vmul.f32 0.5, %v970_v45  ;;  %v2091_v57 = vld [vmem:[#allocation2 + $0x55] sm:$0xff] }
 0x130   : > { %v1589_v0 = vld [vmem:[#allocation2 + $0x61] sm:$0xff]  ;;  %v1964_v3 = vld [vmem:[#allocation2 + $0x4c] sm:$0xff]  ;;  %v1218_v21 = vmul.f32 0.70710677, %v970_v45  ;;  %v983_v15 = vadd.f32 %v13042_v60, %v12964_v38  ;;  %v2028_v17 = vmax.f32 %v1902_v4, %v1965_v27  ;;  %v2155_v22 = vmax.f32 %v2029_v16, %v2092_v11  ;;  %v1529_v23 = vld [vmem:[#allocation2 + $0x78] sm:$0xff] }
 0x131   : > { %v2278_v6 = vmax.f32 %v2152_v54, %v2215_v62  ;;  %v1652_v53 = vmax.f32 %v1526_v63, %v1589_v0  ;;  %v2027_v10 = vmax.f32 %v1901_v56, %v1964_v3  ;;  %v2341_v48 = vld [vmem:[#allocation2 + $0x47] sm:$0xff]  ;;  %v1592_v40 = vld [vmem:[#allocation2 + $0x79] sm:$0xff]  ;;  %v13106_v24 = vpop.f32.mrf.mxu0  ;;  %v12422_v5 = vpop.eup %12421  ;;  %v13110_v60 = vadd.f32 %v12964_v38, %v13047_v12  ;;  %v1528_v52 = vld [vmem:[#allocation2 + $0x70] sm:$0xff] }
 0x132   : > { %v1715_v35 = vld [vmem:[#allocation2 + $0x62] sm:$0xff]  ;;  %v2216_v18 = vld [vmem:[#allocation2 + $0x4e] sm:$0xff]  ;;  %v1655_v33 = vmax.f32 %v1529_v23, %v1592_v40  ;;  %12427 = verf.f32 %v1218_v21  ;;  %v1718_v39 = vld [vmem:[#allocation2 + $0x7a] sm:$0xff]  ;;  %v1338_v43 = vadd.f32 1.0, %v12422_v5  ;;  %v13113_v58 = vmul.f32 0.5, %v962_v7 }
 0x133   : > { %v2404_v59 = vmax.f32 %v2278_v6, %v2341_v48  ;;  %v1778_v20 = vmax.f32 %v1652_v53, %v1715_v35  ;;  %v2153_v26 = vmax.f32 %v2027_v10, %v2090_v47  ;;  %v1841_v28 = vld [vmem:[#allocation2 + $0x63] sm:$0xff]  ;;  %v13115_v44 = vpop.f32.mrf.mxu0  ;;  %v2154_v16 = vmax.f32 %v2028_v17, %v2091_v57  ;;  %v1591_v51 = vld [vmem:[#allocation2 + $0x71] sm:$0xff]  ;;  %v1844_v0 = vld [vmem:[#allocation2 + $0x7b] sm:$0xff] }
 0x134   : > { %v1967_v31 = vld [vmem:[#allocation2 + $0x64] sm:$0xff]  ;;  %v1781_v50 = vmax.f32 %v1655_v33, %v1718_v39  ;;  %v1216_v12 = vmul.f32 0.70710677, %v962_v7  ;;  %v2342_v56 = vld [vmem:[#allocation2 + $0x4f] sm:$0xff]  ;;  %v13117_v27 = vmul.f32 0.5, %v983_v15  ;;  %v1654_v6 = vmax.f32 %v1528_v52, %v1591_v51  ;;  %v1970_v7 = vld [vmem:[#allocation2 + $0x7c] sm:$0xff] }
 0x135   : > { %v2218_v32 = vld [vmem:[#allocation2 + $0x5e] sm:$0xff]  ;;  %2467 = vst.msk [vmem:[#allocation4 + $0x40] sm:$0xff] %vm1450_vm3, %v2404_v59  ;;  %v1904_v34 = vmax.f32 %v1778_v20, %v1841_v28  ;;  %v1527_v41 = vld [vmem:[#allocation2 + $0x68] sm:$0xff]  ;;  %v2279_v49 = vmax.f32 %v2153_v26, %v2216_v18  ;;  %v13119_v4 = vpop.f32.mrf.mxu0  ;;  %v1401_v48 = vmul.f32 %v1338_v43, %v13072_v1  ;;  %v2217_v35 = vld [vmem:[#allocation2 + $0x56] sm:$0xff]  ;;  %v1221_v17 = vmul.f32 0.70710677, %v983_v15 }
 0x136   : > { %v2281_v61 = vmax.f32 %v2155_v22, %v2218_v32  ;;  %v2344_v37 = vld [vmem:[#allocation2 + $0x5f] sm:$0xff]  ;;  %v1590_v54 = vld [vmem:[#allocation2 + $0x69] sm:$0xff]  ;;  %v1907_v47 = vmax.f32 %v1781_v50, %v1844_v0  ;;  %v1717_v11 = vld [vmem:[#allocation2 + $0x72] sm:$0xff]  ;;  %12429 = verf.f32 %v1216_v12  ;;  %v13125_v59 = vmax.f32 %v2154_v16, %v2217_v35 }
 0x137   : > { %v2030_v62 = vmax.f32 %v1904_v34, %v1967_v31  ;;  %v1653_v45 = vmax.f32 %v1527_v41, %v1590_v54  ;;  %v2405_v3 = vmax.f32 %v2279_v49, %v2342_v56  ;;  %v1716_v53 = vld [vmem:[#allocation2 + $0x6a] sm:$0xff]  ;;  %v13123_v18 = vpop.f32.mrf.mxu0  ;;  %v1780_v22 = vmax.f32 %v1654_v6, %v1717_v11  ;;  %1468 = vst.msk [vmem:[#allocation2 + $0x8c] sm:$0xff] %vm1450_vm3, %v1401_v48  ;;  %v1843_v26 = vld [vmem:[#allocation2 + $0x73] sm:$0xff]  ;;  %v1530_v32 = vld [vmem:[#allocation2 + $0x80] sm:$0xff] }
 0x138   : > { %v2407_v63 = vmax.f32 %v2281_v61, %v2344_v37  ;;  %v2093_v10 = vld [vmem:[#allocation2 + $0x65] sm:$0xff]  ;;  %v2033_v20 = vmax.f32 %v1907_v47, %v1970_v7  ;;  %v1219_v1 = vmul.f32 0.70710677, %v13110_v60  ;;  %v12424_v5 = vpop.eup %12423  ;;  %12431 = verf.f32 %v1221_v17  ;;  %v2096_v43 = vld [vmem:[#allocation2 + $0x7d] sm:$0xff]  ;;  %v1969_v50 = vld [vmem:[#allocation2 + $0x74] sm:$0xff] }
 0x139   : > { %v1779_v21 = vmax.f32 %v1653_v45, %v1716_v53  ;;  %v2156_v57 = vmax.f32 %v2030_v62, %v2093_v10  ;;  %2468 = vst.msk [vmem:[#allocation4 + $0x48] sm:$0xff] %vm1450_vm3, %v2405_v3  ;;  %v1842_v23 = vld [vmem:[#allocation2 + $0x6b] sm:$0xff]  ;;  %v1593_v15 = vld [vmem:[#allocation2 + $0x81] sm:$0xff]  ;;  %v986_v33 = vadd.f32 %v13056_v29, %v12964_v38  ;;  %v13132_v34 = vpop.f32.mrf.mxu0  ;;  %v1906_v61 = vmax.f32 %v1780_v22, %v1843_v26  ;;  %v1533_v56 = vld [vmem:[#allocation2 + $0x98] sm:$0xff] }
 0x13a   : > { %2470 = vst.msk [vmem:[#allocation4 + $0x58] sm:$0xff] %vm1450_vm3, %v2407_v63  ;;  %v2219_v40 = vld [vmem:[#allocation2 + $0x66] sm:$0xff]  ;;  %v1656_v41 = vmax.f32 %v1530_v32, %v1593_v15  ;;  %v1343_v16 = vadd.f32 1.0, %v12424_v5  ;;  %12433 = verf.f32 %v1219_v1  ;;  %v2159_v12 = vmax.f32 %v2033_v20, %v2096_v43  ;;  %v2222_v3 = vld [vmem:[#allocation2 + $0x7e] sm:$0xff]  ;;  %v2095_v10 = vld [vmem:[#allocation2 + $0x75] sm:$0xff] }
 0x13b   : > { %v1905_v28 = vmax.f32 %v1779_v21, %v1842_v23  ;;  %v2282_v31 = vmax.f32 %v2156_v57, %v2219_v40  ;;  %v1968_v37 = vld [vmem:[#allocation2 + $0x6c] sm:$0xff]  ;;  %v12426_v49 = vpop.eup %12425  ;;  %v1719_v51 = vld [vmem:[#allocation2 + $0x82] sm:$0xff]  ;;  %v13135_v62 = vmul.f32 0.5, %v13110_v60  ;;  %v13137_v29 = vpop.f32.mrf.mxu0  ;;  %v2032_v63 = vmax.f32 %v1906_v61, %v1969_v50  ;;  %v1596_v47 = vld [vmem:[#allocation2 + $0x99] sm:$0xff] }
 0x13c   : > { %v2345_v39 = vld [vmem:[#allocation2 + $0x67] sm:$0xff]  ;;  %v1782_v45 = vmax.f32 %v1656_v41, %v1719_v51  ;;  %v1406_v6 = vmul.f32 %v1343_v16, %v13077_v9  ;;  %v1341_v53 = vadd.f32 1.0, %v12426_v49  ;;  %v2285_v11 = vmax.f32 %v2159_v12, %v2222_v3  ;;  %v2221_v17 = vld [vmem:[#allocation2 + $0x76] sm:$0xff]  ;;  %v2348_v40 = vld [vmem:[#allocation2 + $0x7f] sm:$0xff] }
 0x13d   : > { %v2031_v52 = vmax.f32 %v1905_v28, %v1968_v37  ;;  %v2408_v54 = vmax.f32 %v2282_v31, %v2345_v39  ;;  %v2094_v0 = vld [vmem:[#allocation2 + $0x6d] sm:$0xff]  ;;  %v1845_v7 = vld [vmem:[#allocation2 + $0x83] sm:$0xff]  ;;  %v1659_v21 = vmax.f32 %v1533_v56, %v1596_v47  ;;  %v1222_v60 = vmul.f32 0.70710677, %v986_v33  ;;  %v13141_v57 = vpop.f32.mrf.mxu0  ;;  %v1722_v1 = vld [vmem:[#allocation2 + $0x9a] sm:$0xff] }
 0x13e   : > { %v2220_v35 = vld [vmem:[#allocation2 + $0x6e] sm:$0xff]  ;;  %v2158_v20 = vmax.f32 %v2032_v63, %v2095_v10  ;;  %v1908_v22 = vmax.f32 %v1782_v45, %v1845_v7  ;;  %v1971_v23 = vld [vmem:[#allocation2 + $0x84] sm:$0xff]  ;;  %1473 = vst.msk [vmem:[#allocation2 + $0xb4] sm:$0xff] %vm1450_vm3, %v1406_v6  ;;  %v1404_v9 = vmul.f32 %v1341_v53, %v13083_v25  ;;  %v978_v5 = vadd.f32 %v12964_v38, %v13064_v46  ;;  %v1848_v16 = vld [vmem:[#allocation2 + $0x9b] sm:$0xff] }
 0x13f   : > { %v2157_v48 = vmax.f32 %v2031_v52, %v2094_v0  ;;  %2471 = vst.msk [vmem:[#allocation4 + $0x60] sm:$0xff] %vm1450_vm3, %v2408_v54  ;;  %v12428_v26 = vpop.eup %12427  ;;  %v2411_v31 = vmax.f32 %v2285_v11, %v2348_v40  ;;  %v1785_v32 = vmax.f32 %v1659_v21, %v1722_v1  ;;  %v1531_v15 = vld [vmem:[#allocation2 + $0x88] sm:$0xff]  ;;  %v1532_v61 = vld [vmem:[#allocation2 + $0x90] sm:$0xff]  ;;  %12435 = verf.f32 %v1222_v60  ;;  %v13147_v39 = vpop.f32.mrf.mxu0  ;;  %v1974_v53 = vld [vmem:[#allocation2 + $0x9c] sm:$0xff] }
 0x140   : > { %v1594_v37 = vld [vmem:[#allocation2 + $0x89] sm:$0xff]  ;;  %v2034_v43 = vmax.f32 %v1908_v22, %v1971_v23  ;;  %v1595_v49 = vld [vmem:[#allocation2 + $0x91] sm:$0xff]  ;;  %1471 = vst.msk [vmem:[#allocation2 + $0xa4] sm:$0xff] %vm1450_vm3, %v1404_v9  ;;  %v1344_v25 = vadd.f32 1.0, %v12428_v26  ;;  %v13150_v52 = vmul.f32 0.5, %v986_v33  ;;  %v13152_v38 = vmax.f32 %v2158_v20, %v2221_v17 }
 0x141   : > { %v2283_v28 = vmax.f32 %v2157_v48, %v2220_v35  ;;  %v2346_v41 = vld [vmem:[#allocation2 + $0x6f] sm:$0xff]  ;;  %v1657_v50 = vmax.f32 %v1531_v15, %v1594_v37  ;;  %2474 = vst.msk [vmem:[#allocation4 + $0x78] sm:$0xff] %vm1450_vm3, %v2411_v31  ;;  %v1911_v54 = vmax.f32 %v1785_v32, %v1848_v16  ;;  %v1658_v51 = vmax.f32 %v1532_v61, %v1595_v49  ;;  %v13155_v56 = vpop.f32.mrf.mxu0  ;;  %v2097_v45 = vld [vmem:[#allocation2 + $0x85] sm:$0xff]  ;;  %v13161_v33 = vld [vmem:[%s17143_s3] ss:$0 sm:$0xff] }
 0x142   : > { %v1720_v12 = vld [vmem:[#allocation2 + $0x8a] sm:$0xff]  ;;  %v1721_v63 = vld [vmem:[#allocation2 + $0x92] sm:$0xff]  ;;  %v1407_v3 = vmul.f32 %v1344_v25, %v13102_v13  ;;  %v1220_v47 = vmul.f32 0.70710677, %v978_v5  ;;  %v999_v6 = vadd.f32 %v13161_v33, %v13074_v2  ;;  %v2160_v35 = vmax.f32 %v2034_v43, %v2097_v45 }
 0x143   : > { %v2409_v46 = vmax.f32 %v2283_v28, %v2346_v41  ;;  %v1783_v0 = vmax.f32 %v1657_v50, %v1720_v12  ;;  %v1784_v10 = vmax.f32 %v1658_v51, %v1721_v63  ;;  %v1846_v48 = vld [vmem:[#allocation2 + $0x8b] sm:$0xff]  ;;  %v13166_v7 = vmul.f32 0.5, %v978_v5  ;;  %v13170_v11 = vpop.f32.mrf.mxu0  ;;  %v12430_v21 = vpop.eup %12429  ;;  %v1847_v17 = vld [vmem:[#allocation2 + $0x93] sm:$0xff] }
 0x144   : > { %v991_v13 = vadd.f32 %v13161_v33, %v13081_v19  ;;  %v2037_v60 = vmax.f32 %v1911_v54, %v1974_v53  ;;  %v2223_v22 = vld [vmem:[#allocation2 + $0x86] sm:$0xff]  ;;  %1474 = vst.msk [vmem:[#allocation2 + $0xbc] sm:$0xff] %vm1450_vm3, %v1407_v3  ;;  %12437 = verf.f32 %v1220_v47  ;;  %v1225_v2 = vmul.f32 0.70710677, %v999_v6  ;;  %v1973_v28 = vld [vmem:[#allocation2 + $0x94] sm:$0xff] }
 0x145   : > { %2472 = vst.msk [vmem:[#allocation4 + $0x68] sm:$0xff] %vm1450_vm3, %v2409_v46  ;;  %v1909_v20 = vmax.f32 %v1783_v0, %v1846_v48  ;;  %v1910_v23 = vmax.f32 %v1784_v10, %v1847_v17  ;;  %v1972_v40 = vld [vmem:[#allocation2 + $0x8c] sm:$0xff]  ;;  %v2286_v1 = vmax.f32 %v2160_v35, %v2223_v22  ;;  %v1342_v9 = vadd.f32 1.0, %v12430_v21  ;;  %v13175_v26 = vpop.f32.mrf.mxu0  ;;  %v12432_v19 = vpop.eup %12431  ;;  %v2099_v51 = vld [vmem:[#allocation2 + $0x95] sm:$0xff] }
 0x146   : > { %v13173_v5 = vmul.f32 0.5, %v999_v6  ;;  %v2349_v32 = vld [vmem:[#allocation2 + $0x87] sm:$0xff]  ;;  %12439 = verf.f32 %v1225_v2  ;;  %v1223_v15 = vmul.f32 0.70710677, %v991_v13  ;;  %v1002_v61 = vadd.f32 %v13161_v33, %v13086_v36  ;;  %v2350_v35 = vld [vmem:[#allocation2 + $0x8f] sm:$0xff] }
 0x147   : > { %v2035_v31 = vmax.f32 %v1909_v20, %v1972_v40  ;;  %v12434_v37 = vpop.eup %12433  ;;  %v2036_v41 = vmax.f32 %v1910_v23, %v1973_v28  ;;  %v2098_v43 = vld [vmem:[#allocation2 + $0x8d] sm:$0xff]  ;;  %v2412_v16 = vmax.f32 %v2286_v1, %v2349_v32  ;;  %v1534_v49 = vld [vmem:[#allocation2 + $0xa0] sm:$0xff]  ;;  %v1405_v25 = vmul.f32 %v1342_v9, %v13113_v58  ;;  %v13180_v54 = vpop.f32.mrf.mxu0  ;;  %v2225_v28 = vld [vmem:[#allocation2 + $0x96] sm:$0xff] }
 0x148   : > { %v1597_v50 = vld [vmem:[#allocation2 + $0xa1] sm:$0xff]  ;;  %v1347_v46 = vadd.f32 1.0, %v12432_v19  ;;  %v1345_v45 = vadd.f32 1.0, %v12434_v37  ;;  %12441 = verf.f32 %v1223_v15  ;;  %v2224_v47 = vld [vmem:[#allocation2 + $0x8e] sm:$0xff]  ;;  %v13185_v58 = vmul.f32 0.5, %v991_v13 }
 0x149   : > { %v2161_v12 = vmax.f32 %v2035_v31, %v2098_v43  ;;  %v1660_v63 = vmax.f32 %v1534_v49, %v1597_v50  ;;  %v2100_v0 = vld [vmem:[#allocation2 + $0x9d] sm:$0xff]  ;;  %v2162_v3 = vmax.f32 %v2036_v41, %v2099_v51  ;;  %2475 = vst.msk [vmem:[#allocation4 + $0x80] sm:$0xff] %vm1450_vm3, %v2412_v16  ;;  %1472 = vst.msk [vmem:[#allocation2 + $0xac] sm:$0xff] %vm1450_vm3, %v1405_v25  ;;  %v13187_v10 = vpop.f32.mrf.mxu0  ;;  %v1226_v22 = vmul.f32 0.70710677, %v1002_v61 }
 0x14a   : > { %v1723_v36 = vld [vmem:[#allocation2 + $0xa2] sm:$0xff]  ;;  %v2163_v6 = vmax.f32 %v2037_v60, %v2100_v0  ;;  %v1410_v53 = vmul.f32 %v1347_v46, %v13117_v27  ;;  %v1408_v20 = vmul.f32 %v1345_v45, %v13135_v62  ;;  %v13191_v60 = vmul.f32 0.5, %v1002_v61 }
 0x14b   : > { %v2287_v48 = vmax.f32 %v2161_v12, %v2224_v47  ;;  %v1786_v21 = vmax.f32 %v1660_v63, %v1723_v36  ;;  %v2226_v17 = vld [vmem:[#allocation2 + $0x9e] sm:$0xff]  ;;  %v994_v27 = vadd.f32 %v13161_v33, %v13090_v55  ;;  %v1015_v13 = vadd.f32 %v13161_v33, %v13100_v8  ;;  %v13197_v9 = vpop.f32.mrf.mxu0  ;;  %v2523_v37 = vld [vmem:[#allocation4] ss:$2 sm:$0xff] }
 0x14c   : > { %v1849_v2 = vld [vmem:[#allocation2 + $0xa3] sm:$0xff]  ;;  %v2289_v23 = vmax.f32 %v2163_v6, %v2226_v17  ;;  %v1537_v40 = vld [vmem:[#allocation2 + $0xb8] sm:$0xff]  ;;  %1477 = vst.msk [vmem:[#allocation2 + $0xd4] sm:$0xff] %vm1450_vm3, %v1410_v53  ;;  %v12436_v19 = vpop.eup %12435  ;;  %1475 = vst.msk [vmem:[#allocation2 + $0xc4] sm:$0xff] %vm1450_vm3, %v1408_v20  ;;  %12443 = verf.f32 %v1226_v22  ;;  %v13200_v61 = vmax.f32 %v2162_v3, %v2225_v28  ;;  %v1007_v45 = vadd.f32 %v13161_v33, %v13106_v24 }
 0x14d   : > { %v1600_v1 = vld [vmem:[#allocation2 + $0xb9] sm:$0xff]  ;;  %v2413_v62 = vmax.f32 %v2287_v48, %v2350_v35  ;;  %v1912_v31 = vmax.f32 %v1786_v21, %v1849_v2  ;;  %v1975_v41 = vld [vmem:[#allocation2 + $0xa4] sm:$0xff]  ;;  %v1348_v16 = vadd.f32 1.0, %v12436_v19  ;;  %v1224_v49 = vmul.f32 0.70710677, %v994_v27  ;;  %v13202_v8 = vpop.f32.mrf.mxu0 }
 0x14e   : > { %v2352_v32 = vld [vmem:[#allocation2 + $0x9f] sm:$0xff]  ;;  %v1663_v15 = vmax.f32 %v1537_v40, %v1600_v1  ;;  %v13205_v46 = vmul.f32 0.5, %v994_v27  ;;  %v1229_v51 = vmul.f32 0.70710677, %v1015_v13  ;;  %v2335_v12 = vld [vmem:[#allocation2 + $0x17] sm:$0xff]  ;;  %v13211_v3 = vpack.c.bf16 %v2523_v37, %v2523_v37 }
 0x14f   : > { %v2415_v43 = vmax.f32 %v2289_v23, %v2352_v32  ;;  %v1726_v55 = vld [vmem:[#allocation2 + $0xba] sm:$0xff]  ;;  %2476 = vst.msk [vmem:[#allocation4 + $0x88] sm:$0xff] %vm1450_vm3, %v2413_v62  ;;  %v2038_v50 = vmax.f32 %v1912_v31, %v1975_v41  ;;  %v1411_v0 = vmul.f32 %v1348_v16, %v13150_v52  ;;  %12445 = verf.f32 %v1224_v49  ;;  %v13213_v47 = vpop.f32.mrf.mxu0 }
 0x150   : > { %v1789_v25 = vmax.f32 %v1663_v15, %v1726_v55  ;;  %v1852_v63 = vld [vmem:[#allocation2 + $0xbb] sm:$0xff]  ;;  %17144 = vst [vmem:[#allocation13_spill] sm:$0xff] %v13211_v3  ;;  %v1535_v6 = vld [vmem:[#allocation2 + $0xa8] sm:$0xff]  ;;  %v1536_v53 = vld [vmem:[#allocation2 + $0xb0] sm:$0xff]  ;;  %v13215_v35 = vmul.f32 0.5, %v1015_v13  ;;  %12447 = verf.f32 %v1229_v51  ;;  %v1018_v21 = vadd.f32 %v13161_v33, %v13115_v44 }
 0x151   : > { %2478 = vst.msk [vmem:[#allocation4 + $0x98] sm:$0xff] %vm1450_vm3, %v2415_v43  ;;  %v1598_v48 = vld [vmem:[#allocation2 + $0xa9] sm:$0xff]  ;;  %v12438_v17 = vpop.eup %12437  ;;  %v1599_v52 = vld [vmem:[#allocation2 + $0xb1] sm:$0xff]  ;;  %1478 = vst.msk [vmem:[#allocation2 + $0xdc] sm:$0xff] %vm1450_vm3, %v1411_v0  ;;  %v1227_v24 = vmul.f32 0.70710677, %v1007_v45  ;;  %v13222_v22 = vadd.f32 %v13161_v33, %v13119_v4  ;;  %v2398_v2 = vmax.f32 %v13049_v14, %v2335_v12  ;;  %v13225_v23 = vpop.f32.mrf.mxu0 }
 0x152   : > { %v1915_v36 = vmax.f32 %v1789_v25, %v1852_v63  ;;  %v1661_v20 = vmax.f32 %v1535_v6, %v1598_v48  ;;  %v1978_v40 = vld [vmem:[#allocation2 + $0xbc] sm:$0xff]  ;;  %v1662_v1 = vmax.f32 %v1536_v53, %v1599_v52  ;;  %v1724_v27 = vld [vmem:[#allocation2 + $0xaa] sm:$0xff]  ;;  %v1346_v13 = vadd.f32 1.0, %v12438_v17  ;;  %v1725_v31 = vld [vmem:[#allocation2 + $0xb2] sm:$0xff] }
 0x153   : > { %v13227_v19 = vmul.f32 0.5, %v1007_v45  ;;  %v2856_v44 = vshrl.u32 %v13211_v3, 16  ;;  %v12440_v28 = vpop.eup %12439  ;;  %v2101_v15 = vld [vmem:[#allocation2 + $0xa5] sm:$0xff]  ;;  %12449 = verf.f32 %v1227_v24  ;;  %v2859_v4 = vshll.u32 %v13211_v3, 16  ;;  %2461 = vst.msk [vmem:[#allocation4 + $0x10] sm:$0xff] %vm1450_vm3, %v2398_v2  ;;  %v13234_v14 = vpop.f32.mrf.mxu0  ;;  %v1851_v43 = vld [vmem:[#allocation2 + $0xb3] sm:$0xff] }
 0x154   : > { %v13230_v62 = vmax.f32 %v1915_v36, %v1978_v40  ;;  %v1787_v32 = vmax.f32 %v1661_v20, %v1724_v27  ;;  %v1788_v37 = vmax.f32 %v1662_v1, %v1725_v31  ;;  %v1850_v41 = vld [vmem:[#allocation2 + $0xab] sm:$0xff]  ;;  %v2164_v55 = vmax.f32 %v2038_v50, %v2101_v15  ;;  %v1538_v63 = vld [vmem:[#allocation2 + $0xc0] sm:$0xff]  ;;  %v1977_v48 = vld [vmem:[#allocation2 + $0xb4] sm:$0xff] }
 0x155   : > { %v1409_v16 = vmul.f32 %v1346_v13, %v13166_v7  ;;  %v1351_v49 = vadd.f32 1.0, %v12440_v28  ;;  %v12442_v25 = vpop.eup %12441  ;;  %v2227_v12 = vld [vmem:[#allocation2 + $0xa6] sm:$0xff]  ;;  %v2858_v45 = vrot.slane %v2856_v44, 6  ;;  %v2861_v36 = vrot.slane %v2859_v4, 7  ;;  %v13239_v53 = vpop.f32.mrf.mxu0  ;;  %v2104_v1 = vld [vmem:[#allocation2 + $0xbd] sm:$0xff] }
 0x156   : > { %v1913_v51 = vmax.f32 %v1787_v32, %v1850_v41  ;;  %v1601_v0 = vld [vmem:[#allocation2 + $0xc1] sm:$0xff]  ;;  %v13237_v6 = vmul.f32 0.5, %v1018_v21  ;;  %v1914_v17 = vmax.f32 %v1788_v37, %v1851_v43  ;;  %v1976_v52 = vld [vmem:[#allocation2 + $0xac] sm:$0xff]  ;;  %v2290_v20 = vmax.f32 %v2164_v55, %v2227_v12  ;;  %v2103_v55 = vld [vmem:[#allocation2 + $0xb5] sm:$0xff] }
 0x157   : > { %v1664_v24 = vmax.f32 %v1538_v63, %v1601_v0  ;;  %1476 = vst.msk [vmem:[#allocation2 + $0xcc] sm:$0xff] %vm1450_vm3, %v1409_v16  ;;  %v1414_v7 = vmul.f32 %v1351_v49, %v13173_v5  ;;  %v2353_v2 = vld [vmem:[#allocation2 + $0xa7] sm:$0xff]  ;;  %v1349_v27 = vadd.f32 1.0, %v12442_v25  ;;  %v13243_v13 = vor.u32 %v2861_v36, %v2858_v45  ;;  %v13245_v28 = vpop.f32.mrf.mxu0 }
 0x158   : > { %v2039_v50 = vmax.f32 %v1913_v51, %v1976_v52  ;;  %v1727_v40 = vld [vmem:[#allocation2 + $0xc2] sm:$0xff]  ;;  %v1230_v44 = vmul.f32 0.70710677, %v1018_v21  ;;  %v13247_v31 = vmax.f32 %v1914_v17, %v1977_v48  ;;  %v2102_v32 = vld [vmem:[#allocation2 + $0xad] sm:$0xff]  ;;  %v2416_v15 = vmax.f32 %v2290_v20, %v2353_v2  ;;  %v1541_v41 = vld [vmem:[#allocation2 + $0xd8] sm:$0xff] }
 0x159   : > { %v1790_v4 = vmax.f32 %v1664_v24, %v1727_v40  ;;  %v2167_v37 = vmax.f32 %v13230_v62, %v2104_v1  ;;  %v1604_v43 = vld [vmem:[#allocation2 + $0xd9] sm:$0xff]  ;;  %1481 = vst.msk [vmem:[#allocation2 + $0xf4] sm:$0xff] %vm1450_vm3, %v1414_v7  ;;  %v12444_v5 = vpop.eup %12443  ;;  %v1853_v49 = vld [vmem:[#allocation2 + $0xc3] sm:$0xff]  ;;  %v1412_v51 = vmul.f32 %v1349_v27, %v13185_v58  ;;  %3173 = vrot.lane.b32.xlu0 %v13243_v13, %s17108_s25  ;;  %v13255_v62 = vmul.f32 0.5, %v13222_v22  ;;  %v13257_v12 = vpop.f32.mrf.mxu0  ;;  %v2228_v0 = vld [vmem:[#allocation2 + $0xae] sm:$0xff] }
 0x15a   : > { %v2165_v16 = vmax.f32 %v2039_v50, %v2102_v32  ;;  %v2230_v21 = vld [vmem:[#allocation2 + $0xbe] sm:$0xff]  ;;  %v1667_v25 = vmax.f32 %v1541_v41, %v1604_v43  ;;  %v2166_v63 = vmax.f32 %v13247_v31, %v2103_v55  ;;  %2479 = vst.msk [vmem:[#allocation4 + $0xa0] sm:$0xff] %vm1450_vm3, %v2416_v15  ;;  %v1352_v17 = vadd.f32 1.0, %v12444_v5  ;;  %v2354_v1 = vld [vmem:[#allocation2 + $0xaf] sm:$0xff] }
 0x15b   : > { %v1916_v45 = vmax.f32 %v1790_v4, %v1853_v49  ;;  %v2293_v36 = vmax.f32 %v2167_v37, %v2230_v21  ;;  %v1730_v48 = vld [vmem:[#allocation2 + $0xda] sm:$0xff]  ;;  %v1979_v58 = vld [vmem:[#allocation2 + $0xc4] sm:$0xff]  ;;  %1479 = vst.msk [vmem:[#allocation2 + $0xe4] sm:$0xff] %vm1450_vm3, %v1412_v51  ;;  %12451 = verf.f32 %v1230_v44  ;;  %v1228_v7 = vmul.f32 0.70710677, %v13222_v22  ;;  %v13263_v2 = vpop.f32.mrf.mxu0 }
 0x15c   : > { %v2291_v52 = vmax.f32 %v2165_v16, %v2228_v0  ;;  %v2356_v20 = vld [vmem:[#allocation2 + $0xbf] sm:$0xff]  ;;  %v1793_v24 = vmax.f32 %v1667_v25, %v1730_v48  ;;  %v12446_v40 = vpop.eup %12445  ;;  %v1415_v15 = vmul.f32 %v1352_v17, %v13191_v60  ;;  %v2863_v4 = vrot.slane %v13243_v13, 4  ;;  %v2229_v49 = vld [vmem:[#allocation2 + $0xb6] sm:$0xff] }
 0x15d   : > { %v2525_v50 = vld [vmem:[#allocation4 + $0x10] ss:$2 sm:$0xff]  ;;  %v2042_v27 = vmax.f32 %v1916_v45, %v1979_v58  ;;  %v2419_v31 = vmax.f32 %v2293_v36, %v2356_v20  ;;  %v12448_v37 = vpop.eup %12447  ;;  %v1350_v16 = vadd.f32 1.0, %v12446_v40  ;;  %12453 = verf.f32 %v1228_v7  ;;  %v13267_v22 = vpop.f32.mrf.mxu0 }
 0x15e   : > { %v1856_v32 = vld [vmem:[#allocation2 + $0xdb] sm:$0xff]  ;;  %v2417_v41 = vmax.f32 %v2291_v52, %v2354_v1  ;;  %v1539_v5 = vld [vmem:[#allocation2 + $0xc8] sm:$0xff]  ;;  %v1540_v55 = vld [vmem:[#allocation2 + $0xd0] sm:$0xff]  ;;  %1482 = vst.msk [vmem:[#allocation2 + $0xfc] sm:$0xff] %vm1450_vm3, %v1415_v15  ;;  %v1355_v60 = vadd.f32 1.0, %v12448_v37  ;;  %v13271_v0 = vpack.c.bf16 %v2525_v50, %v2525_v50  ;;  %v1031_v45 = vadd.f32 %v13161_v33, %v13123_v18 }
 0x15f   : > { %v1919_v43 = vmax.f32 %v1793_v24, %v1856_v32  ;;  %v1602_v44 = vld [vmem:[#allocation2 + $0xc9] sm:$0xff]  ;;  %2482 = vst.msk [vmem:[#allocation4 + $0xb8] sm:$0xff] %vm1450_vm3, %v2419_v31  ;;  %v1982_v21 = vld [vmem:[#allocation2 + $0xdc] sm:$0xff]  ;;  %v1603_v25 = vld [vmem:[#allocation2 + $0xd1] sm:$0xff]  ;;  %v13275_v36 = vmax.f32 %v2166_v63, %v2229_v49  ;;  %v1413_v58 = vmul.f32 %v1350_v16, %v13205_v46  ;;  %v13281_v20 = vpop.f32.mrf.mxu0  ;;  %v1023_v46 = vadd.f32 %v13161_v33, %v13132_v34 }
 0x160   : > { %v1665_v51 = vmax.f32 %v1539_v5, %v1602_v44  ;;  %17145 = vst [vmem:[#allocation14_spill] sm:$0xff] %v13271_v0  ;;  %2480 = vst.msk [vmem:[#allocation4 + $0xa8] sm:$0xff] %vm1450_vm3, %v2417_v41  ;;  %v1666_v17 = vmax.f32 %v1540_v55, %v1603_v25  ;;  %v1728_v52 = vld [vmem:[#allocation2 + $0xca] sm:$0xff]  ;;  %v12450_v24 = vpop.eup %12449  ;;  %v1729_v7 = vld [vmem:[#allocation2 + $0xd2] sm:$0xff]  ;;  %v1418_v1 = vmul.f32 %v1355_v60, %v13215_v35  ;;  %v2865_v18 = vshrl.u32 %v13271_v0, 16 }
 0x161   : > { %v13278_v48 = vmax.f32 %v1919_v43, %v1982_v21  ;;  %v2105_v50 = vld [vmem:[#allocation2 + $0xc5] sm:$0xff]  ;;  %v2868_v63 = vshll.u32 %v13271_v0, 16  ;;  %v1855_v15 = vld [vmem:[#allocation2 + $0xd3] sm:$0xff]  ;;  %1480 = vst.msk [vmem:[#allocation2 + $0xec] sm:$0xff] %vm1450_vm3, %v1413_v58  ;;  %v1353_v41 = vadd.f32 1.0, %v12450_v24  ;;  %v13289_v43 = vpop.f32.mrf.mxu0  ;;  %v13292_v21 = vmul.f32 0.5, %v1031_v45 }
 0x162   : > { %v1791_v40 = vmax.f32 %v1665_v51, %v1728_v52  ;;  %v1792_v31 = vmax.f32 %v1666_v17, %v1729_v7  ;;  %v1854_v32 = vld [vmem:[#allocation2 + $0xcb] sm:$0xff]  ;;  %v2168_v37 = vmax.f32 %v2042_v27, %v2105_v50  ;;  %v1542_v44 = vld [vmem:[#allocation2 + $0xe0] sm:$0xff]  ;;  %1485 = vst.msk [vmem:[#allocation2 + $0x114] sm:$0xff] %vm1450_vm3, %v1418_v1  ;;  %v2867_v16 = vrot.slane %v2865_v18, 6  ;;  %v1981_v25 = vld [vmem:[#allocation2 + $0xd4] sm:$0xff] }
 0x163   : > { %v2231_v55 = vld [vmem:[#allocation2 + $0xc6] sm:$0xff]  ;;  %v2870_v49 = vrot.slane %v2868_v63, 7  ;;  %v1416_v52 = vmul.f32 %v1353_v41, %v13227_v19  ;;  %v17146_v34 = vmov 0  ;;  %v13301_v58 = vpop.f32.mrf.mxu0  ;;  %v2108_v50 = vld [vmem:[#allocation2 + $0xdd] sm:$0xff]  ;;  %v1233_v18 = vmul.f32 0.70710677, %v1031_v45 }
 0x164   : > { %v1917_v5 = vmax.f32 %v1791_v40, %v1854_v32  ;;  %v1605_v35 = vld [vmem:[#allocation2 + $0xe1] sm:$0xff]  ;;  %v1918_v27 = vmax.f32 %v1792_v31, %v1855_v15  ;;  %v1980_v51 = vld [vmem:[#allocation2 + $0xcc] sm:$0xff]  ;;  %v2294_v60 = vmax.f32 %v2168_v37, %v2231_v55  ;;  %v17147_v34 = vsel %vm13297_vm7, 4294967295, %v17146_v34  ;;  %17149 = vst [vmem:[#allocation16_spill] sm:$0xff] %v13301_v58  ;;  %v13307_v31 = vld [vmem:[#allocation2 + $0xd5] sm:$0xff] }
 0x165   : > { %v1668_v17 = vmax.f32 %v1542_v44, %v1605_v35  ;;  %17148 = vst [vmem:[#allocation15_spill] sm:$0xff] %v17147_v34  ;;  %v2357_v7 = vld [vmem:[#allocation2 + $0xc7] sm:$0xff]  ;;  %v13303_v1 = vor.u32 %v2870_v49, %v2867_v16  ;;  %v1034_v63 = vadd.f32 %v13161_v33, %v13137_v29  ;;  %v2171_v41 = vmax.f32 %v13278_v48, %v2108_v50  ;;  %v1545_v55 = vld [vmem:[#allocation2 + $0xf8] sm:$0xff]  ;;  %v13313_v44 = vpop.f32.mrf.mxu0 }
 0x166   : > { %v2043_v24 = vmax.f32 %v1917_v5, %v1980_v51  ;;  %v1731_v40 = vld [vmem:[#allocation2 + $0xe2] sm:$0xff]  ;;  %v13309_v19 = vmax.f32 %v1918_v27, %v1981_v25  ;;  %v2106_v32 = vld [vmem:[#allocation2 + $0xcd] sm:$0xff]  ;;  %v2420_v15 = vmax.f32 %v2294_v60, %v2357_v7  ;;  %v1608_v5 = vld [vmem:[#allocation2 + $0xf9] sm:$0xff]  ;;  %1483 = vst.msk [vmem:[#allocation2 + $0x104] sm:$0xff] %vm1450_vm3, %v1416_v52  ;;  %12455 = verf.f32 %v1233_v18 }
 0x167   : > { %v1794_v37 = vmax.f32 %v1668_v17, %v1731_v40  ;;  %17150 = vst [vmem:[#allocation17_spill] sm:$0xff] %v13313_v44  ;;  %v2232_v45 = vld [vmem:[#allocation2 + $0xce] sm:$0xff]  ;;  %v1857_v16 = vld [vmem:[#allocation2 + $0xe3] sm:$0xff]  ;;  %v1671_v29 = vmax.f32 %v1545_v55, %v1608_v5  ;;  %v2872_v25 = vsel %vm13297_vm7, %v2863_v4, %v13303_v1  ;;  %v1734_v52 = vld [vmem:[#allocation2 + $0xfa] sm:$0xff]  ;;  %v1231_v7 = vmul.f32 0.70710677, %v1023_v46  ;;  %v13324_v40 = vpop.f32.mrf.mxu0 }
 0x168   : > { %v2169_v35 = vmax.f32 %v2043_v24, %v2106_v32  ;;  %v2234_v49 = vld [vmem:[#allocation2 + $0xde] sm:$0xff]  ;;  %v2527_v27 = vld [vmem:[#allocation4 + $0x20] ss:$2 sm:$0xff]  ;;  %2483 = vst.msk [vmem:[#allocation4 + $0xc0] sm:$0xff] %vm1450_vm3, %v2420_v15  ;;  %3175 = vrot.lane.b32.xlu0 %v2872_v25, %s17108_s25  ;;  %v13322_v24 = vmul.f32 0.5, %v1023_v46  ;;  %17151 = vst [vmem:[#allocation18_spill] sm:$0xff] %v13324_v40  ;;  %v12452_v13 = vpop.eup %12451  ;;  %v2170_v4 = vmax.f32 %v13309_v19, %v13307_v31 }
 0x169   : > { %v1920_v48 = vmax.f32 %v1794_v37, %v1857_v16  ;;  %v1983_v51 = vld [vmem:[#allocation2 + $0xe4] sm:$0xff]  ;;  %v2297_v60 = vmax.f32 %v2171_v41, %v2234_v49  ;;  %v1797_v18 = vmax.f32 %v1671_v29, %v1734_v52  ;;  %v1544_v15 = vld [vmem:[#allocation2 + $0xf0] sm:$0xff]  ;;  %v13328_v55 = vmul.f32 0.5, %v1034_v63  ;;  %v1860_v49 = vld [vmem:[#allocation2 + $0xfb] sm:$0xff]  ;;  %v13330_v0 = vpop.f32.mrf.mxu0 }
 0x16a   : > { %v2360_v17 = vld [vmem:[#allocation2 + $0xdf] sm:$0xff]  ;;  %v2295_v50 = vmax.f32 %v2169_v35, %v2232_v45  ;;  %v1543_v32 = vld [vmem:[#allocation2 + $0xe8] sm:$0xff]  ;;  %v1607_v25 = vld [vmem:[#allocation2 + $0xf1] sm:$0xff]  ;;  %v1234_v46 = vmul.f32 0.70710677, %v1034_v63  ;;  %v12454_v3 = vpop.eup %12453  ;;  %v1356_v35 = vadd.f32 1.0, %v12452_v13  ;;  %12457 = verf.f32 %v1231_v7 }
 0x16b   : > { %v1606_v37 = vld [vmem:[#allocation2 + $0xe9] sm:$0xff]  ;;  %v2046_v5 = vmax.f32 %v1920_v48, %v1983_v51  ;;  %v2423_v16 = vmax.f32 %v2297_v60, %v2360_v17  ;;  %v1923_v44 = vmax.f32 %v1797_v18, %v1860_v49  ;;  %v1670_v31 = vmax.f32 %v1544_v15, %v1607_v25  ;;  %v1986_v45 = vld [vmem:[#allocation2 + $0xfc] sm:$0xff]  ;;  %v1733_v29 = vld [vmem:[#allocation2 + $0xf2] sm:$0xff]  ;;  %v11676_v60 = vpop.f32.mrf.mxu0 }
 0x16c   : > { %v2358_v41 = vld [vmem:[#allocation2 + $0xcf] sm:$0xff]  ;;  %v1669_v30 = vmax.f32 %v1543_v32, %v1606_v37  ;;  %v2109_v58 = vld [vmem:[#allocation2 + $0xe5] sm:$0xff]  ;;  %v1354_v48 = vadd.f32 1.0, %v12454_v3  ;;  %v13333_v51 = vpack.c.bf16 %v2527_v27, %v2527_v27  ;;  %v1419_v13 = vmul.f32 %v1356_v35, %v13237_v6 }
 0x16d   : > { %v2421_v40 = vmax.f32 %v2295_v50, %v2358_v41  ;;  %v1732_v19 = vld [vmem:[#allocation2 + $0xea] sm:$0xff]  ;;  %2486 = vst.msk [vmem:[#allocation4 + $0xd8] sm:$0xff] %vm1450_vm3, %v2423_v16  ;;  %v2233_v63 = vld [vmem:[#allocation2 + $0xd6] sm:$0xff]  ;;  %v2049_v17 = vmax.f32 %v1923_v44, %v1986_v45  ;;  %v1796_v50 = vmax.f32 %v1670_v31, %v1733_v29  ;;  %v2172_v15 = vmax.f32 %v2046_v5, %v2109_v58  ;;  %v1546_v16 = vld [vmem:[#allocation2 + $0x100] sm:$0xff] }
 0x16e   : > { %v1795_v52 = vmax.f32 %v1669_v30, %v1732_v19  ;;  %v1858_v18 = vld [vmem:[#allocation2 + $0xeb] sm:$0xff]  ;;  %v1859_v32 = vld [vmem:[#allocation2 + $0xf3] sm:$0xff]  ;;  %v13337_v37 = vmax.f32 %v2170_v4, %v2233_v63  ;;  %v1609_v3 = vld [vmem:[#allocation2 + $0x101] sm:$0xff]  ;;  %v1417_v27 = vmul.f32 %v1354_v48, %v13255_v62  ;;  %12459 = verf.f32 %v1234_v46  ;;  %1486 = vst.msk [vmem:[#allocation2 + $0x11c] sm:$0xff] %vm1450_vm3, %v1419_v13 }
 0x16f   : > { %2484 = vst.msk [vmem:[#allocation4 + $0xc8] sm:$0xff] %vm1450_vm3, %v2421_v40  ;;  %v2235_v30 = vld [vmem:[#allocation2 + $0xe6] sm:$0xff]  ;;  %v1985_v7 = vld [vmem:[#allocation2 + $0xf4] sm:$0xff]  ;;  %v1922_v49 = vmax.f32 %v1796_v50, %v1859_v32  ;;  %v1672_v44 = vmax.f32 %v1546_v16, %v1609_v3  ;;  %v2875_v58 = vshrl.u32 %v13333_v51, 16  ;;  %v2112_v31 = vld [vmem:[#allocation2 + $0xfd] sm:$0xff]  ;;  %v2878_v19 = vshll.u32 %v13333_v51, 16 }
 0x170   : > { %v1921_v41 = vmax.f32 %v1795_v52, %v1858_v18  ;;  %v1984_v25 = vld [vmem:[#allocation2 + $0xec] sm:$0xff]  ;;  %v2298_v40 = vmax.f32 %v2172_v15, %v2235_v30  ;;  %v1735_v4 = vld [vmem:[#allocation2 + $0x102] sm:$0xff]  ;;  %1484 = vst.msk [vmem:[#allocation2 + $0x10c] sm:$0xff] %vm1450_vm3, %v1417_v27  ;;  %v1026_v62 = vadd.f32 %v13161_v33, %v13141_v57  ;;  %v1047_v46 = vadd.f32 %v13161_v33, %v13147_v39  ;;  %v2111_v60 = vld [vmem:[#allocation2 + $0xf5] sm:$0xff] }
 0x171   : > { %v2361_v6 = vld [vmem:[#allocation2 + $0xe7] sm:$0xff]  ;;  %v2048_v35 = vmax.f32 %v1922_v49, %v1985_v7  ;;  %v1798_v52 = vmax.f32 %v1672_v44, %v1735_v4  ;;  %v2175_v48 = vmax.f32 %v2049_v17, %v2112_v31  ;;  %v2238_v18 = vld [vmem:[#allocation2 + $0xfe] sm:$0xff]  ;;  %v2873_v32 = vrot.slane %v13303_v1, 4  ;;  %v2237_v27 = vld [vmem:[#allocation2 + $0xf6] sm:$0xff] }
 0x172   : > { %v2047_v5 = vmax.f32 %v1921_v41, %v1984_v25  ;;  %v2110_v45 = vld [vmem:[#allocation2 + $0xed] sm:$0xff]  ;;  %v2424_v29 = vmax.f32 %v2298_v40, %v2361_v6  ;;  %v1861_v50 = vld [vmem:[#allocation2 + $0x103] sm:$0xff]  ;;  %v2877_v15 = vrot.slane %v2875_v58, 6  ;;  %v2880_v13 = vrot.slane %v2878_v19, 7  ;;  %v2339_v44 = vld [vmem:[#allocation2 + $0x37] sm:$0xff] }
 0x173   : > { %v2174_v41 = vmax.f32 %v2048_v35, %v2111_v60  ;;  %v2236_v30 = vld [vmem:[#allocation2 + $0xee] sm:$0xff]  ;;  %v1924_v57 = vmax.f32 %v1798_v52, %v1861_v50  ;;  %v2301_v16 = vmax.f32 %v2175_v48, %v2238_v18  ;;  %v1232_v39 = vmul.f32 0.70710677, %v1026_v62  ;;  %v12456_v3 = vpop.eup %12455  ;;  %v2364_v49 = vld [vmem:[#allocation2 + $0xff] sm:$0xff] }
 0x174   : > { %v2173_v63 = vmax.f32 %v2047_v5, %v2110_v45  ;;  %2487 = vst.msk [vmem:[#allocation4 + $0xe0] sm:$0xff] %vm1450_vm3, %v2424_v29  ;;  %v13350_v17 = vor.u32 %v2880_v13, %v2877_v15  ;;  %v13352_v25 = vmul.f32 0.5, %v1026_v62  ;;  %v1237_v40 = vmul.f32 0.70710677, %v1047_v46  ;;  %v2362_v58 = vld [vmem:[#allocation2 + $0xef] sm:$0xff]  ;;  %v1987_v35 = vld [vmem:[#allocation2 + $0x104] sm:$0xff] }
 0x175   : > { %v13354_v1 = vmax.f32 %v2174_v41, %v2237_v27  ;;  %v2427_v5 = vmax.f32 %v2301_v16, %v2364_v49  ;;  %v1359_v6 = vadd.f32 1.0, %v12456_v3  ;;  %v13356_v4 = vmul.f32 0.5, %v1047_v46  ;;  %v2531_v31 = vld [vmem:[#allocation4 + $0x40] ss:$2 sm:$0xff]  ;;  %v1549_v45 = vld [vmem:[#allocation2 + $0x118] sm:$0xff] }
 0x176   : > { %v2299_v7 = vmax.f32 %v2173_v63, %v2236_v30  ;;  %v1612_v29 = vld [vmem:[#allocation2 + $0x119] sm:$0xff]  ;;  %v2882_v52 = vsel %vm13297_vm7, %v2873_v32, %v13350_v17  ;;  %12461 = verf.f32 %v1232_v39  ;;  %v2402_v62 = vmax.f32 %v13092_v42, %v2339_v44 }
 0x177   : > { %v2050_v48 = vmax.f32 %v1924_v57, %v1987_v35  ;;  %2490 = vst.msk [vmem:[#allocation4 + $0xf8] sm:$0xff] %vm1450_vm3, %v2427_v5  ;;  %v1675_v60 = vmax.f32 %v1549_v45, %v1612_v29  ;;  %v1422_v63 = vmul.f32 %v1359_v6, %v13292_v21  ;;  %3177 = vrot.lane.b32.xlu1 %v2882_v52, %s17108_s25  ;;  %12463 = verf.f32 %v1237_v40  ;;  %v2343_v46 = vld [vmem:[#allocation2 + $0x57] sm:$0xff]  ;;  %v1547_v18 = vld [vmem:[#allocation2 + $0x108] sm:$0xff]  ;;  %v12458_v21 = vpop.eup %12457 }
 0x178   : > { %v2425_v19 = vmax.f32 %v2299_v7, %v2362_v58  ;;  %v1738_v50 = vld [vmem:[#allocation2 + $0x11a] sm:$0xff]  ;;  %2465 = vst.msk [vmem:[#allocation4 + $0x30] sm:$0xff] %vm1450_vm3, %v2402_v62  ;;  %v2883_v32 = vrot.slane %v13350_v17, 4  ;;  %v1039_v42 = vadd.f32 %v13161_v33, %v13155_v56  ;;  %v1050_v15 = vadd.f32 %v13161_v33, %v13170_v11  ;;  %v1548_v30 = vld [vmem:[#allocation2 + $0x110] sm:$0xff] }
 0x179   : > { %v13372_v13 = vpack.c.bf16 %v2531_v31, %v2531_v31  ;;  %v1801_v41 = vmax.f32 %v1675_v60, %v1738_v50  ;;  %v1610_v57 = vld [vmem:[#allocation2 + $0x109] sm:$0xff]  ;;  %v1611_v16 = vld [vmem:[#allocation2 + $0x111] sm:$0xff]  ;;  %1489 = vst.msk [vmem:[#allocation2 + $0x134] sm:$0xff] %vm1450_vm3, %v1422_v63  ;;  %v1042_v39 = vadd.f32 %v13161_v33, %v13175_v26  ;;  %v2406_v3 = vmax.f32 %v13125_v59, %v2343_v46  ;;  %v1864_v27 = vld [vmem:[#allocation2 + $0x11b] sm:$0xff] }
 0x17a   : > { %2488 = vst.msk [vmem:[#allocation4 + $0xe8] sm:$0xff] %vm1450_vm3, %v2425_v19  ;;  %v1063_v56 = vadd.f32 %v13161_v33, %v13180_v54  ;;  %v1673_v7 = vmax.f32 %v1547_v18, %v1610_v57  ;;  %v1674_v11 = vmax.f32 %v1548_v30, %v1611_v16  ;;  %v1736_v49 = vld [vmem:[#allocation2 + $0x10a] sm:$0xff]  ;;  %v1357_v40 = vadd.f32 1.0, %v12458_v21  ;;  %v1737_v6 = vld [vmem:[#allocation2 + $0x112] sm:$0xff]  ;;  %v1990_v18 = vld [vmem:[#allocation2 + $0x11c] sm:$0xff] }
 0x17b   : > { %v13382_v44 = vadd.f32 %v13161_v33, %v13187_v10  ;;  %v12460_v58 = vpop.eup %12459  ;;  %v1927_v5 = vmax.f32 %v1801_v41, %v1864_v27  ;;  %v2113_v31 = vld [vmem:[#allocation2 + $0x105] sm:$0xff]  ;;  %v13384_v19 = vmul.f32 0.5, %v1039_v42  ;;  %v1235_v26 = vmul.f32 0.70710677, %v1039_v42  ;;  %2469 = vst.msk [vmem:[#allocation4 + $0x50] sm:$0xff] %vm1450_vm3, %v2406_v3  ;;  %v1863_v62 = vld [vmem:[#allocation2 + $0x113] sm:$0xff] }
 0x17c   : > { %v13386_v59 = vmul.f32 0.5, %v1050_v15  ;;  %v1799_v54 = vmax.f32 %v1673_v7, %v1736_v49  ;;  %v1800_v35 = vmax.f32 %v1674_v11, %v1737_v6  ;;  %v2176_v45 = vmax.f32 %v2050_v48, %v2113_v31  ;;  %v1862_v52 = vld [vmem:[#allocation2 + $0x10b] sm:$0xff]  ;;  %v1989_v50 = vld [vmem:[#allocation2 + $0x114] sm:$0xff] }
 0x17d   : > { %v1420_v29 = vmul.f32 %v1357_v40, %v13322_v24  ;;  %v2239_v10 = vld [vmem:[#allocation2 + $0x106] sm:$0xff]  ;;  %v1360_v60 = vadd.f32 1.0, %v12460_v58  ;;  %12465 = verf.f32 %v1235_v26  ;;  %v1238_v63 = vmul.f32 0.70710677, %v1050_v15 }
 0x17e   : > { %v13392_v46 = vadd.f32 %v13161_v33, %v13197_v9  ;;  %v1925_v42 = vmax.f32 %v1799_v54, %v1862_v52  ;;  %v1926_v21 = vmax.f32 %v1800_v35, %v1863_v62  ;;  %v2302_v41 = vmax.f32 %v2176_v45, %v2239_v10  ;;  %v1988_v30 = vld [vmem:[#allocation2 + $0x10c] sm:$0xff]  ;;  %v2115_v9 = vld [vmem:[#allocation2 + $0x115] sm:$0xff] }
 0x17f   : > { %1487 = vst.msk [vmem:[#allocation2 + $0x124] sm:$0xff] %vm1450_vm3, %v1420_v29  ;;  %v2895_v48 = vshrl.u32 %v13372_v13, 16  ;;  %v13396_v24 = vmax.f32 %v1927_v5, %v1990_v18  ;;  %v2365_v57 = vld [vmem:[#allocation2 + $0x107] sm:$0xff]  ;;  %v1423_v16 = vmul.f32 %v1360_v60, %v13328_v55  ;;  %v2529_v15 = vld [vmem:[#allocation4 + $0x30] ss:$2 sm:$0xff]  ;;  %12467 = verf.f32 %v1238_v63 }
 0x180   : > { %v2898_v33 = vshll.u32 %v13372_v13, 16  ;;  %v2051_v3 = vmax.f32 %v1925_v42, %v1988_v30  ;;  %v2052_v27 = vmax.f32 %v1926_v21, %v1989_v50  ;;  %v2428_v7 = vmax.f32 %v2302_v41, %v2365_v57  ;;  %v2114_v49 = vld [vmem:[#allocation2 + $0x10d] sm:$0xff]  ;;  %v2241_v63 = vld [vmem:[#allocation2 + $0x116] sm:$0xff] }
 0x181   : > { %v13400_v11 = vpack.c.bf16 %v2529_v15, %v2529_v15  ;;  %1490 = vst.msk [vmem:[#allocation2 + $0x13c] sm:$0xff] %vm1450_vm3, %v1423_v16  ;;  %v2897_v40 = vrot.slane %v2895_v48, 6  ;;  %v13403_v5 = vmul.f32 0.5, %v1042_v39  ;;  %v1236_v6 = vmul.f32 0.70710677, %v1042_v39  ;;  %v2240_v29 = vld [vmem:[#allocation2 + $0x10e] sm:$0xff] }
 0x182   : > { %v2900_v58 = vrot.slane %v2898_v33, 7  ;;  %v2177_v31 = vmax.f32 %v2051_v3, %v2114_v49  ;;  %v2178_v55 = vmax.f32 %v2052_v27, %v2115_v9  ;;  %2491 = vst.msk [vmem:[#allocation4 + $0x100] sm:$0xff] %vm1450_vm3, %v2428_v7  ;;  %v2533_v35 = vld [vmem:[#allocation4 + $0x50] ss:$2 sm:$0xff]  ;;  %v13410_v62 = vmul.f32 0.5, %v1063_v56  ;;  %v2366_v41 = vld [vmem:[#allocation2 + $0x10f] sm:$0xff] }
 0x183   : > { %v2885_v26 = vshrl.u32 %v13400_v11, 16  ;;  %v2888_v54 = vshll.u32 %v13400_v11, 16  ;;  %v12462_v45 = vpop.eup %12461  ;;  %12469 = verf.f32 %v1236_v6  ;;  %v13408_v52 = vpack.c.bf16 %v2533_v35, %v2533_v35  ;;  %v2535_v6 = vld [vmem:[#allocation4 + $0x60] ss:$2 sm:$0xff] }
 0x184   : > { %v1241_v10 = vmul.f32 0.70710677, %v1063_v56  ;;  %v12464_v60 = vpop.eup %12463  ;;  %v2303_v39 = vmax.f32 %v2177_v31, %v2240_v29  ;;  %v1358_v50 = vadd.f32 1.0, %v12462_v45  ;;  %v13412_v42 = vor.u32 %v2900_v58, %v2897_v40 }
 0x185   : > { %v2887_v18 = vrot.slane %v2885_v26, 6  ;;  %v13414_v21 = vmax.f32 %v2178_v55, %v2241_v63  ;;  %v1363_v57 = vadd.f32 1.0, %v12464_v60  ;;  %v2890_v16 = vrot.slane %v2888_v54, 7 }
 0x186   : > { %v1550_v48 = vld [vmem:[#allocation2 + $0x120] sm:$0xff]  ;;  %12471 = verf.f32 %v1241_v10  ;;  %v2429_v15 = vmax.f32 %v2303_v39, %v2366_v41  ;;  %v1421_v56 = vmul.f32 %v1358_v50, %v13352_v25  ;;  %v2905_v3 = vshrl.u32 %v13408_v52, 16 }
 0x187   : > { %v1613_v30 = vld [vmem:[#allocation2 + $0x121] sm:$0xff]  ;;  %v1426_v49 = vmul.f32 %v1363_v57, %v13356_v4  ;;  %v2891_v40 = vor.u32 %v2890_v16, %v2887_v18  ;;  %v2908_v58 = vshll.u32 %v13408_v52, 16  ;;  %v2903_v25 = vrot.slane %v13412_v42, 4 }
 0x188   : > { %v1676_v33 = vmax.f32 %v1550_v48, %v1613_v30  ;;  %v2116_v9 = vld [vmem:[#allocation2 + $0x11d] sm:$0xff]  ;;  %2492 = vst.msk [vmem:[#allocation4 + $0x108] sm:$0xff] %vm1450_vm3, %v2429_v15  ;;  %1488 = vst.msk [vmem:[#allocation2 + $0x12c] sm:$0xff] %vm1450_vm3, %v1421_v56  ;;  %v2907_v35 = vrot.slane %v2905_v3, 6  ;;  %v13425_v45 = vmul.f32 0.5, %v13382_v44  ;;  %v13434_v30 = vpack.c.bf16 %v2535_v6, %v2535_v6 }
 0x189   : > { %v1739_v27 = vld [vmem:[#allocation2 + $0x122] sm:$0xff]  ;;  %v2179_v7 = vmax.f32 %v13396_v24, %v2116_v9  ;;  %v1553_v26 = vld [vmem:[#allocation2 + $0x138] sm:$0xff]  ;;  %1493 = vst.msk [vmem:[#allocation2 + $0x154] sm:$0xff] %vm1450_vm3, %v1426_v49  ;;  %v2892_v10 = vsel %vm13297_vm7, %v2883_v32, %v2891_v40  ;;  %v2893_v60 = vrot.slane %v2891_v40, 4  ;;  %v2910_v41 = vrot.slane %v2908_v58, 7 }
 0x18a   : > { %v1802_v31 = vmax.f32 %v1676_v33, %v1739_v27  ;;  %v2242_v55 = vld [vmem:[#allocation2 + $0x11e] sm:$0xff]  ;;  %v12466_v63 = vpop.eup %12465  ;;  %3179 = vrot.lane.b32.xlu1 %v2892_v10, %s17108_s25  ;;  %v1239_v48 = vmul.f32 0.70710677, %v13382_v44  ;;  %v13441_v56 = vmul.f32 0.5, %v13392_v46  ;;  %v1242_v44 = vmul.f32 0.70710677, %v13392_v46 }
 0x18b   : > { %v1616_v54 = vld [vmem:[#allocation2 + $0x139] sm:$0xff]  ;;  %v1865_v24 = vld [vmem:[#allocation2 + $0x123] sm:$0xff]  ;;  %v2305_v4 = vmax.f32 %v2179_v7, %v2242_v55  ;;  %v1361_v15 = vadd.f32 1.0, %v12466_v63  ;;  %v2902_v17 = vsel %vm13297_vm7, %v2893_v60, %v13412_v42  ;;  %v2911_v9 = vor.u32 %v2910_v41, %v2907_v35 }
 0x18c   : > { %v1679_v29 = vmax.f32 %v1553_v26, %v1616_v54  ;;  %v1928_v39 = vmax.f32 %v1802_v31, %v1865_v24  ;;  %v2368_v50 = vld [vmem:[#allocation2 + $0x11f] sm:$0xff]  ;;  %v12468_v32 = vpop.eup %12467  ;;  %3181 = vrot.lane.b32.xlu0 %v2902_v17, %s17108_s25  ;;  %12473 = verf.f32 %v1239_v48  ;;  %v2915_v42 = vshrl.u32 %v13434_v30, 16  ;;  %v2347_v40 = vld [vmem:[#allocation2 + $0x77] sm:$0xff] }
 0x18d   : > { %v1742_v18 = vld [vmem:[#allocation2 + $0x13a] sm:$0xff]  ;;  %v2431_v57 = vmax.f32 %v2305_v4, %v2368_v50  ;;  %v1991_v3 = vld [vmem:[#allocation2 + $0x124] sm:$0xff]  ;;  %v1424_v7 = vmul.f32 %v1361_v15, %v13384_v19  ;;  %v1364_v49 = vadd.f32 1.0, %v12468_v32  ;;  %v2912_v6 = vsel %vm13297_vm7, %v2903_v25, %v2911_v9 }
 0x18e   : > { %v1805_v16 = vmax.f32 %v1679_v29, %v1742_v18  ;;  %v1868_v33 = vld [vmem:[#allocation2 + $0x13b] sm:$0xff]  ;;  %v2054_v58 = vmax.f32 %v1928_v39, %v1991_v3  ;;  %12475 = verf.f32 %v1242_v44  ;;  %v2918_v31 = vshll.u32 %v13434_v30, 16  ;;  %3183 = vrot.lane.b32.xlu1 %v2912_v6, %s17108_s25 }
 0x18f   : > { %2494 = vst.msk [vmem:[#allocation4 + $0x118] sm:$0xff] %vm1450_vm3, %v2431_v57  ;;  %v1551_v55 = vld [vmem:[#allocation2 + $0x128] sm:$0xff]  ;;  %v1552_v26 = vld [vmem:[#allocation2 + $0x130] sm:$0xff]  ;;  %1491 = vst.msk [vmem:[#allocation2 + $0x144] sm:$0xff] %vm1450_vm3, %v1424_v7  ;;  %v1427_v54 = vmul.f32 %v1364_v49, %v13386_v59  ;;  %v2913_v19 = vrot.slane %v2911_v9, 4  ;;  %v2917_v35 = vrot.slane %v2915_v42, 6  ;;  %v2410_v39 = vmax.f32 %v13152_v38, %v2347_v40 }
 0x190   : > { %v1931_v27 = vmax.f32 %v1805_v16, %v1868_v33  ;;  %v1614_v46 = vld [vmem:[#allocation2 + $0x129] sm:$0xff]  ;;  %v13456_v24 = vld [vmem:[%s17143_s3] ss:$0 sm:$0xff]  ;;  %v12470_v4 = vpop.eup %12469  ;;  %v1615_v10 = vld [vmem:[#allocation2 + $0x131] sm:$0xff]  ;;  %v2920_v63 = vrot.slane %v2918_v31, 7  ;;  %vm8509_vm4 = vcmask 1042432  }
 0x191   : > { %v1058_v25 = vadd.f32 %v13456_v24, %v13202_v8  ;;  %v1994_v29 = vld [vmem:[#allocation2 + $0x13c] sm:$0xff]  ;;  %v1677_v60 = vmax.f32 %v1551_v55, %v1614_v46  ;;  %v1079_v59 = vadd.f32 %v13456_v24, %v13213_v47  ;;  %v1678_v18 = vmax.f32 %v1552_v26, %v1615_v10  ;;  %v1740_v41 = vld [vmem:[#allocation2 + $0x12a] sm:$0xff]  ;;  %1494 = vst.msk [vmem:[#allocation2 + $0x15c] sm:$0xff] %vm1450_vm3, %v1427_v54  ;;  %v1741_v16 = vld [vmem:[#allocation2 + $0x132] sm:$0xff] }
 0x192   : > { %v13463_v50 = vmax.f32 %v1931_v27, %v1994_v29  ;;  %v1362_v48 = vadd.f32 1.0, %v12470_v4  ;;  %v2117_v17 = vld [vmem:[#allocation2 + $0x125] sm:$0xff]  ;;  %v13468_v32 = vor.u32 %v2920_v63, %v2917_v35  ;;  %2473 = vst.msk [vmem:[#allocation4 + $0x70] sm:$0xff] %vm1450_vm3, %v2410_v39  ;;  %v1071_v38 = vadd.f32 %v13456_v24, %v13225_v23  ;;  %v1867_v44 = vld [vmem:[#allocation2 + $0x133] sm:$0xff]  ;;  %vm14015_vm9 = vmand %vm8509_vm4, %vm8510_vm6 }
 0x193   : > { %v13466_v57 = vmul.f32 0.5, %v1058_v25  ;;  %v12472_v8 = vpop.eup %12471  ;;  %v1803_v15 = vmax.f32 %v1677_v60, %v1740_v41  ;;  %v1240_v33 = vmul.f32 0.70710677, %v1058_v25  ;;  %v1804_v47 = vmax.f32 %v1678_v18, %v1741_v16  ;;  %v1866_v9 = vld [vmem:[#allocation2 + $0x12b] sm:$0xff]  ;;  %v1993_v49 = vld [vmem:[#allocation2 + $0x134] sm:$0xff]  ;;  %vm14140_vm4 = vmand %vm2685_vm11, %vm2852_vm5 }
 0x194   : > { %v2180_v3 = vmax.f32 %v2054_v58, %v2117_v17  ;;  %v1425_v27 = vmul.f32 %v1362_v48, %v13403_v5  ;;  %v1367_v7 = vadd.f32 1.0, %v12472_v8  ;;  %v1992_v40 = vld [vmem:[#allocation2 + $0x12c] sm:$0xff]  ;;  %v2922_v31 = vsel %vm13297_vm7, %v2913_v19, %v13468_v32  ;;  %v12033_v23 = vld [vmem:[%s17092_s4 + $0x78] sm:$0xff]  }
 0x195   : > { %v1929_v42 = vmax.f32 %v1803_v15, %v1866_v9  ;;  %v2243_v6 = vld [vmem:[#allocation2 + $0x126] sm:$0xff]  ;;  %12477 = verf.f32 %v1240_v33  ;;  %v13477_v55 = vmul.f32 0.5, %v1079_v59  ;;  %v1930_v58 = vmax.f32 %v1804_v47, %v1867_v44  ;;  %3185 = vrot.lane.b32.xlu0 %v2922_v31, %s17108_s25  ;;  %v12034_v19 = vld [vmem:[%s17092_s4 + $0xb8] sm:$0xff]   ;;  %v12035_v35 = vld [vmem:[%s17092_s4 + $0x70] sm:$0xff]   ;;  %11677 = vmatprep.subr.bf16.mxu1 %v12033_v23 }
 0x196   : > { %v2539_v26 = vld [vmem:[#allocation4 + $0x80] ss:$2 sm:$0xff]  ;;  %v2306_v46 = vmax.f32 %v2180_v3, %v2243_v6  ;;  %1492 = vst.msk [vmem:[#allocation2 + $0x14c] sm:$0xff] %vm1450_vm3, %v1425_v27  ;;  %v1430_v5 = vmul.f32 %v1367_v7, %v13410_v62  ;;  %v1245_v54 = vmul.f32 0.70710677, %v1079_v59  ;;  %v1554_v10 = vld [vmem:[#allocation2 + $0x140] sm:$0xff]  ;;  %v1082_v39 = vadd.f32 %v13456_v24, %v13234_v14  ;;  %11773 = vmatprep.subr.bf16.mxu0 %v12034_v19 }
 0x197   : > { %v12036_v25 = vld [vmem:[%s17092_s4 + $0xb0] sm:$0xff]   ;;  %v2055_v4 = vmax.f32 %v1929_v42, %v1992_v40  ;;  %v2369_v29 = vld [vmem:[#allocation2 + $0x127] sm:$0xff]  ;;  %v2923_v62 = vrot.slane %v13468_v32, 4  ;;  %v1243_v63 = vmul.f32 0.70710677, %v1071_v38  ;;  %v13497_v59 = vmax.f32 %v1930_v58, %v1993_v49  ;;  %v2120_v8 = vld [vmem:[#allocation2 + $0x13d] sm:$0xff]  ;;  %11678 = vmatpush3.bf16.msra.mxu1 %v12033_v23  ;;  %11774 = vmatpush3.bf16.msra.mxu0 %v12034_v19 }
 0x198   : > { %v1617_v60 = vld [vmem:[#allocation2 + $0x141] sm:$0xff]  ;;  %v2118_v18 = vld [vmem:[#allocation2 + $0x12d] sm:$0xff]  ;;  %v2432_v41 = vmax.f32 %v2306_v46, %v2369_v29  ;;  %1497 = vst.msk [vmem:[#allocation2 + $0x174] sm:$0xff] %vm1450_vm3, %v1430_v5  ;;  %12479 = verf.f32 %v1245_v54  ;;  %v13500_v16 = vld [vmem:[#allocation2 + $0x135] sm:$0xff]  ;;  %v2183_v47 = vmax.f32 %v13463_v50, %v2120_v8  ;;  %v13503_v9 = vmul.f32 0.5, %v1071_v38  ;;  %11679 = vmatprep.subr.bf16.mxu1 %v12035_v35  ;;  %11775 = vmatprep.subr.bf16.mxu0 %v12036_v25 }
 0x199   : > { %v1680_v48 = vmax.f32 %v1554_v10, %v1617_v60  ;;  %v2181_v15 = vmax.f32 %v2055_v4, %v2118_v18  ;;  %v2244_v17 = vld [vmem:[#allocation2 + $0x12e] sm:$0xff]  ;;  %v1743_v33 = vld [vmem:[#allocation2 + $0x142] sm:$0xff]  ;;  %v1557_v14 = vld [vmem:[#allocation2 + $0x158] sm:$0xff]  ;;  %12481 = verf.f32 %v1243_v63  ;;  %v12474_v44 = vpop.eup %12473  ;;  %v13506_v42 = vmul.f32 0.5, %v1082_v39 }
 0x19a   : > { %v2370_v3 = vld [vmem:[#allocation2 + $0x12f] sm:$0xff]  ;;  %2495 = vst.msk [vmem:[#allocation4 + $0x120] sm:$0xff] %vm1450_vm3, %v2432_v41  ;;  %v2246_v7 = vld [vmem:[#allocation2 + $0x13e] sm:$0xff]  ;;  %v1246_v40 = vmul.f32 0.70710677, %v1082_v39  ;;  %v13508_v6 = vpack.c.bf16 %v2539_v26, %v2539_v26  ;;  %v1365_v5 = vadd.f32 1.0, %v12474_v44  ;;  %v2182_v19 = vmax.f32 %v13497_v59, %v13500_v16 }
 0x19b   : > { %v1806_v27 = vmax.f32 %v1680_v48, %v1743_v33  ;;  %v1620_v49 = vld [vmem:[#allocation2 + $0x159] sm:$0xff]  ;;  %v2307_v50 = vmax.f32 %v2181_v15, %v2244_v17  ;;  %v1869_v31 = vld [vmem:[#allocation2 + $0x143] sm:$0xff]  ;;  %v2309_v23 = vmax.f32 %v2183_v47, %v2246_v7  ;;  %v12476_v54 = vpop.eup %12475  ;;  %11680 = vmatpush3.bf16.msra.mxu1 %v12035_v35  ;;  %11776 = vmatpush3.bf16.msra.mxu0 %v12036_v25  ;;  %vm2847_vm6 = vsmask.f32 3328 }
 0x19c   : > { %v1995_v38 = vld [vmem:[#allocation2 + $0x144] sm:$0xff]  ;;  %v1683_v46 = vmax.f32 %v1557_v14, %v1620_v49  ;;  %v1746_v29 = vld [vmem:[#allocation2 + $0x15a] sm:$0xff]  ;;  %12483 = verf.f32 %v1246_v40  ;;  %v2935_v60 = vshrl.u32 %v13508_v6, 16  ;;  %v1428_v15 = vmul.f32 %v1365_v5, %v13425_v45  ;;  %vm14157_vm5 = vmand %vm1447_vm2, %vm2847_vm6 }
 0x19d   : > { %v2372_v58 = vld [vmem:[#allocation2 + $0x13f] sm:$0xff]  ;;  %v1932_v4 = vmax.f32 %v1806_v27, %v1869_v31  ;;  %v12037_v26 = vld [vmem:[%s17092_s4 + $0x68] sm:$0xff]   ;;  %v2433_v63 = vmax.f32 %v2307_v50, %v2370_v3  ;;  %v1556_v48 = vld [vmem:[#allocation2 + $0x150] sm:$0xff]  ;;  %v1368_v47 = vadd.f32 1.0, %v12476_v54  ;;  %v2938_v45 = vshll.u32 %v13508_v6, 16 }
 0x19e   : > { %v2537_v10 = vld [vmem:[#allocation4 + $0x70] ss:$2 sm:$0xff]  ;;  %v2435_v39 = vmax.f32 %v2309_v23, %v2372_v58  ;;  %v1809_v18 = vmax.f32 %v1683_v46, %v1746_v29  ;;  %v1555_v41 = vld [vmem:[#allocation2 + $0x148] sm:$0xff]  ;;  %11681 = vmatprep.subr.bf16.mxu1 %v12037_v26  ;;  %1495 = vst.msk [vmem:[#allocation2 + $0x164] sm:$0xff] %vm1450_vm3, %v1428_v15  ;;  %v2937_v27 = vrot.slane %v2935_v60, 6 }
 0x19f   : > { %v1618_v8 = vld [vmem:[#allocation2 + $0x149] sm:$0xff]  ;;  %v2058_v59 = vmax.f32 %v1932_v4, %v1995_v38  ;;  %v1872_v16 = vld [vmem:[#allocation2 + $0x15b] sm:$0xff]  ;;  %v1619_v17 = vld [vmem:[#allocation2 + $0x151] sm:$0xff]  ;;  %v13517_v14 = vpack.c.bf16 %v2537_v10, %v2537_v10  ;;  %2496 = vst.msk [vmem:[#allocation4 + $0x128] sm:$0xff] %vm1450_vm3, %v2433_v63  ;;  %v1431_v50 = vmul.f32 %v1368_v47, %v13441_v56  ;;  %11682 = vmatpush3.bf16.msra.mxu1 %v12037_v26  ;;  %v2940_v29 = vrot.slane %v2938_v45, 7 }
 0x1a0   : > { %v1681_v33 = vmax.f32 %v1555_v41, %v1618_v8  ;;  %2498 = vst.msk [vmem:[#allocation4 + $0x138] sm:$0xff] %vm1450_vm3, %v2435_v39  ;;  %v1935_v35 = vmax.f32 %v1809_v18, %v1872_v16  ;;  %v1682_v44 = vmax.f32 %v1556_v48, %v1619_v17  ;;  %v1744_v3 = vld [vmem:[#allocation2 + $0x14a] sm:$0xff]  ;;  %v2245_v25 = vld [vmem:[#allocation2 + $0x136] sm:$0xff]  ;;  %v13531_v18 = vadd.f32 %v13456_v24, %v13239_v53  ;;  %v12039_v26 = vld [vmem:[%s17092_s4 + $0x60] sm:$0xff]  }
 0x1a1   : > { %v1745_v7 = vld [vmem:[#allocation2 + $0x152] sm:$0xff]  ;;  %v2121_v40 = vld [vmem:[#allocation2 + $0x145] sm:$0xff]  ;;  %v2925_v31 = vshrl.u32 %v13517_v14, 16  ;;  %v2928_v38 = vshll.u32 %v13517_v14, 16  ;;  %v13526_v23 = vmax.f32 %v2182_v19, %v2245_v25  ;;  %v1998_v58 = vld [vmem:[#allocation2 + $0x15c] sm:$0xff]  ;;  %1498 = vst.msk [vmem:[#allocation2 + $0x17c] sm:$0xff] %vm1450_vm3, %v1431_v50  ;;  %11683 = vmatprep.subr.bf16.mxu1 %v12039_v26 }
 0x1a2   : > { %v1807_v49 = vmax.f32 %v1681_v33, %v1744_v3  ;;  %v1808_v46 = vmax.f32 %v1682_v44, %v1745_v7  ;;  %v1870_v5 = vld [vmem:[#allocation2 + $0x14b] sm:$0xff]  ;;  %v1871_v54 = vld [vmem:[#allocation2 + $0x153] sm:$0xff]  ;;  %v2184_v4 = vmax.f32 %v2058_v59, %v2121_v40  ;;  %v12478_v10 = vpop.eup %12477  ;;  %v13539_v41 = vmax.f32 %v1935_v35, %v1998_v58  ;;  %v12040_v16 = vld [vmem:[%s17092_s4 + $0xa0] sm:$0xff]  }
 0x1a3   : > { %v2247_v63 = vld [vmem:[#allocation2 + $0x146] sm:$0xff]  ;;  %v2927_v39 = vrot.slane %v2925_v31, 6  ;;  %v2930_v56 = vrot.slane %v2928_v38, 7  ;;  %v1366_v59 = vadd.f32 1.0, %v12478_v10  ;;  %v13547_v53 = vld [vmem:[%s17092_s4 + $0x58] sm:$0xff]   ;;  %v13549_v35 = vor.u32 %v2940_v29, %v2937_v27  ;;  %11684 = vmatpush3.bf16.msra.mxu1 %v12039_v26  ;;  %v2374_v26 = vld [vmem:[#allocation2 + $0x14f] sm:$0xff] }
 0x1a4   : > { %v1933_v60 = vmax.f32 %v1807_v49, %v1870_v5  ;;  %v12038_v19 = vld [vmem:[%s17092_s4 + $0xa8] sm:$0xff]   ;;  %v1934_v48 = vmax.f32 %v1808_v46, %v1871_v54  ;;  %v2310_v15 = vmax.f32 %v2184_v4, %v2247_v63  ;;  %v2351_v17 = vld [vmem:[#allocation2 + $0x97] sm:$0xff]  ;;  %v1244_v45 = vmul.f32 0.70710677, %v13531_v18  ;;  %11685 = vmatprep.subr.bf16.mxu1 %v13547_v53 }
 0x1a5   : > { %v1996_v8 = vld [vmem:[#allocation2 + $0x14c] sm:$0xff]  ;;  %v1997_v33 = vld [vmem:[#allocation2 + $0x154] sm:$0xff]  ;;  %v2931_v3 = vor.u32 %v2930_v56, %v2927_v39  ;;  %11777 = vmatprep.subr.bf16.mxu0 %v12038_v19  ;;  %v12480_v25 = vpop.eup %12479  ;;  %v1429_v31 = vmul.f32 %v1366_v59, %v13466_v57  ;;  %v2414_v38 = vmax.f32 %v13200_v61, %v2351_v17  ;;  %v1558_v5 = vld [vmem:[#allocation2 + $0x160] sm:$0xff]  ;;  %vm4905_vm11 = vsmask.f32 5376 }
 0x1a6   : > { %v2059_v47 = vmax.f32 %v1933_v60, %v1996_v8  ;;  %v2373_v44 = vld [vmem:[#allocation2 + $0x147] sm:$0xff]  ;;  %v2123_v7 = vld [vmem:[#allocation2 + $0x155] sm:$0xff]  ;;  %v2060_v49 = vmax.f32 %v1934_v48, %v1997_v33  ;;  %11778 = vmatpush3.bf16.msra.mxu0 %v12038_v19  ;;  %v12482_v58 = vpop.eup %12481  ;;  %v1371_v4 = vadd.f32 1.0, %v12480_v25  ;;  %v2124_v63 = vld [vmem:[#allocation2 + $0x15d] sm:$0xff]  ;;  %12485 = verf.f32 %v1244_v45 }
 0x1a7   : > { %v2122_v40 = vld [vmem:[#allocation2 + $0x14d] sm:$0xff]  ;;  %v2436_v50 = vmax.f32 %v2310_v15, %v2373_v44  ;;  %v1621_v54 = vld [vmem:[#allocation2 + $0x161] sm:$0xff]  ;;  %v2932_v27 = vsel %vm13297_vm7, %v2923_v62, %v2931_v3  ;;  %v2933_v29 = vrot.slane %v2931_v3, 4  ;;  %11779 = vmatprep.subr.bf16.mxu0 %v12040_v16  ;;  %v12042_v57 = vld [vmem:[%s17092_s4 + $0x98] sm:$0xff]   ;;  %1496 = vst.msk [vmem:[#allocation2 + $0x16c] sm:$0xff] %vm1450_vm3, %v1429_v31  ;;  %v1369_v32 = vadd.f32 1.0, %v12482_v58  ;;  %11686 = vmatpush3.bf16.msra.mxu1 %v13547_v53 }
 0x1a8   : > { %v2185_v46 = vmax.f32 %v2059_v47, %v2122_v40  ;;  %v2186_v10 = vmax.f32 %v2060_v49, %v2123_v7  ;;  %v2248_v61 = vld [vmem:[#allocation2 + $0x14e] sm:$0xff]  ;;  %v1684_v60 = vmax.f32 %v1558_v5, %v1621_v54  ;;  %3187 = vrot.lane.b32.xlu1 %v2932_v27, %s17152_s20  ;;  %2477 = vst.msk [vmem:[#allocation4 + $0x90] sm:$0xff] %vm1450_vm3, %v2414_v38  ;;  %v2249_v56 = vld [vmem:[#allocation2 + $0x156] sm:$0xff]  ;;  %v1747_v48 = vld [vmem:[#allocation2 + $0x162] sm:$0xff]  ;;  %v13579_v7 = vmul.f32 0.5, %v13531_v18 }
 0x1a9   : > { %2499 = vst.msk [vmem:[#allocation4 + $0x140] sm:$0xff] %vm1450_vm3, %v2436_v50  ;;  %v2543_v62 = vld [vmem:[#allocation4 + $0xa0] ss:$2 sm:$0xff]  ;;  %v2187_v8 = vmax.f32 %v13539_v41, %v2124_v63  ;;  %v1434_v15 = vmul.f32 %v1371_v4, %v13477_v55  ;;  %v2942_v59 = vsel %vm13297_vm7, %v2933_v29, %v13549_v35  ;;  %v12484_v17 = vpop.eup %12483  ;;  %v2250_v44 = vld [vmem:[#allocation2 + $0x15e] sm:$0xff]  ;;  %v1432_v25 = vmul.f32 %v1369_v32, %v13503_v9  ;;  %vm14178_vm0 = vmand %vm2686_vm12, %vm4905_vm11 }
 0x1aa   : > { %v12043_v39 = vld [vmem:[%s17092_s4 + $0x50] sm:$0xff]   ;;  %v2311_v19 = vmax.f32 %v2185_v46, %v2248_v61  ;;  %v13574_v33 = vmax.f32 %v2186_v10, %v2249_v56  ;;  %v1810_v47 = vmax.f32 %v1684_v60, %v1747_v48  ;;  %v1561_v3 = vld [vmem:[#allocation2 + $0x178] sm:$0xff]  ;;  %3189 = vrot.lane.b32.xlu0 %v2942_v59, %s17152_s20  ;;  %11780 = vmatpush3.bf16.msra.mxu0 %v12040_v16  ;;  %v1873_v41 = vld [vmem:[#allocation2 + $0x163] sm:$0xff]  ;;  %v1372_v50 = vadd.f32 1.0, %v12484_v17 }
 0x1ab   : > { %v1624_v45 = vld [vmem:[#allocation2 + $0x179] sm:$0xff]  ;;  %v2313_v49 = vmax.f32 %v2187_v8, %v2250_v44  ;;  %1501 = vst.msk [vmem:[#allocation2 + $0x194] sm:$0xff] %vm1450_vm3, %v1434_v15  ;;  %11781 = vmatprep.subr.bf16.mxu0 %v12042_v57  ;;  %v12044_v9 = vld [vmem:[%s17092_s4 + $0x90] sm:$0xff]   ;;  %1499 = vst.msk [vmem:[#allocation2 + $0x184] sm:$0xff] %vm1450_vm3, %v1432_v25  ;;  %v1095_v18 = vadd.f32 %v13456_v24, %v13245_v28  ;;  %v1087_v16 = vadd.f32 %v13456_v24, %v13257_v12  ;;  %vm3306_vm12 = vcmask 1042944  }
 0x1ac   : > { %v2437_v55 = vmax.f32 %v2311_v19, %v2374_v26  ;;  %v1687_v40 = vmax.f32 %v1561_v3, %v1624_v45  ;;  %v1936_v31 = vmax.f32 %v1810_v47, %v1873_v41  ;;  %v2376_v38 = vld [vmem:[#allocation2 + $0x15f] sm:$0xff]  ;;  %v1098_v46 = vadd.f32 %v13456_v24, %v13263_v2  ;;  %11687 = vmatprep.subr.bf16.mxu1 %v12043_v39  ;;  %v12045_v53 = vld [vmem:[%s17092_s4 + $0x48] sm:$0xff]  }
 0x1ad   : > { %v1750_v58 = vld [vmem:[#allocation2 + $0x17a] sm:$0xff]  ;;  %v1999_v5 = vld [vmem:[#allocation2 + $0x164] sm:$0xff]  ;;  %v2439_v54 = vmax.f32 %v2313_v49, %v2376_v38  ;;  %v1435_v4 = vmul.f32 %v1372_v50, %v13506_v42  ;;  %v13598_v29 = vpack.c.bf16 %v2543_v62, %v2543_v62  ;;  %v2943_v12 = vrot.slane %v13549_v35, 4  ;;  %11688 = vmatpush3.bf16.msra.mxu1 %v12043_v39 }
 0x1ae   : > { %2500 = vst.msk [vmem:[#allocation4 + $0x148] sm:$0xff] %vm1450_vm3, %v2437_v55  ;;  %v1813_v27 = vmax.f32 %v1687_v40, %v1750_v58  ;;  %v2062_v28 = vmax.f32 %v1936_v31, %v1999_v5  ;;  %v1876_v10 = vld [vmem:[#allocation2 + $0x17b] sm:$0xff]  ;;  %v13601_v61 = vmul.f32 0.5, %v1095_v18  ;;  %v1249_v2 = vmul.f32 0.70710677, %v1095_v18  ;;  %11782 = vmatpush3.bf16.msra.mxu0 %v12042_v57  ;;  %v13606_v60 = vld [vmem:[%s17092_s4 + $0x88] sm:$0xff]   ;;  %11689 = vmatprep.subr.bf16.mxu1 %v12045_v53 }
 0x1af   : > { %2502 = vst.msk [vmem:[#allocation4 + $0x158] sm:$0xff] %vm1450_vm3, %v2439_v54  ;;  %v1559_v32 = vld [vmem:[#allocation2 + $0x168] sm:$0xff]  ;;  %v1560_v42 = vld [vmem:[#allocation2 + $0x170] sm:$0xff]  ;;  %1502 = vst.msk [vmem:[#allocation2 + $0x19c] sm:$0xff] %vm1450_vm3, %v1435_v4  ;;  %v13610_v56 = vmul.f32 0.5, %v1087_v16  ;;  %v1090_v26 = vadd.f32 %v13456_v24, %v13267_v22  ;;  %11783 = vmatprep.subr.bf16.mxu0 %v12044_v9  ;;  %v2955_v15 = vshrl.u32 %v13598_v29, 16 }
 0x1b0   : > { %v1939_v63 = vmax.f32 %v1813_v27, %v1876_v10  ;;  %v1622_v62 = vld [vmem:[#allocation2 + $0x169] sm:$0xff]  ;;  %v1247_v19 = vmul.f32 0.70710677, %v1087_v16  ;;  %v1623_v57 = vld [vmem:[#allocation2 + $0x171] sm:$0xff]  ;;  %12487 = verf.f32 %v1249_v2  ;;  %v1250_v8 = vmul.f32 0.70710677, %v1098_v46 }
 0x1b1   : > { %v1685_v48 = vmax.f32 %v1559_v32, %v1622_v62  ;;  %v12050_v59 = vld [vmem:[%s17092_s4 + $0x40] sm:$0xff]   ;;  %v1686_v47 = vmax.f32 %v1560_v42, %v1623_v57  ;;  %v1748_v44 = vld [vmem:[#allocation2 + $0x16a] sm:$0xff]  ;;  %v13618_v3 = vmul.f32 0.5, %v1098_v46  ;;  %v2958_v22 = vshll.u32 %v13598_v29, 16  ;;  %v2355_v39 = vld [vmem:[#allocation2 + $0xb7] sm:$0xff]  ;;  %11690 = vmatpush3.bf16.msra.mxu1 %v12045_v53 }
 0x1b2   : > { %v2002_v17 = vld [vmem:[#allocation2 + $0x17c] sm:$0xff]  ;;  %12489 = verf.f32 %v1247_v19  ;;  %v1749_v25 = vld [vmem:[#allocation2 + $0x172] sm:$0xff]  ;;  %v2125_v41 = vld [vmem:[#allocation2 + $0x165] sm:$0xff]  ;;  %v2957_v49 = vrot.slane %v2955_v15, 6  ;;  %11784 = vmatpush3.bf16.msra.mxu0 %v12044_v9  ;;  %v1248_v18 = vmul.f32 0.70710677, %v1090_v26  ;;  %v2418_v9 = vmax.f32 %v13275_v36, %v2355_v39  ;;  %11691 = vmatprep.subr.bf16.mxu1 %v12050_v59 }
 0x1b3   : > { %v2065_v45 = vmax.f32 %v1939_v63, %v2002_v17  ;;  %v1811_v55 = vmax.f32 %v1685_v48, %v1748_v44  ;;  %12491 = verf.f32 %v1250_v8  ;;  %v1812_v40 = vmax.f32 %v1686_v47, %v1749_v25  ;;  %v1874_v50 = vld [vmem:[#allocation2 + $0x16b] sm:$0xff]  ;;  %v1875_v31 = vld [vmem:[#allocation2 + $0x173] sm:$0xff]  ;;  %11785 = vmatprep.subr.bf16.mxu0 %v13606_v60  ;;  %v12051_v16 = vld [vmem:[%s17092_s4 + $0x80] sm:$0xff]   ;;  %v12486_v10 = vpop.eup %12485 }
 0x1b4   : > { %v2188_v38 = vmax.f32 %v2062_v28, %v2125_v41  ;;  %v2960_v58 = vrot.slane %v2958_v22, 7  ;;  %v2251_v5 = vld [vmem:[#allocation2 + $0x166] sm:$0xff]  ;;  %v13625_v4 = vmul.f32 0.5, %v1090_v26  ;;  %v1111_v28 = vadd.f32 %v13456_v24, %v13281_v20  ;;  %v2001_v2 = vld [vmem:[#allocation2 + $0x174] sm:$0xff]  ;;  %v2128_v26 = vld [vmem:[#allocation2 + $0x17d] sm:$0xff]  ;;  %2481 = vst.msk [vmem:[#allocation4 + $0xb0] sm:$0xff] %vm1450_vm3, %v2418_v9 }
 0x1b5   : > { %v1937_v46 = vmax.f32 %v1811_v55, %v1874_v50  ;;  %v1562_v54 = vld [vmem:[#allocation2 + $0x180] sm:$0xff]  ;;  %v1938_v63 = vmax.f32 %v1812_v40, %v1875_v31  ;;  %v2000_v53 = vld [vmem:[#allocation2 + $0x16c] sm:$0xff]  ;;  %v1103_v62 = vadd.f32 %v13456_v24, %v13289_v43  ;;  %v1370_v8 = vadd.f32 1.0, %v12486_v10  ;;  %v2127_v43 = vld [vmem:[#allocation2 + $0x175] sm:$0xff]  ;;  %11692 = vmatpush3.bf16.msra.mxu1 %v12050_v59 }
 0x1b6   : > { %v1625_v27 = vld [vmem:[#allocation2 + $0x181] sm:$0xff]  ;;  %v2314_v32 = vmax.f32 %v2188_v38, %v2251_v5  ;;  %v13632_v15 = vor.u32 %v2960_v58, %v2957_v49  ;;  %12493 = verf.f32 %v1248_v18  ;;  %11786 = vmatpush3.bf16.msra.mxu0 %v13606_v60  ;;  %v2126_v20 = vld [vmem:[#allocation2 + $0x16d] sm:$0xff]  ;;  %v2191_v44 = vmax.f32 %v2065_v45, %v2128_v26  ;;  %v1565_v22 = vld [vmem:[#allocation2 + $0x198] sm:$0xff] }
 0x1b7   : > { %v1688_v42 = vmax.f32 %v1562_v54, %v1625_v27  ;;  %v2063_v19 = vmax.f32 %v1937_v46, %v2000_v53  ;;  %v2377_v57 = vld [vmem:[#allocation2 + $0x167] sm:$0xff]  ;;  %v2064_v36 = vmax.f32 %v1938_v63, %v2001_v2  ;;  %v1628_v39 = vld [vmem:[#allocation2 + $0x199] sm:$0xff]  ;;  %11787 = vmatprep.subr.bf16.mxu0 %v12051_v16  ;;  %v1433_v49 = vmul.f32 %v1370_v8, %v13579_v7  ;;  %v2378_v63 = vld [vmem:[#allocation2 + $0x16f] sm:$0xff] }
 0x1b8   : > { %v1751_v48 = vld [vmem:[#allocation2 + $0x182] sm:$0xff]  ;;  %v2440_v17 = vmax.f32 %v2314_v32, %v2377_v57  ;;  %v1691_v40 = vmax.f32 %v1565_v22, %v1628_v39  ;;  %v13637_v50 = vmul.f32 0.5, %v1111_v28  ;;  %v2252_v60 = vld [vmem:[#allocation2 + $0x16e] sm:$0xff]  ;;  %v1754_v45 = vld [vmem:[#allocation2 + $0x19a] sm:$0xff]  ;;  %v1253_v46 = vmul.f32 0.70710677, %v1111_v28 }
 0x1b9   : > { %v1814_v47 = vmax.f32 %v1688_v42, %v1751_v48  ;;  %v2189_v25 = vmax.f32 %v2063_v19, %v2126_v20  ;;  %v1877_v55 = vld [vmem:[#allocation2 + $0x183] sm:$0xff]  ;;  %v2190_v31 = vmax.f32 %v2064_v36, %v2127_v43  ;;  %v2253_v5 = vld [vmem:[#allocation2 + $0x176] sm:$0xff]  ;;  %1500 = vst.msk [vmem:[#allocation2 + $0x18c] sm:$0xff] %vm1450_vm3, %v1433_v49  ;;  %v2963_v7 = vrot.slane %v13632_v15, 4 }
 0x1ba   : > { %v2254_v41 = vld [vmem:[#allocation2 + $0x17e] sm:$0xff]  ;;  %2503 = vst.msk [vmem:[#allocation4 + $0x160] sm:$0xff] %vm1450_vm3, %v2440_v17  ;;  %v1817_v9 = vmax.f32 %v1691_v40, %v1754_v45  ;;  %v2547_v59 = vld [vmem:[#allocation4 + $0xc0] ss:$2 sm:$0xff]  ;;  %11788 = vmatpush3.bf16.msra.mxu0 %v12051_v16  ;;  %12495 = verf.f32 %v1253_v46  ;;  %v13646_v42 = vmul.f32 0.5, %v1103_v62  ;;  %vm5499_vm11 = vcmask 1043457  }
 0x1bb   : > { %v1940_v38 = vmax.f32 %v1814_v47, %v1877_v55  ;;  %v2317_v58 = vmax.f32 %v2191_v44, %v2254_v41  ;;  %v2541_v18 = vld [vmem:[#allocation4 + $0x90] ss:$2 sm:$0xff]  ;;  %v2315_v54 = vmax.f32 %v2189_v25, %v2252_v60  ;;  %v13644_v2 = vmax.f32 %v2190_v31, %v2253_v5  ;;  %v17154_v41 = vld [vmem:[#allocation17_spill] sm:$0xff] }
 0x1bc   : > { %v2380_v27 = vld [vmem:[#allocation2 + $0x17f] sm:$0xff]  ;;  %v13641_v10 = vpack.c.bf16 %v2541_v18, %v2541_v18  ;;  %v1251_v20 = vmul.f32 0.70710677, %v1103_v62  ;;  %v13655_v44 = vpack.c.bf16 %v2547_v59, %v2547_v59  ;;  %v1106_v40 = vadd.f32 %v13456_v24, %v17154_v41 }
 0x1bd   : > { %v2443_v53 = vmax.f32 %v2317_v58, %v2380_v27  ;;  %v1880_v32 = vld [vmem:[#allocation2 + $0x19b] sm:$0xff]  ;;  %v2441_v28 = vmax.f32 %v2315_v54, %v2378_v63  ;;  %v2003_v19 = vld [vmem:[#allocation2 + $0x184] sm:$0xff]  ;;  %v12488_v8 = vpop.eup %12487 }
 0x1be   : > { %v1943_v57 = vmax.f32 %v1817_v9, %v1880_v32  ;;  %v2945_v48 = vshrl.u32 %v13641_v10, 16  ;;  %v2948_v26 = vshll.u32 %v13641_v10, 16  ;;  %v13650_v36 = vmax.f32 %v1940_v38, %v2003_v19  ;;  %v2545_v16 = vld [vmem:[#allocation4 + $0xb0] ss:$2 sm:$0xff] }
 0x1bf   : > { %2506 = vst.msk [vmem:[#allocation4 + $0x178] sm:$0xff] %vm1450_vm3, %v2443_v53  ;;  %v17153_v17 = vld [vmem:[#allocation16_spill] sm:$0xff]  ;;  %v12490_v22 = vpop.eup %12489  ;;  %2504 = vst.msk [vmem:[#allocation4 + $0x168] sm:$0xff] %vm1450_vm3, %v2441_v28  ;;  %v2006_v39 = vld [vmem:[#allocation2 + $0x19c] sm:$0xff]  ;;  %v1375_v55 = vadd.f32 1.0, %v12488_v8  ;;  %v13662_v62 = vpack.c.bf16 %v2545_v16, %v2545_v16  ;;  %12497 = verf.f32 %v1251_v20  ;;  %v2975_v63 = vshrl.u32 %v13655_v44, 16 }
 0x1c0   : > { %v1114_v47 = vadd.f32 %v13456_v24, %v17153_v17  ;;  %v2947_v43 = vrot.slane %v2945_v48, 6  ;;  %v2950_v25 = vrot.slane %v2948_v26, 7  ;;  %v12492_v49 = vpop.eup %12491  ;;  %v13660_v31 = vmax.f32 %v1943_v57, %v2006_v39  ;;  %v1563_v46 = vld [vmem:[#allocation2 + $0x188] sm:$0xff]  ;;  %v1564_v5 = vld [vmem:[#allocation2 + $0x190] sm:$0xff] }
 0x1c1   : > { %v1373_v60 = vadd.f32 1.0, %v12490_v22  ;;  %v1438_v58 = vmul.f32 %v1375_v55, %v13601_v61  ;;  %v1376_v45 = vadd.f32 1.0, %v12492_v49  ;;  %v1626_v54 = vld [vmem:[#allocation2 + $0x189] sm:$0xff]  ;;  %v2965_v9 = vshrl.u32 %v13662_v62, 16  ;;  %v1627_v53 = vld [vmem:[#allocation2 + $0x191] sm:$0xff] }
 0x1c2   : > { %v2951_v38 = vor.u32 %v2950_v25, %v2947_v43  ;;  %v1254_v18 = vmul.f32 0.70710677, %v1114_v47  ;;  %v2968_v59 = vshll.u32 %v13662_v62, 16  ;;  %v1689_v32 = vmax.f32 %v1563_v46, %v1626_v54  ;;  %v1752_v48 = vld [vmem:[#allocation2 + $0x18a] sm:$0xff]  ;;  %v1753_v16 = vld [vmem:[#allocation2 + $0x192] sm:$0xff] }
 0x1c3   : > { %v1436_v27 = vmul.f32 %v1373_v60, %v13610_v56  ;;  %1505 = vst.msk [vmem:[#allocation2 + $0x1b4] sm:$0xff] %vm1450_vm3, %v1438_v58  ;;  %v1439_v28 = vmul.f32 %v1376_v45, %v13618_v3  ;;  %v12494_v57 = vpop.eup %12493  ;;  %v1690_v56 = vmax.f32 %v1564_v5, %v1627_v53  ;;  %v2967_v26 = vrot.slane %v2965_v9, 6  ;;  %v2129_v20 = vld [vmem:[#allocation2 + $0x185] sm:$0xff]  ;;  %v1879_v41 = vld [vmem:[#allocation2 + $0x193] sm:$0xff] }
 0x1c4   : > { %v2952_v61 = vsel %vm13297_vm7, %v2943_v12, %v2951_v38  ;;  %v2953_v19 = vrot.slane %v2951_v38, 4  ;;  %v2970_v8 = vrot.slane %v2968_v59, 7  ;;  %12499 = verf.f32 %v1254_v18  ;;  %v1878_v39 = vld [vmem:[#allocation2 + $0x18b] sm:$0xff]  ;;  %v2359_v18 = vld [vmem:[#allocation2 + $0xd7] sm:$0xff] }
 0x1c5   : > { %3191 = vrot.lane.b32.xlu1 %v2952_v61, %s17152_s20  ;;  %1503 = vst.msk [vmem:[#allocation2 + $0x1a4] sm:$0xff] %vm1450_vm3, %v1436_v27  ;;  %v1815_v35 = vmax.f32 %v1689_v32, %v1752_v48  ;;  %1506 = vst.msk [vmem:[#allocation2 + $0x1bc] sm:$0xff] %vm1450_vm3, %v1439_v28  ;;  %v1374_v3 = vadd.f32 1.0, %v12494_v57  ;;  %v13681_v17 = vmul.f32 0.5, %v1114_v47  ;;  %v1816_v22 = vmax.f32 %v1690_v56, %v1753_v16  ;;  %v2255_v60 = vld [vmem:[#allocation2 + $0x186] sm:$0xff]  ;;  %v2005_v9 = vld [vmem:[#allocation2 + $0x194] sm:$0xff] }
 0x1c6   : > { %v2962_v12 = vsel %vm13297_vm7, %v2953_v19, %v13632_v15  ;;  %v2192_v43 = vmax.f32 %v13650_v36, %v2129_v20  ;;  %v2971_v25 = vor.u32 %v2970_v8, %v2967_v26  ;;  %v2978_v55 = vshll.u32 %v13655_v44, 16  ;;  %v2004_v47 = vld [vmem:[#allocation2 + $0x18c] sm:$0xff]  ;;  %v2131_v57 = vld [vmem:[#allocation2 + $0x195] sm:$0xff] }
 0x1c7   : > { %3193 = vrot.lane.b32.xlu0 %v2962_v12, %s17152_s20  ;;  %v1941_v49 = vmax.f32 %v1815_v35, %v1878_v39  ;;  %v1437_v38 = vmul.f32 %v1374_v3, %v13625_v4  ;;  %v2977_v58 = vrot.slane %v2975_v63, 6  ;;  %v1252_v45 = vmul.f32 0.70710677, %v1106_v40  ;;  %v12496_v27 = vpop.eup %12495  ;;  %v2381_v53 = vld [vmem:[#allocation2 + $0x187] sm:$0xff]  ;;  %v2257_v35 = vld [vmem:[#allocation2 + $0x196] sm:$0xff] }
 0x1c8   : > { %v1942_v46 = vmax.f32 %v1816_v22, %v1879_v41  ;;  %v2318_v5 = vmax.f32 %v2192_v43, %v2255_v60  ;;  %v2972_v36 = vsel %vm13297_vm7, %v2963_v7, %v2971_v25  ;;  %v13691_v54 = vmul.f32 0.5, %v1106_v40  ;;  %v2551_v32 = vld [vmem:[#allocation4 + $0xe0] ss:$2 sm:$0xff] }
 0x1c9   : > { %v2067_v59 = vmax.f32 %v1941_v49, %v2004_v47  ;;  %1504 = vst.msk [vmem:[#allocation2 + $0x1ac] sm:$0xff] %vm1450_vm3, %v1437_v38  ;;  %3195 = vrot.lane.b32.xlu1 %v2972_v36, %s17152_s20  ;;  %v2980_v4 = vrot.slane %v2978_v55, 7  ;;  %12501 = verf.f32 %v1252_v45  ;;  %v2422_v63 = vmax.f32 %v13337_v37, %v2359_v18  ;;  %v2130_v15 = vld [vmem:[#allocation2 + $0x18d] sm:$0xff] }
 0x1ca   : > { %v2068_v61 = vmax.f32 %v1942_v46, %v2005_v9  ;;  %v2444_v28 = vmax.f32 %v2318_v5, %v2381_v53  ;;  %v1379_v19 = vadd.f32 1.0, %v12496_v27  ;;  %v17155_v7 = vld [vmem:[#allocation18_spill] sm:$0xff]  ;;  %v2973_v8 = vrot.slane %v2971_v25, 4 }
 0x1cb   : > { %v1127_v40 = vadd.f32 %v13456_v24, %v17155_v7  ;;  %v2193_v56 = vmax.f32 %v2067_v59, %v2130_v15  ;;  %v13698_v16 = vor.u32 %v2980_v4, %v2977_v58  ;;  %2485 = vst.msk [vmem:[#allocation4 + $0xd0] sm:$0xff] %vm1450_vm3, %v2422_v63  ;;  %v13703_v37 = vadd.f32 %v13456_v24, %v13330_v0  ;;  %v2256_v12 = vld [vmem:[#allocation2 + $0x18e] sm:$0xff] }
 0x1cc   : > { %v1566_v48 = vld [vmem:[#allocation2 + $0x1a0] sm:$0xff]  ;;  %v2194_v20 = vmax.f32 %v2068_v61, %v2131_v57  ;;  %2507 = vst.msk [vmem:[#allocation4 + $0x180] sm:$0xff] %vm1450_vm3, %v2444_v28  ;;  %v1442_v39 = vmul.f32 %v1379_v19, %v13637_v50  ;;  %v13707_v43 = vpack.c.bf16 %v2551_v32, %v2551_v32  ;;  %v12498_v25 = vpop.eup %12497  ;;  %v2382_v41 = vld [vmem:[#allocation2 + $0x18f] sm:$0xff]  ;;  %v1569_v38 = vld [vmem:[#allocation2 + $0x1b8] sm:$0xff] }
 0x1cd   : > { %v1629_v26 = vld [vmem:[#allocation2 + $0x1a1] sm:$0xff]  ;;  %v2319_v55 = vmax.f32 %v2193_v56, %v2256_v12  ;;  %v2982_v0 = vsel %vm13297_vm7, %v2973_v8, %v13698_v16  ;;  %v13713_v24 = vmul.f32 0.5, %v1127_v40  ;;  %v1632_v18 = vld [vmem:[#allocation2 + $0x1b9] sm:$0xff]  ;;  %v1377_v50 = vadd.f32 1.0, %v12498_v25 }
 0x1ce   : > { %v1692_v3 = vmax.f32 %v1566_v48, %v1629_v26  ;;  %v2132_v22 = vld [vmem:[#allocation2 + $0x19d] sm:$0xff]  ;;  %1509 = vst.msk [vmem:[#allocation2 + $0x1d4] sm:$0xff] %vm1450_vm3, %v1442_v39  ;;  %3197 = vrot.lane.b32.xlu0 %v2982_v0, %s17152_s20  ;;  %v2983_v46 = vrot.slane %v13698_v16, 4  ;;  %v1257_v47 = vmul.f32 0.70710677, %v1127_v40  ;;  %v13718_v5 = vmax.f32 %v2194_v20, %v2257_v35 }
 0x1cf   : > { %v1755_v49 = vld [vmem:[#allocation2 + $0x1a2] sm:$0xff]  ;;  %v2195_v60 = vmax.f32 %v13660_v31, %v2132_v22  ;;  %v2445_v31 = vmax.f32 %v2319_v55, %v2382_v41  ;;  %v1695_v59 = vmax.f32 %v1569_v38, %v1632_v18  ;;  %v1758_v4 = vld [vmem:[#allocation2 + $0x1ba] sm:$0xff]  ;;  %v1440_v61 = vmul.f32 %v1377_v50, %v13646_v42 }
 0x1d0   : > { %v1818_v58 = vmax.f32 %v1692_v3, %v1755_v49  ;;  %v2258_v45 = vld [vmem:[#allocation2 + $0x19e] sm:$0xff]  ;;  %v1567_v63 = vld [vmem:[#allocation2 + $0x1a8] sm:$0xff]  ;;  %v1568_v32 = vld [vmem:[#allocation2 + $0x1b0] sm:$0xff]  ;;  %12503 = verf.f32 %v1257_v47  ;;  %v1255_v15 = vmul.f32 0.70710677, %v13703_v37  ;;  %v2995_v48 = vshrl.u32 %v13707_v43, 16  ;;  %v1121_v3 = vpop.f32.mrf.mxu0 }
 0x1d1   : > { %v1881_v36 = vld [vmem:[#allocation2 + $0x1a3] sm:$0xff]  ;;  %v2321_v27 = vmax.f32 %v2195_v60, %v2258_v45  ;;  %v12500_v28 = vpop.eup %12499  ;;  %2508 = vst.msk [vmem:[#allocation4 + $0x188] sm:$0xff] %vm1450_vm3, %v2445_v31  ;;  %v1821_v40 = vmax.f32 %v1695_v59, %v1758_v4  ;;  %v1631_v56 = vld [vmem:[#allocation2 + $0x1b1] sm:$0xff]  ;;  %v2998_v26 = vshll.u32 %v13707_v43, 16  ;;  %v1884_v35 = vld [vmem:[#allocation2 + $0x1bb] sm:$0xff] }
 0x1d2   : > { %v2384_v9 = vld [vmem:[#allocation2 + $0x19f] sm:$0xff]  ;;  %v1944_v53 = vmax.f32 %v1818_v58, %v1881_v36  ;;  %v1630_v57 = vld [vmem:[#allocation2 + $0x1a9] sm:$0xff]  ;;  %v1694_v12 = vmax.f32 %v1568_v32, %v1631_v56  ;;  %1507 = vst.msk [vmem:[#allocation2 + $0x1c4] sm:$0xff] %vm1450_vm3, %v1440_v61  ;;  %v1380_v42 = vadd.f32 1.0, %v12500_v28  ;;  %v1757_v25 = vld [vmem:[#allocation2 + $0x1b2] sm:$0xff]  ;;  %12505 = verf.f32 %v1255_v15 }
 0x1d3   : > { %v2007_v19 = vld [vmem:[#allocation2 + $0x1a4] sm:$0xff]  ;;  %v2447_v7 = vmax.f32 %v2321_v27, %v2384_v9  ;;  %v1693_v20 = vmax.f32 %v1567_v63, %v1630_v57  ;;  %v1947_v22 = vmax.f32 %v1821_v40, %v1884_v35  ;;  %v2997_v41 = vrot.slane %v2995_v48, 6  ;;  %v2363_v60 = vld [vmem:[#allocation2 + $0xf7] sm:$0xff]  ;;  %v12671_v9 = vld [vmem:[%s17143_s3] ss:$0 sm:$0xff]  ;;  %s11952_s3 = smul.u32 1280, %s12840_s17 }
 0x1d4   : > { %v2070_v8 = vmax.f32 %v1944_v53, %v2007_v19  ;;  %v1756_v39 = vld [vmem:[#allocation2 + $0x1aa] sm:$0xff]  ;;  %v3000_v49 = vrot.slane %v2998_v26, 7  ;;  %v1820_v0 = vmax.f32 %v1694_v12, %v1757_v25  ;;  %v1443_v18 = vmul.f32 %v1380_v42, %v13681_v17  ;;  %v1883_v50 = vld [vmem:[#allocation2 + $0x1b3] sm:$0xff]  ;;  %v2010_v32 = vld [vmem:[#allocation2 + $0x1bc] sm:$0xff]  ;;  %s12741_s17 = smov [#allocation8]  }
 0x1d5   : > { %2510 = vst.msk [vmem:[#allocation4 + $0x198] sm:$0xff] %vm1450_vm3, %v2447_v7  ;;  %v2133_v55 = vld [vmem:[#allocation2 + $0x1a5] sm:$0xff]  ;;  %v1819_v38 = vmax.f32 %v1693_v20, %v1756_v39  ;;  %v13729_v36 = vmul.f32 0.5, %v13703_v37  ;;  %v1122_v59 = vadd.f32 %v12671_v9, %v1121_v3  ;;  %v2426_v53 = vmax.f32 %v13354_v1, %v2363_v60  ;;  %v2009_v63 = vld [vmem:[#allocation2 + $0x1b4] sm:$0xff]  ;;  %s17041_s25 = scalar_lea.hbm %s17102_s14, %s11952_s3  ;;  %s12680_s15 = sshll.u32 %s12741_s17, 4  ;;  %s12681_s15 = int_to_ptr.vmem [resolvable:$false] %s12680_s15 }
 0x1d6   : > { %v1882_v58 = vld [vmem:[#allocation2 + $0x1ab] sm:$0xff]  ;;  %v2196_v45 = vmax.f32 %v2070_v8, %v2133_v55  ;;  %v2549_v31 = vld [vmem:[#allocation4 + $0xd0] ss:$2 sm:$0xff]  ;;  %v13731_v27 = vor.u32 %v3000_v49, %v2997_v41  ;;  %v12502_v4 = vpop.eup %12501  ;;  %v1946_v17 = vmax.f32 %v1820_v0, %v1883_v50  ;;  %1510 = vst.msk [vmem:[#allocation2 + $0x1dc] sm:$0xff] %vm1450_vm3, %v1443_v18  ;;  %v2073_v19 = vmax.f32 %v1947_v22, %v2010_v32  ;;  %s12682_s26 = scalar_lea.vmem %s12681_s15, 2560  ;;  %p12683_p0 = scmp.lt.s32.totalorder %s17043_s28, %s12681_s15 }
 0x1d7   : > { %v2259_v47 = vld [vmem:[#allocation2 + $0x1a6] sm:$0xff]  ;;  %v1945_v61 = vmax.f32 %v1819_v38, %v1882_v58  ;;  %v13738_v28 = vpack.c.bf16 %v2549_v31, %v2549_v31  ;;  %v1378_v57 = vadd.f32 1.0, %v12502_v4  ;;  %v13740_v56 = vmul.f32 0.5, %v1122_v59  ;;  %2489 = vst.msk [vmem:[#allocation4 + $0xf0] sm:$0xff] %vm1450_vm3, %v2426_v53  ;;  %v2367_v25 = vld [vmem:[#allocation2 + $0x117] sm:$0xff]  ;;  %v2260_v58 = vld [vmem:[#allocation2 + $0x1ae] sm:$0xff]  ;;  %p12684_p1 = scmp.lt.s32.totalorder %s12682_s26, %s12676_s2 }
 0x1d8   : > { %v2322_v15 = vmax.f32 %v2196_v45, %v2259_v47  ;;  %v2555_v37 = vld [vmem:[#allocation4 + $0x100] ss:$2 sm:$0xff]  ;;  %v1256_v48 = vmul.f32 0.70710677, %v1122_v59  ;;  %v2072_v26 = vmax.f32 %v1946_v17, %v2009_v63  ;;  %v3003_v38 = vrot.slane %v13731_v27, 4 }
 0x1d9   : > { %v2008_v7 = vld [vmem:[#allocation2 + $0x1ac] sm:$0xff]  ;;  %v2985_v35 = vshrl.u32 %v13738_v28, 16  ;;  %v1570_v12 = vld [vmem:[#allocation2 + $0x1c0] sm:$0xff]  ;;  %v1441_v3 = vmul.f32 %v1378_v57, %v13691_v54  ;;  %v2988_v22 = vshll.u32 %v13738_v28, 16  ;;  %v13746_v39 = vpack.c.bf16 %v2555_v37, %v2555_v37  ;;  %v2135_v0 = vld [vmem:[#allocation2 + $0x1b5] sm:$0xff]  ;;  %p12685_p2 = por %p12684_p1, %p12683_p0 }
 0x1da   : > { %v2385_v40 = vld [vmem:[#allocation2 + $0x1a7] sm:$0xff]  ;;  %v2071_v1 = vmax.f32 %v1945_v61, %v2008_v7  ;;  %12507 = verf.f32 %v1256_v48  ;;  %v2136_v49 = vld [vmem:[#allocation2 + $0x1bd] sm:$0xff]  ;;  %v2198_v31 = vmax.f32 %v2072_v26, %v2135_v0  ;;  %v2386_v59 = vld [vmem:[#allocation2 + $0x1af] sm:$0xff]  ;;  %v2430_v63 = vmax.f32 %v13414_v21, %v2367_v25 }
 0x1db   : > { %v2448_v8 = vmax.f32 %v2322_v15, %v2385_v40  ;;  %v2134_v20 = vld [vmem:[#allocation2 + $0x1ad] sm:$0xff]  ;;  %v1633_v42 = vld [vmem:[#allocation2 + $0x1c1] sm:$0xff]  ;;  %v2987_v60 = vrot.slane %v2985_v35, 6  ;;  %v2199_v18 = vmax.f32 %v2073_v19, %v2136_v49  ;;  %1508 = vst.msk [vmem:[#allocation2 + $0x1cc] sm:$0xff] %vm1450_vm3, %v1441_v3  ;;  %v2990_v54 = vrot.slane %v2988_v22, 7  ;;  %p12686_p3 = pnand %p12685_p2, %p12679_p13 }
 0x1dc   : > { %v2197_v55 = vmax.f32 %v2071_v1, %v2134_v20  ;;  %v1696_v41 = vmax.f32 %v1570_v12, %v1633_v42  ;;  %v1759_v45 = vld [vmem:[#allocation2 + $0x1c2] sm:$0xff]  ;;  %v3015_v50 = vshrl.u32 %v13746_v39, 16  ;;  %v3018_v47 = vshll.u32 %v13746_v39, 16  ;;  %2493 = vst.msk [vmem:[#allocation4 + $0x110] sm:$0xff] %vm1450_vm3, %v2430_v63  ;;  %v2261_v20 = vld [vmem:[#allocation2 + $0x1b6] sm:$0xff] }
 0x1dd   : > { %2511 = vst.msk [vmem:[#allocation4 + $0x1a0] sm:$0xff] %vm1450_vm3, %v2448_v8  ;;  %v2262_v4 = vld [vmem:[#allocation2 + $0x1be] sm:$0xff]  ;;  %v12504_v32 = vpop.eup %12503  ;;  %v2991_v19 = vor.u32 %v2990_v54, %v2987_v60  ;;  %v2559_v26 = vld [vmem:[#allocation4 + $0x120] ss:$2 sm:$0xff] }
 0x1de   : > { %v2323_v9 = vmax.f32 %v2197_v55, %v2260_v58  ;;  %v1822_v53 = vmax.f32 %v1696_v41, %v1759_v45  ;;  %v1885_v61 = vld [vmem:[#allocation2 + $0x1c3] sm:$0xff]  ;;  %v2325_v17 = vmax.f32 %v2199_v18, %v2262_v4  ;;  %v1573_v15 = vld [vmem:[#allocation2 + $0x1d8] sm:$0xff]  ;;  %v3017_v7 = vrot.slane %v3015_v50, 6 }
 0x1df   : > { %v1636_v37 = vld [vmem:[#allocation2 + $0x1d9] sm:$0xff]  ;;  %v3020_v40 = vrot.slane %v3018_v47, 7  ;;  %v1383_v35 = vadd.f32 1.0, %v12504_v32  ;;  %v2992_v21 = vsel %vm13297_vm7, %v2983_v46, %v2991_v19  ;;  %v2993_v3 = vrot.slane %v2991_v19, 4  ;;  %v12506_v55 = vpop.eup %12505  ;;  %v2011_v49 = vld [vmem:[#allocation2 + $0x1c4] sm:$0xff] }
 0x1e0   : > { %v2449_v57 = vmax.f32 %v2323_v9, %v2386_v59  ;;  %v1948_v48 = vmax.f32 %v1822_v53, %v1885_v61  ;;  %v2388_v1 = vld [vmem:[#allocation2 + $0x1bf] sm:$0xff]  ;;  %v1699_v8 = vmax.f32 %v1573_v15, %v1636_v37  ;;  %v13761_v41 = vmax.f32 %v2198_v31, %v2261_v20  ;;  %3199 = vrot.lane.b32.xlu1 %v2992_v21, %s17152_s20  ;;  %v2371_v58 = vld [vmem:[#allocation2 + $0x137] sm:$0xff]  ;;  %v2563_v50 = vld [vmem:[#allocation4 + $0x140] ss:$2 sm:$0xff] }
 0x1e1   : > { %v2451_v12 = vmax.f32 %v2325_v17, %v2388_v1  ;;  %v1762_v42 = vld [vmem:[#allocation2 + $0x1da] sm:$0xff]  ;;  %v13759_v25 = vor.u32 %v3020_v40, %v3017_v7  ;;  %v1446_v0 = vmul.f32 %v1383_v35, %v13713_v24  ;;  %v1381_v45 = vadd.f32 1.0, %v12506_v55 }
 0x1e2   : > { %v2553_v22 = vld [vmem:[#allocation4 + $0xf0] ss:$2 sm:$0xff]  ;;  %2512 = vst.msk [vmem:[#allocation4 + $0x1a8] sm:$0xff] %vm1450_vm3, %v2449_v57  ;;  %v13764_v60 = vmax.f32 %v1699_v8, %v1762_v42  ;;  %v2074_v46 = vmax.f32 %v1948_v48, %v2011_v49  ;;  %v3002_v18 = vsel %vm13297_vm7, %v2993_v3, %v13731_v27  ;;  %v13774_v54 = vpack.c.bf16 %v2559_v26, %v2559_v26  ;;  %v1571_v47 = vld [vmem:[#allocation2 + $0x1c8] sm:$0xff]  ;;  %v1572_v31 = vld [vmem:[#allocation2 + $0x1d0] sm:$0xff] }
 0x1e3   : > { %v13768_v16 = vpack.c.bf16 %v2553_v22, %v2553_v22  ;;  %2514 = vst.msk [vmem:[#allocation4 + $0x1b8] sm:$0xff] %vm1450_vm3, %v2451_v12  ;;  %v1634_v9 = vld [vmem:[#allocation2 + $0x1c9] sm:$0xff]  ;;  %3201 = vrot.lane.b32.xlu0 %v3002_v18, %s17152_s20  ;;  %v3023_v53 = vrot.slane %v13759_v25, 4  ;;  %v2434_v4 = vmax.f32 %v13526_v23, %v2371_v58  ;;  %v1888_v63 = vld [vmem:[#allocation2 + $0x1db] sm:$0xff]  ;;  %v1635_v32 = vld [vmem:[#allocation2 + $0x1d1] sm:$0xff]  ;;  %v1444_v17 = vmul.f32 %v1381_v45, %v13729_v36 }
 0x1e4   : > { %1513 = vst.msk [vmem:[#allocation2 + $0x1f4] sm:$0xf] %vm1447_vm2, %v1446_v0  ;;  %v1697_v61 = vmax.f32 %v1571_v47, %v1634_v9  ;;  %v3035_v15 = vshrl.u32 %v13774_v54, 16  ;;  %v3038_v37 = vshll.u32 %v13774_v54, 16  ;;  %v1951_v19 = vmax.f32 %v13764_v60, %v1888_v63  ;;  %v1760_v40 = vld [vmem:[#allocation2 + $0x1ca] sm:$0xff]  ;;  %v2375_v1 = vld [vmem:[#allocation2 + $0x157] sm:$0xff] }
 0x1e5   : > { %v3005_v24 = vshrl.u32 %v13768_v16, 16  ;;  %v3008_v59 = vshll.u32 %v13768_v16, 16  ;;  %v1698_v7 = vmax.f32 %v1572_v31, %v1635_v32  ;;  %2497 = vst.msk [vmem:[#allocation4 + $0x130] sm:$0xff] %vm1450_vm3, %v2434_v4  ;;  %v1761_v8 = vld [vmem:[#allocation2 + $0x1d2] sm:$0xff]  ;;  %v2137_v35 = vld [vmem:[#allocation2 + $0x1c5] sm:$0xff]  ;;  %1511 = vst.msk [vmem:[#allocation2 + $0x1e4] sm:$0xff] %vm1450_vm3, %v1444_v17  ;;  %v13788_v20 = vpack.c.bf16 %v2563_v50, %v2563_v50 }
 0x1e6   : > { %v1823_v23 = vmax.f32 %v1697_v61, %v1760_v40  ;;  %v3037_v26 = vrot.slane %v3035_v15, 6  ;;  %v3040_v36 = vrot.slane %v3038_v37, 7  ;;  %v1886_v21 = vld [vmem:[#allocation2 + $0x1cb] sm:$0xff]  ;;  %v2200_v3 = vmax.f32 %v2074_v46, %v2137_v35  ;;  %v1887_v60 = vld [vmem:[#allocation2 + $0x1d3] sm:$0xff]  ;;  %v2014_v9 = vld [vmem:[#allocation2 + $0x1dc] sm:$0xff] }
 0x1e7   : > { %v3007_v57 = vrot.slane %v3005_v24, 6  ;;  %v3010_v48 = vrot.slane %v3008_v59, 7  ;;  %v12508_v12 = vpop.eup %12507  ;;  %v1824_v42 = vmax.f32 %v1698_v7, %v1761_v8  ;;  %v2438_v55 = vmax.f32 %v13574_v33, %v2375_v1  ;;  %v2567_v49 = vld [vmem:[#allocation4 + $0x160] ss:$2 sm:$0xff]  ;;  %v2557_v18 = vld [vmem:[#allocation4 + $0x110] ss:$2 sm:$0xff] }
 0x1e8   : > { %v1949_v0 = vmax.f32 %v1823_v23, %v1886_v21  ;;  %v2263_v58 = vld [vmem:[#allocation2 + $0x1c6] sm:$0xff]  ;;  %v1382_v45 = vadd.f32 1.0, %v12508_v12  ;;  %v13791_v47 = vor.u32 %v3040_v36, %v3037_v26  ;;  %v3055_v31 = vshrl.u32 %v13788_v20, 16  ;;  %v2013_v4 = vld [vmem:[#allocation2 + $0x1d4] sm:$0xff] }
 0x1e9   : > { %v3011_v22 = vor.u32 %v3010_v48, %v3007_v57  ;;  %v1950_v50 = vmax.f32 %v1824_v42, %v1887_v60  ;;  %v2012_v24 = vld [vmem:[#allocation2 + $0x1cc] sm:$0xff]  ;;  %v2326_v59 = vmax.f32 %v2200_v3, %v2263_v58  ;;  %2501 = vst.msk [vmem:[#allocation4 + $0x150] sm:$0xff] %vm1450_vm3, %v2438_v55  ;;  %v2077_v63 = vmax.f32 %v1951_v19, %v2014_v9  ;;  %v13813_v19 = vld [vmem:[%s17092_s4 + $0x38] sm:$0xff]  }
 0x1ea   : > { %v2075_v32 = vmax.f32 %v1949_v0, %v2012_v24  ;;  %v2389_v61 = vld [vmem:[#allocation2 + $0x1c7] sm:$0xff]  ;;  %v1445_v17 = vmul.f32 %v1382_v45, %v13740_v56  ;;  %v13801_v15 = vpack.c.bf16 %v2557_v18, %v2557_v18  ;;  %v13808_v40 = vpack.c.bf16 %v2567_v49, %v2567_v49  ;;  %v13815_v56 = vld [vmem:[#allocation2 + $0x1d5] sm:$0xff]  ;;  %11725 = vmatprep.subr.bf16.mxu1 %v13813_v19 }
 0x1eb   : > { %v3012_v46 = vsel %vm13297_vm7, %v3003_v38, %v3011_v22  ;;  %v3013_v33 = vrot.slane %v3011_v22, 4  ;;  %v13803_v37 = vmax.f32 %v1950_v50, %v2013_v4  ;;  %v2138_v7 = vld [vmem:[#allocation2 + $0x1cd] sm:$0xff]  ;;  %v2452_v27 = vmax.f32 %v2326_v59, %v2389_v61 }
 0x1ec   : > { %3203 = vrot.lane.b32.xlu1 %v3012_v46, %s17152_s20  ;;  %v2201_v57 = vmax.f32 %v2075_v32, %v2138_v7  ;;  %1512 = vst.msk [vmem:[#allocation2 + $0x1ec] sm:$0xff] %vm1450_vm3, %v1445_v17  ;;  %v3025_v48 = vshrl.u32 %v13801_v15, 16  ;;  %v3028_v1 = vshll.u32 %v13801_v15, 16  ;;  %v2561_v8 = vld [vmem:[#allocation4 + $0x130] ss:$2 sm:$0xff]  ;;  %v3043_v23 = vrot.slane %v13791_v47, 4 }
 0x1ed   : > { %v3022_v38 = vsel %vm13297_vm7, %v3013_v33, %v13759_v25  ;;  %v2202_v35 = vmax.f32 %v13803_v37, %v13815_v56  ;;  %v2264_v26 = vld [vmem:[#allocation2 + $0x1ce] sm:$0xff]  ;;  %2515 = vst.msk [vmem:[#allocation4 + $0x1c0] sm:$0xff] %vm1450_vm3, %v2452_v27  ;;  %v1574_v36 = vld [vmem:[#allocation2 + $0x1e0] sm:$0xff]  ;;  %v13825_v42 = vpack.c.bf16 %v2561_v8, %v2561_v8  ;;  %v3057_v21 = vrot.slane %v3055_v31, 6 }
 0x1ee   : > { %3205 = vrot.lane.b32.xlu0 %v3022_v38, %s17152_s20  ;;  %v1637_v12 = vld [vmem:[#allocation2 + $0x1e1] sm:$0xff]  ;;  %v3058_v3 = vshll.u32 %v13788_v20, 16  ;;  %v2327_v22 = vmax.f32 %v2201_v57, %v2264_v26  ;;  %v3027_v60 = vrot.slane %v3025_v48, 6  ;;  %v3030_v0 = vrot.slane %v3028_v1, 7  ;;  %v2390_v58 = vld [vmem:[#allocation2 + $0x1cf] sm:$0xff] }
 0x1ef   : > { %v1700_v55 = vmax.f32 %v1574_v36, %v1637_v12  ;;  %v2140_v49 = vld [vmem:[#allocation2 + $0x1dd] sm:$0xff]  ;;  %v3045_v9 = vshrl.u32 %v13825_v42, 16  ;;  %v3048_v50 = vshll.u32 %v13825_v42, 16  ;;  %v3075_v24 = vshrl.u32 %v13808_v40, 16 }
 0x1f0   : > { %v1763_v45 = vld [vmem:[#allocation2 + $0x1e2] sm:$0xff]  ;;  %v2203_v18 = vmax.f32 %v2077_v63, %v2140_v49  ;;  %v2453_v59 = vmax.f32 %v2327_v22, %v2390_v58  ;;  %v3031_v33 = vor.u32 %v3030_v0, %v3027_v60  ;;  %v3060_v4 = vrot.slane %v3058_v3, 7 }
 0x1f1   : > { %v1826_v31 = vmax.f32 %v1700_v55, %v1763_v45  ;;  %v2266_v46 = vld [vmem:[#allocation2 + $0x1de] sm:$0xff]  ;;  %v3047_v7 = vrot.slane %v3045_v9, 6  ;;  %v3050_v27 = vrot.slane %v3048_v50, 7 }
 0x1f2   : > { %v2565_v32 = vld [vmem:[#allocation4 + $0x150] ss:$2 sm:$0xff]  ;;  %v2329_v17 = vmax.f32 %v2203_v18, %v2266_v46  ;;  %2516 = vst.msk [vmem:[#allocation4 + $0x1c8] sm:$0xff] %vm1450_vm3, %v2453_v59  ;;  %v3032_v1 = vsel %vm13297_vm7, %v3023_v53, %v3031_v33  ;;  %v3033_v8 = vrot.slane %v3031_v33, 4  ;;  %v3061_v26 = vor.u32 %v3060_v4, %v3057_v21  ;;  %v2571_v21 = vld [vmem:[#allocation4 + $0x180] ss:$2 sm:$0xff] }
 0x1f3   : > { %v1889_v61 = vld [vmem:[#allocation2 + $0x1e3] sm:$0xff]  ;;  %v13832_v38 = vpack.c.bf16 %v2565_v32, %v2565_v32  ;;  %v1576_v3 = vld [vmem:[#allocation2 + $0x1f0] sm:$0x1f]  ;;  %3207 = vrot.lane.b32.xlu1 %v3032_v1, %s17152_s20  ;;  %v3051_v55 = vor.u32 %v3050_v27, %v3047_v7  ;;  %v2379_v18 = vld [vmem:[#allocation2 + $0x177] sm:$0xff]  ;;  %v3078_v7 = vshll.u32 %v13808_v40, 16 }
 0x1f4   : > { %v1952_v63 = vmax.f32 %v1826_v31, %v1889_v61  ;;  %v2015_v57 = vld [vmem:[#allocation2 + $0x1e4] sm:$0xff]  ;;  %v1639_v58 = vld [vmem:[#allocation2 + $0x1f1] sm:$0x1f]  ;;  %v3042_v25 = vsel %vm13297_vm7, %v3033_v8, %v13791_v47  ;;  %v3063_v53 = vrot.slane %v3061_v26, 4  ;;  %v3077_v47 = vrot.slane %v3075_v24, 6  ;;  %v2383_v1 = vld [vmem:[#allocation2 + $0x197] sm:$0xff] }
 0x1f5   : > { %v2392_v48 = vld [vmem:[#allocation2 + $0x1df] sm:$0xff]  ;;  %v1575_v12 = vld [vmem:[#allocation2 + $0x1e8] sm:$0xff]  ;;  %v3065_v49 = vshrl.u32 %v13832_v38, 16  ;;  %v3068_v60 = vshll.u32 %v13832_v38, 16  ;;  %v1702_v9 = vmax.f32 %v1576_v3, %v1639_v58  ;;  %3209 = vrot.lane.b32.xlu0 %v3042_v25, %s17152_s20  ;;  %v3052_v59 = vsel %vm13297_vm7, %v3043_v23, %v3051_v55  ;;  %v1765_v4 = vld [vmem:[#allocation2 + $0x1f2] sm:$0x1f] }
 0x1f6   : > { %v2455_v36 = vmax.f32 %v2329_v17, %v2392_v48  ;;  %v1638_v22 = vld [vmem:[#allocation2 + $0x1e9] sm:$0xff]  ;;  %v2078_v0 = vmax.f32 %v1952_v63, %v2015_v57  ;;  %v3053_v31 = vrot.slane %v3051_v55, 4  ;;  %v2442_v23 = vmax.f32 %v13644_v2, %v2379_v18  ;;  %v1891_v8 = vld [vmem:[#allocation2 + $0x1f3] sm:$0x1f] }
 0x1f7   : > { %v1701_v45 = vmax.f32 %v1575_v12, %v1638_v22  ;;  %v1764_v50 = vld [vmem:[#allocation2 + $0x1ea] sm:$0xff]  ;;  %v3067_v46 = vrot.slane %v3065_v49, 6  ;;  %v3070_v17 = vrot.slane %v3068_v60, 7  ;;  %v1828_v27 = vmax.f32 %v1702_v9, %v1765_v4  ;;  %3211 = vrot.lane.b32.xlu1 %v3052_v59, %s17152_s20  ;;  %v2017_v2 = vld [vmem:[#allocation2 + $0x1f4] sm:$0x1f] }
 0x1f8   : > { %2518 = vst.msk [vmem:[#allocation4 + $0x1d8] sm:$0xff] %vm1450_vm3, %v2455_v36  ;;  %v2575_v33 = vld [vmem:[#allocation4 + $0x1a0] ss:$2 sm:$0xff]  ;;  %v3062_v48 = vsel %vm13297_vm7, %v3053_v31, %v3061_v26  ;;  %v3080_v22 = vrot.slane %v3078_v7, 7  ;;  %v13854_v55 = vpack.c.bf16 %v2571_v21, %v2571_v21  ;;  %2505 = vst.msk [vmem:[#allocation4 + $0x170] sm:$0xff] %vm1450_vm3, %v2442_v23 }
 0x1f9   : > { %v1827_v32 = vmax.f32 %v1701_v45, %v1764_v50  ;;  %v2141_v61 = vld [vmem:[#allocation2 + $0x1e5] sm:$0xff]  ;;  %v3071_v3 = vor.u32 %v3070_v17, %v3067_v46  ;;  %v1954_v24 = vmax.f32 %v1828_v27, %v1891_v8  ;;  %3213 = vrot.lane.b32.xlu0 %v3062_v48, %s17152_s20  ;;  %v13859_v26 = vpack.c.bf16 %v2575_v33, %v2575_v33  ;;  %v2265_v9 = vld [vmem:[#allocation2 + $0x1d6] sm:$0xff]  ;;  %v2142_v59 = vld [vmem:[#allocation2 + $0x1ed] sm:$0xff] }
 0x1fa   : > { %v1890_v63 = vld [vmem:[#allocation2 + $0x1eb] sm:$0xff]  ;;  %v2204_v57 = vmax.f32 %v2078_v0, %v2141_v61  ;;  %v2446_v0 = vmax.f32 %v13718_v5, %v2383_v1  ;;  %v13863_v21 = vor.u32 %v3080_v22, %v3077_v47  ;;  %v3095_v46 = vshrl.u32 %v13854_v55, 16  ;;  %v2143_v4 = vld [vmem:[#allocation2 + $0x1f5] sm:$0x1f] }
 0x1fb   : > { %v1953_v36 = vmax.f32 %v1827_v32, %v1890_v63  ;;  %v2267_v12 = vld [vmem:[#allocation2 + $0x1e6] sm:$0xff]  ;;  %v3072_v25 = vsel %vm13297_vm7, %v3063_v53, %v3071_v3  ;;  %v3073_v18 = vrot.slane %v3071_v3, 4  ;;  %v2080_v50 = vmax.f32 %v1954_v24, %v2017_v2  ;;  %v2387_v47 = vld [vmem:[#allocation2 + $0x1b7] sm:$0xff]  ;;  %v2268_v27 = vld [vmem:[#allocation2 + $0x1ee] sm:$0xff] }
 0x1fc   : > { %v2016_v49 = vld [vmem:[#allocation2 + $0x1ec] sm:$0xff]  ;;  %v2330_v60 = vmax.f32 %v2204_v57, %v2267_v12  ;;  %3215 = vrot.lane.b32.xlu1 %v3072_v25, %s17152_s20  ;;  %v3098_v5 = vshll.u32 %v13854_v55, 16  ;;  %2509 = vst.msk [vmem:[#allocation4 + $0x190] sm:$0xff] %vm1450_vm3, %v2446_v0  ;;  %v2328_v53 = vmax.f32 %v2202_v35, %v2265_v9  ;;  %v3115_v17 = vshrl.u32 %v13859_v26, 16  ;;  %v2269_v1 = vld [vmem:[#allocation2 + $0x1f6] sm:$0x1f] }
 0x1fd   : > { %v2079_v58 = vmax.f32 %v1953_v36, %v2016_v49  ;;  %v2393_v45 = vld [vmem:[#allocation2 + $0x1e7] sm:$0xff]  ;;  %v3082_v61 = vsel %vm13297_vm7, %v3073_v18, %v13863_v21  ;;  %v2206_v7 = vmax.f32 %v2080_v50, %v2143_v4  ;;  %v3097_v63 = vrot.slane %v3095_v46, 6  ;;  %v2394_v8 = vld [vmem:[#allocation2 + $0x1ef] sm:$0xff] }
 0x1fe   : > { %v2456_v31 = vmax.f32 %v2330_v60, %v2393_v45  ;;  %v2579_v33 = vld [vmem:[#allocation4 + $0x1c0] ss:$2 sm:$0xff]  ;;  %3217 = vrot.lane.b32.xlu0 %v3082_v61, %s17152_s20  ;;  %v3100_v57 = vrot.slane %v3098_v5, 7  ;;  %v3118_v37 = vshll.u32 %v13859_v26, 16  ;;  %v3117_v35 = vrot.slane %v3115_v17, 6  ;;  %v13902_v5 = vpop.permute.xlu0 %3173 }
 0x1ff   : > { %v2205_v32 = vmax.f32 %v2079_v58, %v2142_v59  ;;  %v2450_v48 = vmax.f32 %v13761_v41, %v2387_v47  ;;  %v13880_v23 = vpack.c.bf16 %v2579_v33, %v2579_v33  ;;  %v2569_v22 = vld [vmem:[#allocation4 + $0x170] ss:$2 sm:$0xff]  ;;  %v3083_v24 = vrot.slane %v13863_v21, 4 }
 0x200   : > { %2519 = vst.msk [vmem:[#allocation4 + $0x1e0] sm:$0xff] %vm1450_vm3, %v2456_v31  ;;  %v13882_v36 = vor.u32 %v3100_v57, %v3097_v63  ;;  %v3120_v12 = vrot.slane %v3118_v37, 7  ;;  %v17113_v0 = vmov 0   ;;  %v2391_v41 = vld [vmem:[#allocation2 + $0x1d7] sm:$0xff]  ;;  %v2332_v2 = vmax.f32 %v2206_v7, %v2269_v1 }
 0x201   : > { %v2331_v56 = vmax.f32 %v2205_v32, %v2268_v27  ;;  %2513 = vst.msk [vmem:[#allocation4 + $0x1b0] sm:$0xff] %vm1450_vm3, %v2450_v48  ;;  %v3135_v49 = vshrl.u32 %v13880_v23, 16  ;;  %v3138_v60 = vshll.u32 %v13880_v23, 16  ;;  %2602 = vst [vmem:[#allocation6] sm:$0x3] %v17113_v0  ;;  %v13892_v58 = vpack.c.bf16 %v2569_v22, %v2569_v22  ;;  %v17156_v32 = vld [vmem:[#allocation13_spill] sm:$0xff] }
 0x202   : > { %2603 = vst [vmem:[#allocation6 + $0x7c] sm:$0x8] %v17113_v0  ;;  %2604 = vst [vmem:[#allocation6 + $0x80] sm:$0x1] %v17113_v0  ;;  %v13894_v45 = vor.u32 %v3120_v12, %v3117_v35  ;;  %v3103_v18 = vrot.slane %v13882_v36, 4  ;;  %v2454_v50 = vmax.f32 %v2328_v53, %v2391_v41  ;;  %v2688_v61 = vrot.slane %v17156_v32, 6 }
 0x203   : > { %v2457_v3 = vmax.f32 %v2331_v56, %v2394_v8  ;;  %4893 = vst [vmem:[#allocation7] sm:$0x33] %v17113_v0  ;;  %v2573_v25 = vld [vmem:[#allocation4 + $0x190] ss:$2 sm:$0xff]  ;;  %v3137_v21 = vrot.slane %v3135_v49, 6  ;;  %v3140_v9 = vrot.slane %v3138_v60, 7 }
 0x204   : > { %v3085_v59 = vshrl.u32 %v13892_v58, 16  ;;  %v3088_v31 = vshll.u32 %v13892_v58, 16  ;;  %v13900_v46 = vpack.c.bf16 %v2573_v25, %v2573_v25  ;;  %v3123_v33 = vrot.slane %v13894_v45, 4  ;;  %2517 = vst.msk [vmem:[#allocation4 + $0x1d0] sm:$0xff] %vm1450_vm3, %v2454_v50  ;;  %v2395_v27 = vld [vmem:[#allocation2 + $0x1f7] sm:$0x1f]  ;;  %v3176_v25 = vpop.permute.xlu0 %3175 }
 0x205   : > { %2520 = vst.msk [vmem:[#allocation4 + $0x1e8] sm:$0xff] %vm1450_vm3, %v2457_v3  ;;  %v13905_v4 = vor.u32 %v3140_v9, %v3137_v21  ;;  %v17157_v57 = vld [vmem:[#allocation14_spill] sm:$0xff]  ;;  %v17158_v8 = vmov 0  ;;  %v2689_v3 = vrot.slane %v2688_v61, 4  ;;  %v2458_v22 = vmax.f32 %v2332_v2, %v2395_v27 }
 0x206   : > { %v3087_v17 = vrot.slane %v3085_v59, 6  ;;  %v3090_v53 = vrot.slane %v3088_v31, 7  ;;  %v3105_v47 = vshrl.u32 %v13900_v46, 16  ;;  %v3108_v7 = vshll.u32 %v13900_v46, 16  ;;  %2815 = vst.msk [vmem:[#allocation6] sm:$0xc] %vm2814_vm8, %v2688_v61 }
 0x207   : > { %v3143_v63 = vrot.slane %v13905_v4, 4  ;;  %v2690_v37 = vrot.slane %v17157_v57, 6  ;;  %v17159_v8 = vsel %vm13916_vm13, 4294967295, %v17158_v8  ;;  %v2693_v9 = vrot.slane %v13333_v51, 6  ;;  %2522 = vst.msk [vmem:[#allocation4 + $0x1f0] sm:$0x1f] %vm17112_vm15, %v2458_v22  ;;  %vm4907_vm15 = vmor %vm14178_vm0, %vm14140_vm4 }
 0x208   : > { %v3091_v56 = vor.u32 %v3090_v53, %v3087_v17  ;;  %v3107_v35 = vrot.slane %v3105_v47, 6  ;;  %v3110_v48 = vrot.slane %v3108_v7, 7  ;;  %v2577_v1 = vld [vmem:[#allocation4 + $0x1b0] ss:$2 sm:$0xff]  ;;  %17160 = vst [vmem:[#allocation16_spill] sm:$0xff] %v17159_v8  ;;  %vm3454_vm8 = vcmask 1046528  }
 0x209   : > { %v13920_v12 = vpack.c.bf16 %v2577_v1, %v2577_v1  ;;  %v2691_v31 = vsel %vm13916_vm13, %v2689_v3, %v2690_v37  ;;  %v2692_v47 = vrot.slane %v2690_v37, 4  ;;  %v12115_v0 = vld [vmem:[%s17094_s6 + $0xd8] sm:$0xff]  }
 0x20a   : > { %v3092_v49 = vsel %vm13297_vm7, %v3083_v24, %v3091_v56  ;;  %v3093_v60 = vrot.slane %v3091_v56, 4  ;;  %v3111_v41 = vor.u32 %v3110_v48, %v3107_v35  ;;  %v3178_v24 = vpop.permute.xlu1 %3177  ;;  %2816 = vst.msk [vmem:[#allocation6 + $0x4] sm:$0xf] %vm1447_vm2, %v2691_v31  ;;  %v2695_v48 = vrot.slane %v2693_v9, 4 }
 0x20b   : > { %3219 = vrot.lane.b32.xlu1 %v3092_v49, %s17152_s20  ;;  %v3125_v50 = vshrl.u32 %v13920_v12, 16  ;;  %v3128_v59 = vshll.u32 %v13920_v12, 16  ;;  %v2581_v53 = vld [vmem:[#allocation4 + $0x1d0] ss:$2 sm:$0xff]  ;;  %3276 = vst.msk [vmem:[#allocation6 + $0x4] sm:$0xf] %vm17123_vm14, %v3176_v25  ;;  %v2694_v37 = vsel %vm13916_vm13, %v2692_v47, %v2693_v9 }
 0x20c   : > { %v2583_v21 = vld [vmem:[#allocation4 + $0x1e0] ss:$2 sm:$0xff]  ;;  %v3102_v32 = vsel %vm13297_vm7, %v3093_v60, %v13882_v36  ;;  %v3112_v51 = vsel %vm13297_vm7, %v3103_v18, %v3111_v41  ;;  %v3113_v61 = vrot.slane %v3111_v41, 4  ;;  %v13946_v57 = vpack.c.bf16 %v2581_v53, %v2581_v53  ;;  %2817 = vst.msk [vmem:[#allocation6 + $0x8] sm:$0xf] %vm1447_vm2, %v2694_v37 }
 0x20d   : > { %v13930_v2 = vpack.c.bf16 %v2583_v21, %v2583_v21  ;;  %3221 = vrot.lane.b32.xlu0 %v3102_v32, %s17152_s20  ;;  %v3127_v7 = vrot.slane %v3125_v50, 6  ;;  %v3130_v27 = vrot.slane %v3128_v59, 7  ;;  %v3272_v56 = vld [vmem:[#allocation6] sm:$0xe]  ;;  %3277 = vst.msk [vmem:[#allocation6 + $0x8] sm:$0xf] %vm17123_vm14, %v3178_v24 }
 0x20e   : > { %v3122_v18 = vsel %vm13297_vm7, %v3113_v61, %v13894_v45  ;;  %v3273_v3 = vsel %vm13940_vm1, %v13902_v5, %v3272_v56  ;;  %v3145_v22 = vshrl.u32 %v13946_v57, 16  ;;  %v3148_v49 = vshll.u32 %v13946_v57, 16  ;;  %v3180_v31 = vpop.permute.xlu1 %3179 }
 0x20f   : > { %v3155_v36 = vshrl.u32 %v13930_v2, 16  ;;  %v3158_v35 = vshll.u32 %v13930_v2, 16  ;;  %3223 = vrot.lane.b32.xlu1 %v3112_v51, %s17152_s20  ;;  %v3131_v1 = vor.u32 %v3130_v27, %v3127_v7  ;;  %3274 = vst [vmem:[#allocation6] sm:$0xe] %v3273_v3  ;;  %v2696_v25 = vrot.slane %v13400_v11, 6 }
 0x210   : > { %v2699_v21 = vrot.slane %v13372_v13, 6  ;;  %v3147_v50 = vrot.slane %v3145_v22, 6  ;;  %v3150_v59 = vrot.slane %v3148_v49, 7  ;;  %v2585_v51 = vld [vmem:[#allocation4 + $0x1f0] ss:$2 sm:$0x7] }
 0x211   : > { %v3157_v60 = vrot.slane %v3155_v36, 6  ;;  %v3160_v41 = vrot.slane %v3158_v35, 7  ;;  %3225 = vrot.lane.b32.xlu0 %v3122_v18, %s17152_s20  ;;  %v3132_v5 = vsel %vm13297_vm7, %v3123_v33, %v3131_v1  ;;  %v3133_v9 = vrot.slane %v3131_v1, 4  ;;  %v3182_v33 = vpop.permute.xlu0 %3181 }
 0x212   : > { %v2697_v24 = vsel %vm13916_vm13, %v2695_v48, %v2696_v25  ;;  %v2698_v61 = vrot.slane %v2696_v25, 4  ;;  %v3151_v11 = vor.u32 %v3150_v59, %v3147_v50  ;;  %v13977_v45 = vpack.c.bf16 %v2585_v51, %v2585_v51  ;;  %v13983_v47 = vld [vmem:[#allocation6 + $0x4] sm:$0xf]  ;;  %v3184_v3 = vpop.permute.xlu1 %3183 }
 0x213   : > { %v3161_v32 = vor.u32 %v3160_v41, %v3157_v60  ;;  %3227 = vrot.lane.b32.xlu1 %v3132_v5, %s17152_s20  ;;  %v3142_v13 = vsel %vm13297_vm7, %v3133_v9, %v13905_v4  ;;  %2818 = vst.msk [vmem:[#allocation6 + $0xc] sm:$0xf] %vm1447_vm2, %v2697_v24  ;;  %v2701_v56 = vrot.slane %v2699_v21, 4  ;;  %v2702_v35 = vrot.slane %v13408_v52, 6 }
 0x214   : > { %3278 = vst.msk [vmem:[#allocation6 + $0xc] sm:$0xf] %vm17123_vm14, %v3180_v31  ;;  %v2700_v53 = vsel %vm13916_vm13, %v2698_v61, %v2699_v21  ;;  %v3152_v7 = vsel %vm13297_vm7, %v3143_v63, %v3151_v11  ;;  %v3153_v27 = vrot.slane %v3151_v11, 4  ;;  %v3165_v36 = vshrl.u32 %v13977_v45, 16 }
 0x215   : > { %v3163_v17 = vrot.slane %v3161_v32, 4  ;;  %3229 = vrot.lane.b32.xlu0 %v3142_v13, %s17152_s20  ;;  %v3168_v18 = vshll.u32 %v13977_v45, 16  ;;  %2819 = vst.msk [vmem:[#allocation6 + $0x10] sm:$0xf] %vm1447_vm2, %v2700_v53  ;;  %v2705_v37 = vrot.slane %v13434_v30, 6  ;;  %v2708_v48 = vrot.slane %v13517_v14, 6  ;;  %v3186_v14 = vpop.permute.xlu0 %3185 }
 0x216   : > { %3279 = vst.msk [vmem:[#allocation6 + $0x10] sm:$0xf] %vm17123_vm14, %v3182_v33  ;;  %v3162_v4 = vsel %vm13297_vm7, %v3153_v27, %v3161_v32  ;;  %v3167_v63 = vrot.slane %v3165_v36, 6  ;;  %v3356_v22 = vld [vmem:[#allocation6] sm:$0xe]  ;;  %v2703_v49 = vsel %vm13916_vm13, %v2701_v56, %v2702_v35  ;;  %v2704_v60 = vrot.slane %v2702_v35, 4 }
 0x217   : > { %3231 = vrot.lane.b32.xlu1 %v3152_v7, %s17152_s20  ;;  %v3170_v1 = vrot.slane %v3168_v18, 7  ;;  %v2707_v41 = vrot.slane %v2705_v37, 4  ;;  %v10340_v52 = vcombine.low %v3356_v22, %v13983_v47  ;;  %v3942_v25 = vld [vmem:[#allocation6] sm:$0xc]  ;;  %2820 = vst.msk [vmem:[#allocation6 + $0x14] sm:$0xf] %vm1447_vm2, %v2703_v49 }
 0x218   : > { %v10374_v21 = vcombine.low %v3942_v25, %v13983_v47  ;;  %vm3966_vm1 = vcmask 1045504   ;;  %3280 = vst.msk [vmem:[#allocation6 + $0x14] sm:$0xf] %vm17123_vm14, %v3184_v3  ;;  %v2706_v5 = vsel %vm13916_vm13, %v2704_v60, %v2705_v37  ;;  %v2710_v59 = vrot.slane %v2708_v48, 4 }
 0x219   : > { %3233 = vrot.lane.b32.xlu0 %v3162_v4, %s17152_s20  ;;  %v3171_v30 = vor.u32 %v3170_v1, %v3167_v63  ;;  %v2709_v9 = vsel %vm13916_vm13, %v2707_v41, %v2708_v48  ;;  %v3455_v50 = vrot.slane %v10340_v52, 1  ;;  %v17163_v32 = vmov 0  ;;  %2821 = vst.msk [vmem:[#allocation6 + $0x18] sm:$0xf] %vm1447_vm2, %v2706_v5 }
 0x21a   : > { %v17164_v32 = vsel %vm14015_vm9, 4294967295, %v17163_v32  ;;  %2822 = vst.msk [vmem:[#allocation6 + $0x1c] sm:$0xf] %vm1447_vm2, %v2709_v9  ;;  %v3967_v24 = vrot.slane %v10374_v21, 2  ;;  %v2711_v61 = vrot.slane %v13508_v6, 6  ;;  %v2714_v13 = vrot.slane %v13641_v10, 6  ;;  %v3188_v18 = vpop.permute.xlu1 %3187 }
 0x21b   : > { %v3172_v31 = vsel %vm13297_vm7, %v3163_v17, %v3171_v30  ;;  %17165 = vst [vmem:[#allocation17_spill] sm:$0xff] %v17164_v32  ;;  %v14021_v51 = vld [vmem:[#allocation6 + $0x8] sm:$0xff]   ;;  %3281 = vst.msk [vmem:[#allocation6 + $0x18] sm:$0xf] %vm17123_vm14, %v3186_v14  ;;  %v2717_v11 = vrot.slane %v13598_v29, 6  ;;  %v2720_v33 = vrot.slane %v13662_v62, 6 }
 0x21c   : > { %3235 = vrot.lane.b32.xlu1 %v3172_v31, %s17152_s20  ;;  %v2723_v17 = vrot.slane %v13655_v44, 6  ;;  %v2726_v53 = vrot.slane %v13738_v28, 6  ;;  %v2712_v6 = vsel %vm13916_vm13, %v2710_v59, %v2711_v61  ;;  %3282 = vst.msk [vmem:[#allocation6 + $0x1c] sm:$0xf] %vm17123_vm14, %v3188_v18  ;;  %v3456_v29 = vrot.slane %v14021_v51, 1  ;;  %v3190_v28 = vpop.permute.xlu0 %3189  ;;  %v12060_v59 = vld [vmem:[%s17092_s4 + $0x30] sm:$0xff]  }
 0x21d   : > { %v3312_v7 = vld [vmem:[#allocation6 + $0x10] sm:$0xf]  ;;  %v3968_v62 = vrot.slane %v14021_v51, 2  ;;  %2823 = vst.msk [vmem:[#allocation6 + $0x20] sm:$0xf] %vm1447_vm2, %v2712_v6  ;;  %v2713_v44 = vrot.slane %v2711_v61, 4 }
 0x21e   : > { %v14031_v27 = vld [vmem:[#allocation6 + $0x10] sm:$0xf]  ;;  %v2716_v56 = vrot.slane %v2714_v13, 4  ;;  %v2719_v35 = vrot.slane %v2717_v11, 4  ;;  %v2722_v37 = vrot.slane %v2720_v33, 4  ;;  %v2725_v48 = vrot.slane %v2723_v17, 4 }
 0x21f   : > { %v8512_v36 = vld [vmem:[#allocation6 + $0x10] sm:$0x7]  ;;  %v3457_v4 = vsel %vm3454_vm8, %v3455_v50, %v3456_v29  ;;  %v3969_v63 = vsel %vm3966_vm1, %v3967_v24, %v3968_v62  ;;  %3283 = vst.msk [vmem:[#allocation6 + $0x20] sm:$0xf] %vm17123_vm14, %v3190_v28  ;;  %v2715_v1 = vsel %vm13916_vm13, %v2713_v44, %v2714_v13  ;;  %v2728_v3 = vrot.slane %v2726_v53, 4 }
 0x220   : > { %v8513_v10 = vsel %vm14015_vm9, 0, %v8512_v36  ;;  %11693 = vmatprep.mubr.bf16.mxu1 %v3457_v4  ;;  %11789 = vmatprep.mubr.bf16.mxu0 %v3969_v63  ;;  %v3313_v22 = vld [vmem:[#allocation6 + $0x14] sm:$0xf]  ;;  %2824 = vst.msk [vmem:[#allocation6 + $0x24] sm:$0xf] %vm1447_vm2, %v2715_v1  ;;  %v2718_v49 = vsel %vm13916_vm13, %v2716_v56, %v2717_v11  ;;  %v2721_v60 = vsel %vm13916_vm13, %v2719_v35, %v2720_v33  ;;  %v2729_v52 = vrot.slane %v13707_v43, 6 }
 0x221   : > { %8514 = vst [vmem:[#allocation6 + $0x10] sm:$0x7] %v8513_v10  ;;  %v2724_v41 = vsel %vm13916_vm13, %v2722_v37, %v2723_v17  ;;  %v14054_v25 = vcombine.low %v3312_v7, %v3313_v22  ;;  %2825 = vst.msk [vmem:[#allocation6 + $0x28] sm:$0xf] %vm1447_vm2, %v2718_v49  ;;  %v2727_v30 = vsel %vm13916_vm13, %v2725_v48, %v2726_v53  ;;  %v2732_v14 = vrot.slane %v13768_v16, 6 }
 0x222   : > { %2826 = vst.msk [vmem:[#allocation6 + $0x2c] sm:$0xf] %vm1447_vm2, %v2721_v60  ;;  %2827 = vst.msk [vmem:[#allocation6 + $0x30] sm:$0xf] %vm1447_vm2, %v2724_v41  ;;  %v2735_v21 = vrot.slane %v13746_v39, 6  ;;  %v2730_v43 = vsel %vm13916_vm13, %v2728_v3, %v2729_v52  ;;  %v2731_v5 = vrot.slane %v2729_v52, 4 }
 0x223   : > { %2828 = vst.msk [vmem:[#allocation6 + $0x34] sm:$0xf] %vm1447_vm2, %v2727_v30  ;;  %v2738_v9 = vrot.slane %v13801_v15, 6  ;;  %v2741_v50 = vrot.slane %v13774_v54, 6  ;;  %v3458_v31 = vrot.slane %v14054_v25, 1  ;;  %v3970_v16 = vrot.slane %v14054_v25, 2 }
 0x224   : > { %2829 = vst.msk [vmem:[#allocation6 + $0x38] sm:$0xf] %vm1447_vm2, %v2730_v43  ;;  %v2734_v39 = vrot.slane %v2732_v14, 4  ;;  %v2737_v24 = vrot.slane %v2735_v21, 4  ;;  %v14074_v61 = vld [vmem:[#allocation6 + $0x18] sm:$0xff]   ;;  %v2733_v13 = vsel %vm13916_vm13, %v2731_v5, %v2732_v14  ;;  %v2744_v54 = vrot.slane %v13825_v42, 6 }
 0x225   : > { %v2740_v15 = vrot.slane %v2738_v9, 4  ;;  %v2743_v11 = vrot.slane %v2741_v50, 4  ;;  %v3459_v33 = vsel %vm3454_vm8, %v3456_v29, %v3458_v31  ;;  %v3971_v17 = vsel %vm3966_vm1, %v3968_v62, %v3970_v16  ;;  %2830 = vst.msk [vmem:[#allocation6 + $0x3c] sm:$0xf] %vm1447_vm2, %v2733_v13  ;;  %v12064_v41 = vld [vmem:[%s17092_s4 + $0x20] sm:$0xff]  }
 0x226   : > { %v2736_v53 = vsel %vm13916_vm13, %v2734_v39, %v2735_v21  ;;  %v2739_v7 = vsel %vm13916_vm13, %v2737_v24, %v2738_v9  ;;  %11694 = vmatmul.mubr.bf16.vlgmr.msra.gmra.mxu1 %v3459_v33  ;;  %11790 = vmatmul.mubr.bf16.vlgmr.msra.gmra.mxu0 %v3971_v17  ;;  %v3460_v36 = vrot.slane %v14074_v61, 1  ;;  %v3972_v18 = vrot.slane %v14074_v61, 2  ;;  %v8506_v5 = vld [vmem:[#allocation6] sm:$0x3]  ;;  %v12066_v24 = vld [vmem:[%s17092_s4 + $0x18] sm:$0xff]  }
 0x227   : > { %2831 = vst.msk [vmem:[#allocation6 + $0x40] sm:$0xf] %vm1447_vm2, %v2736_v53  ;;  %2832 = vst.msk [vmem:[#allocation6 + $0x44] sm:$0xf] %vm1447_vm2, %v2739_v7  ;;  %v2742_v42 = vsel %vm13916_vm13, %v2740_v15, %v2741_v50  ;;  %v2745_v6 = vsel %vm13916_vm13, %v2743_v11, %v2744_v54  ;;  %v2746_v10 = vrot.slane %v2744_v54, 4  ;;  %v2747_v29 = vrot.slane %v13788_v20, 6  ;;  %11726 = vmatpush3.bf16.msra.mxu1 %v13813_v19 }
 0x228   : > { %2833 = vst.msk [vmem:[#allocation6 + $0x48] sm:$0xf] %vm1447_vm2, %v2742_v42  ;;  %2834 = vst.msk [vmem:[#allocation6 + $0x4c] sm:$0xf] %vm1447_vm2, %v2745_v6  ;;  %v2750_v62 = vrot.slane %v13832_v38, 6  ;;  %v2753_v44 = vrot.slane %v13808_v40, 6  ;;  %v3461_v28 = vsel %vm3454_vm8, %v3458_v31, %v3460_v36  ;;  %v3973_v56 = vsel %vm3966_vm1, %v3970_v16, %v3972_v18  ;;  %11727 = vmatprep.subr.bf16.mxu1 %v12060_v59 }
 0x229   : > { %v2756_v35 = vrot.slane %v13892_v58, 6  ;;  %v2759_v37 = vrot.slane %v13854_v55, 6  ;;  %v12062_v20 = vld [vmem:[%s17092_s4 + $0x28] sm:$0xff]   ;;  %11697 = vmatprep.mubr.bf16.mxu1 %v3461_v28  ;;  %11793 = vmatprep.mubr.bf16.mxu0 %v3973_v56  ;;  %v2748_v40 = vsel %vm13916_vm13, %v2746_v10, %v2747_v29  ;;  %v2749_v19 = vrot.slane %v2747_v29, 4  ;;  %v12068_v7 = vld [vmem:[%s17092_s4 + $0x10] sm:$0xff]   ;;  %v14208_v56 = vld [vmem:[%s17092_s4 + $0xf8] sm:$0xff]  }
 0x22a   : > { %v2752_v38 = vrot.slane %v2750_v62, 4  ;;  %v2755_v48 = vrot.slane %v2753_v44, 4  ;;  %2835 = vst.msk [vmem:[#allocation6 + $0x50] sm:$0xf] %vm1447_vm2, %v2748_v40  ;;  %v2762_v58 = vrot.slane %v13900_v46, 6  ;;  %v2765_v55 = vrot.slane %v13859_v26, 6 }
 0x22b   : > { %v2758_v4 = vrot.slane %v2756_v35, 4  ;;  %v2761_v63 = vrot.slane %v2759_v37, 4  ;;  %v2751_v1 = vsel %vm13916_vm13, %v2749_v19, %v2750_v62  ;;  %11728 = vmatpush3.bf16.msra.mxu1 %v12060_v59  ;;  %v2768_v49 = vrot.slane %v13920_v12, 6  ;;  %v4908_v33 = vld [vmem:[#allocation7 + $0x100] sm:$0x33] }
 0x22c   : > { %v2754_v3 = vsel %vm13916_vm13, %v2752_v38, %v2753_v44  ;;  %v2757_v22 = vsel %vm13916_vm13, %v2755_v48, %v2756_v35  ;;  %2836 = vst.msk [vmem:[#allocation6 + $0x54] sm:$0xf] %vm1447_vm2, %v2751_v1  ;;  %11729 = vmatprep.subr.bf16.mxu1 %v12062_v20  ;;  %v2764_v60 = vrot.slane %v2762_v58, 4  ;;  %v2767_v52 = vrot.slane %v2765_v55, 4  ;;  %v12070_v10 = vld [vmem:[%s17092_s4 + $0x8] sm:$0xff]   ;;  %v12072_v44 = vld [vmem:[%s17092_s4] sm:$0xff]  }
 0x22d   : > { %2837 = vst.msk [vmem:[#allocation6 + $0x58] sm:$0xf] %vm1447_vm2, %v2754_v3  ;;  %2838 = vst.msk [vmem:[#allocation6 + $0x5c] sm:$0xf] %vm1447_vm2, %v2757_v22  ;;  %v2760_v26 = vsel %vm13916_vm13, %v2758_v4, %v2759_v37  ;;  %v2763_v46 = vsel %vm13916_vm13, %v2761_v63, %v2762_v58  ;;  %v2770_v12 = vrot.slane %v2768_v49, 4  ;;  %v2771_v30 = vrot.slane %v13880_v23, 6 }
 0x22e   : > { %2839 = vst.msk [vmem:[#allocation6 + $0x60] sm:$0xf] %vm1447_vm2, %v2760_v26  ;;  %2840 = vst.msk [vmem:[#allocation6 + $0x64] sm:$0xf] %vm1447_vm2, %v2763_v46  ;;  %v2774_v14 = vrot.slane %v13946_v57, 6  ;;  %v2777_v21 = vrot.slane %v13930_v2, 6  ;;  %v2766_v9 = vsel %vm13916_vm13, %v2764_v60, %v2765_v55  ;;  %v2769_v50 = vsel %vm13916_vm13, %v2767_v52, %v2768_v49 }
 0x22f   : > { %v17166_v43 = vmov 0  ;;  %v2780_v59 = vrot.slane %v13977_v45, 6  ;;  %v14149_v23 = vld [vmem:[#allocation6] sm:$0xf]  ;;  %11730 = vmatpush3.bf16.msra.mxu1 %v12062_v20  ;;  %2841 = vst.msk [vmem:[#allocation6 + $0x68] sm:$0xf] %vm1447_vm2, %v2766_v9  ;;  %v2772_v2 = vsel %vm13916_vm13, %v2770_v12, %v2771_v30 }
 0x230   : > { %v17167_v43 = vsel %vm14140_vm4, 4294967295, %v17166_v43  ;;  %2842 = vst.msk [vmem:[#allocation6 + $0x6c] sm:$0xf] %vm1447_vm2, %v2769_v50  ;;  %v2773_v57 = vrot.slane %v2771_v30, 4  ;;  %v2776_v31 = vrot.slane %v2774_v14, 4  ;;  %v2779_v16 = vrot.slane %v2777_v21, 4  ;;  %11731 = vmatprep.subr.bf16.mxu1 %v12064_v41 }
 0x231   : > { %17168 = vst [vmem:[#allocation18_spill] sm:$0xff] %v17167_v43  ;;  %v2849_v45 = vld [vmem:[#allocation6 + $0x7c] sm:$0xf]  ;;  %2843 = vst.msk [vmem:[#allocation6 + $0x70] sm:$0xf] %vm1447_vm2, %v2772_v2  ;;  %v8507_v13 = vsel %vm14140_vm4, 0, %v8506_v5 }
 0x232   : > { %v2775_v15 = vsel %vm13916_vm13, %v2773_v57, %v2774_v14  ;;  %v2778_v11 = vsel %vm13916_vm13, %v2776_v31, %v2777_v21  ;;  %v2781_v54 = vsel %vm13916_vm13, %v2779_v16, %v2780_v59  ;;  %8508 = vst [vmem:[#allocation6] sm:$0x3] %v8507_v13  ;;  %v17171_v53 = vmov 0  ;;  %v12116_v43 = vld [vmem:[%s17094_s6 + $0x98] sm:$0xff]  }
 0x233   : > { %2844 = vst.msk [vmem:[#allocation6 + $0x74] sm:$0xf] %vm1447_vm2, %v2775_v15  ;;  %2845 = vst.msk [vmem:[#allocation6 + $0x78] sm:$0xf] %vm1447_vm2, %v2778_v11  ;;  %v2850_v17 = vsel %vm14157_vm5, %v2781_v54, %v2849_v45  ;;  %v17172_v53 = vsel %vm14178_vm0, 4294967295, %v17171_v53  ;;  %11732 = vmatpush3.bf16.msra.mxu1 %v12064_v41  ;;  %v4909_v42 = vsel %vm4907_vm15, 0, %v4908_v33 }
 0x234   : > { %17173 = vst [vmem:[#allocation13_spill] sm:$0xff] %v17172_v53  ;;  %2851 = vst [vmem:[#allocation6 + $0x7c] sm:$0xf] %v2850_v17  ;;  %11733 = vmatprep.subr.bf16.mxu1 %v12066_v24  ;;  %vm4387_vm5 = vcmask 1044480   ;;  %vm4894_vm0 = vcmask 1043459   ;;  %vm4897_vm4 = vcmask 1047559  }
 0x235   : > { %4910 = vst [vmem:[#allocation7 + $0x100] sm:$0x33] %v4909_v42 }
 0x237   : > { %v3192_v6 = vpop.permute.xlu1 %3191  ;;  %11734 = vmatpush3.bf16.msra.mxu1 %v12066_v24 }
 0x238   : > { %3284 = vst.msk [vmem:[#allocation6 + $0x24] sm:$0xf] %vm17123_vm14, %v3192_v6  ;;  %11735 = vmatprep.subr.bf16.mxu1 %v12068_v7 }
 0x239   : > { %v3194_v29 = vpop.permute.xlu0 %3193 }
 0x23a   : > { %3285 = vst.msk [vmem:[#allocation6 + $0x28] sm:$0xf] %vm17123_vm14, %v3194_v29 }
 0x23b   : > { %11736 = vmatpush3.bf16.msra.mxu1 %v12068_v7  ;;  %v3196_v62 = vpop.permute.xlu1 %3195 }
 0x23c   : > { %11737 = vmatprep.subr.bf16.mxu1 %v12070_v10  ;;  %3286 = vst.msk [vmem:[#allocation6 + $0x2c] sm:$0xf] %vm17123_vm14, %v3196_v62 }
 0x23f   : > { %v14203_v28 = vld [vmem:[#allocation6 + $0x20] sm:$0xff]   ;;  %11738 = vmatpush3.bf16.msra.mxu1 %v12070_v10 }
 0x240   : > { %11739 = vmatprep.subr.bf16.mxu1 %v12072_v44  ;;  %v3198_v35 = vpop.permute.xlu0 %3197  ;;  %v3462_v37 = vrot.slane %v14203_v28, 1  ;;  %v3974_v20 = vrot.slane %v14203_v28, 2 }
 0x241   : > { %3287 = vst.msk [vmem:[#allocation6 + $0x30] sm:$0xf] %vm17123_vm14, %v3198_v35 }
 0x242   : > { %v3463_v40 = vsel %vm3454_vm8, %v3460_v36, %v3462_v37  ;;  %v3975_v19 = vsel %vm3966_vm1, %v3972_v18, %v3974_v20 }
 0x243   : > { %11740 = vmatpush3.bf16.msra.mxu1 %v12072_v44  ;;  %11794 = vmatmul.mubr.bf16.gmra.mxu0 %v3975_v19  ;;  %v14219_v38 = vld [vmem:[#allocation6 + $0x28] sm:$0xff]  }
 0x244   : > { %11698 = vmatmul.mubr.bf16.gmra.mxu1 %v3463_v40  ;;  %11821 = vmatprep.subr.bf16.mxu1 %v14208_v56  ;;  %v3464_v48 = vrot.slane %v14219_v38, 1  ;;  %v3976_v4 = vrot.slane %v14219_v38, 2 }
 0x246   : > { %v3465_v63 = vsel %vm3454_vm8, %v3462_v37, %v3464_v48  ;;  %v3977_v58 = vsel %vm3966_vm1, %v3974_v20, %v3976_v4 }
 0x247   : > { %11701 = vmatprep.mubr.bf16.mxu1 %v3465_v63  ;;  %11797 = vmatprep.mubr.bf16.mxu0 %v3977_v58 }
 0x252   : > { %v3200_v36 = vpop.permute.xlu1 %3199 }
 0x253   : > { %3288 = vst.msk [vmem:[#allocation6 + $0x34] sm:$0xf] %vm17123_vm14, %v3200_v36 }
 0x255   : > { %v3202_v18 = vpop.permute.xlu0 %3201 }
 0x256   : > { %3289 = vst.msk [vmem:[#allocation6 + $0x38] sm:$0xf] %vm17123_vm14, %v3202_v18 }
 0x25a   : > { %v14228_v55 = vld [vmem:[#allocation6 + $0x30] sm:$0xff]  }
 0x25b   : > { %v3466_v3 = vrot.slane %v14228_v55, 1  ;;  %v3978_v22 = vrot.slane %v14228_v55, 2 }
 0x25d   : > { %v3467_v26 = vsel %vm3454_vm8, %v3464_v48, %v3466_v3  ;;  %v3979_v46 = vsel %vm3966_vm1, %v3976_v4, %v3978_v22 }
 0x25e   : > { %v3204_v1 = vpop.permute.xlu1 %3203  ;;  %11702 = vmatmul.mubr.bf16.gmra.mxu1 %v3467_v26  ;;  %11798 = vmatmul.mubr.bf16.gmra.mxu0 %v3979_v46 }
 0x25f   : > { %3290 = vst.msk [vmem:[#allocation6 + $0x3c] sm:$0xf] %vm17123_vm14, %v3204_v1 }
 0x260   : > { %v3206_v49 = vpop.permute.xlu0 %3205 }
 0x261   : > { %3291 = vst.msk [vmem:[#allocation6 + $0x40] sm:$0xf] %vm17123_vm14, %v3206_v49 }
 0x265   : > { %v3208_v41 = vpop.permute.xlu1 %3207 }
 0x266   : > { %v14236_v60 = vld [vmem:[#allocation6 + $0x38] sm:$0xff]   ;;  %3292 = vst.msk [vmem:[#allocation6 + $0x44] sm:$0xf] %vm17123_vm14, %v3208_v41 }
 0x267   : > { %v3468_v52 = vrot.slane %v14236_v60, 1  ;;  %v3980_v12 = vrot.slane %v14236_v60, 2  ;;  %v3210_v30 = vpop.permute.xlu0 %3209 }
 0x268   : > { %3293 = vst.msk [vmem:[#allocation6 + $0x48] sm:$0xf] %vm17123_vm14, %v3210_v30 }
 0x269   : > { %v3469_v14 = vsel %vm3454_vm8, %v3466_v3, %v3468_v52  ;;  %v3981_v21 = vsel %vm3966_vm1, %v3978_v22, %v3980_v12  ;;  %v3212_v5 = vpop.permute.xlu1 %3211 }
 0x26a   : > { %11705 = vmatprep.mubr.bf16.mxu1 %v3469_v14  ;;  %11801 = vmatprep.mubr.bf16.mxu0 %v3981_v21  ;;  %3294 = vst.msk [vmem:[#allocation6 + $0x4c] sm:$0xf] %vm17123_vm14, %v3212_v5 }
 0x26b   : > { %v3214_v9 = vpop.permute.xlu0 %3213 }
 0x26c   : > { %3295 = vst.msk [vmem:[#allocation6 + $0x50] sm:$0xf] %vm17123_vm14, %v3214_v9 }
 0x26d   : > { %v14246_v50 = vld [vmem:[#allocation6 + $0x40] sm:$0xff]  }
 0x26e   : > { %v3216_v59 = vpop.permute.xlu1 %3215  ;;  %v3470_v2 = vrot.slane %v14246_v50, 1  ;;  %v3982_v57 = vrot.slane %v14246_v50, 2 }
 0x26f   : > { %3296 = vst.msk [vmem:[#allocation6 + $0x54] sm:$0xf] %vm17123_vm14, %v3216_v59 }
 0x270   : > { %v3218_v31 = vpop.permute.xlu0 %3217  ;;  %v3471_v16 = vsel %vm3454_vm8, %v3468_v52, %v3470_v2  ;;  %v3983_v39 = vsel %vm3966_vm1, %v3980_v12, %v3982_v57 }
 0x271   : > { %3297 = vst.msk [vmem:[#allocation6 + $0x58] sm:$0xf] %vm17123_vm14, %v3218_v31  ;;  %v14254_v45 = vld [vmem:[#allocation6 + $0x48] sm:$0xff]   ;;  %11706 = vmatmul.mubr.bf16.gmra.mxu1 %v3471_v16  ;;  %11802 = vmatmul.mubr.bf16.gmra.mxu0 %v3983_v39 }
 0x272   : > { %v3472_v24 = vrot.slane %v14254_v45, 1  ;;  %v3984_v13 = vrot.slane %v14254_v45, 2 }
 0x274   : > { %v3473_v15 = vsel %vm3454_vm8, %v3470_v2, %v3472_v24  ;;  %v3985_v11 = vsel %vm3966_vm1, %v3982_v57, %v3984_v13 }
 0x275   : > { %11709 = vmatprep.mubr.bf16.mxu1 %v3473_v15  ;;  %11805 = vmatprep.mubr.bf16.mxu0 %v3985_v11  ;;  %v10364_v15 = vcombine.low %v14149_v23, %v13983_v47  ;;  %v12075_v11 = vld [vmem:[%s17092_s4 + $0xf0] sm:$0xff]   ;;  %v12077_v47 = vld [vmem:[%s17092_s4 + $0xe0] sm:$0xff]  }
 0x276   : > { %v14260_v54 = vld [vmem:[#allocation6 + $0x50] sm:$0xff]   ;;  %v12081_v23 = vld [vmem:[%s17092_s4 + $0xc0] sm:$0xff]  }
 0x277   : > { %v3474_v33 = vrot.slane %v14260_v54, 1  ;;  %v3986_v17 = vrot.slane %v14260_v54, 2 }
 0x279   : > { %v3475_v7 = vsel %vm3454_vm8, %v3472_v24, %v3474_v33  ;;  %v3987_v42 = vsel %vm3966_vm1, %v3984_v13, %v3986_v17 }
 0x27a   : > { %11710 = vmatmul.mubr.bf16.gmra.mxu1 %v3475_v7  ;;  %11806 = vmatmul.mubr.bf16.gmra.mxu0 %v3987_v42 }
 0x27d   : > { %v3220_v6 = vpop.permute.xlu1 %3219 }
 0x27e   : > { %3298 = vst.msk [vmem:[#allocation6 + $0x5c] sm:$0xf] %vm17123_vm14, %v3220_v6 }
 0x27f   : > { %v3222_v10 = vpop.permute.xlu0 %3221 }
 0x280   : > { %3299 = vst.msk [vmem:[#allocation6 + $0x60] sm:$0xf] %vm17123_vm14, %v3222_v10 }
 0x281   : > { %v3224_v29 = vpop.permute.xlu1 %3223 }
 0x282   : > { %3300 = vst.msk [vmem:[#allocation6 + $0x64] sm:$0xf] %vm17123_vm14, %v3224_v29  ;;  %v12086_v29 = vld [vmem:[#allocation6 + $0x20] sm:$0xff]  }
 0x283   : > { %v3226_v62 = vpop.permute.xlu0 %3225 }
 0x284   : > { %3301 = vst.msk [vmem:[#allocation6 + $0x68] sm:$0xf] %vm17123_vm14, %v3226_v62 }
 0x285   : > { %v14270_v44 = vld [vmem:[#allocation6 + $0x58] sm:$0xff]   ;;  %v3228_v35 = vpop.permute.xlu1 %3227 }
 0x286   : > { %3302 = vst.msk [vmem:[#allocation6 + $0x6c] sm:$0xf] %vm17123_vm14, %v3228_v35  ;;  %v3476_v37 = vrot.slane %v14270_v44, 1  ;;  %v3988_v20 = vrot.slane %v14270_v44, 2  ;;  %v4395_v35 = vrot.slane %v12086_v29, 3 }
 0x287   : > { %v3230_v40 = vpop.permute.xlu0 %3229 }
 0x288   : > { %3303 = vst.msk [vmem:[#allocation6 + $0x70] sm:$0xf] %vm17123_vm14, %v3230_v40  ;;  %v3477_v19 = vsel %vm3454_vm8, %v3474_v33, %v3476_v37  ;;  %v3989_v48 = vsel %vm3966_vm1, %v3986_v17, %v3988_v20  ;;  %v12076_v33 = vld [vmem:[%s17092_s4 + $0xe8] sm:$0xff]  }
 0x289   : > { %v14278_v4 = vld [vmem:[#allocation6 + $0x60] sm:$0xff]   ;;  %v3232_v63 = vpop.permute.xlu1 %3231  ;;  %11713 = vmatprep.mubr.bf16.mxu1 %v3477_v19  ;;  %11809 = vmatprep.mubr.bf16.mxu0 %v3989_v48  ;;  %v12089_v19 = vld [vmem:[#allocation6 + $0x38] sm:$0xff]  }
 0x28a   : > { %3304 = vst.msk [vmem:[#allocation6 + $0x74] sm:$0xf] %vm17123_vm14, %v3232_v63  ;;  %v3478_v58 = vrot.slane %v14278_v4, 1  ;;  %v3990_v36 = vrot.slane %v14278_v4, 2 }
 0x28b   : > { %v3234_v18 = vpop.permute.xlu0 %3233 }
 0x28c   : > { %3305 = vst.msk [vmem:[#allocation6 + $0x78] sm:$0xf] %vm17123_vm14, %v3234_v18  ;;  %v3479_v1 = vsel %vm3454_vm8, %v3476_v37, %v3478_v58  ;;  %v3991_v3 = vsel %vm3966_vm1, %v3988_v20, %v3990_v36  ;;  %v12091_v18 = vld [vmem:[#allocation6 + $0x48] sm:$0xff]   ;;  %vm4898_vm14 = vsmask.f32 7966 }
 0x28d   : > { %v14286_v22 = vld [vmem:[#allocation6 + $0x68] sm:$0xff]   ;;  %11714 = vmatmul.mubr.bf16.gmra.mxu1 %v3479_v1  ;;  %11810 = vmatmul.mubr.bf16.gmra.mxu0 %v3991_v3  ;;  %v4405_v3 = vrot.slane %v12091_v18, 3 }
 0x28e   : > { %v3236_v49 = vpop.permute.xlu1 %3235  ;;  %v3480_v26 = vrot.slane %v14286_v22, 1  ;;  %v3992_v46 = vrot.slane %v14286_v22, 2  ;;  %v12107_v18 = vld [vmem:[%s17094_s6 + $0xe8] sm:$0xff]  }
 0x28f   : > { %3307 = vst.msk [vmem:[#allocation6 + $0x7c] sm:$0x7] %vm3306_vm12, %v3236_v49  ;;  %v12092_v49 = vld [vmem:[#allocation6 + $0x50] sm:$0xff]   ;;  %vm14825_vm12 = vmand %vm5499_vm11, %vm3270_vm10 }
 0x290   : > { %v3481_v41 = vsel %vm3454_vm8, %v3478_v58, %v3480_v26  ;;  %v3993_v52 = vsel %vm3966_vm1, %v3990_v36, %v3992_v46  ;;  %v12090_v58 = vld [vmem:[#allocation6 + $0x40] sm:$0xff]  }
 0x291   : > { %v12069_v12 = vld [vmem:[#allocation6 + $0x70] sm:$0xff]   ;;  %11717 = vmatprep.mubr.bf16.mxu1 %v3481_v41  ;;  %11813 = vmatprep.mubr.bf16.mxu0 %v3993_v52  ;;  %v4403_v1 = vrot.slane %v12090_v58, 3  ;;  %v4407_v41 = vrot.slane %v12092_v49, 3 }
 0x292   : > { %v3482_v30 = vrot.slane %v12069_v12, 1  ;;  %v3994_v14 = vrot.slane %v12069_v12, 2 }
 0x293   : > { %v3338_v9 = vld [vmem:[#allocation6 + $0x78] sm:$0xf] }
 0x294   : > { %v3483_v21 = vsel %vm3454_vm8, %v3480_v26, %v3482_v30  ;;  %v3995_v5 = vsel %vm3966_vm1, %v3992_v46, %v3994_v14  ;;  %v4406_v26 = vsel %vm4387_vm5, %v4403_v1, %v4405_v3  ;;  %v12093_v46 = vld [vmem:[#allocation6 + $0x58] sm:$0xff]  }
 0x295   : > { %11718 = vmatmul.mubr.bf16.gmra.mxu1 %v3483_v21  ;;  %11814 = vmatmul.mubr.bf16.gmra.mxu0 %v3995_v5  ;;  %v4409_v52 = vrot.slane %v12093_v46, 3  ;;  %v12095_v21 = vld [vmem:[#allocation6 + $0x68] sm:$0xff]  }
 0x296   : > { %v3357_v59 = vld [vmem:[#allocation6 + $0x7c] sm:$0x7] }
 0x297   : > { %v3943_v2 = vld [vmem:[#allocation6 + $0x7c] sm:$0xf]  ;;  %v10355_v57 = vcombine.low %v3338_v9, %v3357_v59  ;;  %v4413_v59 = vrot.slane %v12095_v21, 3 }
 0x298   : > { %v10375_v31 = vcombine.low %v3338_v9, %v3943_v2 }
 0x299   : > { %v3484_v16 = vrot.slane %v10355_v57, 1 }
 0x29a   : > { %v3996_v39 = vrot.slane %v10375_v31, 2  ;;  %v12096_v31 = vld [vmem:[#allocation6 + $0x70] sm:$0xff]  }
 0x29b   : > { %v3485_v24 = vsel %vm3454_vm8, %v3482_v30, %v3484_v16  ;;  %v12094_v30 = vld [vmem:[#allocation6 + $0x60] sm:$0xff]  }
 0x29c   : > { %v3997_v13 = vsel %vm3966_vm1, %v3994_v14, %v3996_v39  ;;  %11721 = vmatprep.mubr.bf16.mxu1 %v3485_v24  ;;  %v4410_v14 = vsel %vm4387_vm5, %v4407_v41, %v4409_v52 }
 0x29d   : > { %11817 = vmatprep.mubr.bf16.mxu0 %v3997_v13  ;;  %11722 = vmatmul.mubr.bf16.gmra.mxu1 %v3484_v16  ;;  %v4415_v13 = vrot.slane %v12096_v31, 3  ;;  %v12112_v31 = vld [vmem:[%s17094_s6 + $0xa0] sm:$0xff]  }
 0x29e   : > { %11818 = vmatmul.mubr.bf16.gmra.mxu0 %v3996_v39  ;;  %11741 = vmatprep.mubr.bf16.mxu1 %v10364_v15  ;;  %v12097_v39 = vld [vmem:[#allocation6 + $0x78] sm:$0xff]  }
 0x29f   : > { %v4417_v15 = vrot.slane %v12097_v39, 3 }
 0x2a5   : > { %11742 = vmatmul.mubr.bf16.vlgmr.msra.gmra.mxu1 %v14021_v51  ;;  %v12078_v51 = vld [vmem:[%s17092_s4 + $0xd8] sm:$0xff]  }
 0x2a6   : > { %11822 = vmatpush3.bf16.msra.mxu1 %v14208_v56  ;;  %11745 = vmatprep.mubr.bf16.mxu1 %v14054_v25  ;;  %v12079_v25 = vld [vmem:[%s17092_s4 + $0xd0] sm:$0xff]   ;;  %v12083_v56 = vld [vmem:[#allocation6] sm:$0xf8]  }
 0x2a7   : > { %11823 = vmatprep.subr.bf16.mxu1 %v12075_v11  ;;  %v4388_v17 = vrot.slane %v12083_v56, 3  ;;  %v12099_v56 = vld [vmem:[%s17094_s6 + $0xf8] sm:$0xff]  }
 0x2a8   : > { %10965 = vmatprep.subr.bf16.mxu0 %v12099_v56 }
 0x2aa   : > { %11824 = vmatpush3.bf16.msra.mxu1 %v12075_v11 }
 0x2ab   : > { %11825 = vmatprep.subr.bf16.mxu1 %v12076_v33 }
 0x2ad   : > { %11746 = vmatmul.mubr.bf16.gmra.mxu1 %v14074_v61  ;;  %v12080_v61 = vld [vmem:[%s17092_s4 + $0xc8] sm:$0xff]  }
 0x2ae   : > { %11749 = vmatprep.mubr.bf16.mxu1 %v14203_v28  ;;  %11826 = vmatpush3.bf16.msra.mxu1 %v12076_v33  ;;  %v12084_v28 = vld [vmem:[#allocation6 + $0x8] sm:$0xff]   ;;  %v4416_v33 = vsel %vm4387_vm5, %v4413_v59, %v4415_v13 }
 0x2af   : > { %11827 = vmatprep.subr.bf16.mxu1 %v12077_v47 }
 0x2b2   : > { %11828 = vmatpush3.bf16.msra.mxu1 %v12077_v47  ;;  %v12098_v47 = vld [vmem:[#allocation6 + $0x80] ss:$0 sps:$4 sm:$0x11]  }
 0x2b3   : > { %11829 = vmatprep.subr.bf16.mxu1 %v12078_v51 }
 0x2b5   : > { %11750 = vmatmul.mubr.bf16.gmra.mxu1 %v14219_v38  ;;  %v3339_v38 = vld [vmem:[#allocation6 + $0x7c] sm:$0x3] }
 0x2b6   : > { %11753 = vmatprep.mubr.bf16.mxu1 %v14228_v55  ;;  %11830 = vmatpush3.bf16.msra.mxu1 %v12078_v51  ;;  %v4389_v55 = vrot.slane %v12084_v28, 3  ;;  %v4418_v51 = vsel %vm4387_vm5, %v4415_v13, %v4417_v15 }
 0x2b7   : > { %11831 = vmatprep.subr.bf16.mxu1 %v12079_v25 }
 0x2ba   : > { %11832 = vmatpush3.bf16.msra.mxu1 %v12079_v25 }
 0x2bb   : > { %11833 = vmatprep.subr.bf16.mxu1 %v12080_v61 }
 0x2bd   : > { %11754 = vmatmul.mubr.bf16.gmra.mxu1 %v14236_v60  ;;  %v4260_v60 = vld [vmem:[#allocation6 + $0x14] sm:$0xf] }
 0x2be   : > { %11757 = vmatprep.mubr.bf16.mxu1 %v14246_v50  ;;  %11834 = vmatpush3.bf16.msra.mxu1 %v12080_v61  ;;  %v10365_v50 = vcombine.low %v3338_v9, %v3339_v38  ;;  %v10386_v7 = vcombine.low %v14031_v27, %v4260_v60  ;;  %v12088_v27 = vld [vmem:[#allocation6 + $0x30] sm:$0xff]   ;;  %v4411_v9 = vrot.slane %v12094_v30, 3  ;;  %v4419_v61 = vrot.slane %v12098_v47, 3 }
 0x2bf   : > { %11835 = vmatprep.subr.bf16.mxu1 %v12081_v23  ;;  %v4399_v48 = vrot.slane %v12088_v27, 3 }
 0x2c0   : > { %v4391_v42 = vrot.slane %v10386_v7, 3  ;;  %v4412_v57 = vsel %vm4387_vm5, %v4409_v52, %v4411_v9  ;;  %v4414_v16 = vsel %vm4387_vm5, %v4411_v9, %v4413_v59  ;;  %v4420_v28 = vsel %vm4387_vm5, %v4417_v15, %v4419_v61  ;;  %v12102_v7 = vld [vmem:[%s17094_s6 + $0x38] sm:$0xff]   ;;  %v12110_v59 = vld [vmem:[%s17094_s6 + $0x28] sm:$0xff]   ;;  %v12113_v61 = vld [vmem:[%s17094_s6 + $0x60] sm:$0xff]  }
 0x2c2   : > { %11836 = vmatpush3.bf16.msra.mxu1 %v12081_v23  ;;  %v4392_v10 = vsel %vm4387_vm5, %v4389_v55, %v4391_v42 }
 0x2c5   : > { %11758 = vmatmul.mubr.bf16.gmra.mxu1 %v14254_v45  ;;  %v4390_v45 = vsel %vm4387_vm5, %v4388_v17, %v4389_v55  ;;  %v12100_v55 = vld [vmem:[%s17094_s6 + $0xb8] sm:$0xff]  }
 0x2c6   : > { %11761 = vmatprep.mubr.bf16.mxu1 %v14260_v54  ;;  %v12085_v54 = vld [vmem:[#allocation6 + $0x18] sm:$0xff]   ;;  %10966 = vmatpush3.bf16.msra.mxu0 %v12100_v55 }
 0x2c7   : > { %v4393_v6 = vrot.slane %v12085_v54, 3 }
 0x2c9   : > { %v4394_v62 = vsel %vm4387_vm5, %v4391_v42, %v4393_v6  ;;  %v4396_v20 = vsel %vm4387_vm5, %v4393_v6, %v4395_v35 }
 0x2cd   : > { %11762 = vmatmul.mubr.bf16.gmra.mxu1 %v14270_v44  ;;  %v12087_v44 = vld [vmem:[#allocation6 + $0x28] sm:$0xff]  }
 0x2ce   : > { %11765 = vmatprep.mubr.bf16.mxu1 %v14278_v4  ;;  %v4397_v37 = vrot.slane %v12087_v44, 3  ;;  %v4401_v4 = vrot.slane %v12089_v19, 3 }
 0x2d0   : > { %v4398_v40 = vsel %vm4387_vm5, %v4395_v35, %v4397_v37  ;;  %v4400_v63 = vsel %vm4387_vm5, %v4397_v37, %v4399_v48  ;;  %v4402_v36 = vsel %vm4387_vm5, %v4399_v48, %v4401_v4  ;;  %v12105_v48 = vld [vmem:[%s17094_s6 + $0x70] sm:$0xff]  }
 0x2d5   : > { %11766 = vmatmul.mubr.bf16.gmra.mxu1 %v14286_v22  ;;  %v4404_v22 = vsel %vm4387_vm5, %v4401_v4, %v4403_v1  ;;  %v12108_v1 = vld [vmem:[%s17094_s6 + $0xa8] sm:$0xff]  }
 0x2d6   : > { %11769 = vmatprep.mubr.bf16.mxu1 %v12069_v12  ;;  %v4408_v12 = vsel %vm4387_vm5, %v4405_v3, %v4407_v41 }
 0x2dd   : > { %11770 = vmatmul.mubr.bf16.gmra.mxu1 %v10365_v50  ;;  %v12101_v50 = vld [vmem:[%s17094_s6 + $0x78] sm:$0xff]  }
 0x2de   : > { %11837 = vmatprep.mubr.bf16.mxu1 %v4390_v45  ;;  %11077 = vmatprep.subr.bf16.mxu1 %v12101_v50  ;;  %v12103_v45 = vld [vmem:[%s17094_s6 + $0xf0] sm:$0xff]  }
 0x2df   : > { %10967 = vmatprep.subr.bf16.mxu0 %v12103_v45 }
 0x2e5   : > { %11838 = vmatmul.mubr.bf16.vlgmr.msra.gmra.mxu1 %v4392_v10 }
 0x2e6   : > { %11841 = vmatprep.mubr.bf16.mxu1 %v4394_v62  ;;  %v14345_v5 = vpop.f32.mrf.mxu1  ;;  %11078 = vmatpush3.bf16.msra.mxu1 %v12102_v7 }
 0x2e7   : > { %11079 = vmatprep.subr.bf16.mxu1 %v12105_v48 }
 0x2e8   : > { %v14347_v2 = vpop.f32.mrf.mxu1 }
 0x2ea   : > { %v14351_v24 = vpop.f32.mrf.mxu1 }
 0x2ec   : > { %v14353_v11 = vpop.f32.mrf.mxu1 }
 0x2ed   : > { %11842 = vmatmul.mubr.bf16.gmra.mxu1 %v4396_v20  ;;  %v12104_v20 = vld [vmem:[%s17094_s6 + $0xb0] sm:$0xff]  }
 0x2ee   : > { %11845 = vmatprep.mubr.bf16.mxu1 %v4398_v40  ;;  %10968 = vmatpush3.bf16.msra.mxu0 %v12104_v20 }
 0x2ef   : > { %10969 = vmatprep.subr.bf16.mxu0 %v12107_v18 }
 0x2f2   : > { %10970 = vmatpush3.bf16.msra.mxu0 %v12108_v1 }
 0x2f5   : > { %11846 = vmatmul.mubr.bf16.gmra.mxu1 %v4400_v63  ;;  %v14415_v63 = vpop.f32.mrf.mxu0 }
 0x2f6   : > { %11849 = vmatprep.mubr.bf16.mxu1 %v4402_v36  ;;  %v12106_v36 = vld [vmem:[%s17094_s6 + $0x30] sm:$0xff]  }
 0x2f7   : > { %11080 = vmatpush3.bf16.msra.mxu1 %v12106_v36 }
 0x2fd   : > { %11850 = vmatmul.mubr.bf16.gmra.mxu1 %v4404_v22  ;;  %v14430_v22 = vpop.f32.mrf.mxu0 }
 0x2fe   : > { %11853 = vmatprep.mubr.bf16.mxu1 %v4406_v26 }
 0x2ff   : > { %v14436_v46 = vpop.f32.mrf.mxu0 }
 0x301   : > { %v14445_v30 = vpop.f32.mrf.mxu0 }
 0x303   : > { %v14449_v21 = vpop.f32.mrf.mxu0 }
 0x304   : > { %v14357_v25 = vpop.f32.mrf.mxu1 }
 0x305   : > { %11854 = vmatmul.mubr.bf16.gmra.mxu1 %v4408_v12  ;;  %v12109_v12 = vld [vmem:[%s17094_s6 + $0x68] sm:$0xff]   ;;  %v14464_v39 = vpop.f32.mrf.mxu0 }
 0x306   : > { %11857 = vmatprep.mubr.bf16.mxu1 %v4410_v14  ;;  %v14359_v23 = vpop.f32.mrf.mxu1  ;;  %11081 = vmatprep.subr.bf16.mxu1 %v12109_v12 }
 0x307   : > { %11082 = vmatpush3.bf16.msra.mxu1 %v12110_v59 }
 0x308   : > { %v14365_v38 = vpop.f32.mrf.mxu1  ;;  %11083 = vmatprep.subr.bf16.mxu1 %v12113_v61  ;;  %v12114_v61 = vld [vmem:[%s17094_s6 + $0x20] sm:$0xff]  }
 0x30a   : > { %v14370_v60 = vpop.f32.mrf.mxu1 }
 0x30b   : > { %11084 = vmatpush3.bf16.msra.mxu1 %v12114_v61  ;;  %v12117_v61 = vld [vmem:[%s17094_s6 + $0x58] sm:$0xff]  }
 0x30c   : > { %11085 = vmatprep.subr.bf16.mxu1 %v12117_v61  ;;  %v12120_v61 = vld [vmem:[%s17094_s6 + $0x90] sm:$0xff]  }
 0x30d   : > { %11858 = vmatmul.mubr.bf16.gmra.mxu1 %v4412_v57  ;;  %v12111_v57 = vld [vmem:[%s17094_s6 + $0xe0] sm:$0xff]  }
 0x30e   : > { %11861 = vmatprep.mubr.bf16.mxu1 %v4414_v16  ;;  %10971 = vmatprep.subr.bf16.mxu0 %v12111_v57 }
 0x30f   : > { %10972 = vmatpush3.bf16.msra.mxu0 %v12112_v31 }
 0x310   : > { %10973 = vmatprep.subr.bf16.mxu0 %v12115_v0 }
 0x313   : > { %10974 = vmatpush3.bf16.msra.mxu0 %v12116_v43 }
 0x315   : > { %11862 = vmatmul.mubr.bf16.gmra.mxu1 %v4416_v33  ;;  %v14470_v33 = vpop.f32.mrf.mxu0 }
 0x316   : > { %11865 = vmatprep.mubr.bf16.mxu1 %v4418_v51 }
 0x31d   : > { %11866 = vmatmul.mubr.bf16.gmra.mxu1 %v4420_v28  ;;  %v14479_v28 = vpop.f32.mrf.mxu0 }
 0x31e   : > { %v14375_v17 = vpop.f32.mrf.mxu1 }
 0x31f   : > { %v14483_v55 = vpop.f32.mrf.mxu0 }
 0x320   : > { %v14383_v54 = vpop.f32.mrf.mxu1 }
 0x321   : > { %v14489_v45 = vpop.f32.mrf.mxu0 }
 0x322   : > { %v14385_v42 = vpop.f32.mrf.mxu1 }
 0x323   : > { %v14495_v36 = vpop.f32.mrf.mxu0 }
 0x324   : > { %v14387_v6 = vpop.f32.mrf.mxu1 }
 0x325   : > { %v14501_v12 = vpop.f32.mrf.mxu0 }
 0x331   : > { %v14389_v10 = vpop.f32.mrf.mxu1  ;;  %v14505_v57 = vpop.f32.mrf.mxu0 }
 0x332   : > { %17180 = vst [vmem:[#allocation24_spill] sm:$0xff] %v14505_v57 }
 0x333   : > { %v14391_v29 = vpop.f32.mrf.mxu1  ;;  %v14520_v53 = vpop.f32.mrf.mxu0 }
 0x334   : > { %17181 = vst [vmem:[#allocation25_spill] sm:$0xff] %v14520_v53 }
 0x335   : > { %v14393_v62 = vpop.f32.mrf.mxu1  ;;  %v14526_v8 = vpop.f32.mrf.mxu0 }
 0x336   : > { %17182 = vst [vmem:[#allocation26_spill] sm:$0xff] %v14526_v8  ;;  %v12118_v8 = vld [vmem:[%s17094_s6 + $0x18] sm:$0xff]  }
 0x337   : > { %v14395_v44 = vpop.f32.mrf.mxu1  ;;  %11086 = vmatpush3.bf16.msra.mxu1 %v12118_v8  ;;  %v12121_v8 = vld [vmem:[%s17094_s6 + $0x50] sm:$0xff]  }
 0x338   : > { %11087 = vmatprep.subr.bf16.mxu1 %v12121_v8 }
 0x33a   : > { %v14397_v35 = vpop.f32.mrf.mxu1 }
 0x33c   : > { %v14399_v37 = vpop.f32.mrf.mxu1 }
 0x33d   : > { %17174 = vst [vmem:[#allocation14_spill] sm:$0xff] %v14399_v37 }
 0x33e   : > { %v14404_v27 = vpop.f32.mrf.mxu1 }
 0x33f   : > { %17175 = vst [vmem:[#allocation19_spill] sm:$0xff] %v14404_v27  ;;  %v12119_v27 = vld [vmem:[%s17094_s6 + $0xd0] sm:$0xff]  }
 0x340   : > { %v14406_v40 = vpop.f32.mrf.mxu1  ;;  %10975 = vmatprep.subr.bf16.mxu0 %v12119_v27 }
 0x341   : > { %17176 = vst [vmem:[#allocation20_spill] sm:$0xff] %v14406_v40  ;;  %10976 = vmatpush3.bf16.msra.mxu0 %v12120_v61 }
 0x34d   : > { %v14408_v19 = vpop.f32.mrf.mxu1 }
 0x34f   : > { %v14413_v4 = vpop.f32.mrf.mxu1 }
 0x351   : > { %v14417_v58 = vpop.f32.mrf.mxu1 }
 0x353   : > { %v14428_v3 = vpop.f32.mrf.mxu1 }
 0x354   : > { %17177 = vst [vmem:[#allocation21_spill] sm:$0xff] %v14428_v3  ;;  %v14535_v3 = vpop.f32.mrf.mxu0 }
 0x355   : > { %v14432_v49 = vpop.f32.mrf.mxu1  ;;  %17184 = vst [vmem:[#allocation28_spill] sm:$0xff] %v14535_v3 }
 0x356   : > { %v14539_v53 = vpop.f32.mrf.mxu0 }
 0x357   : > { %v14434_v26 = vpop.f32.mrf.mxu1  ;;  %17186 = vst [vmem:[#allocation30_spill] sm:$0xff] %v14539_v53 }
 0x358   : > { %v14554_v3 = vpop.f32.mrf.mxu0 }
 0x359   : > { %v14438_v41 = vpop.f32.mrf.mxu1  ;;  %17189 = vst [vmem:[#allocation33_spill] sm:$0xff] %v14554_v3 }
 0x35a   : > { %v14565_v27 = vpop.f32.mrf.mxu0 }
 0x35b   : > { %v14440_v52 = vpop.f32.mrf.mxu1 }
 0x35c   : > { %17178 = vst [vmem:[#allocation22_spill] sm:$0xff] %v14440_v52  ;;  %v14572_v61 = vpop.f32.mrf.mxu0 }
 0x35d   : > { %v14447_v14 = vpop.f32.mrf.mxu1 }
 0x35f   : > { %v14451_v9 = vpop.f32.mrf.mxu1 }
 0x361   : > { %v14462_v16 = vpop.f32.mrf.mxu1 }
 0x363   : > { %v14466_v13 = vpop.f32.mrf.mxu1 }
 0x364   : > { %17179 = vst [vmem:[#allocation23_spill] sm:$0xff] %v14466_v13 }
 0x365   : > { %v14468_v15 = vpop.f32.mrf.mxu1 }
 0x367   : > { %v14472_v47 = vpop.f32.mrf.mxu1 }
 0x369   : > { %v14474_v51 = vpop.f32.mrf.mxu1 }
 0x36b   : > { %v14481_v56 = vpop.f32.mrf.mxu1 }
 0x36d   : > { %v14485_v50 = vpop.f32.mrf.mxu1 }
 0x36f   : > { %v14487_v7 = vpop.f32.mrf.mxu1 }
 0x371   : > { %v14491_v20 = vpop.f32.mrf.mxu1 }
 0x373   : > { %v14493_v48 = vpop.f32.mrf.mxu1 }
 0x375   : > { %v14497_v18 = vpop.f32.mrf.mxu1 }
 0x377   : > { %v14499_v1 = vpop.f32.mrf.mxu1 }
 0x379   : > { %v14503_v59 = vpop.f32.mrf.mxu1 }
 0x37b   : > { %v14507_v31 = vpop.f32.mrf.mxu1 }
 0x37d   : > { %v14515_v32 = vpop.f32.mrf.mxu1 }
 0x37f   : > { %v14522_v13 = vpop.f32.mrf.mxu1 }
 0x381   : > { %v14524_v34 = vpop.f32.mrf.mxu1 }
 0x383   : > { %v14528_v52 = vpop.f32.mrf.mxu1 }
 0x385   : > { %v14533_v0 = vpop.f32.mrf.mxu1 }
 0x386   : > { %17183 = vst [vmem:[#allocation27_spill] sm:$0xff] %v14533_v0 }
 0x387   : > { %v14537_v40 = vpop.f32.mrf.mxu1 }
 0x388   : > { %17185 = vst [vmem:[#allocation29_spill] sm:$0xff] %v14537_v40 }
 0x389   : > { %v14541_v43 = vpop.f32.mrf.mxu1 }
 0x38a   : > { %17187 = vst [vmem:[#allocation31_spill] sm:$0xff] %v14541_v43 }
 0x38b   : > { %v14549_v37 = vpop.f32.mrf.mxu1 }
 0x38c   : > { %17188 = vst [vmem:[#allocation32_spill] sm:$0xff] %v14549_v37 }
 0x38d   : > { %v11763_v53 = vpop.f32.mrf.mxu1 }
 0x38e   : > { %v14557_v43 = vadd.f32 %v11763_v53, %v14408_v19 }
 0x38f   : > { %v3895_v40 = vpop.f32.mrf.mxu1 }
 0x390   : > { %17190 = vst [vmem:[#allocation34_spill] sm:$0xff] %v14557_v43  ;;  %v14560_v57 = vadd.f32 %v3895_v40, %v14413_v4  ;;  %v14577_v40 = vpop.f32.mrf.mxu0 }
 0x391   : > { %v11764_v37 = vpop.f32.mrf.mxu1 }
 0x392   : > { %17191 = vst [vmem:[#allocation35_spill] sm:$0xff] %v14560_v57  ;;  %v14568_v0 = vadd.f32 %v11764_v37, %v14417_v58  ;;  %v12122_v37 = vld [vmem:[%s17094_s6 + $0x10] sm:$0xff]   ;;  %v12123_v58 = vld [vmem:[%s17094_s6 + $0xc8] sm:$0xff]  }
 0x393   : > { %v14570_v3 = vpop.f32.mrf.mxu1  ;;  %11088 = vmatpush3.bf16.msra.mxu1 %v12122_v37  ;;  %10977 = vmatprep.subr.bf16.mxu0 %v12123_v58  ;;  %v3816_v58 = vadd.f32 %v14472_v47, %v14347_v2  ;;  %v3819_v2 = vadd.f32 %v14481_v56, %v14353_v11  ;;  %v14647_v11 = vld [vmem:[%s17093_s5] ss:$0 sm:$0xff]  ;;  %v3851_v56 = vadd.f32 %v14507_v31, %v14387_v6 }
 0x394   : > { %17192 = vst [vmem:[#allocation36_spill] sm:$0xff] %v14568_v0  ;;  %v3824_v0 = vadd.f32 %v14468_v15, %v14345_v5  ;;  %v12127_v5 = vld [vmem:[%s17094_s6 + $0xc0] sm:$0xff]  }
 0x395   : > { %v11767_v53 = vpop.f32.mrf.mxu1 }
 0x396   : > { %v14575_v19 = vadd.f32 %v11767_v53, %v14432_v49  ;;  %v12124_v49 = vld [vmem:[%s17094_s6 + $0x88] sm:$0xff]   ;;  %v14597_v53 = vpop.f32.mrf.mxu0  ;;  %v4225_v15 = vadd.f32 %v14415_v63, %v3824_v0  ;;  %v3864_v0 = vadd.f32 %v14522_v13, %v14391_v29  ;;  %v3867_v13 = vadd.f32 %v14528_v52, %v14395_v44 }
 0x397   : > { %v3911_v4 = vpop.f32.mrf.mxu1  ;;  %17196 = vst [vmem:[#allocation40_spill] sm:$0xff] %v14597_v53  ;;  %10978 = vmatpush3.bf16.msra.mxu0 %v12124_v49  ;;  %v3827_v49 = vadd.f32 %v14474_v51, %v14351_v24  ;;  %v3832_v24 = vadd.f32 %v14487_v7, %v14359_v23  ;;  %v3843_v51 = vadd.f32 %v14491_v20, %v14365_v38  ;;  %v17204_v44 = vld [vmem:[#allocation32_spill] sm:$0xff] }
 0x398   : > { %17193 = vst [vmem:[#allocation37_spill] sm:$0xff] %v14575_v19  ;;  %v14580_v57 = vadd.f32 %v3911_v4, %v14434_v26  ;;  %v12125_v26 = vld [vmem:[%s17094_s6 + $0x48] sm:$0xff]   ;;  %10979 = vmatprep.subr.bf16.mxu0 %v12127_v5  ;;  %v4223_v23 = vadd.f32 %v14430_v22, %v3816_v58  ;;  %v3848_v38 = vadd.f32 %v14499_v1, %v14383_v54 }
 0x399   : > { %v11768_v43 = vpop.f32.mrf.mxu1  ;;  %11089 = vmatprep.subr.bf16.mxu1 %v12125_v26  ;;  %v4226_v7 = vadd.f32 %v14436_v46, %v3827_v49  ;;  %v3872_v54 = vadd.f32 %v14515_v32, %v14389_v10  ;;  %v4227_v1 = vadd.f32 %v14464_v39, %v3832_v24  ;;  %v4230_v6 = vadd.f32 %v14470_v33, %v3843_v51  ;;  %v17202_v24 = vld [vmem:[#allocation31_spill] sm:$0xff] }
 0x39a   : > { %17194 = vst [vmem:[#allocation38_spill] sm:$0xff] %v14580_v57  ;;  %v14592_v8 = vadd.f32 %v11768_v43, %v14438_v41  ;;  %v12126_v41 = vld [vmem:[%s17094_s6 + $0x8] sm:$0xff]   ;;  %v14607_v43 = vpop.f32.mrf.mxu0  ;;  %v14679_v32 = vadd.f32 %v14489_v45, %v3848_v38  ;;  %v14685_v39 = vadd.f32 %v14501_v12, %v3851_v56  ;;  %v3875_v33 = vadd.f32 %v14524_v34, %v14393_v62  ;;  %v17197_v45 = vld [vmem:[#allocation27_spill] sm:$0xff] }
 0x39b   : > { %v14599_v4 = vpop.f32.mrf.mxu1  ;;  %11090 = vmatpush3.bf16.msra.mxu1 %v12126_v41  ;;  %v17198_v12 = vld [vmem:[#allocation24_spill] sm:$0xff]  ;;  %v17200_v34 = vld [vmem:[#allocation29_spill] sm:$0xff] }
 0x39c   : > { %17195 = vst [vmem:[#allocation39_spill] sm:$0xff] %v14592_v8  ;;  %v14698_v5 = vadd.f32 %v17198_v12, %v3872_v54  ;;  %v17208_v54 = vld [vmem:[#allocation28_spill] sm:$0xff] }
 0x39d   : > { %v11771_v57 = vpop.f32.mrf.mxu1 }
 0x39e   : > { %v14602_v19 = vadd.f32 %v11771_v57, %v14447_v14  ;;  %v14619_v57 = vpop.f32.mrf.mxu0 }
 0x39f   : > { %v3927_v8 = vpop.f32.mrf.mxu1 }
 0x3a0   : > { %v14612_v53 = vadd.f32 %v3927_v8, %v14451_v9  ;;  %v12128_v9 = vld [vmem:[%s17094_s6 + $0x40] sm:$0xff]   ;;  %v14636_v47 = vpop.f32.mrf.mxu0  ;;  %v3835_v8 = vadd.f32 %v14493_v48, %v14370_v60  ;;  %v3859_v60 = vadd.f32 %v14503_v59, %v14385_v42 }
 0x3a1   : > { %v11772_v37 = vpop.f32.mrf.mxu1  ;;  %11091 = vmatprep.subr.bf16.mxu1 %v12128_v9  ;;  %v17199_v9 = vld [vmem:[#allocation14_spill] sm:$0xff] }
 0x3a2   : > { %v14617_v14 = vadd.f32 %v11772_v37, %v14462_v16  ;;  %v3840_v16 = vadd.f32 %v14485_v50, %v14357_v25  ;;  %v3856_v25 = vadd.f32 %v14497_v18, %v14375_v17  ;;  %v4224_v17 = vadd.f32 %v14445_v30, %v3819_v2  ;;  %v14664_v18 = vpop.f32.mrf.mxu0 }
 0x3a3   : > { %v14623_v26 = vpop.f32.mrf.mxu1  ;;  %v4228_v46 = vadd.f32 %v14479_v28, %v3835_v8  ;;  %v14682_v10 = vadd.f32 %v14495_v36, %v3859_v60  ;;  %v3888_v36 = vadd.f32 %v17197_v45, %v14397_v35  ;;  %v3880_v62 = vadd.f32 %v17200_v34, %v17199_v9  ;;  %v17203_v8 = vld [vmem:[#allocation20_spill] sm:$0xff]  ;;  %v17206_v60 = vld [vmem:[#allocation26_spill] sm:$0xff] }
 0x3a4   : > { %v4229_v22 = vadd.f32 %v14449_v21, %v3840_v16  ;;  %v4233_v21 = vadd.f32 %v14483_v55, %v3856_v25  ;;  %v11816_v29 = vpop.f32.mrf.mxu0  ;;  %v3883_v52 = vadd.f32 %v17204_v44, %v17203_v8  ;;  %v17205_v25 = vld [vmem:[#allocation25_spill] sm:$0xff]  ;;  %v14713_v56 = vadd.f32 %v17206_v60, %v3875_v33  ;;  %v12129_v33 = vld [vmem:[%s17094_s6 + $0x80] sm:$0xff]  }
 0x3a5   : > { %v11839_v41 = vpop.f32.mrf.mxu1  ;;  %10980 = vmatpush3.bf16.msra.mxu0 %v12129_v33 }
 0x3a6   : > { %v4648_v63 = vadd.f32 %v11839_v41, %v4225_v15  ;;  %v17201_v15 = vld [vmem:[#allocation19_spill] sm:$0xff] }
 0x3a7   : > { %v4519_v50 = vpop.f32.mrf.mxu1  ;;  %v3891_v51 = vadd.f32 %v17202_v24, %v17201_v15  ;;  %v17213_v15 = vld [vmem:[#allocation35_spill] sm:$0xff]  ;;  %v17214_v24 = vld [vmem:[#allocation40_spill] sm:$0xff] }
 0x3a8   : > { %v14660_v20 = vadd.f32 %v14647_v11, %v4648_v63  ;;  %v4646_v48 = vadd.f32 %v4519_v50, %v4223_v23  ;;  %v14709_v63 = vadd.f32 %v17205_v25, %v3864_v0  ;;  %v4195_v50 = vpop.f32.mrf.mxu0  ;;  %v14748_v8 = vadd.f32 %v17214_v24, %v17213_v15 }
 0x3a9   : > { %v11840_v42 = vpop.f32.mrf.mxu1  ;;  %v14736_v12 = vadd.f32 %v14565_v27, %v3891_v51  ;;  %v17215_v27 = vld [vmem:[#allocation36_spill] sm:$0xff] }
 0x3aa   : > { %v4751_v59 = vmul.f32 0.70710677, %v14660_v20  ;;  %v14673_v31 = vadd.f32 %v14647_v11, %v4646_v48  ;;  %v4649_v30 = vadd.f32 %v11840_v42, %v4226_v7  ;;  %v17207_v7 = vld [vmem:[#allocation21_spill] sm:$0xff]  ;;  %v14718_v42 = vadd.f32 %v17208_v54, %v3867_v13  ;;  %v11819_v13 = vpop.f32.mrf.mxu0 }
 0x3ab   : > { %v4522_v37 = vpop.f32.mrf.mxu1  ;;  %v3899_v48 = vadd.f32 %v14570_v3, %v17207_v7  ;;  %v12130_v3 = vld [vmem:[%s17094_s6] sm:$0xff]   ;;  %v4719_v54 = vmul.f32 0.5, %v14660_v20 }
 0x3ac   : > { %12509 = verf.f32 %v4751_v59  ;;  %v4749_v28 = vmul.f32 0.70710677, %v14673_v31  ;;  %v14691_v55 = vadd.f32 %v14647_v11, %v4649_v30  ;;  %v4647_v58 = vadd.f32 %v4522_v37, %v4224_v17  ;;  %v17209_v59 = vld [vmem:[#allocation30_spill] sm:$0xff]  ;;  %11092 = vmatpush3.bf16.msra.mxu1 %v12130_v3  ;;  %v4208_v25 = vpop.f32.mrf.mxu0  ;;  %v17218_v7 = vld [vmem:[#allocation39_spill] sm:$0xff] }
 0x3ad   : > { %v11843_v49 = vpop.f32.mrf.mxu1  ;;  %v14721_v30 = vadd.f32 %v17209_v59, %v3888_v36  ;;  %v14755_v51 = vadd.f32 %v14619_v57, %v3899_v48  ;;  %v14772_v57 = vadd.f32 %v11819_v13, %v14602_v19  ;;  %v4717_v59 = vmul.f32 0.5, %v14673_v31 }
 0x3ae   : > { %12511 = verf.f32 %v4749_v28  ;;  %v4752_v2 = vmul.f32 0.70710677, %v14691_v55  ;;  %v4652_v16 = vadd.f32 %v11843_v49, %v4229_v22  ;;  %v4686_v35 = vadd.f32 %v14647_v11, %v4647_v58  ;;  %v17211_v58 = vld [vmem:[#allocation22_spill] sm:$0xff] }
 0x3af   : > { %v4535_v41 = vpop.f32.mrf.mxu1  ;;  %v3915_v36 = vadd.f32 %v14599_v4, %v17211_v58 }
 0x3b0   : > { %12513 = verf.f32 %v4752_v2  ;;  %v4691_v23 = vadd.f32 %v14647_v11, %v4652_v16  ;;  %v4650_v38 = vadd.f32 %v4535_v41, %v4227_v1  ;;  %v4750_v17 = vmul.f32 0.70710677, %v4686_v35  ;;  %v17210_v1 = vld [vmem:[#allocation33_spill] sm:$0xff]  ;;  %v17217_v41 = vld [vmem:[#allocation38_spill] sm:$0xff] }
 0x3b1   : > { %v11844_v22 = vpop.f32.mrf.mxu1  ;;  %v14725_v45 = vadd.f32 %v17210_v1, %v3880_v62  ;;  %v17212_v62 = vld [vmem:[#allocation34_spill] sm:$0xff] }
 0x3b2   : > { %v4755_v0 = vmul.f32 0.70710677, %v4691_v23  ;;  %v4689_v37 = vadd.f32 %v14647_v11, %v4650_v38  ;;  %v4653_v28 = vadd.f32 %v11844_v22, %v4230_v6  ;;  %12515 = verf.f32 %v4750_v17 }
 0x3b3   : > { %v4538_v49 = vpop.f32.mrf.mxu1  ;;  %v14739_v6 = vadd.f32 %v14572_v61, %v3883_v52  ;;  %v14744_v2 = vadd.f32 %v14577_v40, %v17212_v62  ;;  %v14752_v61 = vadd.f32 %v14607_v43, %v17215_v27  ;;  %v17216_v52 = vld [vmem:[#allocation37_spill] sm:$0xff]  ;;  %v14767_v43 = vadd.f32 %v11816_v29, %v17218_v7 }
 0x3b4   : > { %12517 = verf.f32 %v4755_v0  ;;  %v4753_v9 = vmul.f32 0.70710677, %v4689_v37  ;;  %v4692_v34 = vadd.f32 %v14647_v11, %v4653_v28  ;;  %v4651_v16 = vadd.f32 %v4538_v49, %v4228_v46 }
 0x3b5   : > { %v11847_v4 = vpop.f32.mrf.mxu1  ;;  %v14759_v40 = vadd.f32 %v14636_v47, %v17216_v52  ;;  %v14763_v46 = vadd.f32 %v14664_v18, %v17217_v41  ;;  %v14769_v17 = vadd.f32 %v4195_v50, %v3915_v36  ;;  %v14777_v18 = vadd.f32 %v4208_v25, %v14612_v53 }
 0x3b6   : > { %12519 = verf.f32 %v4753_v9  ;;  %v4656_v44 = vadd.f32 %v11847_v4, %v4233_v21  ;;  %v4690_v38 = vadd.f32 %v14647_v11, %v4651_v16  ;;  %v4756_v21 = vmul.f32 0.70710677, %v4692_v34 }
 0x3b7   : > { %v4551_v60 = vpop.f32.mrf.mxu1  ;;  %v4720_v29 = vmul.f32 0.5, %v14691_v55  ;;  %v4718_v50 = vmul.f32 0.5, %v4686_v35  ;;  %v14782_v19 = vmul.f32 0.5, %v4691_v23  ;;  %v14787_v53 = vmul.f32 0.5, %v4692_v34 }
 0x3b8   : > { %v4695_v47 = vadd.f32 %v14647_v11, %v4656_v44  ;;  %v4654_v48 = vadd.f32 %v4551_v60, %v14679_v32  ;;  %v4754_v1 = vmul.f32 0.70710677, %v4690_v38  ;;  %v14785_v32 = vmul.f32 0.5, %v4689_v37 }
 0x3b9   : > { %v12510_v22 = vpop.eup %12509  ;;  %v11848_v0 = vpop.f32.mrf.mxu1  ;;  %12521 = verf.f32 %v4756_v21  ;;  %v14790_v35 = vmul.f32 0.5, %v4690_v38 }
 0x3ba   : > { %v4815_v28 = vadd.f32 1.0, %v12510_v22  ;;  %v4693_v33 = vadd.f32 %v14647_v11, %v4654_v48  ;;  %v4759_v13 = vmul.f32 0.70710677, %v4695_v47  ;;  %v4657_v20 = vadd.f32 %v11848_v0, %v14682_v10 }
 0x3bb   : > { %v12512_v3 = vpop.eup %12511  ;;  %v4554_v31 = vpop.f32.mrf.mxu1  ;;  %v14792_v36 = vmul.f32 0.5, %v4695_v47  ;;  %12523 = verf.f32 %v4754_v1 }
 0x3bc   : > { %v4847_v58 = vmul.f32 %v4815_v28, %v4719_v54  ;;  %v4813_v55 = vadd.f32 1.0, %v12512_v3  ;;  %v4757_v49 = vmul.f32 0.70710677, %v4693_v33  ;;  %v14795_v9 = vadd.f32 %v14647_v11, %v4657_v20  ;;  %v12137_v20 = vld [vmem:[%s17094_s6 + $0x178] sm:$0xff]  }
 0x3bd   : > { %v12514_v23 = vpop.eup %12513  ;;  %v4655_v37 = vadd.f32 %v4554_v31, %v14685_v39  ;;  %v11851_v34 = vpop.f32.mrf.mxu1  ;;  %12525 = verf.f32 %v4759_v13  ;;  %v14800_v4 = vmul.f32 0.5, %v4693_v33  ;;  %11189 = vmatprep.subr.bf16.mxu0 %v12137_v20 }
 0x3be   : > { %v14798_v62 = vpack.c.bf16 %v4847_v58, %v4847_v58  ;;  %v4845_v16 = vmul.f32 %v4813_v55, %v4717_v59  ;;  %v4816_v10 = vadd.f32 1.0, %v12514_v23  ;;  %v4760_v15 = vmul.f32 0.70710677, %v14795_v9 }
 0x3bf   : > { %v14804_v24 = vadd.f32 %v11851_v34, %v14698_v5  ;;  %v12516_v27 = vpop.eup %12515  ;;  %v14809_v25 = vpop.f32.mrf.mxu1  ;;  %12527 = verf.f32 %v4757_v49  ;;  %v14812_v21 = vadd.f32 %v14647_v11, %v4655_v37  ;;  %v5501_v37 = vld [vmem:[#allocation7 + $0x4] sm:$0xe] }
 0x3c0   : > { %v4996_v44 = vrot.slane %v14798_v62, 6  ;;  %v5169_v52 = vshrl.u32 %v14798_v62, 16  ;;  %v5172_v39 = vshll.u32 %v14798_v62, 16  ;;  %v10793_v41 = vpack.c.bf16 %v4845_v16, %v4845_v16 }
 0x3c1   : > { %v12518_v38 = vpop.eup %12517  ;;  %v4848_v60 = vmul.f32 %v4816_v10, %v4720_v29  ;;  %v4814_v7 = vadd.f32 1.0, %v12516_v27  ;;  %12529 = verf.f32 %v4760_v15  ;;  %v14818_v13 = vpop.f32.mrf.mxu1 }
 0x3c2   : > { %v5171_v47 = vrot.slane %v5169_v52, 6  ;;  %v5174_v5 = vrot.slane %v5172_v39, 7  ;;  %v4991_v48 = vrot.slane %v10793_v41, 6  ;;  %v5150_v54 = vshrl.u32 %v10793_v41, 16 }
 0x3c3   : > { %v12520_v22 = vpop.eup %12519  ;;  %v5153_v59 = vshll.u32 %v10793_v41, 16  ;;  %v10796_v0 = vpack.c.bf16 %v4848_v60, %v4848_v60  ;;  %v4846_v28 = vmul.f32 %v4814_v7, %v4718_v50  ;;  %v4998_v1 = vrot.slane %v4996_v44, 4 }
 0x3c4   : > { %v14816_v33 = vor.u32 %v5174_v5, %v5171_v47  ;;  %5117 = vst [vmem:[#allocation7] sm:$0xc] %v4991_v48  ;;  %v4819_v29 = vadd.f32 1.0, %v12518_v38  ;;  %v4817_v3 = vadd.f32 1.0, %v12520_v22  ;;  %v5152_v31 = vrot.slane %v5150_v54, 6  ;;  %v14833_v5 = vpop.f32.mrf.mxu1 }
 0x3c5   : > { %v5155_v58 = vrot.slane %v5153_v59, 7  ;;  %v4999_v55 = vrot.slane %v10796_v0, 6  ;;  %v5179_v23 = vshrl.u32 %v10796_v0, 16  ;;  %v17219_v50 = vmov 0 }
 0x3c6   : > { %v17220_v50 = vsel %vm14825_vm12, 4294967295, %v17219_v50  ;;  %v4992_v49 = vrot.slane %v4991_v48, 4  ;;  %v5182_v34 = vshll.u32 %v10796_v0, 16  ;;  %v10794_v16 = vpack.c.bf16 %v4846_v28, %v4846_v28  ;;  %v12522_v48 = vpop.eup %12521 }
 0x3c7   : > { %17221 = vst [vmem:[#allocation27_spill] sm:$0xff] %v17220_v50  ;;  %v4851_v10 = vmul.f32 %v4819_v29, %v14782_v19  ;;  %v5177_v15 = vrot.slane %v14816_v33, 4  ;;  %v5156_v27 = vor.u32 %v5155_v58, %v5152_v31  ;;  %v5000_v39 = vsel %vm13916_vm13, %v4998_v1, %v4999_v55 }
 0x3c8   : > { %v5181_v41 = vrot.slane %v5179_v23, 6  ;;  %5120 = vst [vmem:[#allocation7 + $0x18] sm:$0xf] %v5000_v39  ;;  %v5184_v38 = vrot.slane %v5182_v34, 7  ;;  %v4993_v60 = vrot.slane %v10794_v16, 6  ;;  %v5159_v7 = vshrl.u32 %v10794_v16, 16  ;;  %v12524_v20 = vpop.eup %12523 }
 0x3c9   : > { %v5162_v47 = vshll.u32 %v10794_v16, 16  ;;  %v5502_v22 = vsel %vm14825_vm12, %v5156_v27, %v5501_v37  ;;  %v5001_v19 = vrot.slane %v4999_v55, 4  ;;  %v14837_v54 = vpack.c.bf16 %v4851_v10, %v4851_v10  ;;  %v14851_v10 = vpop.f32.mrf.mxu1 }
 0x3ca   : > { %v4849_v59 = vmul.f32 %v4817_v3, %v14785_v32  ;;  %5503 = vst [vmem:[#allocation7 + $0x4] sm:$0xe] %v5502_v22  ;;  %v5185_v0 = vor.u32 %v5184_v38, %v5181_v41  ;;  %v4994_v28 = vsel %vm13916_vm13, %v4992_v49, %v4993_v60  ;;  %v4995_v1 = vrot.slane %v4993_v60, 4  ;;  %v12526_v55 = vpop.eup %12525 }
 0x3cb   : > { %v5161_v29 = vrot.slane %v5159_v7, 6  ;;  %v5157_v31 = vrot.slane %v5156_v27, 4  ;;  %5118 = vst [vmem:[#allocation7 + $0x8] sm:$0xf] %v4994_v28  ;;  %v5164_v58 = vrot.slane %v5162_v47, 7  ;;  %v5209_v23 = vshrl.u32 %v14837_v54, 16 }
 0x3cc   : > { %v5212_v37 = vshll.u32 %v14837_v54, 16  ;;  %v5186_v16 = vsel %vm13297_vm7, %v5177_v15, %v5185_v0  ;;  %v4997_v32 = vsel %vm13916_vm13, %v4995_v1, %v4996_v44  ;;  %v10797_v49 = vpack.c.bf16 %v4849_v59, %v4849_v59  ;;  %v12142_v27 = vld [vmem:[%s17094_s6 + $0x1f8] sm:$0xff]   ;;  %v12528_v60 = vpop.eup %12527 }
 0x3cd   : > { %v5187_v39 = vrot.slane %v5185_v0, 4  ;;  %5506 = vst [vmem:[#allocation7 + $0x1c] sm:$0xf] %v5186_v16  ;;  %5119 = vst [vmem:[#allocation7 + $0x10] sm:$0xf] %v4997_v32  ;;  %v5165_v41 = vor.u32 %v5164_v58, %v5161_v29  ;;  %v5211_v38 = vrot.slane %v5209_v23, 6  ;;  %11301 = vmatprep.subr.bf16.mxu1 %v12142_v27  ;;  %v14864_v16 = vpop.f32.mrf.mxu1 }
 0x3ce   : > { %v5214_v15 = vrot.slane %v5212_v37, 7  ;;  %v5002_v62 = vrot.slane %v10797_v49, 6  ;;  %v5189_v7 = vshrl.u32 %v10797_v49, 16  ;;  %v5192_v47 = vshll.u32 %v10797_v49, 16  ;;  %v12530_v22 = vpop.eup %12529 }
 0x3cf   : > { %v4820_v44 = vadd.f32 1.0, %v12522_v48  ;;  %v5166_v59 = vsel %vm13297_vm7, %v5157_v31, %v5165_v41  ;;  %v5167_v28 = vrot.slane %v5165_v41, 4  ;;  %v4818_v3 = vadd.f32 1.0, %v12524_v20 }
 0x3d0   : > { %v14858_v1 = vor.u32 %v5214_v15, %v5211_v38  ;;  %5504 = vst [vmem:[#allocation7 + $0xc] sm:$0xf] %v5166_v59  ;;  %v17224_v0 = vrot.slane %v14837_v54, 6  ;;  %v5003_v58 = vsel %vm13916_vm13, %v5001_v19, %v5002_v62  ;;  %v5191_v23 = vrot.slane %v5189_v7, 6 }
 0x3d1   : > { %v5194_v37 = vrot.slane %v5192_v47, 7  ;;  %v5176_v48 = vsel %vm13297_vm7, %v5167_v28, %v14816_v33  ;;  %v5004_v31 = vrot.slane %v5002_v62, 4  ;;  %5121 = vst [vmem:[#allocation7 + $0x20] sm:$0xf] %v5003_v58  ;;  %v4852_v32 = vmul.f32 %v4820_v44, %v14787_v53 }
 0x3d2   : > { %v5010_v29 = vrot.slane %v17224_v0, 4  ;;  %v4850_v20 = vmul.f32 %v4818_v3, %v14790_v35  ;;  %5505 = vst [vmem:[#allocation7 + $0x14] sm:$0xf] %v5176_v48  ;;  %v5217_v49 = vrot.slane %v14858_v1, 4  ;;  %v4823_v41 = vadd.f32 1.0, %v12526_v55  ;;  %v14877_v35 = vpop.f32.mrf.mxu1 }
 0x3d3   : > { %v5195_v27 = vor.u32 %v5194_v37, %v5191_v23  ;;  %v4821_v19 = vadd.f32 1.0, %v12528_v60  ;;  %v10800_v38 = vpack.c.bf16 %v4852_v32, %v4852_v32  ;;  %v4824_v7 = vadd.f32 1.0, %v12530_v22 }
 0x3d4   : > { %v10798_v15 = vpack.c.bf16 %v4850_v20, %v4850_v20  ;;  %v4758_v47 = vmul.f32 0.70710677, %v14812_v21  ;;  %v4855_v59 = vmul.f32 %v4823_v41, %v14792_v36 }
 0x3d5   : > { %v5196_v33 = vsel %vm13297_vm7, %v5187_v39, %v5195_v27  ;;  %v5197_v62 = vrot.slane %v5195_v27, 4  ;;  %v4853_v53 = vmul.f32 %v4821_v19, %v14800_v4  ;;  %v5011_v3 = vrot.slane %v10800_v38, 6  ;;  %v14885_v27 = vpop.f32.mrf.mxu1 }
 0x3d6   : > { %5507 = vst [vmem:[#allocation7 + $0x24] sm:$0xf] %v5196_v33  ;;  %v5219_v44 = vshrl.u32 %v10800_v38, 16  ;;  %v5222_v55 = vshll.u32 %v10800_v38, 16  ;;  %v5005_v60 = vrot.slane %v10798_v15, 6  ;;  %v5199_v28 = vshrl.u32 %v10798_v15, 16 }
 0x3d7   : > { %v5202_v0 = vshll.u32 %v10798_v15, 16  ;;  %v14879_v22 = vpack.c.bf16 %v4855_v59, %v4855_v59  ;;  %v10801_v58 = vpack.c.bf16 %v4853_v53, %v4853_v53  ;;  %v5012_v39 = vsel %vm13916_vm13, %v5010_v29, %v5011_v3 }
 0x3d8   : > { %v5013_v23 = vrot.slane %v5011_v3, 4  ;;  %v5221_v37 = vrot.slane %v5219_v44, 6  ;;  %v5224_v36 = vrot.slane %v5222_v55, 7  ;;  %5124 = vst [vmem:[#allocation7 + $0x38] sm:$0xf] %v5012_v39  ;;  %v5006_v4 = vsel %vm13916_vm13, %v5004_v31, %v5005_v60 }
 0x3d9   : > { %v5007_v48 = vrot.slane %v5005_v60, 4  ;;  %v5201_v32 = vrot.slane %v5199_v28, 6  ;;  %v5204_v20 = vrot.slane %v5202_v0, 7  ;;  %5122 = vst [vmem:[#allocation7 + $0x28] sm:$0xf] %v5006_v4  ;;  %v5020_v19 = vrot.slane %v14879_v22, 6 }
 0x3da   : > { %v5225_v41 = vor.u32 %v5224_v36, %v5221_v37  ;;  %v5249_v38 = vshrl.u32 %v14879_v22, 16  ;;  %v5252_v29 = vshll.u32 %v14879_v22, 16  ;;  %v17225_v15 = vrot.slane %v14837_v54, 6  ;;  %v11859_v37 = vpop.f32.mrf.mxu1 }
 0x3db   : > { %v5205_v59 = vor.u32 %v5204_v20, %v5201_v32  ;;  %v5014_v31 = vrot.slane %v10801_v58, 6  ;;  %v5229_v53 = vshrl.u32 %v10801_v58, 16  ;;  %v4728_v55 = vmul.f32 0.5, %v14795_v9 }
 0x3dc   : > { %v5009_v33 = vsel %vm13916_vm13, %v5007_v48, %v17225_v15  ;;  %v5226_v3 = vsel %vm13297_vm7, %v5217_v49, %v5225_v41  ;;  %v5251_v44 = vrot.slane %v5249_v38, 6  ;;  %v4699_v60 = vadd.f32 %v14647_v11, %v14804_v24  ;;  %v4599_v38 = vpop.f32.mrf.mxu1 }
 0x3dd   : > { %5123 = vst [vmem:[#allocation7 + $0x30] sm:$0xf] %v5009_v33  ;;  %5510 = vst [vmem:[#allocation7 + $0x3c] sm:$0xf] %v5226_v3  ;;  %v5206_v54 = vsel %vm13297_vm7, %v5197_v62, %v5205_v59  ;;  %v5207_v28 = vrot.slane %v5205_v59, 4  ;;  %v5254_v0 = vrot.slane %v5252_v29, 7  ;;  %v5015_v39 = vsel %vm13916_vm13, %v5013_v23, %v5014_v31 }
 0x3de   : > { %5508 = vst [vmem:[#allocation7 + $0x2c] sm:$0xf] %v5206_v54  ;;  %5125 = vst [vmem:[#allocation7 + $0x40] sm:$0xf] %v5015_v39  ;;  %v5231_v49 = vrot.slane %v5229_v53, 6  ;;  %v5232_v36 = vshll.u32 %v10801_v58, 16  ;;  %v4856_v4 = vmul.f32 %v4824_v7, %v4728_v55  ;;  %12531 = verf.f32 %v4758_v47 }
 0x3df   : > { %v14904_v9 = vmul.f32 0.5, %v14812_v21  ;;  %v5227_v48 = vrot.slane %v5225_v41, 4  ;;  %v5216_v24 = vsel %vm13297_vm7, %v5207_v28, %v14858_v1  ;;  %v5022_v62 = vrot.slane %v5020_v19, 4 }
 0x3e0   : > { %5509 = vst [vmem:[#allocation7 + $0x34] sm:$0xf] %v5216_v24  ;;  %v5234_v23 = vrot.slane %v5232_v36, 7  ;;  %v10804_v32 = vpack.c.bf16 %v4856_v4, %v4856_v4  ;;  %v4763_v20 = vmul.f32 0.70710677, %v4699_v60  ;;  %v4658_v58 = vadd.f32 %v14809_v25, %v14709_v63 }
 0x3e1   : > { %v14913_v7 = vor.u32 %v5254_v0, %v5251_v44  ;;  %v4661_v21 = vadd.f32 %v14818_v13, %v14713_v56  ;;  %v4659_v41 = vadd.f32 %v14833_v5, %v14718_v42  ;;  %v4664_v1 = vadd.f32 %v14851_v10, %v14721_v30  ;;  %v11860_v44 = vpop.f32.mrf.mxu1 }
 0x3e2   : > { %v14921_v47 = vor.u32 %v5234_v23, %v5231_v49  ;;  %v5023_v29 = vrot.slane %v10804_v32, 6  ;;  %v5259_v15 = vshrl.u32 %v10804_v32, 16  ;;  %v5262_v33 = vshll.u32 %v10804_v32, 16 }
 0x3e3   : > { %12533 = verf.f32 %v4763_v20  ;;  %v4697_v63 = vadd.f32 %v14647_v11, %v4658_v58  ;;  %v4700_v25 = vadd.f32 %v14647_v11, %v4661_v21  ;;  %v4698_v59 = vadd.f32 %v14647_v11, %v4659_v41  ;;  %v4602_v23 = vpop.f32.mrf.mxu1 }
 0x3e4   : > { %v14926_v56 = vrot.slane %v5014_v31, 4  ;;  %v5236_v42 = vsel %vm13297_vm7, %v5227_v48, %v14921_v47  ;;  %v5024_v30 = vsel %vm13916_vm13, %v5022_v62, %v5023_v29  ;;  %v14933_v13 = vmul.f32 0.5, %v4699_v60 }
 0x3e5   : > { %v5257_v5 = vrot.slane %v14913_v7, 4  ;;  %5511 = vst [vmem:[#allocation7 + $0x44] sm:$0xf] %v5236_v42  ;;  %5128 = vst [vmem:[#allocation7 + $0x58] sm:$0xf] %v5024_v30  ;;  %v5261_v10 = vrot.slane %v5259_v15, 6  ;;  %v4703_v60 = vadd.f32 %v14647_v11, %v4664_v1  ;;  %v4662_v39 = vadd.f32 %v14864_v16, %v14725_v45 }
 0x3e6   : > { %v5264_v53 = vrot.slane %v5262_v33, 7  ;;  %v4761_v3 = vmul.f32 0.70710677, %v4697_v63  ;;  %v5237_v31 = vrot.slane %v14921_v47, 4  ;;  %v14937_v55 = vrot.slane %v5023_v29, 4 }
 0x3e7   : > { %v4764_v54 = vmul.f32 0.70710677, %v4700_v25  ;;  %v4762_v28 = vmul.f32 0.70710677, %v4698_v59  ;;  %v4665_v49 = vadd.f32 %v14877_v35, %v14736_v12  ;;  %v4663_v36 = vadd.f32 %v14885_v27, %v14739_v6 }
 0x3e8   : > { %v14939_v0 = vor.u32 %v5264_v53, %v5261_v10  ;;  %12535 = verf.f32 %v4761_v3  ;;  %v4668_v4 = vadd.f32 %v11859_v37, %v14744_v2  ;;  %v14952_v24 = vmul.f32 0.5, %v4697_v63 }
 0x3e9   : > { %12537 = verf.f32 %v4764_v54  ;;  %v14954_v62 = vmul.f32 0.5, %v4700_v25  ;;  %v4767_v45 = vmul.f32 0.70710677, %v4703_v60  ;;  %v4701_v16 = vadd.f32 %v14647_v11, %v4662_v39  ;;  %v14982_v54 = vld [vmem:[#allocation7 + $0x8] sm:$0xff] }
 0x3ea   : > { %v5266_v48 = vsel %vm13297_vm7, %v5257_v5, %v14939_v0  ;;  %12539 = verf.f32 %v4762_v28  ;;  %v4704_v12 = vadd.f32 %v14647_v11, %v4665_v49  ;;  %v4702_v6 = vadd.f32 %v14647_v11, %v4663_v36 }
 0x3eb   : > { %5514 = vst [vmem:[#allocation7 + $0x5c] sm:$0xf] %v5266_v48  ;;  %v14959_v35 = vmul.f32 0.5, %v4698_v59  ;;  %v4707_v2 = vadd.f32 %v14647_v11, %v4668_v4  ;;  %v4666_v27 = vadd.f32 %v4599_v38, %v14748_v8  ;;  %v4669_v37 = vadd.f32 %v11860_v44, %v14752_v61  ;;  %v12532_v32 = vpop.eup %12531  ;;  %v14988_v48 = vld [vmem:[#allocation7] sm:$0xff] }
 0x3ec   : > { %v5267_v20 = vrot.slane %v14939_v0, 4  ;;  %12541 = verf.f32 %v4767_v45  ;;  %v4765_v58 = vmul.f32 0.70710677, %v4701_v16  ;;  %v4667_v21 = vadd.f32 %v4602_v23, %v14755_v51  ;;  %v11863_v51 = vpop.f32.mrf.mxu1 }
 0x3ed   : > { %v4822_v41 = vadd.f32 1.0, %v12532_v32  ;;  %v14966_v1 = vmul.f32 0.5, %v4703_v60  ;;  %v4768_v29 = vmul.f32 0.70710677, %v4704_v12  ;;  %v4766_v15 = vmul.f32 0.70710677, %v4702_v6 }
 0x3ee   : > { %v14968_v33 = vmul.f32 0.5, %v4701_v16  ;;  %v14970_v63 = vmul.f32 0.5, %v4704_v12  ;;  %v4771_v25 = vmul.f32 0.70710677, %v4707_v2  ;;  %v4705_v8 = vadd.f32 %v14647_v11, %v4666_v27 }
 0x3ef   : > { %v4854_v61 = vmul.f32 %v4822_v41, %v14904_v9  ;;  %12543 = verf.f32 %v4765_v58  ;;  %v14974_v38 = vmul.f32 0.5, %v4702_v6  ;;  %v4708_v59 = vadd.f32 %v14647_v11, %v4669_v37 }
 0x3f0   : > { %v12534_v42 = vpop.eup %12533  ;;  %12545 = verf.f32 %v4768_v29  ;;  %v14977_v30 = vmul.f32 0.5, %v4707_v2  ;;  %v4769_v5 = vmul.f32 0.70710677, %v4705_v8  ;;  %v4706_v10 = vadd.f32 %v14647_v11, %v4667_v21 }
 0x3f1   : > { %v10802_v53 = vpack.c.bf16 %v4854_v61, %v4854_v61  ;;  %v4827_v3 = vadd.f32 1.0, %v12534_v42  ;;  %12547 = verf.f32 %v4766_v15  ;;  %v14980_v44 = vmul.f32 0.5, %v4705_v8 }
 0x3f2   : > { %12549 = verf.f32 %v4771_v25  ;;  %v14984_v9 = vmul.f32 0.5, %v4708_v59  ;;  %v4772_v28 = vmul.f32 0.70710677, %v4708_v59  ;;  %v4672_v60 = vadd.f32 %v11863_v51, %v14759_v40 }
 0x3f3   : > { %v5017_v39 = vrot.slane %v10802_v53, 6  ;;  %v5239_v49 = vshrl.u32 %v10802_v53, 16  ;;  %v5242_v36 = vshll.u32 %v10802_v53, 16  ;;  %v4859_v4 = vmul.f32 %v4827_v3, %v14933_v13 }
 0x3f4   : > { %12551 = verf.f32 %v4769_v5  ;;  %v14990_v45 = vmul.f32 0.5, %v4706_v10  ;;  %v4770_v16 = vmul.f32 0.70710677, %v4706_v10  ;;  %v10491_v12 = vcombine.high %v14988_v48, %v14982_v54 }
 0x3f5   : > { %v12536_v23 = vpop.eup %12535  ;;  %v5018_v40 = vsel %vm13916_vm13, %v14926_v56, %v5017_v39  ;;  %v5019_v2 = vrot.slane %v5017_v39, 4  ;;  %v5241_v27 = vrot.slane %v5239_v49, 6  ;;  %v5244_v37 = vrot.slane %v5242_v36, 7 }
 0x3f6   : > { %v12538_v6 = vpop.eup %12537  ;;  %5126 = vst [vmem:[#allocation7 + $0x48] sm:$0xf] %v5018_v40  ;;  %v14997_v13 = vpack.c.bf16 %v4859_v4, %v4859_v4  ;;  %v4825_v58 = vadd.f32 1.0, %v12536_v23  ;;  %12553 = verf.f32 %v4772_v28  ;;  %6286 = vmatprep.mubr.bf16.mxu1 %v10491_v12  ;;  %v15004_v56 = vadd.f32 %v14647_v11, %v4672_v60 }
 0x3f7   : > { %v12540_v32 = vpop.eup %12539  ;;  %v4828_v21 = vadd.f32 1.0, %v12538_v6  ;;  %v5021_v41 = vsel %vm13916_vm13, %v5019_v2, %v5020_v19  ;;  %v5245_v29 = vor.u32 %v5244_v37, %v5241_v27  ;;  %12555 = verf.f32 %v4770_v16 }
 0x3f8   : > { %v4826_v15 = vadd.f32 1.0, %v12540_v32  ;;  %5127 = vst [vmem:[#allocation7 + $0x50] sm:$0xf] %v5021_v41  ;;  %v5032_v25 = vrot.slane %v14997_v13, 6  ;;  %v5289_v8 = vshrl.u32 %v14997_v13, 16  ;;  %v5292_v61 = vshll.u32 %v14997_v13, 16 }
 0x3f9   : > { %v4857_v59 = vmul.f32 %v4825_v58, %v14952_v24  ;;  %v12542_v51 = vpop.eup %12541  ;;  %v5246_v22 = vsel %vm13297_vm7, %v5237_v31, %v5245_v29  ;;  %v5247_v19 = vrot.slane %v5245_v29, 4  ;;  %v4860_v42 = vmul.f32 %v4828_v21, %v14954_v62 }
 0x3fa   : > { %v4858_v11 = vmul.f32 %v4826_v15, %v14959_v35  ;;  %5512 = vst [vmem:[#allocation7 + $0x4c] sm:$0xf] %v5246_v22  ;;  %v5034_v5 = vrot.slane %v5032_v25, 4  ;;  %v5291_v10 = vrot.slane %v5289_v8, 6  ;;  %v5294_v53 = vrot.slane %v5292_v61, 7 }
 0x3fb   : > { %v10805_v3 = vpack.c.bf16 %v4857_v59, %v4857_v59  ;;  %v5256_v24 = vsel %vm13297_vm7, %v5247_v19, %v14913_v7  ;;  %v10808_v28 = vpack.c.bf16 %v4860_v42, %v4860_v42  ;;  %v4831_v47 = vadd.f32 1.0, %v12542_v51 }
 0x3fc   : > { %v10806_v60 = vpack.c.bf16 %v4858_v11, %v4858_v11  ;;  %v12544_v39 = vpop.eup %12543  ;;  %5513 = vst [vmem:[#allocation7 + $0x54] sm:$0xf] %v5256_v24  ;;  %v15019_v31 = vor.u32 %v5294_v53, %v5291_v10 }
 0x3fd   : > { %v5026_v49 = vrot.slane %v10805_v3, 6  ;;  %v5269_v62 = vshrl.u32 %v10805_v3, 16  ;;  %v5272_v36 = vshll.u32 %v10805_v3, 16  ;;  %v12546_v35 = vpop.eup %12545  ;;  %v5035_v4 = vrot.slane %v10808_v28, 6 }
 0x3fe   : > { %v5299_v23 = vshrl.u32 %v10808_v28, 16  ;;  %v5302_v12 = vshll.u32 %v10808_v28, 16  ;;  %v5029_v6 = vrot.slane %v10806_v60, 6  ;;  %v12548_v40 = vpop.eup %12547  ;;  %v5297_v32 = vrot.slane %v15019_v31, 4 }
 0x3ff   : > { %v5027_v7 = vsel %vm13916_vm13, %v14937_v55, %v5026_v49  ;;  %v5028_v2 = vrot.slane %v5026_v49, 4  ;;  %v5271_v27 = vrot.slane %v5269_v62, 6  ;;  %v12550_v37 = vpop.eup %12549  ;;  %v5274_v13 = vrot.slane %v5272_v36, 7 }
 0x400   : > { %5129 = vst [vmem:[#allocation7 + $0x60] sm:$0xf] %v5027_v7  ;;  %v5036_v58 = vsel %vm13916_vm13, %v5034_v5, %v5035_v4  ;;  %v5301_v21 = vrot.slane %v5299_v23, 6  ;;  %v5304_v41 = vrot.slane %v5302_v12, 7  ;;  %v5031_v15 = vrot.slane %v5029_v6, 4  ;;  %v4615_v12 = vpop.f32.mrf.mxu1 }
 0x401   : > { %5132 = vst [vmem:[#allocation7 + $0x78] sm:$0xf] %v5036_v58  ;;  %v5030_v29 = vsel %vm13916_vm13, %v5028_v2, %v5029_v6  ;;  %v5279_v8 = vshrl.u32 %v10806_v60, 16  ;;  %v12552_v55 = vpop.eup %12551  ;;  %v5275_v61 = vor.u32 %v5274_v13, %v5271_v27  ;;  %v5282_v16 = vshll.u32 %v10806_v60, 16 }
 0x402   : > { %5130 = vst [vmem:[#allocation7 + $0x68] sm:$0xf] %v5030_v29  ;;  %v4863_v59 = vmul.f32 %v4831_v47, %v14966_v1  ;;  %v4829_v51 = vadd.f32 1.0, %v12544_v39  ;;  %v15030_v22 = vor.u32 %v5304_v41, %v5301_v21  ;;  %v5033_v19 = vsel %vm13916_vm13, %v5031_v15, %v5032_v25 }
 0x403   : > { %v5281_v42 = vrot.slane %v5279_v8, 6  ;;  %v4832_v11 = vadd.f32 1.0, %v12546_v35  ;;  %v12554_v5 = vpop.eup %12553  ;;  %v5276_v10 = vsel %vm13297_vm7, %v5267_v20, %v5275_v61  ;;  %v5037_v53 = vrot.slane %v5035_v4, 4  ;;  %5131 = vst [vmem:[#allocation7 + $0x70] sm:$0xf] %v5033_v19 }
 0x404   : > { %v5284_v3 = vrot.slane %v5282_v16, 7  ;;  %v15038_v24 = vpack.c.bf16 %v4863_v59, %v4863_v59  ;;  %v5277_v1 = vrot.slane %v5275_v61, 4  ;;  %5515 = vst [vmem:[#allocation7 + $0x64] sm:$0xf] %v5276_v10  ;;  %v5306_v28 = vsel %vm13297_vm7, %v5297_v32, %v15030_v22  ;;  %v12556_v15 = vpop.eup %12555 }
 0x405   : > { %v4861_v25 = vmul.f32 %v4829_v51, %v14968_v33  ;;  %v4864_v60 = vmul.f32 %v4832_v11, %v14970_v63  ;;  %5518 = vst [vmem:[#allocation7 + $0x7c] sm:$0xf] %v5306_v28  ;;  %v4830_v36 = vadd.f32 1.0, %v12548_v40  ;;  %v4835_v35 = vadd.f32 1.0, %v12550_v37 }
 0x406   : > { %v5285_v0 = vor.u32 %v5284_v3, %v5281_v42  ;;  %v5044_v47 = vrot.slane %v15038_v24, 6  ;;  %v5329_v20 = vshrl.u32 %v15038_v24, 16  ;;  %v5332_v39 = vshll.u32 %v15038_v24, 16 }
 0x407   : > { %v10809_v49 = vpack.c.bf16 %v4861_v25, %v4861_v25  ;;  %v10812_v62 = vpack.c.bf16 %v4864_v60, %v4864_v60  ;;  %v15060_v29 = vadd.f32 %v4615_v12, %v14763_v46  ;;  %v5307_v8 = vrot.slane %v15030_v22, 4 }
 0x408   : > { %v5286_v4 = vsel %vm13297_vm7, %v5277_v1, %v5285_v0  ;;  %v5287_v23 = vrot.slane %v5285_v0, 4  ;;  %v5046_v33 = vrot.slane %v5044_v47, 4  ;;  %v5331_v63 = vrot.slane %v5329_v20, 6 }
 0x409   : > { %5516 = vst [vmem:[#allocation7 + $0x6c] sm:$0xf] %v5286_v4  ;;  %v5334_v6 = vrot.slane %v5332_v39, 7  ;;  %v5038_v7 = vrot.slane %v10809_v49, 6  ;;  %v5309_v2 = vshrl.u32 %v10809_v49, 16  ;;  %v5312_v27 = vshll.u32 %v10809_v49, 16 }
 0x40a   : > { %v5296_v32 = vsel %vm13297_vm7, %v5287_v23, %v15019_v31  ;;  %v5047_v40 = vrot.slane %v10812_v62, 6  ;;  %v5339_v37 = vshrl.u32 %v10812_v62, 16  ;;  %v5342_v13 = vshll.u32 %v10812_v62, 16 }
 0x40b   : > { %5517 = vst [vmem:[#allocation7 + $0x74] sm:$0xf] %v5296_v32  ;;  %v15055_v58 = vor.u32 %v5334_v6, %v5331_v63  ;;  %v5039_v21 = vsel %vm13916_vm13, %v5037_v53, %v5038_v7  ;;  %v5311_v41 = vrot.slane %v5309_v2, 6  ;;  %v5314_v61 = vrot.slane %v5312_v27, 7 }
 0x40c   : > { %5133 = vst [vmem:[#allocation7 + $0x80] sm:$0xf] %v5039_v21  ;;  %v5048_v31 = vsel %vm13916_vm13, %v5046_v33, %v5047_v40  ;;  %v5341_v16 = vrot.slane %v5339_v37, 6  ;;  %v5040_v59 = vrot.slane %v5038_v7, 4  ;;  %v5344_v51 = vrot.slane %v5342_v13, 7  ;;  %v11864_v33 = vpop.f32.mrf.mxu1 }
 0x40d   : > { %5136 = vst [vmem:[#allocation7 + $0x98] sm:$0xf] %v5048_v31  ;;  %v4862_v19 = vmul.f32 %v4830_v36, %v14974_v38  ;;  %v4867_v42 = vmul.f32 %v4835_v35, %v14977_v30  ;;  %v5315_v11 = vor.u32 %v5314_v61, %v5311_v41  ;;  %v5049_v10 = vrot.slane %v5047_v40, 4 }
 0x40e   : > { %v4833_v46 = vadd.f32 1.0, %v12552_v55  ;;  %v4836_v53 = vadd.f32 1.0, %v12554_v5  ;;  %v5337_v3 = vrot.slane %v15055_v58, 4  ;;  %v5345_v22 = vor.u32 %v5344_v51, %v5341_v16  ;;  %v4618_v61 = vpop.f32.mrf.mxu1 }
 0x40f   : > { %v10810_v1 = vpack.c.bf16 %v4862_v19, %v4862_v19  ;;  %v15068_v28 = vpack.c.bf16 %v4867_v42, %v4867_v42  ;;  %v5316_v25 = vsel %vm13297_vm7, %v5307_v8, %v5315_v11  ;;  %v4834_v0 = vadd.f32 1.0, %v12556_v15 }
 0x410   : > { %v4865_v60 = vmul.f32 %v4833_v46, %v14980_v44  ;;  %v4775_v38 = vmul.f32 0.70710677, %v15004_v56  ;;  %5519 = vst [vmem:[#allocation7 + $0x84] sm:$0xf] %v5316_v25  ;;  %v5346_v30 = vsel %vm13297_vm7, %v5337_v3, %v5345_v22  ;;  %v4868_v20 = vmul.f32 %v4836_v53, %v14984_v9 }
 0x411   : > { %v5041_v55 = vrot.slane %v10810_v1, 6  ;;  %v5319_v5 = vshrl.u32 %v10810_v1, 16  ;;  %5522 = vst [vmem:[#allocation7 + $0x9c] sm:$0xf] %v5346_v30  ;;  %v5322_v39 = vshll.u32 %v10810_v1, 16  ;;  %v5056_v49 = vrot.slane %v15068_v28, 6 }
 0x412   : > { %v5369_v62 = vshrl.u32 %v15068_v28, 16  ;;  %v5372_v36 = vshll.u32 %v15068_v28, 16  ;;  %v10813_v23 = vpack.c.bf16 %v4865_v60, %v4865_v60  ;;  %v5317_v63 = vrot.slane %v5315_v11, 4  ;;  %v17226_v11 = vld [vmem:[#allocation23_spill] sm:$0xff]  ;;  %v11867_v60 = vpop.f32.mrf.mxu1 }
 0x413   : > { %v5042_v44 = vsel %vm13916_vm13, %v5040_v59, %v5041_v55  ;;  %v5043_v35 = vrot.slane %v5041_v55, 4  ;;  %v5321_v4 = vrot.slane %v5319_v5, 6  ;;  %v5324_v12 = vrot.slane %v5322_v39, 7  ;;  %v15118_v55 = vld [vmem:[%s17093_s5] ss:$0 sm:$0xff] }
 0x414   : > { %5134 = vst [vmem:[#allocation7 + $0x88] sm:$0xf] %v5042_v44  ;;  %v5371_v6 = vrot.slane %v5369_v62, 6  ;;  %v5374_v9 = vrot.slane %v5372_v36, 7  ;;  %v5050_v2 = vrot.slane %v10813_v23, 6  ;;  %v5349_v27 = vshrl.u32 %v10813_v23, 16 }
 0x415   : > { %v5045_v7 = vsel %vm13916_vm13, %v5043_v35, %v5044_v47  ;;  %v5352_v32 = vshll.u32 %v10813_v23, 16  ;;  %v5347_v40 = vrot.slane %v5345_v22, 4  ;;  %v5325_v37 = vor.u32 %v5324_v12, %v5321_v4  ;;  %v12143_v36 = vld [vmem:[%s17094_s6 + $0x1b8] sm:$0xff]   ;;  %v9173_v23 = vld [vmem:[#allocation7] sm:$0x33] }
 0x416   : > { %5135 = vst [vmem:[#allocation7 + $0x90] sm:$0xf] %v5045_v7  ;;  %v15086_v13 = vpack.c.bf16 %v4868_v20, %v4868_v20  ;;  %v4866_v21 = vmul.f32 %v4834_v0, %v14990_v45  ;;  %v5058_v41 = vrot.slane %v5056_v49, 4  ;;  %v5051_v15 = vsel %vm13916_vm13, %v5049_v10, %v5050_v2  ;;  %v11820_v7 = vpop.f32.mrf.mxu0 }
 0x417   : > { %v5351_v24 = vrot.slane %v5349_v27, 6  ;;  %v5354_v8 = vrot.slane %v5352_v32, 7  ;;  %v5326_v47 = vsel %vm13297_vm7, %v5317_v63, %v5325_v37  ;;  %v5327_v31 = vrot.slane %v5325_v37, 4  ;;  %5137 = vst [vmem:[#allocation7 + $0xa0] sm:$0xf] %v5051_v15  ;;  %v12151_v63 = vld [vmem:[%s17094_s6 + $0x1f0] sm:$0xff]  }
 0x418   : > { %v15095_v16 = vor.u32 %v5374_v9, %v5371_v6  ;;  %v5059_v59 = vrot.slane %v15086_v13, 6  ;;  %5520 = vst [vmem:[#allocation7 + $0x8c] sm:$0xf] %v5326_v47  ;;  %v5379_v51 = vshrl.u32 %v15086_v13, 16  ;;  %v5382_v19 = vshll.u32 %v15086_v13, 16  ;;  %v4631_v9 = vpop.f32.mrf.mxu1 }
 0x419   : > { %v5355_v45 = vor.u32 %v5354_v8, %v5351_v24  ;;  %v10814_v42 = vpack.c.bf16 %v4866_v21, %v4866_v21  ;;  %v15102_v10 = vadd.f32 %v14623_v26, %v17226_v11  ;;  %v5336_v46 = vsel %vm13297_vm7, %v5327_v31, %v15055_v58  ;;  %v15113_v26 = vld [vmem:[#allocation7 + $0x14] ss:$8 sps:$4 sm:$0xff]   ;;  %v5603_v6 = vld [vmem:[#allocation7] sm:$0xee]  ;;  %v12152_v24 = vld [vmem:[%s17094_s6 + $0x1b0] sm:$0xff]   ;;  %v4211_v11 = vpop.f32.mrf.mxu0 }
 0x41a   : > { %v5060_v53 = vsel %vm13916_vm13, %v5058_v41, %v5059_v59  ;;  %12557 = verf.f32 %v4775_v38  ;;  %5521 = vst [vmem:[#allocation7 + $0x94] sm:$0xf] %v5336_v46  ;;  %v5052_v3 = vrot.slane %v5050_v2, 4  ;;  %v5381_v1 = vrot.slane %v5379_v51, 6  ;;  %v12161_v31 = vld [vmem:[%s17094_s6 + $0x1e8] sm:$0xff]  }
 0x41b   : > { %v5356_v22 = vsel %vm13297_vm7, %v5347_v40, %v5355_v45  ;;  %5140 = vst [vmem:[#allocation7 + $0xb8] sm:$0xf] %v5060_v53  ;;  %v5384_v25 = vrot.slane %v5382_v19, 7  ;;  %v5053_v0 = vrot.slane %v10814_v42, 6  ;;  %v5359_v58 = vshrl.u32 %v10814_v42, 16 }
 0x41c   : > { %5523 = vst [vmem:[#allocation7 + $0xa4] sm:$0xf] %v5356_v22  ;;  %v5362_v30 = vshll.u32 %v10814_v42, 16  ;;  %v15122_v38 = vadd.f32 %v15118_v55, %v15060_v29  ;;  %v5377_v5 = vrot.slane %v15095_v16, 4  ;;  %v10490_v39 = vcombine.low %v14988_v48, %v14982_v54  ;;  %v15150_v40 = vld [vmem:[#allocation7 + $0x10] ss:$8 sps:$4 sm:$0xff]   ;;  %v11868_v42 = vpop.f32.mrf.mxu1 }
 0x41d   : > { %v15125_v20 = vor.u32 %v5384_v25, %v5381_v1  ;;  %v4673_v62 = vadd.f32 %v11864_v33, %v14767_v43  ;;  %v5054_v44 = vsel %vm13916_vm13, %v5052_v3, %v5053_v0  ;;  %v5055_v35 = vrot.slane %v5053_v0, 4  ;;  %v15190_v1 = vld [vmem:[#allocation7 + $0x24] ss:$8 sps:$4 sm:$0xff]  }
 0x41e   : > { %v5361_v4 = vrot.slane %v5359_v58, 6  ;;  %v5364_v29 = vrot.slane %v5362_v30, 7  ;;  %v5357_v12 = vrot.slane %v5355_v45, 4  ;;  %5138 = vst [vmem:[#allocation7 + $0xa8] sm:$0xf] %v5054_v44  ;;  %6287 = vmatmul.mubr.bf16.vlgmr.msra.gmra.mxu1 %v10490_v39  ;;  %v5769_v33 = vrot.slane %v15113_v26, 1 }
 0x41f   : > { %v5386_v43 = vsel %vm13297_vm7, %v5377_v5, %v15125_v20  ;;  %v4773_v48 = vmul.f32 0.70710677, %v15122_v38  ;;  %v5057_v2 = vsel %vm13916_vm13, %v5055_v35, %v5056_v49  ;;  %v15148_v32 = vadd.f32 %v15118_v55, %v4673_v62  ;;  %6294 = vmatprep.mubr.bf16.mxu1 %v15113_v26  ;;  %11302 = vmatpush3.bf16.msra.mxu1 %v12143_v36  ;;  %v15200_v30 = vld [vmem:[#allocation7 + $0x20] ss:$8 sps:$4 sm:$0xff]   ;;  %v4901_v39 = vld [vmem:[#allocation7 + $0xf8] sm:$0x88]  ;;  %v4634_v62 = vpop.f32.mrf.mxu1 }
 0x420   : > { %5526 = vst [vmem:[#allocation7 + $0xbc] sm:$0xf] %v5386_v43  ;;  %v5365_v27 = vor.u32 %v5364_v29, %v5361_v4  ;;  %v4671_v37 = vadd.f32 %v4618_v61, %v14769_v17  ;;  %5139 = vst [vmem:[#allocation7 + $0xb0] sm:$0xf] %v5057_v2  ;;  %v10443_v21 = vcombine.high %v5603_v6, %v14982_v54  ;;  %v9174_v49 = vsel %vm4907_vm15, 0, %v9173_v23  ;;  %v12146_v36 = vld [vmem:[%s17094_s6 + $0x170] sm:$0xff]  }
 0x421   : > { %12559 = verf.f32 %v4773_v48  ;;  %v4676_v15 = vadd.f32 %v11867_v60, %v14772_v57  ;;  %v4776_v61 = vmul.f32 0.70710677, %v15148_v32  ;;  %9175 = vst [vmem:[#allocation7] sm:$0x33] %v9174_v49  ;;  %v4254_v47 = vadd.f32 %v11820_v7, %v14617_v14  ;;  %11303 = vmatprep.subr.bf16.mxu1 %v12151_v63  ;;  %v15218_v23 = vld [vmem:[#allocation7 + $0x34] ss:$8 sps:$4 sm:$0xff]  }
 0x422   : > { %v5366_v17 = vsel %vm13297_vm7, %v5357_v12, %v5365_v27  ;;  %v5367_v8 = vrot.slane %v5365_v27, 4  ;;  %v15172_v57 = vadd.f32 %v15118_v55, %v4671_v37  ;;  %v5768_v45 = vrot.slane %v10443_v21, 1  ;;  %v15220_v63 = vld [vmem:[#allocation7 + $0x30] ss:$8 sps:$4 sm:$0xff]   ;;  %v12156_v21 = vld [vmem:[%s17094_s6 + $0x168] sm:$0xff]  }
 0x423   : > { %5524 = vst [vmem:[#allocation7 + $0xac] sm:$0xf] %v5366_v17  ;;  %v15175_v51 = vadd.f32 %v15118_v55, %v4676_v15  ;;  %v10442_v19 = vcombine.low %v5603_v6, %v14982_v54  ;;  %12561 = verf.f32 %v4776_v61  ;;  %v5766_v46 = vrot.slane %v15150_v40, 1  ;;  %v12138_v54 = vld [vmem:[%s17094_s6 + $0x138] sm:$0xff]   ;;  %11304 = vmatpush3.bf16.msra.mxu1 %v12152_v24  ;;  %v12172_v6 = vld [vmem:[%s17094_s6 + $0x1a0] sm:$0xff]  }
 0x424   : > { %v5376_v14 = vsel %vm13297_vm7, %v5367_v8, %v15095_v16  ;;  %v4674_v53 = vadd.f32 %v4631_v9, %v14777_v18  ;;  %v4774_v3 = vmul.f32 0.70710677, %v15172_v57  ;;  %v5770_v22 = vsel %vm3454_vm8, %v5768_v45, %v5769_v33  ;;  %v12162_v18 = vld [vmem:[%s17094_s6 + $0x1a8] sm:$0xff]   ;;  %11305 = vmatprep.subr.bf16.mxu1 %v12161_v31  ;;  %v12181_v2 = vld [vmem:[%s17094_s6 + $0x1d8] sm:$0xff]   ;;  %v12166_v45 = vld [vmem:[%s17094_s6 + $0x160] sm:$0xff]  }
 0x425   : > { %5525 = vst [vmem:[#allocation7 + $0xb4] sm:$0xf] %v5376_v14  ;;  %v4252_v16 = vadd.f32 %v4211_v11, %v15102_v10  ;;  %5987 = vmatprep.mubr.bf16.mxu0 %v5770_v22  ;;  %v4779_v25 = vmul.f32 0.70710677, %v15175_v51  ;;  %v5765_v60 = vrot.slane %v10442_v19, 1  ;;  %v4677_v58 = vadd.f32 %v11868_v42, %v4254_v47  ;;  %v12171_v10 = vld [vmem:[%s17094_s6 + $0x1e0] sm:$0xff]  }
 0x426   : > { %v15198_v0 = vadd.f32 %v15118_v55, %v4674_v53  ;;  %12563 = verf.f32 %v4774_v3  ;;  %6295 = vmatmul.mubr.bf16.gmra.mxu1 %v15150_v40  ;;  %vm4895_vm15 = vsmask.f32 7950  ;;  %v4743_v44 = vmul.f32 0.5, %v15004_v56  ;;  %v12148_v56 = vld [vmem:[%s17094_s6 + $0x130] sm:$0xff]   ;;  %v12182_v8 = vld [vmem:[%s17094_s6 + $0x198] sm:$0xff]  }
 0x427   : > { %v12558_v5 = vpop.eup %12557  ;;  %12565 = verf.f32 %v4779_v25  ;;  %v5767_v4 = vsel %vm3454_vm8, %v5765_v60, %v5766_v46  ;;  %vm15213_vm11 = vmand %vm4894_vm0, %vm4895_vm15  ;;  %6302 = vmatprep.mubr.bf16.mxu1 %v15190_v1  ;;  %v4716_v43 = vadd.f32 %v15118_v55, %v4677_v58  ;;  %v5773_v48 = vrot.slane %v15190_v1, 1  ;;  %11306 = vmatpush3.bf16.msra.mxu1 %v12162_v18  ;;  %v15247_v24 = vld [vmem:[#allocation7 + $0x44] ss:$8 sps:$4 sm:$0xff]   ;;  %v15288_v58 = vld [vmem:[#allocation7 + $0x50] ss:$8 sps:$4 sm:$0xff]  }
 0x428   : > { %v4839_v35 = vadd.f32 1.0, %v12558_v5  ;;  %5988 = vmatmul.mubr.bf16.vlgmr.msra.gmra.mxu0 %v5767_v4  ;;  %v4777_v12 = vmul.f32 0.70710677, %v15198_v0  ;;  %vm4899_vm0 = vmand %vm4897_vm4, %vm4898_vm14  ;;  %v4675_v7 = vadd.f32 %v4634_v62, %v4252_v16  ;;  %11307 = vmatprep.subr.bf16.mxu1 %v12171_v10  ;;  %v5771_v15 = vrot.slane %v15200_v30, 1  ;;  %v12192_v40 = vld [vmem:[%s17094_s6 + $0x190] sm:$0xff]   ;;  %v12201_v62 = vld [vmem:[%s17094_s6 + $0x1c8] sm:$0xff]  }
 0x429   : > { %11190 = vmatpush3.bf16.msra.mxu0 %v12138_v54  ;;  %v4780_v27 = vmul.f32 0.70710677, %v4716_v43  ;;  %vm4900_vm15 = vmor %vm4899_vm0, %vm15213_vm11  ;;  %v5774_v37 = vsel %vm3454_vm8, %v5769_v33, %v5773_v48  ;;  %v15251_v17 = vrot.slane %v5059_v59, 4  ;;  %v5777_v33 = vrot.slane %v15218_v23, 1  ;;  %v12158_v59 = vld [vmem:[%s17094_s6 + $0x128] sm:$0xff]   ;;  %v12176_v4 = vld [vmem:[%s17094_s6 + $0x158] sm:$0xff]  }
 0x42a   : > { %v4871_v9 = vmul.f32 %v4839_v35, %v4743_v44  ;;  %12567 = verf.f32 %v4777_v12  ;;  %11191 = vmatprep.subr.bf16.mxu0 %v12146_v36  ;;  %v4902_v28 = vsel %vm4900_vm15, 0, %v4901_v39  ;;  %5995 = vmatprep.mubr.bf16.mxu0 %v5774_v37  ;;  %v4714_v49 = vadd.f32 %v15118_v55, %v4675_v7  ;;  %v15282_v54 = vld [vmem:[#allocation7 + $0x40] ss:$8 sps:$4 sm:$0xff]  }
 0x42b   : > { %12569 = verf.f32 %v4780_v27  ;;  %4903 = vst [vmem:[#allocation7 + $0xf8] sm:$0x88] %v4902_v28  ;;  %11308 = vmatpush3.bf16.msra.mxu1 %v12172_v6  ;;  %v5387_v55 = vrot.slane %v15125_v20, 4  ;;  %v4741_v47 = vmul.f32 0.5, %v15122_v38  ;;  %v4744_v31 = vmul.f32 0.5, %v15148_v32  ;;  %v12191_v32 = vld [vmem:[%s17094_s6 + $0x1d0] sm:$0xff]  }
 0x42c   : > { %v15243_v41 = vpack.c.bf16 %v4871_v9, %v4871_v9  ;;  %v5775_v13 = vrot.slane %v15220_v63, 1  ;;  %11309 = vmatprep.subr.bf16.mxu1 %v12181_v2  ;;  %v4778_v38 = vmul.f32 0.70710677, %v4714_v49  ;;  %v15275_v53 = vmul.f32 0.5, %v15172_v57  ;;  %v15286_v57 = vld [vmem:[#allocation7 + $0x54] ss:$8 sps:$4 sm:$0xff]  }
 0x42d   : > { %11192 = vmatpush3.bf16.msra.mxu0 %v12148_v56  ;;  %v5772_v3 = vsel %vm3454_vm8, %v5766_v46, %v5771_v15  ;;  %v5781_v22 = vrot.slane %v15247_v24, 1  ;;  %v4747_v25 = vmul.f32 0.5, %v15175_v51  ;;  %v5778_v60 = vsel %vm3454_vm8, %v5773_v48, %v5777_v33  ;;  %v12168_v39 = vld [vmem:[%s17094_s6 + $0x120] sm:$0xff]   ;;  %v12202_v37 = vld [vmem:[%s17094_s6 + $0x188] sm:$0xff]  }
 0x42e   : > { %v12560_v61 = vpop.eup %12559  ;;  %v5409_v19 = vshrl.u32 %v15243_v41, 16  ;;  %v5412_v42 = vshll.u32 %v15243_v41, 16  ;;  %6303 = vmatmul.mubr.bf16.gmra.mxu1 %v15200_v30  ;;  %11193 = vmatprep.subr.bf16.mxu0 %v12156_v21  ;;  %v5068_v14 = vrot.slane %v15243_v41, 6  ;;  %12571 = verf.f32 %v4778_v38  ;;  %v12209_v41 = vld [vmem:[%s17094_s6 + $0x100] sm:$0xff]  }
 0x42f   : > { %v4837_v11 = vadd.f32 1.0, %v12560_v61  ;;  %6310 = vmatprep.mubr.bf16.mxu1 %v15218_v23  ;;  %11310 = vmatpush3.bf16.msra.mxu1 %v12182_v8  ;;  %v15294_v10 = vmul.f32 0.5, %v15198_v0  ;;  %v15296_v5 = vmul.f32 0.5, %v4716_v43  ;;  %v15298_v51 = vmul.f32 0.5, %v4714_v49 }
 0x430   : > { %v12562_v16 = vpop.eup %12561  ;;  %5996 = vmatmul.mubr.bf16.gmra.mxu0 %v5772_v3  ;;  %v5411_v36 = vrot.slane %v5409_v19, 6  ;;  %v5414_v44 = vrot.slane %v5412_v42, 7  ;;  %v5776_v0 = vsel %vm3454_vm8, %v5771_v15, %v5775_v13  ;;  %11311 = vmatprep.subr.bf16.mxu1 %v12191_v32  ;;  %v5070_v56 = vrot.slane %v5068_v14, 4  ;;  %v12210_v19 = vld [vmem:[%s17094_s6 + $0x1c0] sm:$0xff]  }
 0x431   : > { %v4869_v18 = vmul.f32 %v4837_v11, %v4741_v47  ;;  %v4840_v46 = vadd.f32 1.0, %v12562_v16  ;;  %6003 = vmatprep.mubr.bf16.mxu0 %v5778_v60  ;;  %11194 = vmatpush3.bf16.msra.mxu0 %v12158_v59  ;;  %v5782_v43 = vsel %vm3454_vm8, %v5777_v33, %v5781_v22  ;;  %v5779_v48 = vrot.slane %v15282_v54, 1  ;;  %v12178_v33 = vld [vmem:[%s17094_s6 + $0x118] sm:$0xff]   ;;  %v15339_v59 = vld [vmem:[#allocation7 + $0x64] ss:$8 sps:$4 sm:$0xff]  }
 0x432   : > { %11195 = vmatprep.subr.bf16.mxu0 %v12166_v45  ;;  %v5785_v49 = vrot.slane %v15286_v57, 1  ;;  %v5783_v15 = vrot.slane %v15288_v58, 1  ;;  %v15333_v8 = vor.u32 %v5414_v44, %v5411_v36  ;;  %v12186_v45 = vld [vmem:[%s17094_s6 + $0x150] sm:$0xff]   ;;  %vm5534_vm14 = vcmask 1043456  }
 0x433   : > { %v15306_v35 = vpack.c.bf16 %v4869_v18, %v4869_v18  ;;  %v12564_v29 = vpop.eup %12563  ;;  %v4872_v12 = vmul.f32 %v4840_v46, %v4744_v31  ;;  %11312 = vmatpush3.bf16.msra.mxu1 %v12192_v40  ;;  %v5780_v60 = vsel %vm3454_vm8, %v5775_v13, %v5779_v48  ;;  %v12211_v40 = vld [vmem:[%s17094_s6 + $0x180] sm:$0xff]   ;;  %vm9176_vm4 = vcmask 1046532   ;;  %vm15456_vm0 = vmand %vm5534_vm14, %vm2847_vm6 }
 0x434   : > { %v12566_v6 = vpop.eup %12565  ;;  %v4838_v27 = vadd.f32 1.0, %v12564_v29  ;;  %11313 = vmatprep.subr.bf16.mxu1 %v12201_v62  ;;  %v5786_v13 = vsel %vm3454_vm8, %v5781_v22, %v5785_v49  ;;  %v12188_v62 = vld [vmem:[%s17094_s6 + $0x110] sm:$0xff]   ;;  %v12196_v22 = vld [vmem:[%s17094_s6 + $0x148] sm:$0xff]   ;;  %vm9177_vm11 = vsmask.f32 6418  ;;  %vm8569_vm15 = vcmask 519169  }
 0x435   : > { %v5062_v9 = vrot.slane %v15306_v35, 6  ;;  %v5389_v7 = vshrl.u32 %v15306_v35, 16  ;;  %v5392_v2 = vshll.u32 %v15306_v35, 16  ;;  %v15326_v21 = vpack.c.bf16 %v4872_v12, %v4872_v12  ;;  %11196 = vmatpush3.bf16.msra.mxu0 %v12168_v39  ;;  %vm15471_vm6 = vmand %vm9176_vm4, %vm9177_vm11 }
 0x436   : > { %v4843_v28 = vadd.f32 1.0, %v12566_v6  ;;  %6311 = vmatmul.mubr.bf16.gmra.mxu1 %v15220_v63  ;;  %11197 = vmatprep.subr.bf16.mxu0 %v12176_v4  ;;  %v4870_v32 = vmul.f32 %v4838_v27, %v15275_v53  ;;  %v5417_v4 = vrot.slane %v15333_v8, 4  ;;  %vm17277_vm14 = vcmask 520192   ;;  %vm16634_vm4 = vmand %vm8569_vm15, %vm3270_vm10 }
 0x437   : > { %v5063_v61 = vsel %vm13916_vm13, %v15251_v17, %v5062_v9  ;;  %v5391_v47 = vrot.slane %v5389_v7, 6  ;;  %v5394_v31 = vrot.slane %v5392_v2, 7  ;;  %v12568_v42 = vpop.eup %12567  ;;  %v5071_v11 = vrot.slane %v15326_v21, 6  ;;  %6318 = vmatprep.mubr.bf16.mxu1 %v15247_v24  ;;  %11314 = vmatpush3.bf16.msra.mxu1 %v12202_v37 }
 0x438   : > { %5141 = vst [vmem:[#allocation7 + $0xc0] sm:$0xf] %v5063_v61  ;;  %v5419_v17 = vshrl.u32 %v15326_v21, 16  ;;  %v5422_v38 = vshll.u32 %v15326_v21, 16  ;;  %v4875_v16 = vmul.f32 %v4843_v28, %v4747_v25  ;;  %v4841_v18 = vadd.f32 1.0, %v12568_v42  ;;  %6004 = vmatmul.mubr.bf16.gmra.mxu0 %v5776_v0  ;;  %v12570_v46 = vpop.eup %12569  ;;  %11315 = vmatprep.subr.bf16.mxu1 %v12210_v19  ;;  %v12212_v21 = vld [vmem:[%s17096_s8 + $0x78] sm:$0xff]  }
 0x439   : > { %v15352_v3 = vor.u32 %v5394_v31, %v5391_v47  ;;  %v5072_v53 = vsel %vm13916_vm13, %v5070_v56, %v5071_v11  ;;  %6011 = vmatprep.mubr.bf16.mxu0 %v5782_v43  ;;  %11198 = vmatpush3.bf16.msra.mxu0 %v12178_v33  ;;  %v10818_v44 = vpack.c.bf16 %v4870_v32, %v4870_v32  ;;  %v5789_v0 = vrot.slane %v15339_v59, 1 }
 0x43a   : > { %v5421_v25 = vrot.slane %v5419_v17, 6  ;;  %v5424_v39 = vrot.slane %v5422_v38, 7  ;;  %5144 = vst [vmem:[#allocation7 + $0xd8] sm:$0xf] %v5072_v53  ;;  %v15379_v35 = vpack.c.bf16 %v4875_v16, %v4875_v16  ;;  %11199 = vmatprep.subr.bf16.mxu0 %v12186_v45  ;;  %v5064_v29 = vrot.slane %v5062_v9, 4  ;;  %v12207_v45 = vld [vmem:[%s17094_s6 + $0x140] sm:$0xff]  }
 0x43b   : > { %v5396_v36 = vsel %vm13297_vm7, %v5387_v55, %v15352_v3  ;;  %v4873_v55 = vmul.f32 %v4841_v18, %v15294_v10  ;;  %v5065_v56 = vrot.slane %v10818_v44, 6  ;;  %v5399_v12 = vshrl.u32 %v10818_v44, 16  ;;  %11316 = vmatpush3.bf16.msra.mxu1 %v12211_v40  ;;  %v12572_v7 = vpop.eup %12571  ;;  %v12198_v10 = vld [vmem:[%s17094_s6 + $0x108] sm:$0xff]  }
 0x43c   : > { %5527 = vst [vmem:[#allocation7 + $0xc4] sm:$0xf] %v5396_v36  ;;  %v15386_v20 = vor.u32 %v5424_v39, %v5421_v25  ;;  %v5402_v43 = vshll.u32 %v10818_v44, 16  ;;  %v4844_v6 = vadd.f32 1.0, %v12570_v46  ;;  %v5397_v2 = vrot.slane %v15352_v3, 4 }
 0x43d   : > { %v5449_v37 = vshrl.u32 %v15379_v35, 16  ;;  %v5452_v9 = vshll.u32 %v15379_v35, 16  ;;  %11200 = vmatpush3.bf16.msra.mxu0 %v12188_v62  ;;  %v17231_v28 = vmov 0   ;;  %v5066_v33 = vsel %vm13916_vm13, %v5064_v29, %v5065_v56 }
 0x43e   : > { %v5426_v27 = vsel %vm13297_vm7, %v5417_v4, %v15386_v20  ;;  %8320 = vmatprep.subr.bf16.mxu1 %v17231_v28  ;;  %v5067_v61 = vrot.slane %v5065_v56, 4  ;;  %v5401_v47 = vrot.slane %v5399_v12, 6  ;;  %v5404_v31 = vrot.slane %v5402_v43, 7  ;;  %6319 = vmatmul.mubr.bf16.gmra.mxu1 %v15282_v54  ;;  %5142 = vst [vmem:[#allocation7 + $0xc8] sm:$0xf] %v5066_v33 }
 0x43f   : > { %5530 = vst [vmem:[#allocation7 + $0xdc] sm:$0xf] %v5426_v27  ;;  %11201 = vmatprep.subr.bf16.mxu0 %v12196_v22  ;;  %v5080_v19 = vrot.slane %v15379_v35, 6  ;;  %v5451_v42 = vrot.slane %v5449_v37, 6  ;;  %v5454_v17 = vrot.slane %v5452_v9, 7  ;;  %v10821_v38 = vpack.c.bf16 %v4873_v55, %v4873_v55  ;;  %6326 = vmatprep.mubr.bf16.mxu1 %v15286_v57 }
 0x440   : > { %v5069_v32 = vsel %vm13916_vm13, %v5067_v61, %v5068_v14  ;;  %v5405_v3 = vor.u32 %v5404_v31, %v5401_v47  ;;  %v4876_v16 = vmul.f32 %v4844_v6, %v15296_v5  ;;  %v4842_v18 = vadd.f32 1.0, %v12572_v7  ;;  %6012 = vmatmul.mubr.bf16.gmra.mxu0 %v5780_v60  ;;  %v15442_v9 = vld [vmem:[#allocation7 + $0x60] ss:$8 sps:$4 sm:$0xff]   ;;  %v15452_v61 = vld [vmem:[#allocation7 + $0x74] ss:$8 sps:$4 sm:$0xff]  }
 0x441   : > { %v5073_v40 = vrot.slane %v5071_v11, 4  ;;  %5143 = vst [vmem:[#allocation7 + $0xd0] sm:$0xf] %v5069_v32  ;;  %v5074_v46 = vrot.slane %v10821_v38, 6  ;;  %v5429_v53 = vshrl.u32 %v10821_v38, 16  ;;  %v5432_v25 = vshll.u32 %v10821_v38, 16  ;;  %6019 = vmatprep.mubr.bf16.mxu0 %v5786_v13  ;;  %11202 = vmatpush3.bf16.msra.mxu0 %v12198_v10 }
 0x442   : > { %v5406_v14 = vsel %vm13297_vm7, %v5397_v2, %v5405_v3  ;;  %v5407_v5 = vrot.slane %v5405_v3, 4  ;;  %v10824_v39 = vpack.c.bf16 %v4876_v16, %v4876_v16  ;;  %v4874_v60 = vmul.f32 %v4842_v18, %v15298_v51  ;;  %11203 = vmatprep.subr.bf16.mxu0 %v12207_v45  ;;  %v5536_v45 = vld [vmem:[#allocation7 + $0xfc] sm:$0xf] }
 0x443   : > { %5528 = vst [vmem:[#allocation7 + $0xcc] sm:$0xf] %v5406_v14  ;;  %v5082_v11 = vrot.slane %v5080_v19, 4  ;;  %v15425_v13 = vor.u32 %v5454_v17, %v5451_v42  ;;  %v5075_v62 = vsel %vm13916_vm13, %v5073_v40, %v5074_v46  ;;  %v5431_v36 = vrot.slane %v5429_v53, 6  ;;  %v15489_v14 = vld [vmem:[#allocation7 + $0x70] ss:$8 sps:$4 sm:$0xff]  }
 0x444   : > { %v5416_v44 = vsel %vm13297_vm7, %v5407_v5, %v15333_v8  ;;  %5145 = vst [vmem:[#allocation7 + $0xe0] sm:$0xf] %v5075_v62  ;;  %v5434_v51 = vrot.slane %v5432_v25, 7  ;;  %v5083_v22 = vrot.slane %v10824_v39, 6  ;;  %v5459_v4 = vshrl.u32 %v10824_v39, 16 }
 0x445   : > { %v5427_v29 = vrot.slane %v15386_v20, 4  ;;  %5529 = vst [vmem:[#allocation7 + $0xd4] sm:$0xf] %v5416_v44  ;;  %v5462_v55 = vshll.u32 %v10824_v39, 16  ;;  %v10822_v56 = vpack.c.bf16 %v4874_v60, %v4874_v60  ;;  %v5784_v12 = vsel %vm3454_vm8, %v5779_v48, %v5783_v15  ;;  %11204 = vmatpush3.bf16.msra.mxu0 %v12209_v41  ;;  %v9180_v5 = vld [vmem:[#allocation7 + $0x20] sm:$0x77] }
 0x446   : > { %v5076_v43 = vrot.slane %v5074_v46, 4  ;;  %v5435_v6 = vor.u32 %v5434_v51, %v5431_v36  ;;  %v5084_v8 = vsel %vm13916_vm13, %v5082_v11, %v5083_v22  ;;  %v5461_v7 = vrot.slane %v5459_v4, 6  ;;  %6327 = vmatmul.mubr.bf16.gmra.mxu1 %v15288_v58  ;;  %11413 = vmatprep.subr.bf16.mxu0 %v12212_v21  ;;  %v15497_v21 = vld [vmem:[#allocation7 + $0x84] ss:$8 sps:$4 sm:$0xff]   ;;  %v15499_v11 = vld [vmem:[#allocation7 + $0x80] ss:$8 sps:$4 sm:$0xff]  }
 0x447   : > { %5148 = vst [vmem:[#allocation7 + $0xf8] sm:$0xf] %v5084_v8  ;;  %v5464_v20 = vrot.slane %v5462_v55, 7  ;;  %v5077_v2 = vrot.slane %v10822_v56, 6  ;;  %v5439_v27 = vshrl.u32 %v10822_v56, 16  ;;  %v5442_v37 = vshll.u32 %v10822_v56, 16  ;;  %6334 = vmatprep.mubr.bf16.mxu1 %v15339_v59 }
 0x448   : > { %v5457_v48 = vrot.slane %v15425_v13, 4  ;;  %v5436_v10 = vsel %vm13297_vm7, %v5427_v29, %v5435_v6  ;;  %6020 = vmatmul.mubr.bf16.gmra.mxu0 %v5784_v12  ;;  %v5790_v33 = vsel %vm3454_vm8, %v5785_v49, %v5789_v0  ;;  %v5787_v16 = vrot.slane %v15442_v9, 1  ;;  %v15503_v62 = vld [vmem:[#allocation7 + $0x90] ss:$8 sps:$4 sm:$0xff]   ;;  %v15505_v36 = vld [vmem:[#allocation7 + $0xa4] ss:$8 sps:$4 sm:$0xff]  }
 0x449   : > { %5531 = vst [vmem:[#allocation7 + $0xe4] sm:$0xf] %v5436_v10  ;;  %v5465_v31 = vor.u32 %v5464_v20, %v5461_v7  ;;  %v5078_v42 = vsel %vm13916_vm13, %v5076_v43, %v5077_v2  ;;  %v5079_v17 = vrot.slane %v5077_v2, 4  ;;  %v5441_v38 = vrot.slane %v5439_v27, 6  ;;  %6027 = vmatprep.mubr.bf16.mxu0 %v5790_v33  ;;  %v15515_v22 = vld [vmem:[#allocation7 + $0xa0] ss:$8 sps:$4 sm:$0xff]  }
 0x44a   : > { %5146 = vst [vmem:[#allocation7 + $0xe8] sm:$0xf] %v5078_v42  ;;  %v5444_v32 = vrot.slane %v5442_v37, 7  ;;  %v5437_v40 = vrot.slane %v5435_v6, 4  ;;  %v5793_v25 = vrot.slane %v15452_v61, 1  ;;  %v5788_v41 = vsel %vm3454_vm8, %v5783_v15, %v5787_v16 }
 0x44b   : > { %v5466_v49 = vsel %vm13297_vm7, %v5457_v48, %v5465_v31  ;;  %v5081_v3 = vsel %vm13916_vm13, %v5079_v17, %v5080_v19  ;;  %vm9179_vm13 = vmor %vm15471_vm6, %vm14015_vm9  ;;  %v15501_v15 = vld [vmem:[#allocation7 + $0x94] ss:$8 sps:$4 sm:$0xff]   ;;  %v17127_v44 = vrot.slane %v15113_v26, 3  ;;  %v5791_v51 = vrot.slane %v15489_v14, 1 }
 0x44c   : > { %v5537_v46 = vsel %vm15456_vm0, %v5466_v49, %v5536_v45  ;;  %5147 = vst [vmem:[#allocation7 + $0xf0] sm:$0xf] %v5081_v3  ;;  %v5445_v53 = vor.u32 %v5444_v32, %v5441_v38  ;;  %v5794_v60 = vsel %vm3454_vm8, %v5789_v0, %v5793_v25  ;;  %v9181_v0 = vsel %vm9179_vm13, 0, %v9180_v5  ;;  %v15527_v6 = vld [vmem:[#allocation7 + $0xb4] ss:$8 sps:$4 sm:$0xff]   ;;  %vm17283_vm6 = vmmov %vm17277_vm14 }
 0x44d   : > { %5538 = vst [vmem:[#allocation7 + $0xfc] sm:$0xf] %v5537_v46  ;;  %9182 = vst [vmem:[#allocation7 + $0x20] sm:$0x77] %v9181_v0  ;;  %v5797_v4 = vrot.slane %v15497_v21, 1  ;;  %v17126_v29 = vrot.slane %v15113_v26, 2  ;;  %v5792_v27 = vsel %vm3454_vm8, %v5787_v16, %v5791_v51 }
 0x44e   : > { %v5446_v52 = vsel %vm13297_vm7, %v5437_v40, %v5445_v53  ;;  %v5447_v35 = vrot.slane %v5445_v53, 4  ;;  %6335 = vmatmul.mubr.bf16.gmra.mxu1 %v15442_v9  ;;  %v6621_v56 = vrot.slane %v15190_v1, 2  ;;  %v5795_v12 = vrot.slane %v15499_v11, 1 }
 0x44f   : > { %5532 = vst [vmem:[#allocation7 + $0xec] sm:$0xf] %v5446_v52  ;;  %6342 = vmatprep.mubr.bf16.mxu1 %v15452_v61  ;;  %v5801_v43 = vrot.slane %v15501_v15, 1  ;;  %v7056_v8 = vrot.slane %v15218_v23, 3  ;;  %v5799_v7 = vrot.slane %v15503_v62, 1  ;;  %v5805_v20 = vrot.slane %v15505_v36, 1 }
 0x450   : > { %v5456_v39 = vsel %vm13297_vm7, %v5447_v35, %v15425_v13  ;;  %6028 = vmatmul.mubr.bf16.gmra.mxu0 %v5788_v41  ;;  %v7052_v13 = vrot.slane %v15190_v1, 3  ;;  %v15536_v2 = vsel %vm3966_vm1, %v17126_v29, %v6621_v56  ;;  %v6625_v1 = vrot.slane %v15218_v23, 2  ;;  %v15704_v29 = vld [vmem:[#allocation7 + $0xd0] ss:$8 sps:$4 sm:$0xff]  }
 0x451   : > { %5533 = vst [vmem:[#allocation7 + $0xf4] sm:$0xf] %v5456_v39  ;;  %6035 = vmatprep.mubr.bf16.mxu0 %v5794_v60  ;;  %v17129_v37 = vrot.slane %v15515_v22, 1  ;;  %v5798_v10 = vsel %vm3454_vm8, %v5793_v25, %v5797_v4  ;;  %v7060_v47 = vrot.slane %v15247_v24, 3  ;;  %v5796_v23 = vsel %vm3454_vm8, %v5791_v51, %v5795_v12  ;;  %v15724_v50 = vld [vmem:[#allocation7 + $0xe0] ss:$8 sps:$4 sm:$0xff]  }
 0x452   : > { %v15522_v55 = vsel %vm4387_vm5, %v17127_v44, %v7052_v13  ;;  %v15543_v48 = vsel %vm4387_vm5, %v7052_v13, %v7056_v8  ;;  %v15547_v33 = vsel %vm3966_vm1, %v6621_v56, %v6625_v1  ;;  %v17128_v31 = vrot.slane %v15527_v6, 1 }
 0x453   : > { %v5802_v45 = vsel %vm3454_vm8, %v5797_v4, %v5801_v43  ;;  %v15554_v42 = vsel %vm3454_vm8, %v5795_v12, %v5799_v7  ;;  %v15557_v17 = vsel %vm3454_vm8, %v5801_v43, %v5805_v20  ;;  %v15562_v32 = vsel %vm4387_vm5, %v7056_v8, %v7060_v47 }
 0x454   : > { %v15567_v49 = vsel %vm3454_vm8, %v5799_v7, %v17129_v37  ;;  %v17125_v3 = vrot.slane %v15220_v63, 3  ;;  %v17124_v16 = vrot.slane %v15220_v63, 2  ;;  %v6629_v18 = vrot.slane %v15247_v24, 2  ;;  %v5604_v40 = vld [vmem:[#allocation7 + $0xf8] sm:$0xff] }
 0x455   : > { %v7058_v46 = vrot.slane %v15282_v54, 3  ;;  %v7064_v53 = vrot.slane %v15286_v57, 3  ;;  %v6627_v25 = vrot.slane %v15282_v54, 2  ;;  %v6633_v52 = vrot.slane %v15286_v57, 2 }
 0x456   : > { %6343 = vmatmul.mubr.bf16.gmra.mxu1 %v15489_v14  ;;  %v15579_v35 = vsel %vm3454_vm8, %v5805_v20, %v17128_v31  ;;  %v15588_v24 = vsel %vm3966_vm1, %v6625_v1, %v6629_v18  ;;  %v7062_v60 = vrot.slane %v15288_v58, 3  ;;  %v7068_v13 = vrot.slane %v15339_v59, 3 }
 0x457   : > { %6350 = vmatprep.mubr.bf16.mxu1 %v15497_v21  ;;  %v15594_v54 = vsel %vm4387_vm5, %v17125_v3, %v7058_v46  ;;  %v15597_v57 = vsel %vm4387_vm5, %v7060_v47, %v7064_v53  ;;  %v15602_v5 = vsel %vm3966_vm1, %v17124_v16, %v6627_v25  ;;  %v15605_v39 = vsel %vm3966_vm1, %v6629_v18, %v6633_v52 }
 0x458   : > { %6036 = vmatmul.mubr.bf16.gmra.mxu0 %v5792_v27  ;;  %v15559_v38 = vld [vmem:[#allocation7 + $0xf0] sm:$0xff]  ;;  %v6631_v0 = vrot.slane %v15288_v58, 2  ;;  %v6637_v51 = vrot.slane %v15339_v59, 2  ;;  %v7066_v4 = vrot.slane %v15442_v9, 3  ;;  %v7072_v56 = vrot.slane %v15452_v61, 3 }
 0x459   : > { %6043 = vmatprep.mubr.bf16.mxu0 %v5798_v10  ;;  %v15582_v19 = vcombine.high %v15559_v38, %v5604_v40  ;;  %v15585_v41 = vcombine.low %v15559_v38, %v5604_v40  ;;  %v6635_v12 = vrot.slane %v15442_v9, 2  ;;  %v6641_v43 = vrot.slane %v15452_v61, 2 }
 0x45a   : > { %v15617_v8 = vsel %vm4387_vm5, %v7058_v46, %v7062_v60  ;;  %v15620_v7 = vsel %vm4387_vm5, %v7064_v53, %v7068_v13  ;;  %v15623_v58 = vsel %vm3966_vm1, %v6627_v25, %v6631_v0  ;;  %v15626_v59 = vsel %vm3966_vm1, %v6633_v52, %v6637_v51 }
 0x45b   : > { %v15629_v20 = vsel %vm4387_vm5, %v7062_v60, %v7066_v4  ;;  %v15632_v9 = vsel %vm4387_vm5, %v7068_v13, %v7072_v56  ;;  %v15635_v61 = vsel %vm3966_vm1, %v6631_v0, %v6635_v12  ;;  %v15638_v1 = vsel %vm3966_vm1, %v6637_v51, %v6641_v43  ;;  %v15663_v60 = vld [vmem:[#allocation7 + $0xc4] ss:$8 sps:$4 sm:$0xff]   ;;  %v15678_v51 = vld [vmem:[#allocation7 + $0xc0] ss:$8 sps:$4 sm:$0xff]  }
 0x45c   : > { %v7070_v27 = vrot.slane %v15489_v14, 3  ;;  %v7076_v10 = vrot.slane %v15497_v21, 3  ;;  %v6639_v47 = vrot.slane %v15489_v14, 2  ;;  %v7080_v18 = vrot.slane %v15501_v15, 3 }
 0x45d   : > { %v6643_v40 = vrot.slane %v15499_v11, 2  ;;  %v6649_v46 = vrot.slane %v15501_v15, 2  ;;  %v6657_v16 = vrot.slane %v15527_v6, 2  ;;  %v6659_v34 = vrot.slane %v15678_v51, 2 }
 0x45e   : > { %6351 = vmatmul.mubr.bf16.gmra.mxu1 %v15499_v11  ;;  %v15649_v53 = vsel %vm4387_vm5, %v7066_v4, %v7070_v27  ;;  %v15652_v25 = vsel %vm4387_vm5, %v7072_v56, %v7076_v10  ;;  %v15655_v52 = vsel %vm3966_vm1, %v6635_v12, %v6639_v47  ;;  %v7078_v4 = vrot.slane %v15503_v62, 3 }
 0x45f   : > { %6358 = vmatprep.mubr.bf16.mxu1 %v15501_v15  ;;  %v15669_v15 = vsel %vm4387_vm5, %v7076_v10, %v7080_v18  ;;  %v15672_v13 = vsel %vm3966_vm1, %v6639_v47, %v6643_v40  ;;  %v7084_v56 = vrot.slane %v15505_v36, 3  ;;  %v6647_v12 = vrot.slane %v15503_v62, 2 }
 0x460   : > { %6044 = vmatmul.mubr.bf16.gmra.mxu0 %v5796_v23  ;;  %v6645_v23 = vrot.slane %v15497_v21, 2  ;;  %v15661_v21 = vld [vmem:[#allocation7 + $0xb0] ss:$8 sps:$4 sm:$0xff]   ;;  %v7082_v10 = vrot.slane %v15515_v22, 3  ;;  %v7088_v47 = vrot.slane %v15527_v6, 3  ;;  %vm8242_vm9 = vcmask 130048  }
 0x461   : > { %6051 = vmatprep.mubr.bf16.mxu0 %v5802_v45  ;;  %v7074_v45 = vrot.slane %v15499_v11, 3  ;;  %v6655_v37 = vrot.slane %v15661_v21, 2  ;;  %vm8580_vm11 = vcmask 1044484   ;;  %vm17280_vm10 = vcmask 1040384  }
 0x462   : > { %v15658_v14 = vsel %vm3966_vm1, %v6641_v43, %v6645_v23  ;;  %v15675_v0 = vsel %vm3966_vm1, %v6645_v23, %v6649_v46  ;;  %v6653_v43 = vrot.slane %v15505_v36, 2  ;;  %v6651_v23 = vrot.slane %v15515_v22, 2  ;;  %vm16643_vm0 = vmor %vm17280_vm10, %vm8580_vm11 }
 0x463   : > { %v15666_v11 = vsel %vm4387_vm5, %v7070_v27, %v7074_v45  ;;  %v15685_v27 = vld [vmem:[#allocation7 + $0xd4] ss:$8 sps:$4 sm:$0xff]   ;;  %v15693_v3 = vsel %vm4387_vm5, %v7074_v45, %v7078_v4  ;;  %v15707_v44 = vsel %vm4387_vm5, %v7078_v4, %v7082_v10  ;;  %v15710_v31 = vsel %vm4387_vm5, %v7084_v56, %v7088_v47 }
 0x464   : > { %17239 = vst [vmem:[#allocation29_spill] sm:$0xff] %v15707_v44  ;;  %17240 = vst [vmem:[#allocation19_spill] sm:$0xff] %v15710_v31  ;;  %v15716_v45 = vsel %vm3966_vm1, %v6653_v43, %v6657_v16  ;;  %v6661_v4 = vrot.slane %v15663_v60, 2  ;;  %vm17285_vm13 = vcmask 1043969  }
 0x465   : > { %17242 = vst [vmem:[#allocation20_spill] sm:$0xff] %v15716_v45 }
 0x466   : > { %6359 = vmatmul.mubr.bf16.gmra.mxu1 %v15503_v62  ;;  %v15696_v62 = vsel %vm4387_vm5, %v7080_v18, %v7084_v56  ;;  %v15718_v18 = vld [vmem:[#allocation7 + $0xe4] ss:$8 sps:$4 sm:$0xff]   ;;  %v7090_v56 = vrot.slane %v15678_v51, 3 }
 0x467   : > { %6366 = vmatprep.mubr.bf16.mxu1 %v15505_v36  ;;  %v15699_v36 = vsel %vm3966_vm1, %v6643_v40, %v6647_v12  ;;  %v7086_v40 = vrot.slane %v15661_v21, 3 }
 0x468   : > { %6052 = vmatmul.mubr.bf16.gmra.mxu0 %v15554_v42  ;;  %17237 = vst [vmem:[#allocation24_spill] sm:$0xff] %v15699_v36  ;;  %v15702_v42 = vsel %vm3966_vm1, %v6649_v46, %v6653_v43  ;;  %v7092_v46 = vrot.slane %v15663_v60, 3  ;;  %v6665_v43 = vrot.slane %v15685_v27, 2  ;;  %v15740_v36 = vsel %vm3966_vm1, %v6657_v16, %v6661_v4 }
 0x469   : > { %6059 = vmatprep.mubr.bf16.mxu0 %v15557_v17  ;;  %17238 = vst [vmem:[#allocation14_spill] sm:$0xff] %v15702_v42  ;;  %v15713_v17 = vsel %vm3966_vm1, %v6647_v12, %v6651_v23  ;;  %v7096_v12 = vrot.slane %v15685_v27, 3  ;;  %v15731_v45 = vsel %vm4387_vm5, %v7082_v10, %v7086_v40  ;;  %v15737_v42 = vsel %vm3966_vm1, %v6651_v23, %v6655_v37 }
 0x46a   : > { %17241 = vst [vmem:[#allocation31_spill] sm:$0xff] %v15713_v17  ;;  %v15734_v17 = vsel %vm4387_vm5, %v7088_v47, %v7092_v46  ;;  %17243 = vst [vmem:[#allocation32_spill] sm:$0xff] %v15737_v42  ;;  %v15744_v31 = vsel %vm4387_vm5, %v7086_v40, %v7090_v56  ;;  %v15750_v10 = vsel %vm3966_vm1, %v6655_v37, %v6659_v34  ;;  %v7094_v23 = vrot.slane %v15704_v29, 3 }
 0x46b   : > { %17244 = vst [vmem:[#allocation25_spill] sm:$0xff] %v15740_v36  ;;  %17245 = vst [vmem:[#allocation26_spill] sm:$0xff] %v15744_v31  ;;  %v15747_v44 = vsel %vm4387_vm5, %v7092_v46, %v7096_v12  ;;  %v15753_v47 = vsel %vm3966_vm1, %v6661_v4, %v6665_v43  ;;  %v7100_v16 = vrot.slane %v15718_v18, 3  ;;  %v6663_v36 = vrot.slane %v15704_v29, 2 }
 0x46c   : > { %17246 = vst [vmem:[#allocation21_spill] sm:$0xff] %v15747_v44  ;;  %17247 = vst [vmem:[#allocation28_spill] sm:$0xff] %v15750_v10  ;;  %v6669_v40 = vrot.slane %v15718_v18, 2  ;;  %v7098_v46 = vrot.slane %v15724_v50, 3  ;;  %v6667_v10 = vrot.slane %v15724_v50, 2  ;;  %v17250_v31 = vrot.slane %v15582_v19, 3 }
 0x46d   : > { %17248 = vst [vmem:[#allocation30_spill] sm:$0xff] %v15753_v47  ;;  %v15767_v47 = vsel %vm4387_vm5, %v7090_v56, %v7094_v23  ;;  %v15770_v42 = vsel %vm4387_vm5, %v7096_v12, %v7100_v16  ;;  %v15773_v44 = vsel %vm3966_vm1, %v6659_v34, %v6663_v36  ;;  %v17251_v56 = vrot.slane %v15582_v19, 2 }
 0x46e   : > { %6367 = vmatmul.mubr.bf16.gmra.mxu1 %v15515_v22  ;;  %v15779_v37 = vsel %vm4387_vm5, %v7094_v23, %v7098_v46  ;;  %v15784_v4 = vsel %vm4387_vm5, %v7100_v16, %v17250_v31  ;;  %v5807_v34 = vrot.slane %v15661_v21, 1  ;;  %v6671_v23 = vrot.slane %v15585_v41, 2 }
 0x46f   : > { %6374 = vmatprep.mubr.bf16.mxu1 %v15527_v6  ;;  %v15792_v12 = vsel %vm3966_vm1, %v6669_v40, %v17251_v56  ;;  %v17253_v16 = vrot.slane %v15515_v22, 1  ;;  %v17254_v56 = vrot.slane %v15527_v6, 1  ;;  %v5821_v6 = vrot.slane %v15718_v18, 1 }
 0x470   : > { %6060 = vmatmul.mubr.bf16.gmra.mxu0 %v15567_v49  ;;  %v15776_v49 = vsel %vm3966_vm1, %v6665_v43, %v6669_v40  ;;  %17252 = vst [vmem:[#allocation22_spill] sm:$0xff] %v15792_v12  ;;  %v17132_v43 = vrot.slane %v15585_v41, 3 }
 0x471   : > { %6067 = vmatprep.mubr.bf16.mxu0 %v15579_v35  ;;  %17249 = vst [vmem:[#allocation33_spill] sm:$0xff] %v15776_v49  ;;  %v15787_v35 = vsel %vm3966_vm1, %v6663_v36, %v6667_v10  ;;  %v5813_v49 = vrot.slane %v15663_v60, 1  ;;  %v15806_v36 = vsel %vm3966_vm1, %v6667_v10, %v6671_v23  ;;  %v5808_v40 = vsel %vm3454_vm8, %v17253_v16, %v5807_v34  ;;  %v7000_v16 = vld [vmem:[#allocation7] sm:$0x88] }
 0x472   : > { %v15801_v31 = vsel %vm4387_vm5, %v7098_v46, %v17132_v43  ;;  %v5811_v46 = vrot.slane %v15678_v51, 1  ;;  %v5817_v43 = vrot.slane %v15685_v27, 1 }
 0x473   : > { %v5814_v12 = vsel %vm3454_vm8, %v17254_v56, %v5813_v49 }
 0x474   : > { %v5818_v22 = vsel %vm3454_vm8, %v5813_v49, %v5817_v43  ;;  %v5570_v49 = vld [vmem:[#allocation7 + $0xf8] sm:$0x77] }
 0x476   : > { %6375 = vmatmul.mubr.bf16.gmra.mxu1 %v15661_v21  ;;  %v5812_v21 = vsel %vm3454_vm8, %v5807_v34, %v5811_v46  ;;  %v10493_v34 = vcombine.high %v15559_v38, %v5570_v49 }
 0x477   : > { %6382 = vmatprep.mubr.bf16.mxu1 %v15663_v60  ;;  %v5815_v60 = vrot.slane %v15704_v29, 1 }
 0x478   : > { %6068 = vmatmul.mubr.bf16.gmra.mxu0 %v5808_v40  ;;  %v12673_v40 = vld [vmem:[#allocation7 + $0x8] sm:$0xff] }
 0x479   : > { %6075 = vmatprep.mubr.bf16.mxu0 %v5814_v12  ;;  %v5816_v10 = vsel %vm3454_vm8, %v5811_v46, %v5815_v60  ;;  %v5825_v12 = vrot.slane %v15582_v19, 1  ;;  %v5823_v46 = vrot.slane %v15585_v41, 1 }
 0x47e   : > { %6383 = vmatmul.mubr.bf16.gmra.mxu1 %v15678_v51  ;;  %v5822_v51 = vsel %vm3454_vm8, %v5817_v43, %v5821_v6 }
 0x47f   : > { %6390 = vmatprep.mubr.bf16.mxu1 %v15685_v27  ;;  %v5819_v27 = vrot.slane %v15724_v50, 1 }
 0x480   : > { %6076 = vmatmul.mubr.bf16.gmra.mxu0 %v5812_v21  ;;  %v10492_v21 = vcombine.low %v15559_v38, %v5570_v49  ;;  %v12214_v38 = vld [vmem:[%s17096_s8 + $0xb8] sm:$0xff]  }
 0x481   : > { %6083 = vmatprep.mubr.bf16.mxu0 %v5818_v22  ;;  %v5820_v56 = vsel %vm3454_vm8, %v5815_v60, %v5819_v27  ;;  %v10560_v22 = vcombine.low %v7000_v16, %v12673_v40  ;;  %v6415_v60 = vld [vmem:[#allocation7] sm:$0xcc] }
 0x486   : > { %6391 = vmatmul.mubr.bf16.gmra.mxu1 %v15704_v29  ;;  %v10561_v29 = vcombine.high %v7000_v16, %v12673_v40 }
 0x487   : > { %6398 = vmatprep.mubr.bf16.mxu1 %v15718_v18  ;;  %v5826_v18 = vsel %vm3454_vm8, %v5821_v6, %v5825_v12  ;;  %v7044_v6 = vrot.slane %v10560_v22, 3 }
 0x488   : > { %6084 = vmatmul.mubr.bf16.gmra.mxu0 %v5816_v10  ;;  %v7047_v43 = vrot.slane %v10561_v29, 3  ;;  %v17255_v10 = vrot.slane %v15113_v26, 3 }
 0x489   : > { %6091 = vmatprep.mubr.bf16.mxu0 %v5822_v51  ;;  %v5824_v51 = vsel %vm3454_vm8, %v5819_v27, %v5823_v46  ;;  %v12217_v27 = vld [vmem:[%s17096_s8 + $0xb0] sm:$0xff]  }
 0x48e   : > { %6399 = vmatmul.mubr.bf16.gmra.mxu1 %v15724_v50  ;;  %v7049_v50 = vsel %vm4387_vm5, %v7047_v43, %v17255_v10 }
 0x48f   : > { %6406 = vmatprep.mubr.bf16.mxu1 %v10493_v34  ;;  %v10511_v34 = vcombine.high %v6415_v60, %v12673_v40 }
 0x490   : > { %6092 = vmatmul.mubr.bf16.gmra.mxu0 %v5820_v56  ;;  %v12674_v56 = vld [vmem:[#allocation7 + $0x10] ss:$8 sps:$4 sm:$0xff]  }
 0x491   : > { %6099 = vmatprep.mubr.bf16.mxu0 %v5826_v18  ;;  %v7045_v29 = vrot.slane %v12674_v56, 3  ;;  %v6616_v49 = vrot.slane %v10511_v34, 2  ;;  %v10510_v18 = vcombine.low %v6415_v60, %v12673_v40  ;;  %v6614_v10 = vrot.slane %v12674_v56, 2  ;;  %v12216_v60 = vld [vmem:[%s17096_s8 + $0x30] sm:$0xff]  }
 0x492   : > { %v6619_v34 = vrot.slane %v15200_v30, 2  ;;  %v17257_v56 = vrot.slane %v15220_v63, 3 }
 0x493   : > { %v7046_v16 = vsel %vm4387_vm5, %v7044_v6, %v7045_v29  ;;  %v6613_v22 = vrot.slane %v10510_v18, 2  ;;  %v12219_v6 = vld [vmem:[%s17096_s8 + $0x28] sm:$0xff]   ;;  %v12224_v18 = vld [vmem:[%s17096_s8 + $0x58] sm:$0xff]  }
 0x496   : > { %6407 = vmatmul.mubr.bf16.gmra.mxu1 %v10492_v21  ;;  %v7050_v21 = vrot.slane %v15200_v30, 3  ;;  %v12221_v30 = vld [vmem:[%s17096_s8 + $0x60] sm:$0xff]  }
 0x497   : > { %7270 = vmatprep.mubr.bf16.mxu1 %v7049_v50  ;;  %v6615_v50 = vsel %vm3966_vm1, %v6613_v22, %v6614_v10  ;;  %v12235_v22 = vld [vmem:[%s17096_s8 + $0x40] sm:$0xff]  }
 0x498   : > { %6100 = vmatmul.mubr.bf16.gmra.mxu0 %v5824_v51  ;;  %v7051_v40 = vsel %vm4387_vm5, %v7045_v29, %v7050_v21  ;;  %v12223_v51 = vld [vmem:[%s17096_s8 + $0xa0] sm:$0xff]   ;;  %v7055_v29 = vsel %vm4387_vm5, %v7050_v21, %v17257_v56 }
 0x499   : > { %6107 = vmatprep.mubr.bf16.mxu0 %v5825_v12  ;;  %v17256_v12 = vrot.slane %v15113_v26, 2  ;;  %v12213_v26 = vld [vmem:[%s17096_s8 + $0x38] sm:$0xff]   ;;  %v12233_v21 = vld [vmem:[%s17096_s8 + $0x80] sm:$0xff]  }
 0x49b   : > { %v6618_v43 = vsel %vm3966_vm1, %v6616_v49, %v17256_v12  ;;  %v6620_v49 = vsel %vm3966_vm1, %v6614_v10, %v6619_v34  ;;  %v17258_v12 = vrot.slane %v15220_v63, 2  ;;  %v12231_v63 = vld [vmem:[%s17096_s8 + $0x48] sm:$0xff]  }
 0x49e   : > { %7271 = vmatmul.mubr.bf16.vlgmr.msra.gmra.mxu1 %v7046_v16  ;;  %v12222_v16 = vld [vmem:[%s17096_s8 + $0x20] sm:$0xff]  }
 0x49f   : > { %7278 = vmatprep.mubr.bf16.mxu1 %v15522_v55  ;;  %8321 = vmatpush1.bf16.msra.mxu1 %v12214_v38  ;;  %v12220_v55 = vld [vmem:[%s17096_s8 + $0xa8] sm:$0xff]   ;;  %v12227_v38 = vld [vmem:[%s17096_s8 + $0x90] sm:$0xff]  }
 0x4a0   : > { %6108 = vmatmul.mubr.bf16.gmra.mxu0 %v5823_v46  ;;  %8322 = vmatprep.subr.bf16.mxu1 %v17231_v28  ;;  %v12215_v46 = vld [vmem:[%s17096_s8 + $0x70] sm:$0xff]  }
 0x4a1   : > { %6839 = vmatprep.mubr.bf16.mxu0 %v6618_v43  ;;  %v6624_v43 = vsel %vm3966_vm1, %v6619_v34, %v17258_v12 }
 0x4a3   : > { %8323 = vmatpush1.bf16.msra.mxu1 %v12217_v27  ;;  %v12228_v27 = vld [vmem:[%s17096_s8 + $0x50] sm:$0xff]  }
 0x4a4   : > { %8324 = vmatprep.subr.bf16.mxu1 %v17231_v28 }
 0x4a6   : > { %7279 = vmatmul.mubr.bf16.gmra.mxu1 %v7051_v40 }
 0x4a7   : > { %7286 = vmatprep.mubr.bf16.mxu1 %v15543_v48  ;;  %8325 = vmatpush1.bf16.msra.mxu1 %v12220_v55  ;;  %v12218_v48 = vld [vmem:[%s17096_s8 + $0x68] sm:$0xff]  }
 0x4a8   : > { %6840 = vmatmul.mubr.bf16.vlgmr.msra.gmra.mxu0 %v6615_v50  ;;  %8326 = vmatprep.subr.bf16.mxu1 %v17231_v28  ;;  %v17263_v50 = vld [vmem:[#allocation31_spill] sm:$0xff] }
 0x4a9   : > { %11414 = vmatpush3.bf16.msra.mxu0 %v12213_v26  ;;  %6847 = vmatprep.mubr.bf16.mxu0 %v15536_v2  ;;  %v12225_v2 = vld [vmem:[%s17096_s8 + $0x98] sm:$0xff]  }
 0x4aa   : > { %11415 = vmatprep.subr.bf16.mxu0 %v12215_v46 }
 0x4ab   : > { %8327 = vmatpush1.bf16.msra.mxu1 %v12223_v51 }
 0x4ac   : > { %8328 = vmatprep.subr.bf16.mxu1 %v17231_v28 }
 0x4ad   : > { %11416 = vmatpush3.bf16.msra.mxu0 %v12216_v60 }
 0x4ae   : > { %7287 = vmatmul.mubr.bf16.gmra.mxu1 %v7055_v29  ;;  %11417 = vmatprep.subr.bf16.mxu0 %v12218_v48  ;;  %v17264_v48 = vld [vmem:[#allocation20_spill] sm:$0xff] }
 0x4af   : > { %7294 = vmatprep.mubr.bf16.mxu1 %v15562_v32  ;;  %8329 = vmatpush1.bf16.msra.mxu1 %v12225_v2  ;;  %v12230_v32 = vld [vmem:[%s17096_s8 + $0x88] sm:$0xff]  }
 0x4b0   : > { %6848 = vmatmul.mubr.bf16.gmra.mxu0 %v6620_v49  ;;  %8330 = vmatprep.subr.bf16.mxu1 %v17231_v28 }
 0x4b1   : > { %6855 = vmatprep.mubr.bf16.mxu0 %v15547_v33  ;;  %11418 = vmatpush3.bf16.msra.mxu0 %v12219_v6  ;;  %v12226_v33 = vld [vmem:[%s17096_s8 + $0x18] sm:$0xff]  }
 0x4b2   : > { %11419 = vmatprep.subr.bf16.mxu0 %v12221_v30 }
 0x4b3   : > { %8331 = vmatpush1.bf16.msra.mxu1 %v12227_v38 }
 0x4b4   : > { %8332 = vmatprep.subr.bf16.mxu1 %v17231_v28 }
 0x4b5   : > { %11420 = vmatpush3.bf16.msra.mxu0 %v12222_v16 }
 0x4b6   : > { %7295 = vmatmul.mubr.bf16.gmra.mxu1 %v15594_v54  ;;  %11421 = vmatprep.subr.bf16.mxu0 %v12224_v18  ;;  %v12229_v54 = vld [vmem:[%s17096_s8 + $0x10] sm:$0xff]  }
 0x4b7   : > { %7302 = vmatprep.mubr.bf16.mxu1 %v15597_v57  ;;  %8333 = vmatpush1.bf16.msra.mxu1 %v12230_v32  ;;  %v12240_v57 = vld [vmem:[%s17096_s8 + $0xc0] sm:$0xff]   ;;  %v17266_v32 = vld [vmem:[#allocation21_spill] sm:$0xff] }
 0x4b8   : > { %6856 = vmatmul.mubr.bf16.gmra.mxu0 %v6624_v43  ;;  %8334 = vmatprep.subr.bf16.mxu1 %v17231_v28 }
 0x4b9   : > { %6863 = vmatprep.mubr.bf16.mxu0 %v15588_v24  ;;  %11422 = vmatpush3.bf16.msra.mxu0 %v12226_v33  ;;  %v12232_v24 = vld [vmem:[%s17096_s8 + $0x8] sm:$0xff]  }
 0x4ba   : > { %11423 = vmatprep.subr.bf16.mxu0 %v12228_v27  ;;  %v17267_v27 = vld [vmem:[#allocation32_spill] sm:$0xff] }
 0x4bb   : > { %8335 = vmatpush1.bf16.msra.mxu1 %v12233_v21  ;;  %v17268_v21 = vld [vmem:[#allocation25_spill] sm:$0xff] }
 0x4bc   : > { %8350 = vmatprep.subr.bf16.mxu1 %v17231_v28  ;;  %v12236_v28 = vld [vmem:[%s17096_s8] sm:$0xff]  }
 0x4bd   : > { %11424 = vmatpush3.bf16.msra.mxu0 %v12229_v54 }
 0x4be   : > { %7303 = vmatmul.mubr.bf16.gmra.mxu1 %v15617_v8  ;;  %11425 = vmatprep.subr.bf16.mxu0 %v12231_v63 }
 0x4bf   : > { %7310 = vmatprep.mubr.bf16.mxu1 %v15620_v7  ;;  %8351 = vmatpush2.bf16.msra.mxu1 %v12240_v57 }
 0x4c0   : > { %6864 = vmatmul.mubr.bf16.gmra.mxu0 %v15602_v5 }
 0x4c1   : > { %6871 = vmatprep.mubr.bf16.mxu0 %v15605_v39  ;;  %11426 = vmatpush3.bf16.msra.mxu0 %v12232_v24 }
 0x4c2   : > { %11427 = vmatprep.subr.bf16.mxu0 %v12235_v22 }
 0x4c5   : > { %11428 = vmatpush3.bf16.msra.mxu0 %v12236_v28 }
 0x4c6   : > { %7311 = vmatmul.mubr.bf16.gmra.mxu1 %v15629_v20 }
 0x4c7   : > { %7318 = vmatprep.mubr.bf16.mxu1 %v15632_v9  ;;  %v17259_v9 = vld [vmem:[#allocation29_spill] sm:$0xff] }
 0x4c8   : > { %6872 = vmatmul.mubr.bf16.gmra.mxu0 %v15623_v58 }
 0x4c9   : > { %6879 = vmatprep.mubr.bf16.mxu0 %v15626_v59 }
 0x4ce   : > { %7319 = vmatmul.mubr.bf16.gmra.mxu1 %v15649_v53  ;;  %v17261_v53 = vld [vmem:[#allocation24_spill] sm:$0xff] }
 0x4cf   : > { %7326 = vmatprep.mubr.bf16.mxu1 %v15652_v25  ;;  %v17262_v25 = vld [vmem:[#allocation14_spill] sm:$0xff] }
 0x4d0   : > { %6880 = vmatmul.mubr.bf16.gmra.mxu0 %v15635_v61  ;;  %v17260_v61 = vld [vmem:[#allocation19_spill] sm:$0xff] }
 0x4d1   : > { %6887 = vmatprep.mubr.bf16.mxu0 %v15638_v1 }
 0x4d6   : > { %7327 = vmatmul.mubr.bf16.gmra.mxu1 %v15666_v11 }
 0x4d7   : > { %7334 = vmatprep.mubr.bf16.mxu1 %v15669_v15 }
 0x4d8   : > { %6888 = vmatmul.mubr.bf16.gmra.mxu0 %v15655_v52 }
 0x4d9   : > { %6895 = vmatprep.mubr.bf16.mxu0 %v15658_v14 }
 0x4de   : > { %v11093_v5 = vpop.f32.mrf.mxu1  ;;  %7335 = vmatmul.mubr.bf16.gmra.mxu1 %v15693_v3 }
 0x4df   : > { %7342 = vmatprep.mubr.bf16.mxu1 %v15696_v62 }
 0x4e0   : > { %6896 = vmatmul.mubr.bf16.gmra.mxu0 %v15672_v13  ;;  %v11094_v39 = vpop.f32.mrf.mxu1 }
 0x4e1   : > { %6903 = vmatprep.mubr.bf16.mxu0 %v15675_v0  ;;  %v11095_v8 = vadd.f32 %v11094_v39, %v11093_v5 }
 0x4e2   : > { %v11096_v7 = vpop.f32.mrf.mxu1 }
 0x4e4   : > { %v11097_v58 = vpop.f32.mrf.mxu1 }
 0x4e5   : > { %v11098_v59 = vadd.f32 %v11097_v58, %v11096_v7 }
 0x4e6   : > { %v11099_v20 = vpop.f32.mrf.mxu1  ;;  %7343 = vmatmul.mubr.bf16.gmra.mxu1 %v17259_v9 }
 0x4e7   : > { %7350 = vmatprep.mubr.bf16.mxu1 %v17260_v61 }
 0x4e8   : > { %v10981_v1 = vpop.f32.mrf.mxu0  ;;  %6904 = vmatmul.mubr.bf16.gmra.mxu0 %v17261_v53  ;;  %v11100_v3 = vpop.f32.mrf.mxu1 }
 0x4e9   : > { %6911 = vmatprep.mubr.bf16.mxu0 %v17262_v25  ;;  %v11101_v52 = vadd.f32 %v11100_v3, %v11099_v20  ;;  %v17269_v20 = vld [vmem:[#allocation28_spill] sm:$0xff] }
 0x4ea   : > { %v10982_v14 = vpop.f32.mrf.mxu0  ;;  %v11102_v11 = vpop.f32.mrf.mxu1 }
 0x4eb   : > { %v10983_v15 = vadd.f32 %v10982_v14, %v10981_v1  ;;  %v17270_v1 = vld [vmem:[#allocation30_spill] sm:$0xff]  ;;  %v7001_v14 = vld [vmem:[#allocation7 + $0x100] sm:$0x33] }
 0x4ec   : > { %v10984_v13 = vpop.f32.mrf.mxu0  ;;  %v11103_v0 = vpop.f32.mrf.mxu1 }
 0x4ed   : > { %v15973_v62 = vadd.f32 %v11095_v8, %v10983_v15  ;;  %v11104_v10 = vadd.f32 %v11103_v0, %v11102_v11 }
 0x4ee   : > { %v10985_v55 = vpop.f32.mrf.mxu0  ;;  %v11105_v26 = vpop.f32.mrf.mxu1  ;;  %7351 = vmatmul.mubr.bf16.gmra.mxu1 %v15731_v45 }
 0x4ef   : > { %v10986_v40 = vadd.f32 %v10985_v55, %v10984_v13  ;;  %7358 = vmatprep.mubr.bf16.mxu1 %v15734_v17  ;;  %v17265_v17 = vld [vmem:[#allocation26_spill] sm:$0xff] }
 0x4f0   : > { %v10987_v46 = vpop.f32.mrf.mxu0  ;;  %6912 = vmatmul.mubr.bf16.gmra.mxu0 %v17263_v50  ;;  %v11106_v51 = vpop.f32.mrf.mxu1  ;;  %v17271_v50 = vld [vmem:[#allocation33_spill] sm:$0xff] }
 0x4f1   : > { %v15978_v60 = vadd.f32 %v11098_v59, %v10986_v40  ;;  %6919 = vmatprep.mubr.bf16.mxu0 %v17264_v48  ;;  %v11107_v34 = vadd.f32 %v11106_v51, %v11105_v26 }
 0x4f2   : > { %v10988_v2 = vpop.f32.mrf.mxu0  ;;  %v11108_v6 = vpop.f32.mrf.mxu1 }
 0x4f3   : > { %v10989_v56 = vadd.f32 %v10988_v2, %v10987_v46 }
 0x4f4   : > { %v10990_v29 = vpop.f32.mrf.mxu0  ;;  %v11109_v30 = vpop.f32.mrf.mxu1 }
 0x4f5   : > { %v15981_v38 = vadd.f32 %v11101_v52, %v10989_v56  ;;  %v11110_v45 = vadd.f32 %v11109_v30, %v11108_v6 }
 0x4f6   : > { %v10991_v49 = vpop.f32.mrf.mxu0  ;;  %v11111_v16 = vpop.f32.mrf.mxu1  ;;  %7359 = vmatmul.mubr.bf16.gmra.mxu1 %v17265_v17 }
 0x4f7   : > { %v10992_v18 = vadd.f32 %v10991_v49, %v10990_v29  ;;  %7366 = vmatprep.mubr.bf16.mxu1 %v17266_v32 }
 0x4f8   : > { %v10993_v33 = vpop.f32.mrf.mxu0  ;;  %6920 = vmatmul.mubr.bf16.gmra.mxu0 %v17267_v27  ;;  %v11112_v12 = vpop.f32.mrf.mxu1 }
 0x4f9   : > { %v15986_v43 = vadd.f32 %v11104_v10, %v10992_v18  ;;  %6927 = vmatprep.mubr.bf16.mxu0 %v17268_v21  ;;  %v11113_v54 = vadd.f32 %v11112_v12, %v11111_v16  ;;  %v10563_v10 = vcombine.high %v7001_v14, %v7001_v14  ;;  %v17273_v21 = vld [vmem:[#allocation22_spill] sm:$0xff] }
 0x4fa   : > { %v10994_v63 = vpop.f32.mrf.mxu0  ;;  %v11114_v57 = vpop.f32.mrf.mxu1 }
 0x4fb   : > { %v10995_v24 = vadd.f32 %v10994_v63, %v10993_v33  ;;  %v7108_v2 = vrot.slane %v10563_v10, 3 }
 0x4fc   : > { %v10996_v22 = vpop.f32.mrf.mxu0  ;;  %v11115_v28 = vpop.f32.mrf.mxu1 }
 0x4fd   : > { %v15989_v5 = vadd.f32 %v11107_v34, %v10995_v24  ;;  %v11116_v39 = vadd.f32 %v11115_v28, %v11114_v57 }
 0x4fe   : > { %v10997_v8 = vpop.f32.mrf.mxu0  ;;  %v11117_v7 = vpop.f32.mrf.mxu1  ;;  %7367 = vmatmul.mubr.bf16.gmra.mxu1 %v15767_v47 }
 0x4ff   : > { %v10998_v58 = vadd.f32 %v10997_v8, %v10996_v22  ;;  %7374 = vmatprep.mubr.bf16.mxu1 %v15770_v42  ;;  %v12246_v22 = vld [vmem:[%s15881_s18 + $0xc] ss:$16 sps:$4 sm:$0xff]  }
 0x500   : > { %v10999_v59 = vpop.f32.mrf.mxu0  ;;  %6928 = vmatmul.mubr.bf16.gmra.mxu0 %v17269_v20  ;;  %v11118_v9 = vpop.f32.mrf.mxu1 }
 0x501   : > { %v15994_v61 = vadd.f32 %v11110_v45, %v10998_v58  ;;  %6935 = vmatprep.mubr.bf16.mxu0 %v17270_v1  ;;  %v11119_v53 = vadd.f32 %v11118_v9, %v11117_v7  ;;  %v6447_v45 = vld [vmem:[#allocation7 + $0x100] sm:$0x11] }
 0x502   : > { %v11000_v3 = vpop.f32.mrf.mxu0  ;;  %v11120_v25 = vpop.f32.mrf.mxu1  ;;  %v10543_v27 = vcombine.high %v6447_v45, %v6447_v45 }
 0x503   : > { %v11001_v52 = vadd.f32 %v11000_v3, %v10999_v59 }
 0x504   : > { %v11002_v11 = vpop.f32.mrf.mxu0  ;;  %v11121_v15 = vpop.f32.mrf.mxu1  ;;  %v6677_v8 = vrot.slane %v10543_v27, 2 }
 0x505   : > { %v15997_v13 = vadd.f32 %v11113_v54, %v11001_v52  ;;  %v11122_v47 = vadd.f32 %v11121_v15, %v11120_v25  ;;  %v17275_v25 = vrot.slane %v15582_v19, 2 }
 0x506   : > { %v11003_v0 = vpop.f32.mrf.mxu0  ;;  %v11123_v42 = vpop.f32.mrf.mxu1  ;;  %7375 = vmatmul.mubr.bf16.gmra.mxu1 %v15779_v37 }
 0x507   : > { %v11004_v55 = vadd.f32 %v11003_v0, %v11002_v11  ;;  %7382 = vmatprep.mubr.bf16.mxu1 %v15784_v4  ;;  %v10562_v4 = vcombine.low %v7001_v14, %v7001_v14  ;;  %v6678_v52 = vsel %vm3966_vm1, %v17275_v25, %v6677_v8 }
 0x508   : > { %v11005_v26 = vpop.f32.mrf.mxu0  ;;  %6936 = vmatmul.mubr.bf16.gmra.mxu0 %v15773_v44  ;;  %v11124_v40 = vpop.f32.mrf.mxu1  ;;  %v17272_v44 = vrot.slane %v15582_v19, 3  ;;  %v12243_v19 = vld [vmem:[%s15881_s18 + $0x4] ss:$16 sps:$4 sm:$0xff]  }
 0x509   : > { %v16002_v46 = vadd.f32 %v11116_v39, %v11004_v55  ;;  %6943 = vmatprep.mubr.bf16.mxu0 %v17271_v50  ;;  %v11125_v51 = vadd.f32 %v11124_v40, %v11123_v42  ;;  %v7106_v63 = vrot.slane %v10562_v4, 3  ;;  %v12244_v42 = vld [vmem:[%s15881_s18 + $0x8] ss:$16 sps:$4 sm:$0xff]  }
 0x50a   : > { %v11006_v48 = vpop.f32.mrf.mxu0  ;;  %v11126_v34 = vpop.f32.mrf.mxu1  ;;  %v7109_v17 = vsel %vm4387_vm5, %v17272_v44, %v7108_v2 }
 0x50b   : > { %v11007_v6 = vadd.f32 %v11006_v48, %v11005_v26  ;;  %v12250_v26 = vld [vmem:[%s15881_s18 + $0x2c] ss:$16 sps:$4 sm:$0xff]  }
 0x50c   : > { %v11008_v56 = vpop.f32.mrf.mxu0  ;;  %v11127_v29 = vpop.f32.mrf.mxu1 }
 0x50d   : > { %v16005_v37 = vadd.f32 %v11119_v53, %v11007_v6  ;;  %v11128_v30 = vadd.f32 %v11127_v29, %v11126_v34  ;;  %v10542_v53 = vcombine.low %v6447_v45, %v6447_v45 }
 0x50e   : > { %v11009_v49 = vpop.f32.mrf.mxu0  ;;  %v11129_v16 = vpop.f32.mrf.mxu1  ;;  %7383 = vmatmul.mubr.bf16.gmra.mxu1 %v15801_v31 }
 0x50f   : > { %v11010_v18 = vadd.f32 %v11009_v49, %v11008_v56  ;;  %7390 = vmatprep.mubr.bf16.mxu1 %v7109_v17  ;;  %v6675_v55 = vrot.slane %v10542_v53, 2  ;;  %v12256_v17 = vld [vmem:[%s15881_s18 + $0x4c] ss:$16 sps:$4 sm:$0xff]  }
 0x510   : > { %v11011_v32 = vpop.f32.mrf.mxu0  ;;  %6944 = vmatmul.mubr.bf16.gmra.mxu0 %v15787_v35  ;;  %v11130_v33 = vpop.f32.mrf.mxu1  ;;  %v17274_v35 = vrot.slane %v15585_v41, 3 }
 0x511   : > { %v16012_v12 = vadd.f32 %v11122_v47, %v11010_v18  ;;  %6951 = vmatprep.mubr.bf16.mxu0 %v17273_v21  ;;  %v11131_v54 = vadd.f32 %v11130_v33, %v11129_v16  ;;  %v6676_v6 = vsel %vm3966_vm1, %v6671_v23, %v6675_v55  ;;  %v12252_v16 = vld [vmem:[%s15881_s18 + $0x28] ss:$16 sps:$4 sm:$0xff]   ;;  %v12249_v33 = vld [vmem:[%s15881_s18 + $0x24] ss:$16 sps:$4 sm:$0xff]  }
 0x512   : > { %v11012_v57 = vpop.f32.mrf.mxu0  ;;  %v11132_v24 = vpop.f32.mrf.mxu1  ;;  %v7107_v59 = vsel %vm4387_vm5, %v17274_v35, %v7106_v63  ;;  %v12264_v55 = vld [vmem:[%s15881_s18 + $0x68] ss:$16 sps:$4 sm:$0x7f]  }
 0x513   : > { %v11013_v31 = vadd.f32 %v11012_v57, %v11011_v32  ;;  %v12241_v32 = vld [vmem:[%s15881_s18] ss:$16 sps:$4 sm:$0xff]  }
 0x514   : > { %v11014_v28 = vpop.f32.mrf.mxu0  ;;  %v11133_v39 = vpop.f32.mrf.mxu1 }
 0x515   : > { %v16016_v7 = vadd.f32 %v11125_v51, %v11013_v31  ;;  %v11134_v58 = vadd.f32 %v11133_v39, %v11132_v24  ;;  %v12258_v39 = vld [vmem:[%s15881_s18 + $0x48] ss:$16 sps:$4 sm:$0xff]  }
 0x516   : > { %v11015_v20 = vpop.f32.mrf.mxu0  ;;  %v11135_v9 = vpop.f32.mrf.mxu1  ;;  %7391 = vmatmul.mubr.bf16.gmra.mxu1 %v7107_v59  ;;  %v12247_v59 = vld [vmem:[%s15881_s18 + $0x20] ss:$16 sps:$4 sm:$0xff]  }
 0x517   : > { %v11016_v1 = vadd.f32 %v11015_v20, %v11014_v28  ;;  %10623 = vmatprep.mubr.msk.bf16.mxu1 %vm8242_vm9, %v12246_v22 }
 0x518   : > { %v11017_v3 = vpop.f32.mrf.mxu0  ;;  %6952 = vmatmul.mubr.bf16.gmra.mxu0 %v15806_v36  ;;  %v11136_v14 = vpop.f32.mrf.mxu1 }
 0x519   : > { %v16026_v11 = vadd.f32 %v11128_v30, %v11016_v1  ;;  %6959 = vmatprep.mubr.bf16.mxu0 %v6678_v52  ;;  %v11137_v15 = vadd.f32 %v11136_v14, %v11135_v9  ;;  %v12255_v1 = vld [vmem:[%s15881_s18 + $0x44] ss:$16 sps:$4 sm:$0xff]  }
 0x51a   : > { %v11018_v47 = vpop.f32.mrf.mxu0  ;;  %v11138_v0 = vpop.f32.mrf.mxu1 }
 0x51b   : > { %v11019_v10 = vadd.f32 %v11018_v47, %v11017_v3 }
 0x51c   : > { %v11020_v40 = vpop.f32.mrf.mxu0  ;;  %v11139_v50 = vpop.f32.mrf.mxu1 }
 0x51d   : > { %v16030_v51 = vadd.f32 %v11131_v54, %v11019_v10  ;;  %v11140_v36 = vadd.f32 %v11139_v50, %v11138_v0  ;;  %v12253_v50 = vld [vmem:[%s15881_s18 + $0x40] ss:$16 sps:$4 sm:$0xff]  }
 0x51e   : > { %v11021_v48 = vpop.f32.mrf.mxu0  ;;  %v11141_v34 = vpop.f32.mrf.mxu1  ;;  %8353 = vmatmul.mubr.bf16.vlgmr.msra.gmra.mxu1 %v12244_v42 }
 0x51f   : > { %v11022_v2 = vadd.f32 %v11021_v48, %v11020_v40  ;;  %10624 = vmatprep.mubr.msk.bf16.mxu1 %vm8242_vm9, %v12250_v26  ;;  %v12261_v48 = vld [vmem:[%s15881_s18 + $0x64] ss:$16 sps:$4 sm:$0x7f]  }
 0x520   : > { %v11023_v56 = vpop.f32.mrf.mxu0  ;;  %6960 = vmatmul.mubr.bf16.gmra.mxu0 %v6676_v6  ;;  %v11142_v29 = vpop.f32.mrf.mxu1 }
 0x521   : > { %v16037_v30 = vadd.f32 %v11134_v58, %v11022_v2  ;;  %v11143_v45 = vadd.f32 %v11142_v29, %v11141_v34  ;;  %8287 = vmatprep.mubr.bf16.mxu0 %v12243_v19  ;;  %v12262_v58 = vld [vmem:[%s15881_s18 + $0x6c] ss:$16 sps:$4 sm:$0x7f]  }
 0x522   : > { %v11024_v4 = vpop.f32.mrf.mxu0  ;;  %v11144_v49 = vpop.f32.mrf.mxu1 }
 0x523   : > { %v11025_v44 = vadd.f32 %v11024_v4, %v11023_v56 }
 0x524   : > { %v11026_v18 = vpop.f32.mrf.mxu0  ;;  %v11145_v41 = vpop.f32.mrf.mxu1 }
 0x525   : > { %v16042_v23 = vadd.f32 %v11137_v15, %v11025_v44  ;;  %v11146_v25 = vadd.f32 %v11145_v41, %v11144_v49 }
 0x526   : > { %v11027_v27 = vpop.f32.mrf.mxu0  ;;  %v11147_v21 = vpop.f32.mrf.mxu1  ;;  %8361 = vmatmul.mubr.bf16.gmra.mxu1 %v12252_v16 }
 0x527   : > { %v11028_v54 = vadd.f32 %v11027_v27, %v11026_v18  ;;  %10625 = vmatprep.mubr.msk.bf16.mxu1 %vm8242_vm9, %v12256_v17 }
 0x528   : > { %v11029_v63 = vpop.f32.mrf.mxu0  ;;  %8288 = vmatmul.mubr.bf16.vlgmr.msra.gmra.mxu0 %v12241_v32  ;;  %v11148_v57 = vpop.f32.mrf.mxu1  ;;  %v12259_v32 = vld [vmem:[%s15881_s18 + $0x60] ss:$16 sps:$4 sm:$0x7f]   ;;  %s17292_s18 = sand.u32 1, %s12728_s30  }
 0x529   : > { %v16046_v24 = vadd.f32 %v11140_v36, %v11028_v54  ;;  %v11149_v31 = vadd.f32 %v11148_v57, %v11147_v21  ;;  %8295 = vmatprep.mubr.bf16.mxu0 %v12249_v33  ;;  %s17048_s0 = scalar_lea.sflag [#allocation9], %s17292_s18 }
 0x52a   : > { %v11030_v22 = vpop.f32.mrf.mxu0  ;;  %v11150_v28 = vpop.f32.mrf.mxu1 }
 0x52b   : > { %v11031_v8 = vadd.f32 %v11030_v22, %v11029_v63 }
 0x52c   : > { %v11032_v35 = vpop.f32.mrf.mxu0  ;;  %v11151_v20 = vpop.f32.mrf.mxu1 }
 0x52d   : > { %v16051_v9 = vadd.f32 %v11143_v45, %v11031_v8  ;;  %v11152_v6 = vadd.f32 %v11151_v20, %v11150_v28 }
 0x52e   : > { %v11033_v53 = vpop.f32.mrf.mxu0  ;;  %v11153_v3 = vpop.f32.mrf.mxu1  ;;  %8369 = vmatmul.mubr.bf16.gmra.mxu1 %v12258_v39 }
 0x52f   : > { %v11034_v52 = vadd.f32 %v11033_v53, %v11032_v35  ;;  %10626 = vmatprep.mubr.msk.bf16.mxu1 %vm8242_vm9, %v12262_v58  ;;  %vm17286_vm9 = vcmask 1043968  }
 0x530   : > { %v11035_v14 = vpop.f32.mrf.mxu0  ;;  %8296 = vmatmul.mubr.bf16.gmra.mxu0 %v12247_v59  ;;  %v11154_v15 = vpop.f32.mrf.mxu1  ;;  %vm17287_vm15 = vmmov %vm17286_vm9 }
 0x531   : > { %v16055_v47 = vadd.f32 %v11146_v25, %v11034_v52  ;;  %v11155_v0 = vadd.f32 %v11154_v15, %v11153_v3  ;;  %8303 = vmatprep.mubr.bf16.mxu0 %v12255_v1 }
 0x532   : > { %v11036_v42 = vpop.f32.mrf.mxu0  ;;  %v11156_v10 = vpop.f32.mrf.mxu1 }
 0x533   : > { %v11037_v26 = vadd.f32 %v11036_v42, %v11035_v14 }
 0x534   : > { %v11038_v40 = vpop.f32.mrf.mxu0  ;;  %v11157_v36 = vpop.f32.mrf.mxu1 }
 0x535   : > { %v16059_v19 = vadd.f32 %v11149_v31, %v11037_v26  ;;  %v11158_v54 = vadd.f32 %v11157_v36, %v11156_v10 }
 0x536   : > { %v11039_v34 = vpop.f32.mrf.mxu0  ;;  %v11159_v2 = vpop.f32.mrf.mxu1  ;;  %8377 = vmatmul.mubr.bf16.gmra.mxu1 %v12264_v55 }
 0x537   : > { %v11040_v56 = vadd.f32 %v11039_v34, %v11038_v40 }
 0x538   : > { %v11041_v29 = vpop.f32.mrf.mxu0  ;;  %8304 = vmatmul.mubr.bf16.gmra.mxu0 %v12253_v50  ;;  %v11160_v45 = vpop.f32.mrf.mxu1 }
 0x539   : > { %v16062_v4 = vadd.f32 %v11152_v6, %v11040_v56  ;;  %v11161_v49 = vadd.f32 %v11160_v45, %v11159_v2  ;;  %8311 = vmatprep.mubr.bf16.mxu0 %v12261_v48 }
 0x53a   : > { %v11042_v16 = vpop.f32.mrf.mxu0  ;;  %v11162_v44 = vpop.f32.mrf.mxu1 }
 0x53b   : > { %v11043_v17 = vadd.f32 %v11042_v16, %v11041_v29 }
 0x53c   : > { %v11044_v18 = vpop.f32.mrf.mxu0  ;;  %v11163_v41 = vpop.f32.mrf.mxu1 }
 0x53d   : > { %v16065_v33 = vadd.f32 %v11155_v0, %v11043_v17  ;;  %v11164_v3 = vadd.f32 %v11163_v41, %v11162_v44 }
 0x53e   : > { %v11045_v27 = vpop.f32.mrf.mxu0  ;;  %v11165_v21 = vpop.f32.mrf.mxu1 }
 0x53f   : > { %v11046_v63 = vadd.f32 %v11045_v27, %v11044_v18 }
 0x540   : > { %v11047_v57 = vpop.f32.mrf.mxu0  ;;  %8312 = vmatmul.mubr.bf16.gmra.mxu0 %v12259_v32  ;;  %v11166_v31 = vpop.f32.mrf.mxu1 }
 0x541   : > { %v16067_v22 = vadd.f32 %v11158_v54, %v11046_v63  ;;  %v11167_v28 = vadd.f32 %v11166_v31, %v11165_v21 }
 0x542   : > { %v11048_v39 = vpop.f32.mrf.mxu0  ;;  %v11168_v8 = vpop.f32.mrf.mxu1 }
 0x543   : > { %v11049_v58 = vadd.f32 %v11048_v39, %v11047_v57 }
 0x544   : > { %v11050_v35 = vpop.f32.mrf.mxu0  ;;  %v11169_v59 = vpop.f32.mrf.mxu1 }
 0x545   : > { %v16069_v20 = vadd.f32 %v11161_v49, %v11049_v58  ;;  %v11170_v34 = vadd.f32 %v11169_v59, %v11168_v8 }
 0x546   : > { %v11051_v1 = vpop.f32.mrf.mxu0  ;;  %v11171_v53 = vpop.f32.mrf.mxu1 }
 0x547   : > { %v11052_v25 = vadd.f32 %v11051_v1, %v11050_v35 }
 0x548   : > { %v11053_v52 = vpop.f32.mrf.mxu0  ;;  %v11172_v14 = vpop.f32.mrf.mxu1 }
 0x549   : > { %v16071_v15 = vadd.f32 %v11164_v3, %v11052_v25  ;;  %v11173_v0 = vadd.f32 %v11172_v14, %v11171_v53 }
 0x54a   : > { %v11054_v42 = vpop.f32.mrf.mxu0  ;;  %v11174_v10 = vpop.f32.mrf.mxu1 }
 0x54b   : > { %v11055_v55 = vadd.f32 %v11054_v42, %v11053_v52 }
 0x54c   : > { %v11056_v26 = vpop.f32.mrf.mxu0  ;;  %v11175_v40 = vpop.f32.mrf.mxu1 }
 0x54d   : > { %v16073_v50 = vadd.f32 %v11167_v28, %v11055_v55  ;;  %v11176_v54 = vadd.f32 %v11175_v40, %v11174_v10 }
 0x54e   : > { %v11057_v36 = vpop.f32.mrf.mxu0  ;;  %v11177_v48 = vpop.f32.mrf.mxu1 }
 0x54f   : > { %v11058_v2 = vadd.f32 %v11057_v36, %v11056_v26 }
 0x550   : > { %v11059_v6 = vpop.f32.mrf.mxu0  ;;  %v11178_v56 = vpop.f32.mrf.mxu1 }
 0x551   : > { %v16075_v29 = vadd.f32 %v11170_v34, %v11058_v2  ;;  %v11179_v45 = vadd.f32 %v11178_v56, %v11177_v48 }
 0x552   : > { %v11060_v49 = vpop.f32.mrf.mxu0  ;;  %v11180_v16 = vpop.f32.mrf.mxu1 }
 0x553   : > { %v11061_v44 = vadd.f32 %v11060_v49, %v11059_v6 }
 0x554   : > { %v11062_v17 = vpop.f32.mrf.mxu0  ;;  %v11181_v18 = vpop.f32.mrf.mxu1 }
 0x555   : > { %v16077_v32 = vadd.f32 %v11173_v0, %v11061_v44  ;;  %v11182_v41 = vadd.f32 %v11181_v18, %v11180_v16 }
 0x556   : > { %v11063_v27 = vpop.f32.mrf.mxu0  ;;  %v11183_v21 = vpop.f32.mrf.mxu1 }
 0x557   : > { %v11064_v63 = vadd.f32 %v11063_v27, %v11062_v17 }
 0x558   : > { %v11065_v57 = vpop.f32.mrf.mxu0  ;;  %v11184_v31 = vpop.f32.mrf.mxu1 }
 0x559   : > { %v16079_v28 = vadd.f32 %v11176_v54, %v11064_v63  ;;  %v11185_v39 = vadd.f32 %v11184_v31, %v11183_v21  ;;  %v16093_v63 = vld [vmem:[%s17095_s7] ss:$0 sm:$0xff] }
 0x55a   : > { %v11066_v8 = vpop.f32.mrf.mxu0  ;;  %v11186_v58 = vpop.f32.mrf.mxu1 }
 0x55b   : > { %v11067_v35 = vadd.f32 %v11066_v8, %v11065_v57 }
 0x55c   : > { %v11068_v59 = vpop.f32.mrf.mxu0  ;;  %v11187_v1 = vpop.f32.mrf.mxu1 }
 0x55d   : > { %v16081_v53 = vadd.f32 %v11179_v45, %v11067_v35  ;;  %v11188_v3 = vadd.f32 %v11187_v1, %v11186_v58 }
 0x55e   : > { %v11069_v25 = vpop.f32.mrf.mxu0  ;;  %v11317_v52 = vpop.f32.mrf.mxu1 }
 0x55f   : > { %v11070_v14 = vadd.f32 %v11069_v25, %v11068_v59 }
 0x560   : > { %v11071_v0 = vpop.f32.mrf.mxu0  ;;  %v11318_v42 = vpop.f32.mrf.mxu1 }
 0x561   : > { %v16083_v10 = vadd.f32 %v11182_v41, %v11070_v14  ;;  %v11319_v21 = vadd.f32 %v11318_v42, %v11317_v52 }
 0x562   : > { %v11072_v55 = vpop.f32.mrf.mxu0  ;;  %v11320_v26 = vpop.f32.mrf.mxu1 }
 0x563   : > { %v11073_v40 = vadd.f32 %v11072_v55, %v11071_v0 }
 0x564   : > { %v11074_v36 = vpop.f32.mrf.mxu0  ;;  %v11321_v48 = vpop.f32.mrf.mxu1 }
 0x565   : > { %v16085_v34 = vadd.f32 %v11185_v39, %v11073_v40  ;;  %v11322_v59 = vadd.f32 %v11321_v48, %v11320_v26 }
 0x566   : > { %v11075_v2 = vpop.f32.mrf.mxu0  ;;  %v11323_v6 = vpop.f32.mrf.mxu1 }
 0x567   : > { %v11076_v56 = vadd.f32 %v11075_v2, %v11074_v36 }
 0x568   : > { %v11205_v45 = vpop.f32.mrf.mxu0  ;;  %v11324_v49 = vpop.f32.mrf.mxu1 }
 0x569   : > { %v16087_v16 = vadd.f32 %v11188_v3, %v11076_v56  ;;  %v11325_v40 = vadd.f32 %v11324_v49, %v11323_v6 }
 0x56a   : > { %v11206_v44 = vpop.f32.mrf.mxu0  ;;  %v11326_v17 = vpop.f32.mrf.mxu1 }
 0x56b   : > { %v11207_v18 = vadd.f32 %v11206_v44, %v11205_v45 }
 0x56c   : > { %v11208_v27 = vpop.f32.mrf.mxu0  ;;  %v11327_v41 = vpop.f32.mrf.mxu1 }
 0x56d   : > { %v6968_v54 = vadd.f32 %v11207_v18, %v15973_v62 }
 0x56e   : > { %v11209_v57 = vpop.f32.mrf.mxu0  ;;  %v11329_v31 = vpop.f32.mrf.mxu1 }
 0x56f   : > { %v7399_v39 = vadd.f32 %v11319_v21, %v6968_v54  ;;  %v11210_v8 = vadd.f32 %v11209_v57, %v11208_v27  ;;  %v11328_v27 = vadd.f32 %v11327_v41, %v11326_v17 }
 0x570   : > { %v11211_v58 = vpop.f32.mrf.mxu0  ;;  %v11330_v35 = vpop.f32.mrf.mxu1 }
 0x571   : > { %v7438_v1 = vadd.f32 %v16093_v63, %v7399_v39  ;;  %v6969_v3 = vadd.f32 %v11210_v8, %v15978_v60 }
 0x572   : > { %v11212_v25 = vpop.f32.mrf.mxu0  ;;  %v11332_v52 = vpop.f32.mrf.mxu1 }
 0x573   : > { %v7502_v14 = vmul.f32 0.70710677, %v7438_v1  ;;  %v7400_v62 = vadd.f32 %v11322_v59, %v6969_v3  ;;  %v11213_v0 = vadd.f32 %v11212_v25, %v11211_v58  ;;  %v11331_v59 = vadd.f32 %v11330_v35, %v11329_v31 }
 0x574   : > { %v11214_v42 = vpop.f32.mrf.mxu0  ;;  %v11333_v55 = vpop.f32.mrf.mxu1 }
 0x575   : > { %12573 = verf.f32 %v7502_v14  ;;  %v7439_v36 = vadd.f32 %v16093_v63, %v7400_v62  ;;  %v6970_v2 = vadd.f32 %v11213_v0, %v15981_v38 }
 0x576   : > { %v11215_v56 = vpop.f32.mrf.mxu0  ;;  %v11335_v45 = vpop.f32.mrf.mxu1 }
 0x577   : > { %v7503_v26 = vmul.f32 0.70710677, %v7439_v36  ;;  %v7401_v48 = vadd.f32 %v11325_v40, %v6970_v2  ;;  %v11216_v44 = vadd.f32 %v11215_v56, %v11214_v42  ;;  %v11334_v40 = vadd.f32 %v11333_v55, %v11332_v52 }
 0x578   : > { %v11217_v18 = vpop.f32.mrf.mxu0  ;;  %v11336_v60 = vpop.f32.mrf.mxu1 }
 0x579   : > { %12575 = verf.f32 %v7503_v26  ;;  %v7440_v21 = vadd.f32 %v16093_v63, %v7401_v48  ;;  %v6971_v54 = vadd.f32 %v11216_v44, %v15986_v43 }
 0x57a   : > { %v11218_v57 = vpop.f32.mrf.mxu0  ;;  %v11338_v39 = vpop.f32.mrf.mxu1 }
 0x57b   : > { %v7504_v6 = vmul.f32 0.70710677, %v7440_v21  ;;  %v7402_v49 = vadd.f32 %v11328_v27, %v6971_v54  ;;  %v11219_v8 = vadd.f32 %v11218_v57, %v11217_v18 }
 0x57c   : > { %v11220_v58 = vpop.f32.mrf.mxu0  ;;  %v11339_v38 = vpop.f32.mrf.mxu1 }
 0x57d   : > { %12577 = verf.f32 %v7504_v6  ;;  %v16102_v3 = vadd.f32 %v16093_v63, %v7402_v49  ;;  %v6972_v25 = vadd.f32 %v11219_v8, %v15989_v5  ;;  %v7470_v5 = vmul.f32 0.5, %v7438_v1 }
 0x57e   : > { %v11221_v14 = vpop.f32.mrf.mxu0  ;;  %v11341_v17 = vpop.f32.mrf.mxu1  ;;  %v11337_v49 = vadd.f32 %v11336_v60, %v11335_v45  ;;  %v7471_v1 = vmul.f32 0.5, %v7439_v36  ;;  %v7472_v36 = vmul.f32 0.5, %v7440_v21 }
 0x57f   : > { %v7505_v41 = vmul.f32 0.70710677, %v16102_v3  ;;  %v7403_v62 = vadd.f32 %v11331_v59, %v6972_v25  ;;  %v11222_v43 = vadd.f32 %v11221_v14, %v11220_v58 }
 0x580   : > { %v11223_v0 = vpop.f32.mrf.mxu0  ;;  %v11342_v42 = vpop.f32.mrf.mxu1 }
 0x581   : > { %12579 = verf.f32 %v7505_v41  ;;  %v16107_v2 = vadd.f32 %v16093_v63, %v7403_v62  ;;  %v6973_v31 = vadd.f32 %v11222_v43, %v15994_v61  ;;  %v11343_v21 = vadd.f32 %v11342_v42, %v11341_v17 }
 0x582   : > { %v12574_v35 = vpop.eup %12573  ;;  %v11224_v56 = vpop.f32.mrf.mxu0 }
 0x583   : > { %v16110_v26 = vpop.f32.mrf.mxu1  ;;  %v7566_v48 = vadd.f32 1.0, %v12574_v35  ;;  %v7506_v44 = vmul.f32 0.70710677, %v16107_v2  ;;  %v7404_v18 = vadd.f32 %v11334_v40, %v6973_v31  ;;  %v11225_v27 = vadd.f32 %v11224_v56, %v11223_v0 }
 0x584   : > { %v11226_v54 = vpop.f32.mrf.mxu0  ;;  %v11340_v40 = vadd.f32 %v11339_v38, %v11338_v39 }
 0x585   : > { %v11345_v57 = vpop.f32.mrf.mxu1  ;;  %v7598_v6 = vmul.f32 %v7566_v48, %v7470_v5  ;;  %12581 = verf.f32 %v7506_v44  ;;  %v16114_v52 = vadd.f32 %v16093_v63, %v7404_v18  ;;  %v6974_v61 = vadd.f32 %v11225_v27, %v15997_v13 }
 0x586   : > { %v12576_v55 = vpop.eup %12575  ;;  %v11227_v8 = vpop.f32.mrf.mxu0 }
 0x587   : > { %v16117_v58 = vpop.f32.mrf.mxu1  ;;  %7632 = vst [vmem:[#allocation3 + $0x2] sm:$0xff] %v7598_v6  ;;  %v7567_v59 = vadd.f32 1.0, %v12576_v55  ;;  %v7507_v25 = vmul.f32 0.70710677, %v16114_v52  ;;  %v11228_v14 = vadd.f32 %v11227_v8, %v11226_v54  ;;  %v7405_v41 = vadd.f32 %v11337_v49, %v6974_v61 }
 0x588   : > { %v11229_v62 = vpop.f32.mrf.mxu0 }
 0x589   : > { %v11348_v43 = vpop.f32.mrf.mxu1  ;;  %v7599_v0 = vmul.f32 %v7567_v59, %v7471_v1  ;;  %12583 = verf.f32 %v7507_v25  ;;  %v6975_v31 = vadd.f32 %v11228_v14, %v16002_v46  ;;  %v16122_v13 = vadd.f32 %v16093_v63, %v7405_v41 }
 0x58a   : > { %v12578_v45 = vpop.eup %12577  ;;  %v11230_v60 = vpop.f32.mrf.mxu0  ;;  %v17276_v59 = vmov -inf   ;;  %v7473_v25 = vmul.f32 0.5, %v16102_v3  ;;  %v11346_v3 = vadd.f32 %v11345_v57, %v16110_v26 }
 0x58b   : > { %v16124_v35 = vpop.f32.mrf.mxu1  ;;  %7633 = vst [vmem:[#allocation3 + $0xa] sm:$0xff] %v7599_v0  ;;  %v7568_v56 = vadd.f32 1.0, %v12578_v45  ;;  %v7406_v5 = vadd.f32 %v11340_v40, %v6975_v31  ;;  %v11231_v48 = vadd.f32 %v11230_v60, %v11229_v62  ;;  %v7508_v44 = vmul.f32 0.70710677, %v16122_v13 }
 0x58c   : > { %v11232_v18 = vpop.f32.mrf.mxu0 }
 0x58d   : > { %v16127_v27 = vpop.f32.mrf.mxu1  ;;  %v16129_v39 = vmul.f32 %v7568_v56, %v7472_v36  ;;  %v16132_v46 = vadd.f32 %v16093_v63, %v7406_v5  ;;  %v6976_v38 = vadd.f32 %v11231_v48, %v16005_v37  ;;  %12585 = verf.f32 %v7508_v44 }
 0x58e   : > { %v12580_v54 = vpop.eup %12579  ;;  %v7664_v55 = vld [vmem:[#allocation3] sm:$0xff]  ;;  %v11233_v61 = vpop.f32.mrf.mxu0  ;;  %v7474_v5 = vmul.f32 0.5, %v16107_v2 }
 0x58f   : > { %v7696_v49 = vld [vmem:[#allocation3 + $0x1] sm:$0xff]  ;;  %v16135_v8 = vpop.f32.mrf.mxu1  ;;  %10117 = vst [vmem:[#allocation3] sm:$0x1] %v17276_v59  ;;  %7634 = vst [vmem:[#allocation3 + $0x12] sm:$0xff] %v16129_v39  ;;  %v7569_v14 = vadd.f32 1.0, %v12580_v54  ;;  %v7407_v62 = vadd.f32 %v11343_v21, %v6976_v38  ;;  %v11234_v37 = vadd.f32 %v11233_v61, %v11232_v18 }
 0x590   : > { %v7728_v1 = vmax.f32 %v7664_v55, %v7696_v49  ;;  %v7509_v41 = vmul.f32 0.70710677, %v16132_v46  ;;  %v11235_v40 = vpop.f32.mrf.mxu0 }
 0x591   : > { %v16141_v31 = vpop.f32.mrf.mxu1  ;;  %v16143_v17 = vmul.f32 %v7569_v14, %v7473_v25  ;;  %v16148_v48 = vadd.f32 %v16093_v63, %v7407_v62  ;;  %v6977_v44 = vadd.f32 %v11234_v37, %v16012_v12  ;;  %v11349_v12 = vadd.f32 %v11348_v43, %v16117_v58 }
 0x592   : > { %v7792_v45 = vmax.f32 %v7728_v1, %v7598_v6  ;;  %12587 = verf.f32 %v7509_v41  ;;  %v12582_v42 = vpop.eup %12581  ;;  %v7665_v60 = vld [vmem:[#allocation3 + $0x8] sm:$0xff]  ;;  %v11236_v18 = vpop.f32.mrf.mxu0 }
 0x593   : > { %v7697_v36 = vld [vmem:[#allocation3 + $0x9] sm:$0xff]  ;;  %v16151_v38 = vpop.f32.mrf.mxu1  ;;  %7635 = vst [vmem:[#allocation3 + $0x1a] sm:$0xff] %v16143_v17  ;;  %v7570_v55 = vadd.f32 1.0, %v12582_v42  ;;  %v11237_v49 = vadd.f32 %v11236_v18, %v11235_v40  ;;  %v7510_v21 = vmul.f32 0.70710677, %v16148_v48  ;;  %v7408_v61 = vadd.f32 %v11346_v3, %v6977_v44 }
 0x594   : > { %v7824_v56 = vld [vmem:[#allocation3 + $0x3] sm:$0xff]  ;;  %v7729_v6 = vmax.f32 %v7665_v60, %v7697_v36  ;;  %v11238_v2 = vpop.f32.mrf.mxu0  ;;  %v7475_v40 = vmul.f32 0.5, %v16114_v52 }
 0x595   : > { %v7856_v54 = vmax.f32 %v7792_v45, %v7824_v56  ;;  %v16155_v1 = vpop.f32.mrf.mxu1  ;;  %v16157_v57 = vmul.f32 %v7570_v55, %v7474_v5  ;;  %v6978_v25 = vadd.f32 %v11237_v49, %v16016_v7  ;;  %12589 = verf.f32 %v7510_v21 }
 0x596   : > { %v7793_v26 = vmax.f32 %v7729_v6, %v7599_v0  ;;  %v12584_v14 = vpop.eup %12583  ;;  %v7666_v41 = vld [vmem:[#allocation3 + $0x10] sm:$0xff]  ;;  %v16163_v45 = vadd.f32 %v16093_v63, %v7408_v61  ;;  %v11239_v42 = vpop.f32.mrf.mxu0  ;;  %v11352_v49 = vadd.f32 %v16127_v27, %v16124_v35  ;;  %v7477_v35 = vmul.f32 0.5, %v16132_v46 }
 0x597   : > { %7888 = vst [vmem:[#allocation5] sm:$0xff] %v7856_v54  ;;  %v7698_v62 = vld [vmem:[#allocation3 + $0x11] sm:$0xff]  ;;  %v16165_v60 = vpop.f32.mrf.mxu1  ;;  %7636 = vst [vmem:[#allocation3 + $0x22] sm:$0xff] %v16157_v57  ;;  %v7571_v58 = vadd.f32 1.0, %v12584_v14  ;;  %v7409_v43 = vadd.f32 %v11349_v12, %v6978_v25  ;;  %v11240_v56 = vadd.f32 %v11239_v42, %v11238_v2  ;;  %v7476_v14 = vmul.f32 0.5, %v16122_v13 }
 0x598   : > { %v7825_v37 = vld [vmem:[#allocation3 + $0xb] sm:$0xff]  ;;  %v7730_v0 = vmax.f32 %v7666_v41, %v7698_v62  ;;  %v7511_v7 = vmul.f32 0.70710677, %v16163_v45  ;;  %v11241_v5 = vpop.f32.mrf.mxu0  ;;  %v11355_v13 = vadd.f32 %v16141_v31, %v16135_v8 }
 0x599   : > { %v7857_v36 = vmax.f32 %v7793_v26, %v7825_v37  ;;  %v16169_v3 = vpop.f32.mrf.mxu1  ;;  %v16172_v44 = vmul.f32 %v7571_v58, %v7475_v40  ;;  %v16175_v18 = vadd.f32 %v16093_v63, %v7409_v43  ;;  %v6979_v21 = vadd.f32 %v11240_v56, %v16026_v11 }
 0x59a   : > { %v7794_v52 = vmax.f32 %v7730_v0, %v16129_v39  ;;  %v7667_v6 = vld [vmem:[#allocation3 + $0x18] sm:$0xff]  ;;  %12591 = verf.f32 %v7511_v7  ;;  %v11242_v61 = vpop.f32.mrf.mxu0  ;;  %v12586_v26 = vpop.eup %12585 }
 0x59b   : > { %7889 = vst [vmem:[#allocation5 + $0x8] sm:$0xff] %v7857_v36  ;;  %v7699_v54 = vld [vmem:[#allocation3 + $0x19] sm:$0xff]  ;;  %v16180_v2 = vpop.f32.mrf.mxu1  ;;  %7637 = vst [vmem:[#allocation3 + $0x2a] sm:$0xff] %v16172_v44  ;;  %v7512_v25 = vmul.f32 0.70710677, %v16175_v18  ;;  %v7572_v41 = vadd.f32 1.0, %v12586_v26  ;;  %v7410_v62 = vadd.f32 %v11352_v49, %v6979_v21  ;;  %v11243_v37 = vadd.f32 %v11242_v61, %v11241_v5 }
 0x59c   : > { %v7826_v55 = vld [vmem:[#allocation3 + $0x13] sm:$0xff]  ;;  %v7731_v39 = vmax.f32 %v7667_v6, %v7699_v54  ;;  %v11244_v40 = vpop.f32.mrf.mxu0 }
 0x59d   : > { %v7858_v12 = vmax.f32 %v7794_v52, %v7826_v55  ;;  %v16185_v42 = vpop.f32.mrf.mxu1  ;;  %12593 = verf.f32 %v7512_v25  ;;  %v16189_v43 = vmul.f32 %v7572_v41, %v7476_v14  ;;  %v16194_v7 = vadd.f32 %v16093_v63, %v7410_v62 }
 0x59e   : > { %v7795_v11 = vmax.f32 %v7731_v39, %v16143_v17  ;;  %v7668_v0 = vld [vmem:[#allocation3 + $0x20] sm:$0xff]  ;;  %v6980_v56 = vadd.f32 %v11243_v37, %v16030_v51  ;;  %v11245_v17 = vpop.f32.mrf.mxu0 }
 0x59f   : > { %7890 = vst [vmem:[#allocation5 + $0x10] sm:$0xff] %v7858_v12  ;;  %v12588_v27 = vpop.eup %12587  ;;  %v7700_v36 = vld [vmem:[#allocation3 + $0x21] sm:$0xff]  ;;  %v16197_v5 = vpop.f32.mrf.mxu1  ;;  %v11246_v54 = vadd.f32 %v11245_v17, %v11244_v40  ;;  %7638 = vst [vmem:[#allocation3 + $0x32] sm:$0xff] %v16189_v43  ;;  %v7513_v55 = vmul.f32 0.70710677, %v16194_v7 }
 0x5a0   : > { %v7827_v58 = vld [vmem:[#allocation3 + $0x1b] sm:$0xff]  ;;  %v7732_v46 = vmax.f32 %v7668_v0, %v7700_v36  ;;  %v7573_v6 = vadd.f32 1.0, %v12588_v27  ;;  %v7411_v8 = vadd.f32 %v11355_v13, %v6980_v56  ;;  %v11247_v31 = vpop.f32.mrf.mxu0  ;;  %v11361_v36 = vadd.f32 %v16169_v3, %v16165_v60 }
 0x5a1   : > { %v7859_v52 = vmax.f32 %v7795_v11, %v7827_v58  ;;  %10118 = vst [vmem:[#allocation3 + $0x20] sm:$0x1] %v17276_v59  ;;  %v16203_v49 = vpop.f32.mrf.mxu1  ;;  %v11358_v59 = vadd.f32 %v16155_v1, %v16151_v38  ;;  %v6981_v61 = vadd.f32 %v11246_v54, %v16037_v30  ;;  %12595 = verf.f32 %v7513_v55 }
 0x5a2   : > { %v7796_v51 = vmax.f32 %v7732_v46, %v16157_v57  ;;  %v16206_v21 = vmul.f32 %v7573_v6, %v7477_v35  ;;  %v7669_v26 = vld [vmem:[#allocation3 + $0x28] sm:$0xff]  ;;  %v16212_v25 = vadd.f32 %v16093_v63, %v7411_v8  ;;  %v11248_v14 = vpop.f32.mrf.mxu0  ;;  %v12590_v57 = vpop.eup %12589  ;;  %v7478_v1 = vmul.f32 0.5, %v16148_v48 }
 0x5a3   : > { %7891 = vst [vmem:[#allocation5 + $0x18] sm:$0xff] %v7859_v52  ;;  %v7701_v39 = vld [vmem:[#allocation3 + $0x29] sm:$0xff]  ;;  %v16214_v41 = vpop.f32.mrf.mxu1  ;;  %v7412_v38 = vadd.f32 %v11358_v59, %v6981_v61  ;;  %v11249_v30 = vadd.f32 %v11248_v14, %v11247_v31  ;;  %v7574_v40 = vadd.f32 1.0, %v12590_v57 }
 0x5a4   : > { %v7828_v12 = vld [vmem:[#allocation3 + $0x23] sm:$0xff]  ;;  %v7733_v62 = vmax.f32 %v7669_v26, %v7701_v39  ;;  %7639 = vst [vmem:[#allocation3 + $0x3a] sm:$0xff] %v16206_v21  ;;  %v7514_v11 = vmul.f32 0.70710677, %v16212_v25  ;;  %v11250_v35 = vpop.f32.mrf.mxu0 }
 0x5a5   : > { %v7860_v37 = vmax.f32 %v7796_v51, %v7828_v12  ;;  %v16223_v27 = vpop.f32.mrf.mxu1  ;;  %v16229_v58 = vadd.f32 %v16093_v63, %v7412_v38  ;;  %v6982_v13 = vadd.f32 %v11249_v30, %v16042_v23  ;;  %v16232_v56 = vmul.f32 %v7574_v40, %v7478_v1 }
 0x5a6   : > { %v7797_v0 = vmax.f32 %v7733_v62, %v16172_v44  ;;  %12597 = verf.f32 %v7514_v11  ;;  %v11251_v48 = vpop.f32.mrf.mxu0  ;;  %v7670_v52 = vld [vmem:[#allocation3 + $0x30] sm:$0xff]  ;;  %v7479_v23 = vmul.f32 0.5, %v16163_v45  ;;  %v11364_v38 = vadd.f32 %v16185_v42, %v16180_v2 }
 0x5a7   : > { %7892 = vst [vmem:[#allocation5 + $0x20] sm:$0xff] %v7860_v37  ;;  %v16234_v17 = vpop.f32.mrf.mxu1  ;;  %v12592_v46 = vpop.eup %12591  ;;  %v7702_v6 = vld [vmem:[#allocation3 + $0x31] sm:$0xff]  ;;  %v7515_v54 = vmul.f32 0.70710677, %v16229_v58  ;;  %v7413_v55 = vadd.f32 %v11361_v36, %v6982_v13  ;;  %v11252_v60 = vadd.f32 %v11251_v48, %v11250_v35  ;;  %7640 = vst [vmem:[#allocation3 + $0x42] sm:$0xff] %v16232_v56  ;;  %v7480_v40 = vmul.f32 0.5, %v16175_v18 }
 0x5a8   : > { %v7829_v44 = vld [vmem:[#allocation3 + $0x2b] sm:$0xff]  ;;  %v7734_v3 = vmax.f32 %v7670_v52, %v7702_v6  ;;  %v7575_v31 = vadd.f32 1.0, %v12592_v46  ;;  %v11253_v51 = vpop.f32.mrf.mxu0 }
 0x5a9   : > { %v7861_v8 = vmax.f32 %v7797_v0, %v7829_v44  ;;  %v16239_v59 = vpop.f32.mrf.mxu1  ;;  %12599 = verf.f32 %v7515_v54  ;;  %v16242_v26 = vadd.f32 %v16093_v63, %v7413_v55  ;;  %v6983_v39 = vadd.f32 %v11252_v60, %v16046_v24 }
 0x5aa   : > { %v7920_v61 = vld [vmem:[#allocation5] ss:$4 sm:$0xff]  ;;  %v12594_v12 = vpop.eup %12593  ;;  %v7798_v14 = vmax.f32 %v7734_v3, %v16189_v43  ;;  %v16250_v37 = vmul.f32 %v7575_v31, %v7479_v23  ;;  %v11254_v30 = vpop.f32.mrf.mxu0  ;;  %v7481_v31 = vmul.f32 0.5, %v16194_v7 }
 0x5ab   : > { %7935 = vst [vmem:[%s16246_s21] sm:$0xff] %v7920_v61  ;;  %7893 = vst [vmem:[#allocation5 + $0x28] sm:$0xff] %v7861_v8  ;;  %v7671_v45 = vld [vmem:[#allocation3 + $0x38] sm:$0xff]  ;;  %v16254_v1 = vpop.f32.mrf.mxu1  ;;  %v7576_v11 = vadd.f32 1.0, %v12594_v12  ;;  %v7516_v35 = vmul.f32 0.70710677, %v16242_v26  ;;  %v7414_v43 = vadd.f32 %v11364_v38, %v6983_v39  ;;  %v11255_v36 = vadd.f32 %v11254_v30, %v11253_v51 }
 0x5ac   : > { %v7703_v57 = vld [vmem:[#allocation3 + $0x39] sm:$0xff]  ;;  %7641 = vst [vmem:[#allocation3 + $0x4a] sm:$0xff] %v16250_v37  ;;  %v11256_v13 = vpop.f32.mrf.mxu0  ;;  %v11370_v12 = vadd.f32 %v16223_v27, %v16214_v41 }
 0x5ad   : > { %v7830_v62 = vld [vmem:[#allocation3 + $0x33] sm:$0xff]  ;;  %v7735_v24 = vmax.f32 %v7671_v45, %v7703_v57  ;;  %v16259_v48 = vpop.f32.mrf.mxu1  ;;  %v16262_v2 = vmul.f32 %v7576_v11, %v7480_v40  ;;  %12601 = verf.f32 %v7516_v35  ;;  %v16265_v42 = vadd.f32 %v16093_v63, %v7414_v43 }
 0x5ae   : > { %v7862_v0 = vmax.f32 %v7798_v14, %v7830_v62  ;;  %v6984_v18 = vadd.f32 %v11255_v36, %v16051_v9  ;;  %v11257_v52 = vpop.f32.mrf.mxu0  ;;  %v12596_v44 = vpop.eup %12595  ;;  %v7672_v54 = vld [vmem:[#allocation3 + $0x40] sm:$0xff] }
 0x5af   : > { %v7799_v46 = vmax.f32 %v7735_v24, %v16206_v21  ;;  %v16268_v6 = vpop.f32.mrf.mxu1  ;;  %v7704_v55 = vld [vmem:[#allocation3 + $0x41] sm:$0xff]  ;;  %7642 = vst [vmem:[#allocation3 + $0x52] sm:$0xff] %v16262_v2  ;;  %v11367_v21 = vadd.f32 %v16203_v49, %v16197_v5  ;;  %v11258_v3 = vadd.f32 %v11257_v52, %v11256_v13  ;;  %v7577_v51 = vadd.f32 1.0, %v12596_v44 }
 0x5b0   : > { %7894 = vst [vmem:[#allocation5 + $0x30] sm:$0xff] %v7862_v0  ;;  %v7831_v60 = vld [vmem:[#allocation3 + $0x3b] sm:$0xff]  ;;  %v7736_v8 = vmax.f32 %v7672_v54, %v7704_v55  ;;  %v11259_v61 = vpop.f32.mrf.mxu0  ;;  %v7517_v39 = vmul.f32 0.70710677, %v16265_v42 }
 0x5b1   : > { %v7863_v23 = vmax.f32 %v7799_v46, %v7831_v60  ;;  %v16274_v9 = vpop.f32.mrf.mxu1  ;;  %v7415_v14 = vadd.f32 %v11367_v21, %v6984_v18  ;;  %v6985_v45 = vadd.f32 %v11258_v3, %v16055_v47  ;;  %v16281_v5 = vmul.f32 %v7577_v51, %v7481_v31 }
 0x5b2   : > { %v7800_v57 = vmax.f32 %v7736_v8, %v16232_v56  ;;  %v11260_v49 = vpop.f32.mrf.mxu0  ;;  %12603 = verf.f32 %v7517_v39  ;;  %v7482_v56 = vmul.f32 0.5, %v16212_v25  ;;  %v11373_v25 = vadd.f32 %v16239_v59, %v16234_v17 }
 0x5b3   : > { %7895 = vst [vmem:[#allocation5 + $0x38] sm:$0xff] %v7863_v23  ;;  %v16283_v62 = vpop.f32.mrf.mxu1  ;;  %v12598_v7 = vpop.eup %12597  ;;  %v7673_v38 = vld [vmem:[#allocation3 + $0x48] sm:$0xff]  ;;  %v16286_v40 = vadd.f32 %v16093_v63, %v7415_v14  ;;  %v7416_v41 = vadd.f32 %v11370_v12, %v6985_v45  ;;  %v11261_v27 = vadd.f32 %v11260_v49, %v11259_v61  ;;  %7643 = vst [vmem:[#allocation3 + $0x5a] sm:$0xff] %v16281_v5  ;;  %v7483_v23 = vmul.f32 0.5, %v16229_v58 }
 0x5b4   : > { %v7705_v30 = vld [vmem:[#allocation3 + $0x49] sm:$0xff]  ;;  %v7578_v35 = vadd.f32 1.0, %v12598_v7  ;;  %v11262_v0 = vpop.f32.mrf.mxu0 }
 0x5b5   : > { %v7832_v24 = vld [vmem:[#allocation3 + $0x43] sm:$0xff]  ;;  %v7737_v11 = vmax.f32 %v7673_v38, %v7705_v30  ;;  %v16290_v43 = vpop.f32.mrf.mxu1  ;;  %v7518_v36 = vmul.f32 0.70710677, %v16286_v40  ;;  %v16294_v13 = vadd.f32 %v16093_v63, %v7416_v41  ;;  %v6986_v46 = vadd.f32 %v11261_v27, %v16059_v19 }
 0x5b6   : > { %v7864_v47 = vmax.f32 %v7800_v57, %v7832_v24  ;;  %v12600_v18 = vpop.eup %12599  ;;  %v7674_v44 = vld [vmem:[#allocation3 + $0x50] sm:$0xff]  ;;  %v16298_v60 = vmul.f32 %v7578_v35, %v7482_v56  ;;  %v11263_v21 = vpop.f32.mrf.mxu0  ;;  %v11376_v27 = vadd.f32 %v16259_v48, %v16254_v1 }
 0x5b7   : > { %v7801_v52 = vmax.f32 %v7737_v11, %v16250_v37  ;;  %v7706_v54 = vld [vmem:[#allocation3 + $0x51] sm:$0xff]  ;;  %v16302_v3 = vpop.f32.mrf.mxu1  ;;  %v7579_v31 = vadd.f32 1.0, %v12600_v18  ;;  %12605 = verf.f32 %v7518_v36  ;;  %v7519_v37 = vmul.f32 0.70710677, %v16294_v13 }
 0x5b8   : > { %7896 = vst [vmem:[#allocation5 + $0x40] sm:$0xff] %v7864_v47  ;;  %v7833_v55 = vld [vmem:[#allocation3 + $0x4b] sm:$0xff]  ;;  %v7738_v8 = vmax.f32 %v7674_v44, %v7706_v54  ;;  %7644 = vst [vmem:[#allocation3 + $0x62] sm:$0xff] %v16298_v60  ;;  %v7417_v51 = vadd.f32 %v11373_v25, %v6986_v46  ;;  %v11264_v61 = vadd.f32 %v11263_v21, %v11262_v0  ;;  %v11265_v39 = vpop.f32.mrf.mxu0 }
 0x5b9   : > { %v7865_v19 = vmax.f32 %v7801_v52, %v7833_v55  ;;  %v16307_v12 = vpop.f32.mrf.mxu1  ;;  %v16310_v59 = vmul.f32 %v7579_v31, %v7483_v23  ;;  %12607 = verf.f32 %v7519_v37  ;;  %v11379_v46 = vadd.f32 %v16274_v9, %v16268_v6 }
 0x5ba   : > { %v7802_v17 = vmax.f32 %v7738_v8, %v16262_v2  ;;  %v7922_v14 = vld [vmem:[#allocation5 + $0x20] ss:$4 sm:$0xff]  ;;  %v12602_v45 = vpop.eup %12601  ;;  %v16313_v58 = vadd.f32 %v16093_v63, %v7417_v51  ;;  %v6987_v57 = vadd.f32 %v11264_v61, %v16062_v4  ;;  %v11266_v49 = vpop.f32.mrf.mxu0  ;;  %v7484_v2 = vmul.f32 0.5, %v16242_v26 }
 0x5bb   : > { %7897 = vst [vmem:[#allocation5 + $0x48] sm:$0xff] %v7865_v19  ;;  %v16316_v7 = vpop.f32.mrf.mxu1  ;;  %7936 = vst [vmem:[%s16246_s21 + $0x8] sm:$0xff] %v7922_v14  ;;  %v7675_v38 = vld [vmem:[#allocation3 + $0x58] sm:$0xff]  ;;  %v7580_v41 = vadd.f32 1.0, %v12602_v45  ;;  %v11267_v11 = vadd.f32 %v11266_v49, %v11265_v39  ;;  %v7485_v31 = vmul.f32 0.5, %v16265_v42  ;;  %v11382_v45 = vadd.f32 %v16290_v43, %v16283_v62 }
 0x5bc   : > { %v7707_v30 = vld [vmem:[#allocation3 + $0x59] sm:$0xff]  ;;  %7645 = vst [vmem:[#allocation3 + $0x6a] sm:$0xff] %v16310_v59  ;;  %v7520_v4 = vmul.f32 0.70710677, %v16313_v58  ;;  %v11268_v35 = vpop.f32.mrf.mxu0  ;;  %v7418_v18 = vadd.f32 %v11376_v27, %v6987_v57 }
 0x5bd   : > { %v7834_v24 = vld [vmem:[#allocation3 + $0x53] sm:$0xff]  ;;  %v7739_v47 = vmax.f32 %v7675_v38, %v7707_v30  ;;  %v16324_v0 = vpop.f32.mrf.mxu1  ;;  %v16326_v36 = vmul.f32 %v7580_v41, %v7484_v2  ;;  %v6988_v26 = vadd.f32 %v11267_v11, %v16065_v33 }
 0x5be   : > { %v7866_v56 = vmax.f32 %v7802_v17, %v7834_v24  ;;  %12609 = verf.f32 %v7520_v4  ;;  %v11269_v1 = vpop.f32.mrf.mxu0  ;;  %v16336_v25 = vadd.f32 %v16093_v63, %v7418_v18 }
 0x5bf   : > { %v7803_v52 = vmax.f32 %v7739_v47, %v16281_v5  ;;  %v16332_v48 = vpop.f32.mrf.mxu1  ;;  %v7676_v44 = vld [vmem:[#allocation3 + $0x60] sm:$0xff]  ;;  %7646 = vst [vmem:[#allocation3 + $0x72] sm:$0xff] %v16326_v36  ;;  %v7419_v21 = vadd.f32 %v11379_v46, %v6988_v26  ;;  %v11270_v6 = vadd.f32 %v11269_v1, %v11268_v35  ;;  %v12604_v9 = vpop.eup %12603  ;;  %v11385_v46 = vadd.f32 %v16307_v12, %v16302_v3 }
 0x5c0   : > { %7898 = vst [vmem:[#allocation5 + $0x50] sm:$0xff] %v7866_v56  ;;  %v7708_v54 = vld [vmem:[#allocation3 + $0x61] sm:$0xff]  ;;  %v11271_v23 = vpop.f32.mrf.mxu0  ;;  %v7581_v19 = vadd.f32 1.0, %v12604_v9  ;;  %v7521_v37 = vmul.f32 0.70710677, %v16336_v25 }
 0x5c1   : > { %v7835_v55 = vld [vmem:[#allocation3 + $0x5b] sm:$0xff]  ;;  %v7740_v8 = vmax.f32 %v7676_v44, %v7708_v54  ;;  %v16338_v5 = vpop.f32.mrf.mxu1  ;;  %v16343_v51 = vadd.f32 %v16093_v63, %v7419_v21  ;;  %v6989_v57 = vadd.f32 %v11270_v6, %v16067_v22  ;;  %v7486_v22 = vmul.f32 0.5, %v16286_v40 }
 0x5c2   : > { %v7867_v33 = vmax.f32 %v7803_v52, %v7835_v55  ;;  %v11272_v49 = vpop.f32.mrf.mxu0  ;;  %v16351_v30 = vmul.f32 %v7581_v19, %v7485_v31  ;;  %12611 = verf.f32 %v7521_v37  ;;  %v7487_v21 = vmul.f32 0.5, %v16294_v13 }
 0x5c3   : > { %v7804_v61 = vmax.f32 %v7740_v8, %v16298_v60  ;;  %v7677_v39 = vld [vmem:[#allocation3 + $0x68] sm:$0xff]  ;;  %v16349_v38 = vpop.f32.mrf.mxu1  ;;  %v7522_v60 = vmul.f32 0.70710677, %v16343_v51  ;;  %v7420_v41 = vadd.f32 %v11382_v45, %v6989_v57  ;;  %v11273_v27 = vadd.f32 %v11272_v49, %v11271_v23 }
 0x5c4   : > { %7899 = vst [vmem:[#allocation5 + $0x58] sm:$0xff] %v7867_v33  ;;  %v7709_v17 = vld [vmem:[#allocation3 + $0x69] sm:$0xff]  ;;  %v12606_v24 = vpop.eup %12605  ;;  %v11274_v11 = vpop.f32.mrf.mxu0  ;;  %7647 = vst [vmem:[#allocation3 + $0x7a] sm:$0xff] %v16351_v30  ;;  %v11388_v33 = vadd.f32 %v16324_v0, %v16316_v7 }
 0x5c5   : > { %v7836_v14 = vld [vmem:[#allocation3 + $0x63] sm:$0xff]  ;;  %v7741_v42 = vmax.f32 %v7677_v39, %v7709_v17  ;;  %v16354_v47 = vpop.f32.mrf.mxu1  ;;  %v7582_v43 = vadd.f32 1.0, %v12606_v24  ;;  %12613 = verf.f32 %v7522_v60  ;;  %v16362_v18 = vadd.f32 %v16093_v63, %v7420_v41 }
 0x5c6   : > { %v7868_v2 = vmax.f32 %v7804_v61, %v7836_v14  ;;  %v7678_v56 = vld [vmem:[#allocation3 + $0x70] sm:$0xff]  ;;  %v6990_v26 = vadd.f32 %v11273_v27, %v16069_v20  ;;  %v11275_v52 = vpop.f32.mrf.mxu0  ;;  %v12608_v1 = vpop.eup %12607  ;;  %v11391_v27 = vadd.f32 %v16338_v5, %v16332_v48 }
 0x5c7   : > { %v7805_v62 = vmax.f32 %v7741_v42, %v16310_v59  ;;  %v7710_v4 = vld [vmem:[#allocation3 + $0x71] sm:$0xff]  ;;  %v16365_v59 = vpop.f32.mrf.mxu1  ;;  %v16367_v54 = vmul.f32 %v7582_v43, %v7486_v22  ;;  %v11276_v55 = vadd.f32 %v11275_v52, %v11274_v11  ;;  %v7583_v6 = vadd.f32 1.0, %v12608_v1 }
 0x5c8   : > { %7900 = vst [vmem:[#allocation5 + $0x60] sm:$0xff] %v7868_v2  ;;  %v7837_v35 = vld [vmem:[#allocation3 + $0x6b] sm:$0xff]  ;;  %v7742_v44 = vmax.f32 %v7678_v56, %v7710_v4  ;;  %v7523_v3 = vmul.f32 0.70710677, %v16362_v18  ;;  %v7421_v12 = vadd.f32 %v11385_v46, %v6990_v26  ;;  %v11277_v9 = vpop.f32.mrf.mxu0  ;;  %v7489_v26 = vmul.f32 0.5, %v16336_v25 }
 0x5c9   : > { %v7869_v40 = vmax.f32 %v7805_v62, %v7837_v35  ;;  %v16371_v8 = vpop.f32.mrf.mxu1  ;;  %7648 = vst [vmem:[#allocation3 + $0x82] sm:$0xff] %v16367_v54  ;;  %v6991_v23 = vadd.f32 %v11276_v55, %v16071_v15  ;;  %v16378_v13 = vmul.f32 %v7583_v6, %v7487_v21  ;;  %v7488_v15 = vmul.f32 0.5, %v16313_v58 }
 0x5ca   : > { %v7806_v20 = vmax.f32 %v7742_v44, %v16326_v36  ;;  %12615 = verf.f32 %v7523_v3  ;;  %v16381_v19 = vadd.f32 %v16093_v63, %v7421_v12  ;;  %v11278_v37 = vpop.f32.mrf.mxu0 }
 0x5cb   : > { %7901 = vst [vmem:[#allocation5 + $0x68] sm:$0xff] %v7869_v40  ;;  %v7924_v31 = vld [vmem:[#allocation5 + $0x40] ss:$4 sm:$0xff]  ;;  %v16383_v61 = vpop.f32.mrf.mxu1  ;;  %v12610_v36 = vpop.eup %12609  ;;  %v7422_v39 = vadd.f32 %v11388_v33, %v6991_v23  ;;  %v11279_v17 = vadd.f32 %v11278_v37, %v11277_v9  ;;  %7649 = vst [vmem:[#allocation3 + $0x8a] sm:$0xff] %v16378_v13  ;;  %v11394_v23 = vadd.f32 %v16354_v47, %v16349_v38  ;;  %v7490_v37 = vmul.f32 0.5, %v16343_v51 }
 0x5cc   : > { %7937 = vst [vmem:[%s16246_s21 + $0x10] sm:$0xff] %v7924_v31  ;;  %v7679_v14 = vld [vmem:[#allocation3 + $0x78] sm:$0xff]  ;;  %v7584_v7 = vadd.f32 1.0, %v12610_v36  ;;  %v11280_v0 = vpop.f32.mrf.mxu0  ;;  %v7524_v2 = vmul.f32 0.70710677, %v16381_v19 }
 0x5cd   : > { %v7711_v45 = vld [vmem:[#allocation3 + $0x79] sm:$0xff]  ;;  %v16388_v49 = vpop.f32.mrf.mxu1  ;;  %v16392_v60 = vadd.f32 %v16093_v63, %v7422_v39  ;;  %v6992_v11 = vadd.f32 %v11279_v17, %v16073_v50 }
 0x5ce   : > { %v7838_v57 = vld [vmem:[#allocation3 + $0x73] sm:$0xff]  ;;  %v7743_v42 = vmax.f32 %v7679_v14, %v7711_v45  ;;  %v16394_v41 = vmul.f32 %v7584_v7, %v7488_v15  ;;  %v11281_v62 = vpop.f32.mrf.mxu0  ;;  %12617 = verf.f32 %v7524_v2  ;;  %v11397_v14 = vadd.f32 %v16371_v8, %v16365_v59  ;;  %v16434_v59 = vld [vmem:[%s17095_s7] ss:$0 sm:$0xff] }
 0x5cf   : > { %v7870_v24 = vmax.f32 %v7806_v20, %v7838_v57  ;;  %v16399_v58 = vpop.f32.mrf.mxu1  ;;  %v7525_v43 = vmul.f32 0.70710677, %v16392_v60  ;;  %v12612_v56 = vpop.eup %12611  ;;  %v7423_v48 = vadd.f32 %v11391_v27, %v6992_v11  ;;  %v11282_v5 = vadd.f32 %v11281_v62, %v11280_v0 }
 0x5d0   : > { %v7807_v22 = vmax.f32 %v7743_v42, %v16351_v30  ;;  %v7680_v4 = vld [vmem:[#allocation3 + $0x80] sm:$0xff]  ;;  %7650 = vst [vmem:[#allocation3 + $0x92] sm:$0xff] %v16394_v41  ;;  %v11283_v50 = vpop.f32.mrf.mxu0  ;;  %v7585_v30 = vadd.f32 1.0, %v12612_v56  ;;  %v7491_v11 = vmul.f32 0.5, %v16362_v18 }
 0x5d1   : > { %7902 = vst [vmem:[#allocation5 + $0x70] sm:$0xff] %v7870_v24  ;;  %v7712_v35 = vld [vmem:[#allocation3 + $0x81] sm:$0xff]  ;;  %v16405_v52 = vpop.f32.mrf.mxu1  ;;  %12619 = verf.f32 %v7525_v43  ;;  %v16408_v40 = vadd.f32 %v16093_v63, %v7423_v48  ;;  %v6993_v55 = vadd.f32 %v11282_v5, %v16075_v29 }
 0x5d2   : > { %v7839_v46 = vld [vmem:[#allocation3 + $0x7b] sm:$0xff]  ;;  %v7744_v1 = vmax.f32 %v7680_v4, %v7712_v35  ;;  %v11284_v21 = vpop.f32.mrf.mxu0  ;;  %v12614_v3 = vpop.eup %12613  ;;  %v7681_v12 = vld [vmem:[#allocation3 + $0x88] sm:$0xff]  ;;  %v16414_v33 = vmul.f32 %v7585_v30, %v7489_v26  ;;  %v11400_v4 = vadd.f32 %v16388_v49, %v16383_v61 }
 0x5d3   : > { %v7871_v44 = vmax.f32 %v7807_v22, %v7839_v46  ;;  %v16411_v6 = vpop.f32.mrf.mxu1  ;;  %v7713_v9 = vld [vmem:[#allocation3 + $0x89] sm:$0xff]  ;;  %v11285_v31 = vadd.f32 %v11284_v21, %v11283_v50  ;;  %v7586_v29 = vadd.f32 1.0, %v12614_v3  ;;  %v7526_v36 = vmul.f32 0.70710677, %v16408_v40 }
 0x5d4   : > { %v7808_v25 = vmax.f32 %v7744_v1, %v16367_v54  ;;  %v7840_v20 = vld [vmem:[#allocation3 + $0x83] sm:$0xff]  ;;  %v7745_v63 = vmax.f32 %v7681_v12, %v7713_v9  ;;  %v11286_v39 = vpop.f32.mrf.mxu0  ;;  %7651 = vst [vmem:[#allocation3 + $0x9a] sm:$0xff] %v16414_v33  ;;  %v7424_v45 = vadd.f32 %v11394_v23, %v6993_v55  ;;  %v7493_v23 = vmul.f32 0.5, %v16392_v60 }
 0x5d5   : > { %7903 = vst [vmem:[#allocation5 + $0x78] sm:$0xff] %v7871_v44  ;;  %v16420_v17 = vpop.f32.mrf.mxu1  ;;  %v6994_v57 = vadd.f32 %v11285_v31, %v16077_v32  ;;  %v16427_v47 = vmul.f32 %v7586_v29, %v7490_v37  ;;  %12621 = verf.f32 %v7526_v36  ;;  %v11403_v31 = vadd.f32 %v16405_v52, %v16399_v58 }
 0x5d6   : > { %v7872_v54 = vmax.f32 %v7808_v25, %v7840_v20  ;;  %v7809_v38 = vmax.f32 %v7745_v63, %v16378_v13  ;;  %v11287_v51 = vpop.f32.mrf.mxu0  ;;  %v16437_v32 = vadd.f32 %v16434_v59, %v7424_v45 }
 0x5d7   : > { %v16429_v15 = vpop.f32.mrf.mxu1  ;;  %v12616_v7 = vpop.eup %12615  ;;  %v7682_v0 = vld [vmem:[#allocation3 + $0x90] sm:$0xff]  ;;  %v7425_v8 = vadd.f32 %v11397_v14, %v6994_v57  ;;  %v11288_v13 = vadd.f32 %v11287_v51, %v11286_v39  ;;  %7652 = vst [vmem:[#allocation3 + $0xa2] sm:$0xff] %v16427_v47 }
 0x5d8   : > { %7904 = vst [vmem:[#allocation5 + $0x80] sm:$0xff] %v7872_v54  ;;  %v7714_v42 = vld [vmem:[#allocation3 + $0x91] sm:$0xff]  ;;  %v7587_v62 = vadd.f32 1.0, %v12616_v7  ;;  %v11289_v22 = vpop.f32.mrf.mxu0  ;;  %v7527_v56 = vmul.f32 0.70710677, %v16437_v32 }
 0x5d9   : > { %v7841_v24 = vld [vmem:[#allocation3 + $0x8b] sm:$0xff]  ;;  %v7746_v2 = vmax.f32 %v7682_v0, %v7714_v42  ;;  %v16441_v43 = vpop.f32.mrf.mxu1  ;;  %v16447_v35 = vadd.f32 %v16434_v59, %v7425_v8  ;;  %v6995_v46 = vadd.f32 %v11288_v13, %v16079_v28  ;;  %v7492_v28 = vmul.f32 0.5, %v16381_v19 }
 0x5da   : > { %v7873_v27 = vmax.f32 %v7809_v38, %v7841_v24  ;;  %v16451_v48 = vmul.f32 %v7587_v62, %v7491_v11  ;;  %v11290_v18 = vpop.f32.mrf.mxu0  ;;  %12623 = verf.f32 %v7527_v56 }
 0x5db   : > { %v7810_v26 = vmax.f32 %v7746_v2, %v16394_v41  ;;  %v16453_v5 = vpop.f32.mrf.mxu1  ;;  %v7528_v1 = vmul.f32 0.70710677, %v16447_v35  ;;  %v7426_v44 = vadd.f32 %v11400_v4, %v6995_v46  ;;  %v12618_v61 = vpop.eup %12617  ;;  %v7683_v49 = vld [vmem:[#allocation3 + $0x98] sm:$0xff]  ;;  %v11291_v41 = vadd.f32 %v11290_v18, %v11289_v22 }
 0x5dc   : > { %7905 = vst [vmem:[#allocation5 + $0x88] sm:$0xff] %v7873_v27  ;;  %v7926_v50 = vld [vmem:[#allocation5 + $0x60] ss:$4 sm:$0xff]  ;;  %7653 = vst [vmem:[#allocation3 + $0xaa] sm:$0xff] %v16451_v48  ;;  %v11292_v21 = vpop.f32.mrf.mxu0  ;;  %v7588_v9 = vadd.f32 1.0, %v12618_v61 }
 0x5dd   : > { %7938 = vst [vmem:[%s16246_s21 + $0x18] sm:$0xff] %v7926_v50  ;;  %v7715_v30 = vld [vmem:[#allocation3 + $0x99] sm:$0xff]  ;;  %v16459_v3 = vpop.f32.mrf.mxu1  ;;  %12625 = verf.f32 %v7528_v1  ;;  %v16465_v63 = vadd.f32 %v16434_v59, %v7426_v44  ;;  %v6996_v37 = vadd.f32 %v11291_v41, %v16081_v53  ;;  %v11409_v50 = vadd.f32 %v16441_v43, %v16429_v15 }
 0x5de   : > { %v7842_v55 = vld [vmem:[#allocation3 + $0x93] sm:$0xff]  ;;  %v7747_v25 = vmax.f32 %v7683_v49, %v7715_v30  ;;  %v12620_v20 = vpop.eup %12619  ;;  %v11293_v19 = vpop.f32.mrf.mxu0  ;;  %v7684_v39 = vld [vmem:[#allocation3 + $0xa0] sm:$0xff]  ;;  %v16471_v45 = vmul.f32 %v7588_v9, %v7492_v28 }
 0x5df   : > { %v7874_v12 = vmax.f32 %v7810_v26, %v7842_v55  ;;  %v16468_v29 = vpop.f32.mrf.mxu1  ;;  %v7716_v54 = vld [vmem:[#allocation3 + $0xa1] sm:$0xff]  ;;  %v7589_v60 = vadd.f32 1.0, %v12620_v20  ;;  %v11294_v57 = vadd.f32 %v11293_v19, %v11292_v21  ;;  %v7529_v58 = vmul.f32 0.70710677, %v16465_v63 }
 0x5e0   : > { %v7811_v36 = vmax.f32 %v7747_v25, %v16414_v33  ;;  %v7843_v14 = vld [vmem:[#allocation3 + $0x9b] sm:$0xff]  ;;  %v7748_v38 = vmax.f32 %v7684_v39, %v7716_v54  ;;  %v7427_v52 = vadd.f32 %v11403_v31, %v6996_v37  ;;  %v11295_v51 = vpop.f32.mrf.mxu0  ;;  %7654 = vst [vmem:[#allocation3 + $0xb2] sm:$0xff] %v16471_v45  ;;  %v11406_v33 = vadd.f32 %v16420_v17, %v16411_v6 }
 0x5e1   : > { %7906 = vst [vmem:[#allocation5 + $0x90] sm:$0xff] %v7874_v12  ;;  %v8356_v7 = vpop.f32.mrf.mxu1  ;;  %v16475_v0 = vmul.f32 %v7589_v60, %v7493_v23  ;;  %v6997_v42 = vadd.f32 %v11294_v57, %v16083_v10  ;;  %12627 = verf.f32 %v7529_v58  ;;  %v7496_v39 = vmul.f32 0.5, %v16447_v35  ;;  %v16518_v35 = vld [vmem:[%s17097_s9] ss:$0 sm:$0xff] }
 0x5e2   : > { %v7875_v53 = vmax.f32 %v7811_v36, %v7843_v14  ;;  %v7812_v24 = vmax.f32 %v7748_v38, %v16427_v47  ;;  %v16482_v8 = vadd.f32 %v16434_v59, %v7427_v52  ;;  %v11296_v13 = vpop.f32.mrf.mxu0  ;;  %v12622_v27 = vpop.eup %12621  ;;  %v7494_v47 = vmul.f32 0.5, %v16408_v40 }
 0x5e3   : > { %v16484_v2 = vpop.f32.mrf.mxu1  ;;  %v7685_v11 = vld [vmem:[#allocation3 + $0xa8] sm:$0xff]  ;;  %7655 = vst [vmem:[#allocation3 + $0xba] sm:$0xff] %v16475_v0  ;;  %v7428_v56 = vadd.f32 %v11406_v33, %v6997_v42  ;;  %v11297_v6 = vadd.f32 %v11296_v13, %v11295_v51  ;;  %v7590_v4 = vadd.f32 1.0, %v12622_v27  ;;  %v11412_v54 = vadd.f32 %v16459_v3, %v16453_v5 }
 0x5e4   : > { %7907 = vst [vmem:[#allocation5 + $0x98] sm:$0xff] %v7875_v53  ;;  %v7717_v62 = vld [vmem:[#allocation3 + $0xa9] sm:$0xff]  ;;  %v11298_v46 = vpop.f32.mrf.mxu0  ;;  %v7530_v18 = vmul.f32 0.70710677, %v16482_v8 }
 0x5e5   : > { %v7844_v22 = vld [vmem:[#allocation3 + $0xa3] sm:$0xff]  ;;  %v7749_v17 = vmax.f32 %v7685_v11, %v7717_v62  ;;  %v8359_v26 = vpop.f32.mrf.mxu1  ;;  %v16492_v1 = vadd.f32 %v16434_v59, %v7428_v56  ;;  %v6998_v44 = vadd.f32 %v11297_v6, %v16085_v34  ;;  %v16496_v49 = vmul.f32 %v7590_v4, %v7494_v47 }
 0x5e6   : > { %v7876_v10 = vmax.f32 %v7812_v24, %v7844_v22  ;;  %v11299_v30 = vpop.f32.mrf.mxu0  ;;  %12629 = verf.f32 %v7530_v18  ;;  %v7495_v34 = vmul.f32 0.5, %v16437_v32  ;;  %v7497_v4 = vmul.f32 0.5, %v16465_v63 }
 0x5e7   : > { %v7813_v61 = vmax.f32 %v7749_v17, %v16451_v48  ;;  %v16498_v40 = vpop.f32.mrf.mxu1  ;;  %v7531_v55 = vmul.f32 0.70710677, %v16492_v1  ;;  %v7429_v28 = vadd.f32 %v11409_v50, %v6998_v44  ;;  %v12624_v41 = vpop.eup %12623  ;;  %v7686_v21 = vld [vmem:[#allocation3 + $0xb0] sm:$0xff]  ;;  %7656 = vst [vmem:[#allocation3 + $0xc2] sm:$0xff] %v16496_v49  ;;  %v11300_v25 = vadd.f32 %v11299_v30, %v11298_v46 }
 0x5e8   : > { %7908 = vst [vmem:[#allocation5 + $0xa0] sm:$0xff] %v7876_v10  ;;  %v7718_v15 = vld [vmem:[#allocation3 + $0xb1] sm:$0xff]  ;;  %v11429_v48 = vpop.f32.mrf.mxu0  ;;  %v7591_v23 = vadd.f32 1.0, %v12624_v41 }
 0x5e9   : > { %v7845_v43 = vld [vmem:[#allocation3 + $0xab] sm:$0xff]  ;;  %v8364_v12 = vpop.f32.mrf.mxu1  ;;  %v7750_v9 = vmax.f32 %v7686_v21, %v7718_v15  ;;  %12631 = verf.f32 %v7531_v55  ;;  %v16507_v14 = vadd.f32 %v16434_v59, %v7429_v28  ;;  %v6999_v32 = vadd.f32 %v11300_v25, %v16087_v16 }
 0x5ea   : > { %v7877_v20 = vmax.f32 %v7813_v61, %v7845_v43  ;;  %v12626_v31 = vpop.eup %12625  ;;  %v7687_v37 = vld [vmem:[#allocation3 + $0xb8] sm:$0xff]  ;;  %v11430_v60 = vpop.f32.mrf.mxu0  ;;  %v16513_v52 = vmul.f32 %v7591_v23, %v7495_v34 }
 0x5eb   : > { %v7719_v19 = vld [vmem:[#allocation3 + $0xb9] sm:$0xff]  ;;  %v16510_v57 = vpop.f32.mrf.mxu1  ;;  %v7814_v38 = vmax.f32 %v7750_v9, %v16471_v45  ;;  %v7592_v51 = vadd.f32 1.0, %v12626_v31  ;;  %v7532_v3 = vmul.f32 0.70710677, %v16507_v14  ;;  %v7430_v7 = vadd.f32 %v11412_v54, %v6999_v32 }
 0x5ec   : > { %v7846_v36 = vld [vmem:[#allocation3 + $0xb3] sm:$0xff]  ;;  %7909 = vst [vmem:[#allocation5 + $0xa8] sm:$0xff] %v7877_v20  ;;  %v7751_v58 = vmax.f32 %v7687_v37, %v7719_v19  ;;  %v11431_v16 = vadd.f32 %v11430_v60, %v11429_v48  ;;  %v11432_v53 = vpop.f32.mrf.mxu0  ;;  %7657 = vst [vmem:[#allocation3 + $0xca] sm:$0xff] %v16513_v52  ;;  %v7499_v19 = vmul.f32 0.5, %v16492_v1 }
 0x5ed   : > { %v7928_v5 = vld [vmem:[#allocation5 + $0x80] ss:$4 sm:$0xff]  ;;  %v8367_v33 = vpop.f32.mrf.mxu1  ;;  %v7878_v42 = vmax.f32 %v7814_v38, %v7846_v36  ;;  %v7624_v24 = vmul.f32 %v7592_v51, %v7496_v39  ;;  %12633 = verf.f32 %v7532_v3  ;;  %v16525_v13 = vadd.f32 %v16434_v59, %v7430_v7 }
 0x5ee   : > { %7939 = vst [vmem:[%s16246_s21 + $0x20] sm:$0xff] %v7928_v5  ;;  %v7815_v45 = vmax.f32 %v7751_v58, %v16475_v0  ;;  %v8290_v27 = vadd.f32 %v11431_v16, %v16518_v35  ;;  %v11433_v11 = vpop.f32.mrf.mxu0  ;;  %v12628_v22 = vpop.eup %12627  ;;  %v7688_v56 = vld [vmem:[#allocation3 + $0xc0] sm:$0xff] }
 0x5ef   : > { %v16528_v62 = vpop.f32.mrf.mxu1  ;;  %7910 = vst [vmem:[#allocation5 + $0xb0] sm:$0xff] %v7878_v42  ;;  %v7720_v6 = vld [vmem:[#allocation3 + $0xc1] sm:$0xff]  ;;  %7658 = vst [vmem:[#allocation3 + $0xd2] sm:$0xff] %v7624_v24  ;;  %v11434_v0 = vadd.f32 %v11433_v11, %v11432_v53  ;;  %v7593_v46 = vadd.f32 1.0, %v12628_v22  ;;  %v7533_v18 = vmul.f32 0.70710677, %v16525_v13 }
 0x5f0   : > { %v7847_v17 = vld [vmem:[#allocation3 + $0xbb] sm:$0xff]  ;;  %v7752_v10 = vmax.f32 %v7688_v56, %v7720_v6  ;;  %v11435_v26 = vpop.f32.mrf.mxu0  ;;  %v16533_v50 = vadd.f32 %v16468_v29, %v8290_v27 }
 0x5f1   : > { %v7879_v47 = vmax.f32 %v7815_v45, %v7847_v17  ;;  %v8372_v59 = vpop.f32.mrf.mxu1  ;;  %v8293_v44 = vadd.f32 %v11434_v0, %v16518_v35  ;;  %v16537_v30 = vmul.f32 %v7593_v46, %v7497_v4  ;;  %12635 = verf.f32 %v7533_v18 }
 0x5f2   : > { %v7816_v61 = vmax.f32 %v7752_v10, %v16496_v49  ;;  %v11436_v55 = vpop.f32.mrf.mxu0  ;;  %v8393_v63 = vmul.f32 0.70710677, %v16533_v50  ;;  %v7498_v49 = vmul.f32 0.5, %v16482_v8 }
 0x5f3   : > { %7911 = vst [vmem:[#allocation5 + $0xb8] sm:$0xff] %v7879_v47  ;;  %v16539_v28 = vpop.f32.mrf.mxu1  ;;  %v16543_v41 = vadd.f32 %v16484_v2, %v8293_v44  ;;  %v12630_v21 = vpop.eup %12629  ;;  %v7689_v15 = vld [vmem:[#allocation3 + $0xc8] sm:$0xff]  ;;  %7659 = vst [vmem:[#allocation3 + $0xda] sm:$0xff] %v16537_v30  ;;  %v11437_v34 = vadd.f32 %v11436_v55, %v11435_v26 }
 0x5f4   : > { %v7721_v29 = vld [vmem:[#allocation3 + $0xc9] sm:$0xff]  ;;  %v11438_v25 = vpop.f32.mrf.mxu0  ;;  %v7594_v20 = vadd.f32 1.0, %v12630_v21  ;;  %12637 = verf.f32 %v8393_v63 }
 0x5f5   : > { %v7848_v43 = vld [vmem:[#allocation3 + $0xc3] sm:$0xff]  ;;  %v8375_v48 = vpop.f32.mrf.mxu1  ;;  %v7753_v12 = vmax.f32 %v7689_v15, %v7721_v29  ;;  %v8394_v36 = vmul.f32 0.70710677, %v16543_v41  ;;  %v8298_v39 = vadd.f32 %v11437_v34, %v16518_v35 }
 0x5f6   : > { %v7880_v9 = vmax.f32 %v7816_v61, %v7848_v43  ;;  %v12632_v23 = vpop.eup %12631  ;;  %v7690_v31 = vld [vmem:[#allocation3 + $0xd0] sm:$0xff]  ;;  %v11439_v54 = vpop.f32.mrf.mxu0  ;;  %v7626_v38 = vmul.f32 %v7594_v20, %v7498_v49 }
 0x5f7   : > { %v7722_v37 = vld [vmem:[#allocation3 + $0xd1] sm:$0xff]  ;;  %v16550_v32 = vpop.f32.mrf.mxu1  ;;  %v7817_v8 = vmax.f32 %v7753_v12, %v16513_v52  ;;  %v7595_v58 = vadd.f32 1.0, %v12632_v23  ;;  %12639 = verf.f32 %v8394_v36  ;;  %v16554_v51 = vadd.f32 %v16498_v40, %v8298_v39 }
 0x5f8   : > { %v7849_v2 = vld [vmem:[#allocation3 + $0xcb] sm:$0xff]  ;;  %7912 = vst [vmem:[#allocation5 + $0xc0] sm:$0xff] %v7880_v9  ;;  %v7754_v60 = vmax.f32 %v7690_v31, %v7722_v37  ;;  %v11440_v5 = vadd.f32 %v11439_v54, %v11438_v25  ;;  %v11441_v1 = vpop.f32.mrf.mxu0  ;;  %7660 = vst [vmem:[#allocation3 + $0xe2] sm:$0xff] %v7626_v38 }
 0x5f9   : > { %v8380_v3 = vpop.f32.mrf.mxu1  ;;  %v7881_v16 = vmax.f32 %v7817_v8, %v7849_v2  ;;  %v7627_v53 = vmul.f32 %v7595_v58, %v7499_v19  ;;  %v8395_v45 = vmul.f32 0.70710677, %v16554_v51 }
 0x5fa   : > { %v7818_v7 = vmax.f32 %v7754_v60, %v7624_v24  ;;  %v7930_v33 = vld [vmem:[#allocation5 + $0xa0] ss:$4 sm:$0xff]  ;;  %v8301_v52 = vadd.f32 %v11440_v5, %v16518_v35  ;;  %v11442_v42 = vpop.f32.mrf.mxu0  ;;  %v12634_v11 = vpop.eup %12633  ;;  %v7500_v24 = vmul.f32 0.5, %v16507_v14  ;;  %v8386_v5 = vmul.f32 0.5, %v16543_v41 }
 0x5fb   : > { %v16558_v27 = vpop.f32.mrf.mxu1  ;;  %7940 = vst [vmem:[%s16246_s21 + $0x28] sm:$0xff] %v7930_v33  ;;  %7913 = vst [vmem:[#allocation5 + $0xc8] sm:$0xff] %v7881_v16  ;;  %v7691_v40 = vld [vmem:[#allocation3 + $0xd8] sm:$0xff]  ;;  %v11443_v6 = vadd.f32 %v11442_v42, %v11441_v1  ;;  %v7596_v10 = vadd.f32 1.0, %v12634_v11  ;;  %12641 = verf.f32 %v8395_v45 }
 0x5fc   : > { %v7723_v22 = vld [vmem:[#allocation3 + $0xd9] sm:$0xff]  ;;  %7661 = vst [vmem:[#allocation3 + $0xea] sm:$0xff] %v7627_v53  ;;  %v11444_v47 = vpop.f32.mrf.mxu0  ;;  %v16563_v46 = vadd.f32 %v16510_v57, %v8301_v52  ;;  %v7501_v57 = vmul.f32 0.5, %v16525_v13 }
 0x5fd   : > { %v7850_v56 = vld [vmem:[#allocation3 + $0xd3] sm:$0xff]  ;;  %v7755_v17 = vmax.f32 %v7691_v40, %v7723_v22  ;;  %v8383_v4 = vpop.f32.mrf.mxu1  ;;  %v8306_v26 = vadd.f32 %v11443_v6, %v16518_v35  ;;  %v7628_v18 = vmul.f32 %v7596_v10, %v7500_v24 }
 0x5fe   : > { %v7882_v0 = vmax.f32 %v7818_v7, %v7850_v56  ;;  %v11445_v44 = vpop.f32.mrf.mxu0  ;;  %v8396_v61 = vmul.f32 0.70710677, %v16563_v46  ;;  %v12636_v63 = vpop.eup %12635  ;;  %v8387_v56 = vmul.f32 0.5, %v16554_v51  ;;  %v8388_v51 = vmul.f32 0.5, %v16563_v46 }
 0x5ff   : > { %v7819_v59 = vmax.f32 %v7755_v17, %v16537_v30  ;;  %v16569_v14 = vadd.f32 %v16528_v62, %v8306_v26  ;;  %v11446_v55 = vadd.f32 %v11445_v44, %v11444_v47  ;;  %v7692_v21 = vld [vmem:[#allocation3 + $0xe0] sm:$0xff]  ;;  %7662 = vst [vmem:[#allocation3 + $0xf2] sm:$0xff] %v7628_v18  ;;  %v7597_v30 = vadd.f32 1.0, %v12636_v63 }
 0x600   : > { %7914 = vst [vmem:[#allocation5 + $0xd0] sm:$0xff] %v7882_v0  ;;  %v7724_v15 = vld [vmem:[#allocation3 + $0xe1] sm:$0xff]  ;;  %v11447_v43 = vpop.f32.mrf.mxu0  ;;  %12643 = verf.f32 %v8396_v61  ;;  %v8385_v62 = vmul.f32 0.5, %v16533_v50 }
 0x601   : > { %v7851_v29 = vld [vmem:[#allocation3 + $0xdb] sm:$0xff]  ;;  %v7756_v49 = vmax.f32 %v7692_v21, %v7724_v15  ;;  %v12638_v25 = vpop.eup %12637  ;;  %v8397_v20 = vmul.f32 0.70710677, %v16569_v14  ;;  %v8309_v23 = vadd.f32 %v11446_v55, %v16518_v35  ;;  %v7629_v13 = vmul.f32 %v7597_v30, %v7501_v57 }
 0x602   : > { %v7883_v34 = vmax.f32 %v7819_v59, %v7851_v29  ;;  %v11448_v31 = vpop.f32.mrf.mxu0  ;;  %v8409_v19 = vadd.f32 1.0, %v12638_v25 }
 0x603   : > { %v7693_v48 = vld [vmem:[#allocation3 + $0xe8] sm:$0xff]  ;;  %v7820_v37 = vmax.f32 %v7756_v49, %v7626_v38  ;;  %12645 = verf.f32 %v8397_v20  ;;  %v16576_v36 = vadd.f32 %v16539_v28, %v8309_v23  ;;  %v11449_v39 = vadd.f32 %v11448_v31, %v11447_v43  ;;  %7663 = vst [vmem:[#allocation3 + $0xfa] sm:$0x1f] %v7629_v13 }
 0x604   : > { %v7725_v12 = vld [vmem:[#allocation3 + $0xe9] sm:$0xff]  ;;  %7915 = vst [vmem:[#allocation5 + $0xd8] sm:$0xff] %v7883_v34  ;;  %v11450_v54 = vpop.f32.mrf.mxu0  ;;  %v12640_v8 = vpop.eup %12639  ;;  %v8417_v50 = vmul.f32 %v8409_v19, %v8385_v62 }
 0x605   : > { %v7852_v9 = vld [vmem:[#allocation3 + $0xe3] sm:$0xff]  ;;  %v7757_v2 = vmax.f32 %v7693_v48, %v7725_v12  ;;  %v8410_v1 = vadd.f32 1.0, %v12640_v8  ;;  %v8398_v38 = vmul.f32 0.70710677, %v16576_v36  ;;  %v8314_v3 = vadd.f32 %v11449_v39, %v16518_v35 }
 0x606   : > { %v7884_v58 = vmax.f32 %v7820_v37, %v7852_v9  ;;  %v11451_v7 = vpop.f32.mrf.mxu0  ;;  %v7694_v16 = vld [vmem:[#allocation3 + $0xf0] sm:$0xff]  ;;  %8428 = vst.msk [vmem:[#allocation2 + $0x2] sm:$0xff] %vm1450_vm3, %v8417_v50  ;;  %v8389_v48 = vmul.f32 0.5, %v16569_v14  ;;  %v8390_v14 = vmul.f32 0.5, %v16576_v36 }
 0x607   : > { %v7821_v60 = vmax.f32 %v7757_v2, %v7627_v53  ;;  %v7726_v33 = vld [vmem:[#allocation3 + $0xf1] sm:$0xff]  ;;  %v11452_v45 = vadd.f32 %v11451_v7, %v11450_v54  ;;  %v8418_v42 = vmul.f32 %v8410_v1, %v8386_v5  ;;  %12647 = verf.f32 %v8398_v38 }
 0x608   : > { %7916 = vst [vmem:[#allocation5 + $0xe0] sm:$0xff] %v7884_v58  ;;  %v7853_v28 = vld [vmem:[#allocation3 + $0xeb] sm:$0xff]  ;;  %v7758_v53 = vmax.f32 %v7694_v16, %v7726_v33  ;;  %v12642_v11 = vpop.eup %12641  ;;  %v16583_v41 = vadd.f32 %v16550_v32, %v8314_v3  ;;  %v12265_v58 = vld [vmem:[%s17098_s10 + $0x38] sm:$0xff]  }
 0x609   : > { %v7885_v52 = vmax.f32 %v7821_v60, %v7853_v28  ;;  %v8317_v40 = vadd.f32 %v11452_v45, %v16518_v35  ;;  %8429 = vst.msk [vmem:[#allocation2 + $0xa] sm:$0xff] %vm1450_vm3, %v8418_v42  ;;  %v8411_v24 = vadd.f32 1.0, %v12642_v11  ;;  %v12266_v50 = vld [vmem:[%s17098_s10 + $0x30] sm:$0xff]   ;;  %v12267_v5 = vld [vmem:[%s17098_s10 + $0x78] sm:$0xff]   ;;  %11889 = vmatprep.subr.bf16.mxu1 %v12265_v58 }
 0x60a   : > { %v7822_v22 = vmax.f32 %v7758_v53, %v7628_v18  ;;  %v8399_v17 = vmul.f32 0.70710677, %v16583_v41  ;;  %v7695_v10 = vld [vmem:[#allocation3 + $0xf8] sm:$0x1f]  ;;  %11869 = vmatprep.subr.bf16.mxu0 %v12267_v5  ;;  %11890 = vmatpush3.bf16.msra.mxu1 %v12265_v58  ;;  %v8391_v16 = vmul.f32 0.5, %v16583_v41 }
 0x60b   : > { %7917 = vst [vmem:[#allocation5 + $0xe8] sm:$0xff] %v7885_v52  ;;  %v7932_v6 = vld [vmem:[#allocation5 + $0xc0] ss:$4 sm:$0xff]  ;;  %v16590_v0 = vadd.f32 %v16558_v27, %v8317_v40  ;;  %v8419_v32 = vmul.f32 %v8411_v24, %v8387_v56  ;;  %11870 = vmatpush3.bf16.msra.mxu0 %v12267_v5  ;;  %11891 = vmatprep.subr.bf16.mxu1 %v12266_v50 }
 0x60c   : > { %7941 = vst [vmem:[%s16246_s21 + $0x30] sm:$0xff] %v7932_v6  ;;  %v7727_v47 = vld [vmem:[#allocation3 + $0xf9] sm:$0x1f]  ;;  %12649 = verf.f32 %v8399_v17 }
 0x60d   : > { %v7759_v4 = vmax.f32 %v7695_v10, %v7727_v47  ;;  %v7854_v26 = vld [vmem:[#allocation3 + $0xf3] sm:$0xff]  ;;  %v8400_v35 = vmul.f32 0.70710677, %v16590_v0  ;;  %v12644_v59 = vpop.eup %12643  ;;  %8430 = vst.msk [vmem:[#allocation2 + $0x12] sm:$0xff] %vm1450_vm3, %v8419_v32  ;;  %v8436_v61 = vld [vmem:[#allocation2] sm:$0xff] }
 0x60e   : > { %v7791_v18 = vld [vmem:[#allocation3 + $0xfa] sm:$0x1f]  ;;  %v7886_v44 = vmax.f32 %v7822_v22, %v7854_v26  ;;  %v8444_v55 = vld [vmem:[#allocation2 + $0x1] sm:$0xff]  ;;  %v8412_v63 = vadd.f32 1.0, %v12644_v59  ;;  %v8392_v22 = vmul.f32 0.5, %v16590_v0  ;;  %11892 = vmatpush3.bf16.msra.mxu1 %v12266_v50 }
 0x60f   : > { %v7823_v27 = vmax.f32 %v7759_v4, %v7791_v18  ;;  %12651 = verf.f32 %v8400_v35  ;;  %v8452_v21 = vmax.f32 %v8436_v61, %v8444_v55  ;;  %v7855_v15 = vld [vmem:[#allocation3 + $0xfb] sm:$0x1f]  ;;  %v8460_v29 = vld [vmem:[#allocation2 + $0x2] sm:$0xff] }
 0x610   : > { %7918 = vst [vmem:[#allocation5 + $0xf0] sm:$0xff] %v7886_v44  ;;  %v12646_v57 = vpop.eup %12645  ;;  %v8420_v49 = vmul.f32 %v8412_v63, %v8388_v51  ;;  %v8437_v34 = vld [vmem:[#allocation2 + $0x8] sm:$0xff]  ;;  %v12272_v5 = vld [vmem:[%s17098_s10 + $0x18] sm:$0xff]  }
 0x611   : > { %v7887_v43 = vmax.f32 %v7823_v27, %v7855_v15  ;;  %v8445_v30 = vld [vmem:[#allocation2 + $0x9] sm:$0xff]  ;;  %v8468_v25 = vmax.f32 %v8452_v21, %v8460_v29  ;;  %v8413_v12 = vadd.f32 1.0, %v12646_v57  ;;  %v12270_v57 = vld [vmem:[%s17098_s10 + $0x20] sm:$0xff]  }
 0x612   : > { %v8453_v9 = vmax.f32 %v8437_v34, %v8445_v30  ;;  %v8476_v46 = vld [vmem:[#allocation2 + $0x3] sm:$0xff]  ;;  %8431 = vst.msk [vmem:[#allocation2 + $0x1a] sm:$0xff] %vm1450_vm3, %v8420_v49  ;;  %v12269_v21 = vld [vmem:[%s17098_s10 + $0x70] sm:$0xff]  }
 0x613   : > { %7919 = vst [vmem:[#allocation5 + $0xf8] sm:$0x1f] %v7887_v43  ;;  %v8461_v62 = vld [vmem:[#allocation2 + $0xa] sm:$0xff]  ;;  %v8484_v20 = vmax.f32 %v8468_v25, %v8476_v46  ;;  %v8421_v23 = vmul.f32 %v8413_v12, %v8389_v48  ;;  %11871 = vmatprep.subr.bf16.mxu0 %v12269_v21 }
 0x614   : > { %v8469_v31 = vmax.f32 %v8453_v9, %v8461_v62  ;;  %v12648_v37 = vpop.eup %12647  ;;  %v8477_v2 = vld [vmem:[#allocation2 + $0xb] sm:$0xff]  ;;  %11872 = vmatpush3.bf16.msra.mxu0 %v12269_v21  ;;  %v8571_v62 = vld [vmem:[#allocation6] sm:$0xe] }
 0x615   : > { %8492 = vst.msk [vmem:[#allocation4] sm:$0xff] %vm1450_vm3, %v8484_v20  ;;  %v8438_v13 = vld [vmem:[#allocation2 + $0x10] sm:$0xff]  ;;  %8432 = vst.msk [vmem:[#allocation2 + $0x22] sm:$0xff] %vm1450_vm3, %v8421_v23  ;;  %v8414_v39 = vadd.f32 1.0, %v12648_v37  ;;  %v12268_v63 = vld [vmem:[%s17098_s10 + $0x28] sm:$0xff]  }
 0x616   : > { %v8446_v19 = vld [vmem:[#allocation2 + $0x11] sm:$0xff]  ;;  %v8485_v54 = vmax.f32 %v8469_v31, %v8477_v2  ;;  %v12271_v43 = vld [vmem:[%s17098_s10 + $0x68] sm:$0xff]   ;;  %11893 = vmatprep.subr.bf16.mxu1 %v12268_v63 }
 0x617   : > { %v8454_v8 = vmax.f32 %v8438_v13, %v8446_v19  ;;  %v8462_v60 = vld [vmem:[#allocation2 + $0x12] sm:$0xff]  ;;  %v8422_v1 = vmul.f32 %v8414_v39, %v8390_v14  ;;  %11894 = vmatpush3.bf16.msra.mxu1 %v12268_v63  ;;  %11873 = vmatprep.subr.bf16.mxu0 %v12271_v43  ;;  %v12282_v63 = vld [vmem:[%s17098_s10 + $0x40] sm:$0xff]  }
 0x618   : > { %8493 = vst.msk [vmem:[#allocation4 + $0x8] sm:$0xff] %vm1450_vm3, %v8485_v54  ;;  %11895 = vmatprep.subr.bf16.mxu1 %v12270_v57  ;;  %11874 = vmatpush3.bf16.msra.mxu0 %v12271_v43 }
 0x619   : > { %v8470_v36 = vmax.f32 %v8454_v8, %v8462_v60  ;;  %v12650_v38 = vpop.eup %12649  ;;  %8433 = vst.msk [vmem:[#allocation2 + $0x2a] sm:$0xff] %vm1450_vm3, %v8422_v1  ;;  %v8439_v3 = vld [vmem:[#allocation2 + $0x18] sm:$0xff]  ;;  %v12273_v1 = vld [vmem:[%s17098_s10 + $0x60] sm:$0xff]  }
 0x61a   : > { %v8447_v7 = vld [vmem:[#allocation2 + $0x19] sm:$0xff]  ;;  %v8415_v33 = vadd.f32 1.0, %v12650_v38  ;;  %11875 = vmatprep.subr.bf16.mxu0 %v12273_v1 }
 0x61b   : > { %v8455_v28 = vmax.f32 %v8439_v3, %v8447_v7  ;;  %v8478_v45 = vld [vmem:[#allocation2 + $0x13] sm:$0xff]  ;;  %11896 = vmatpush3.bf16.msra.mxu1 %v12270_v57 }
 0x61c   : > { %v7934_v53 = vld [vmem:[#allocation5 + $0xe0] ss:$4 sm:$0xff]  ;;  %v12652_v52 = vpop.eup %12651  ;;  %v8486_v11 = vmax.f32 %v8470_v36, %v8478_v45  ;;  %v8423_v40 = vmul.f32 %v8415_v33, %v8391_v16  ;;  %11897 = vmatprep.subr.bf16.mxu1 %v12272_v5  ;;  %11876 = vmatpush3.bf16.msra.mxu0 %v12273_v1 }
 0x61d   : > { %v8463_v42 = vld [vmem:[#allocation2 + $0x1a] sm:$0xff]  ;;  %7942 = vst [vmem:[%s16246_s21 + $0x38] sm:$0xff] %v7934_v53  ;;  %v8416_v56 = vadd.f32 1.0, %v12652_v52  ;;  %v8464_v26 = vld [vmem:[#allocation2 + $0x22] sm:$0xff]  ;;  %v12275_v16 = vld [vmem:[%s17098_s10 + $0x10] sm:$0xff]  }
 0x61e   : > { %v8471_v24 = vmax.f32 %v8455_v28, %v8463_v42  ;;  %v8479_v6 = vld [vmem:[#allocation2 + $0x1b] sm:$0xff]  ;;  %8494 = vst.msk [vmem:[#allocation4 + $0x10] sm:$0xff] %vm1450_vm3, %v8486_v11  ;;  %8434 = vst.msk [vmem:[#allocation2 + $0x32] sm:$0xff] %vm1450_vm3, %v8423_v40 }
 0x61f   : > { %v8440_v17 = vld [vmem:[#allocation2 + $0x20] sm:$0xff]  ;;  %v8424_v47 = vmul.f32 %v8416_v56, %v8392_v22  ;;  %v8500_v32 = vld [vmem:[#allocation4] ss:$2 sm:$0xff]  ;;  %v12276_v33 = vld [vmem:[%s17098_s10 + $0x58] sm:$0xff]   ;;  %11898 = vmatpush3.bf16.msra.mxu1 %v12272_v5 }
 0x620   : > { %v8448_v10 = vld [vmem:[#allocation2 + $0x21] sm:$0xff]  ;;  %v8487_v4 = vmax.f32 %v8471_v24, %v8479_v6  ;;  %v10825_v35 = vpack.c.bf16 %v8500_v32, %v8500_v32  ;;  %v8449_v18 = vld [vmem:[#allocation2 + $0x29] sm:$0xff]  ;;  %11899 = vmatprep.subr.bf16.mxu1 %v12275_v16  ;;  %11877 = vmatprep.subr.bf16.mxu0 %v12276_v33 }
 0x621   : > { %v8456_v41 = vmax.f32 %v8440_v17, %v8448_v10  ;;  %8435 = vst.msk [vmem:[#allocation2 + $0x3a] sm:$0x1f] %vm17277_vm14, %v8424_v47  ;;  %v8441_v0 = vld [vmem:[#allocation2 + $0x28] sm:$0xff]  ;;  %11878 = vmatpush3.bf16.msra.mxu0 %v12276_v33  ;;  %vm8613_vm14 = vcmask 1040896  }
 0x622   : > { %8495 = vst.msk [vmem:[#allocation4 + $0x18] sm:$0xff] %vm1450_vm3, %v8487_v4  ;;  %v8582_v44 = vrot.slane %v10825_v35, 7  ;;  %v8526_v51 = vshrl.u32 %v10825_v35, 16  ;;  %v8529_v61 = vshll.u32 %v10825_v35, 16  ;;  %v8457_v55 = vmax.f32 %v8441_v0, %v8449_v18  ;;  %v8480_v27 = vld [vmem:[#allocation2 + $0x23] sm:$0xff] }
 0x623   : > { %v8472_v59 = vmax.f32 %v8456_v41, %v8464_v26  ;;  %v8465_v15 = vld [vmem:[#allocation2 + $0x2a] sm:$0xff]  ;;  %11900 = vmatpush3.bf16.msra.mxu1 %v12275_v16  ;;  %v12279_v35 = vld [vmem:[%s17098_s10] sm:$0xff]  }
 0x624   : > { %8593 = vrot.lane.b32.xlu0 %v8582_v44, %s17152_s20  ;;  %v8528_v49 = vrot.slane %v8526_v51, 6  ;;  %v8531_v34 = vrot.slane %v8529_v61, 7  ;;  %v8473_v30 = vmax.f32 %v8457_v55, %v8465_v15  ;;  %v8583_v60 = vrot.slane %v8582_v44, 4  ;;  %v12277_v10 = vld [vmem:[%s17098_s10 + $0x8] sm:$0xff]   ;;  %v12278_v41 = vld [vmem:[%s17098_s10 + $0x50] sm:$0xff]   ;;  %v16686_v51 = vld [vmem:[%s17098_s10 + $0xf8] sm:$0xff]  }
 0x625   : > { %v8488_v29 = vmax.f32 %v8472_v59, %v8480_v27  ;;  %v8481_v12 = vld [vmem:[#allocation2 + $0x2b] sm:$0xff]  ;;  %11901 = vmatprep.subr.bf16.mxu1 %v12277_v10  ;;  %11879 = vmatprep.subr.bf16.mxu0 %v12278_v41 }
 0x626   : > { %v8532_v48 = vor.u32 %v8531_v34, %v8528_v49  ;;  %v8442_v9 = vld [vmem:[#allocation2 + $0x30] sm:$0xff]  ;;  %v8489_v20 = vmax.f32 %v8473_v30, %v8481_v12  ;;  %v12280_v59 = vld [vmem:[%s17098_s10 + $0x48] sm:$0xff]   ;;  %11880 = vmatpush3.bf16.msra.mxu0 %v12278_v41  ;;  %v12285_v12 = vld [vmem:[%s17098_s10 + $0xb8] sm:$0xff]  }
 0x627   : > { %8496 = vst.msk [vmem:[#allocation4 + $0x20] sm:$0xff] %vm1450_vm3, %v8488_v29  ;;  %v8450_v46 = vld [vmem:[#allocation2 + $0x31] sm:$0xff]  ;;  %11902 = vmatpush3.bf16.msra.mxu1 %v12277_v10  ;;  %11881 = vmatprep.subr.bf16.mxu0 %v12280_v59  ;;  %v12289_v41 = vld [vmem:[%s17098_s10 + $0xe0] sm:$0xff]  }
 0x628   : > { %v8458_v23 = vmax.f32 %v8442_v9, %v8450_v46  ;;  %v8466_v31 = vld [vmem:[#allocation2 + $0x32] sm:$0xff]  ;;  %v8572_v37 = vsel %vm16634_vm4, %v8532_v48, %v8571_v62  ;;  %8497 = vst.msk [vmem:[#allocation4 + $0x28] sm:$0xff] %vm1450_vm3, %v8489_v20  ;;  %v8467_v50 = vld [vmem:[#allocation2 + $0x3a] sm:$0x1f]  ;;  %v8533_v40 = vrot.slane %v8532_v48, 4  ;;  %11903 = vmatprep.subr.bf16.mxu1 %v12279_v35 }
 0x629   : > { %v8501_v2 = vld [vmem:[#allocation4 + $0x10] ss:$2 sm:$0xff]  ;;  %8573 = vst [vmem:[#allocation6] sm:$0xe] %v8572_v37  ;;  %vm8614_vm4 = vsmask.f32 256 }
 0x62a   : > { %v8443_v13 = vld [vmem:[#allocation2 + $0x38] sm:$0x1f]  ;;  %v10826_v39 = vpack.c.bf16 %v8501_v2, %v8501_v2  ;;  %v8474_v8 = vmax.f32 %v8458_v23, %v8466_v31  ;;  %11882 = vmatpush3.bf16.msra.mxu0 %v12280_v59  ;;  %vm8615_vm11 = vmand %vm8613_vm14, %vm8614_vm4  ;;  %v12295_v59 = vld [vmem:[%s17098_s10 + $0xc8] sm:$0xff]  }
 0x62b   : > { %v8482_v19 = vld [vmem:[#allocation2 + $0x33] sm:$0xff]  ;;  %v8483_v42 = vld [vmem:[#allocation2 + $0x3b] sm:$0x1f]  ;;  %11904 = vmatpush3.bf16.msra.mxu1 %v12279_v35  ;;  %11883 = vmatprep.subr.bf16.mxu0 %v12282_v63 }
 0x62c   : > { %v8451_v54 = vld [vmem:[#allocation2 + $0x39] sm:$0x1f]  ;;  %v8535_v36 = vshrl.u32 %v10826_v39, 16  ;;  %v8538_v38 = vshll.u32 %v10826_v39, 16  ;;  %v8584_v3 = vrot.slane %v10826_v39, 7  ;;  %v8490_v7 = vmax.f32 %v8474_v8, %v8482_v19  ;;  %11929 = vmatprep.subr.bf16.mxu1 %v16686_v51 }
 0x62d   : > { %v8459_v58 = vmax.f32 %v8443_v13, %v8451_v54  ;;  %v12294_v35 = vld [vmem:[%s17098_s10 + $0x98] sm:$0xff]  }
 0x62e   : > { %v8537_v45 = vrot.slane %v8535_v36, 6  ;;  %v8540_v53 = vrot.slane %v8538_v38, 7  ;;  %v8585_v52 = vsel %vm16643_vm0, %v8583_v60, %v8584_v3  ;;  %8498 = vst.msk [vmem:[#allocation4 + $0x30] sm:$0xff] %vm1450_vm3, %v8490_v7  ;;  %v8586_v4 = vrot.slane %v8584_v3, 4  ;;  %11884 = vmatpush3.bf16.msra.mxu0 %v12282_v63  ;;  %v12284_v36 = vld [vmem:[%s17098_s10 + $0xf0] sm:$0xff]  }
 0x62f   : > { %v8475_v28 = vmax.f32 %v8459_v58, %v8467_v50  ;;  %8595 = vrot.lane.b32.xlu1 %v8585_v52, %s17152_s20  ;;  %v8502_v56 = vld [vmem:[#allocation4 + $0x20] ss:$2 sm:$0xff]  ;;  %vm8577_vm3 = vcmask 516096   ;;  %11909 = vmatprep.subr.bf16.mxu0 %v12285_v12 }
 0x630   : > { %v8541_v22 = vor.u32 %v8540_v53, %v8537_v45  ;;  %v10827_v24 = vpack.c.bf16 %v8502_v56, %v8502_v56 }
 0x631   : > { %v8491_v11 = vmax.f32 %v8475_v28, %v8483_v42 }
 0x632   : > { %v8542_v17 = vsel %vm13297_vm7, %v8533_v40, %v8541_v22  ;;  %v8545_v47 = vshrl.u32 %v10827_v24, 16  ;;  %v8548_v32 = vshll.u32 %v10827_v24, 16  ;;  %v8587_v26 = vrot.slane %v10827_v24, 7  ;;  %v12287_v40 = vld [vmem:[%s17098_s10 + $0xe8] sm:$0xff]   ;;  %v12288_v24 = vld [vmem:[%s17098_s10 + $0xb0] sm:$0xff]  }
 0x633   : > { %8499 = vst.msk [vmem:[#allocation4 + $0x38] sm:$0x1f] %vm17283_vm6, %v8491_v11  ;;  %v8543_v61 = vrot.slane %v8541_v22, 4  ;;  %vm16872_vm6 = vmand %vm17280_vm10, %vm8614_vm4 }
 0x634   : > { %8574 = vst.msk [vmem:[#allocation6 + $0x4] sm:$0xf] %vm1447_vm2, %v8542_v17  ;;  %v8547_v0 = vrot.slane %v8545_v47, 6  ;;  %v8550_v18 = vrot.slane %v8548_v32, 7  ;;  %v8588_v44 = vsel %vm16643_vm0, %v8586_v4, %v8587_v26  ;;  %v8589_v43 = vrot.slane %v8587_v26, 4  ;;  %v12290_v47 = vld [vmem:[%s17098_s10 + $0xa8] sm:$0xff]  }
 0x635   : > { %8597 = vrot.lane.b32.xlu0 %v8588_v44, %s17152_s20  ;;  %v12291_v32 = vld [vmem:[%s17098_s10 + $0xd8] sm:$0xff]   ;;  %v12292_v4 = vld [vmem:[%s17098_s10 + $0xa0] sm:$0xff]   ;;  %v12293_v26 = vld [vmem:[%s17098_s10 + $0xd0] sm:$0xff]  }
 0x636   : > { %v8551_v55 = vor.u32 %v8550_v18, %v8547_v0  ;;  %v12296_v0 = vld [vmem:[%s17098_s10 + $0x90] sm:$0xff]   ;;  %v12297_v18 = vld [vmem:[%s17098_s10 + $0xc0] sm:$0xff]  }
 0x638   : > { %v8552_v15 = vsel %vm13297_vm7, %v8543_v61, %v8551_v55  ;;  %v8553_v9 = vrot.slane %v8551_v55, 4  ;;  %v12300_v55 = vld [vmem:[%s17098_s10 + $0x80] sm:$0xff]  }
 0x639   : > { %8575 = vst.msk [vmem:[#allocation6 + $0x8] sm:$0xf] %vm1447_vm2, %v8552_v15 }
 0x63a   : > { %v8503_v27 = vld [vmem:[#allocation4 + $0x30] ss:$2 sm:$0x7f] }
 0x63b   : > { %v10828_v21 = vpack.c.bf16 %v8503_v27, %v8503_v27 }
 0x63d   : > { %v8555_v29 = vshrl.u32 %v10828_v21, 16  ;;  %v8558_v57 = vshll.u32 %v10828_v21, 16  ;;  %v8590_v49 = vrot.slane %v10828_v21, 7 }
 0x63f   : > { %v8557_v34 = vrot.slane %v8555_v29, 6  ;;  %v8560_v30 = vrot.slane %v8558_v57, 7  ;;  %v8591_v25 = vsel %vm16643_vm0, %v8589_v43, %v8590_v49  ;;  %v8592_v48 = vrot.slane %v8590_v49, 4  ;;  %v12302_v29 = vld [vmem:[%s17100_s12 + $0x78] sm:$0xff]   ;;  %v12304_v43 = vld [vmem:[%s17100_s12 + $0x70] sm:$0xff]  }
 0x640   : > { %8599 = vrot.lane.b32.xlu1 %v8591_v25, %s17152_s20  ;;  %v12303_v57 = vld [vmem:[%s17100_s12 + $0x38] sm:$0xff]   ;;  %v12306_v25 = vld [vmem:[%s17100_s12 + $0x30] sm:$0xff]  }
 0x641   : > { %v8561_v46 = vor.u32 %v8560_v30, %v8557_v34  ;;  %8601 = vrot.lane.b32.xlu0 %v8592_v48, %s17152_s20  ;;  %v12305_v49 = vld [vmem:[%s17100_s12 + $0xf8] sm:$0xff]   ;;  %v12309_v30 = vld [vmem:[%s17100_s12 + $0xf0] sm:$0xff]   ;;  %v12308_v48 = vld [vmem:[%s17100_s12 + $0x68] sm:$0xff]  }
 0x642   : > { %v12307_v34 = vld [vmem:[%s17100_s12 + $0xb8] sm:$0xff]  }
 0x643   : > { %v8563_v62 = vrot.slane %v8561_v46, 4  ;;  %v8562_v20 = vsel %vm13297_vm7, %v8553_v9, %v8561_v46  ;;  %v12313_v9 = vld [vmem:[%s17100_s12 + $0xe8] sm:$0xff]  }
 0x644   : > { %8576 = vst.msk [vmem:[#allocation6 + $0xc] sm:$0xf] %vm1447_vm2, %v8562_v20  ;;  %vm17288_vm2 = vmmov %vm17286_vm9  ;;  %v12310_v46 = vld [vmem:[%s17100_s12 + $0x28] sm:$0xff]  }
 0x645   : > { %8578 = vst.msk [vmem:[#allocation6 + $0x10] sm:$0x1] %vm8577_vm3, %v8563_v62  ;;  %v12312_v62 = vld [vmem:[%s17100_s12 + $0x60] sm:$0xff]   ;;  %v12315_v20 = vld [vmem:[%s17100_s12 + $0xa8] sm:$0xff]  }
 0x64c   : > { %v8616_v54 = vld [vmem:[#allocation6 + $0x10] sm:$0x1] }
 0x696   : > { %v8594_v23 = vpop.permute.xlu0 %8593 }
 0x697   : > { %8609 = vst.msk [vmem:[#allocation6] sm:$0xe] %vm17285_vm13, %v8594_v23  ;;  %v12317_v23 = vld [vmem:[%s17100_s12 + $0xe0] sm:$0xff]  }
 0x69e   : > { %v8619_v2 = vld [vmem:[#allocation6] sm:$0xf] }
 0x69f   : > { %v8639_v58 = vld [vmem:[#allocation6] sm:$0xe] }
 0x6a0   : > { %v9008_v50 = vld [vmem:[#allocation6] sm:$0x8] }
 0x6a1   : > { %v8596_v31 = vpop.permute.xlu1 %8595  ;;  %v8876_v3 = vld [vmem:[#allocation6] sm:$0xc] }
 0x6a2   : > { %8610 = vst.msk [vmem:[#allocation6 + $0x4] sm:$0xf] %vm17286_vm9, %v8596_v31  ;;  %v12314_v31 = vld [vmem:[%s17100_s12 + $0x20] sm:$0xff]  }
 0x6a7   : > { %v8598_v37 = vpop.permute.xlu0 %8597 }
 0x6a8   : > { %8611 = vst.msk [vmem:[#allocation6 + $0x8] sm:$0xf] %vm17287_vm15, %v8598_v37  ;;  %v12316_v37 = vld [vmem:[%s17100_s12 + $0x58] sm:$0xff]  }
 0x6a9   : > { %v8620_v13 = vld [vmem:[#allocation6 + $0x4] sm:$0xf] }
 0x6aa   : > { %v10642_v19 = vcombine.low %v8619_v2, %v8620_v13  ;;  %v10631_v5 = vcombine.low %v8639_v58, %v8620_v13  ;;  %v10661_v1 = vcombine.low %v9008_v50, %v8620_v13  ;;  %v10651_v7 = vcombine.low %v8876_v3, %v8620_v13  ;;  %v12319_v2 = vld [vmem:[%s17100_s12 + $0xa0] sm:$0xff]   ;;  %v12321_v13 = vld [vmem:[%s17100_s12 + $0xd8] sm:$0xff]   ;;  %v12324_v58 = vld [vmem:[%s17100_s12 + $0x48] sm:$0xff]  }
 0x6ab   : > { %v12327_v50 = vld [vmem:[%s17100_s12 + $0x90] sm:$0xff]   ;;  %v12335_v3 = vld [vmem:[%s17100_s12 + $0xc0] sm:$0xff]  }
 0x6ac   : > { %11905 = vmatprep.mubr.bf16.mxu1 %v10642_v19  ;;  %v8670_v16 = vrot.slane %v10631_v5, 1  ;;  %v9032_v28 = vrot.slane %v10661_v1, 3  ;;  %v8900_v56 = vrot.slane %v10651_v7, 2  ;;  %v12318_v19 = vld [vmem:[%s17100_s12 + $0x18] sm:$0xff]   ;;  %v12329_v5 = vld [vmem:[%s17100_s12 + $0xc8] sm:$0xff]   ;;  %v12330_v7 = vld [vmem:[%s17100_s12] sm:$0xff]  }
 0x6ad   : > { %v12326_v1 = vld [vmem:[%s17100_s12 + $0x8] sm:$0xff]  }
 0x6b2   : > { %v8600_v39 = vpop.permute.xlu1 %8599 }
 0x6b3   : > { %8612 = vst.msk [vmem:[#allocation6 + $0xc] sm:$0xf] %vm17288_vm2, %v8600_v39  ;;  %v8602_v8 = vpop.permute.xlu0 %8601  ;;  %v12320_v39 = vld [vmem:[%s17100_s12 + $0x50] sm:$0xff]  }
 0x6b4   : > { %v8617_v60 = vsel %vm8615_vm11, %v8602_v8, %v8616_v54  ;;  %v12323_v54 = vld [vmem:[%s17100_s12 + $0x98] sm:$0xff]   ;;  %v12325_v8 = vld [vmem:[%s17100_s12 + $0xd0] sm:$0xff]  }
 0x6b5   : > { %8618 = vst [vmem:[#allocation6 + $0x10] sm:$0x1] %v8617_v60  ;;  %v12322_v60 = vld [vmem:[%s17100_s12 + $0x10] sm:$0xff]  }
 0x6ba   : > { %v16713_v38 = vld [vmem:[#allocation6 + $0x8] sm:$0xff]  }
 0x6bb   : > { %11906 = vmatmul.mubr.bf16.vlgmr.msra.gmra.mxu1 %v16713_v38  ;;  %v8671_v33 = vrot.slane %v16713_v38, 1  ;;  %v9033_v45 = vrot.slane %v16713_v38, 3  ;;  %v8901_v11 = vrot.slane %v16713_v38, 2  ;;  %v12331_v38 = vld [vmem:[%s17100_s12 + $0x88] sm:$0xff]  }
 0x6bc   : > { %11930 = vmatpush3.bf16.msra.mxu1 %v16686_v51  ;;  %v12286_v53 = vld [vmem:[#allocation6 + $0x10] ss:$0 sps:$4 sm:$0x11]   ;;  %v12298_v51 = vld [vmem:[%s17098_s10 + $0x88] sm:$0xff]  }
 0x6bd   : > { %v8672_v52 = vsel %vm3454_vm8, %v8670_v16, %v8671_v33  ;;  %11931 = vmatprep.subr.bf16.mxu1 %v12284_v36  ;;  %v9034_v42 = vsel %vm4387_vm5, %v9032_v28, %v9033_v45  ;;  %v8673_v22 = vrot.slane %v12286_v53, 1  ;;  %v8902_v10 = vsel %vm3966_vm1, %v8900_v56, %v8901_v11  ;;  %v12299_v44 = vld [vmem:[#allocation6 + $0x10] ss:$0 sps:$4 sm:$0x77]   ;;  %v12334_v16 = vld [vmem:[%s17100_s12 + $0x1f8] sm:$0xff]  }
 0x6be   : > { %11885 = vmatprep.mubr.bf16.mxu0 %v8672_v52  ;;  %11945 = vmatprep.mubr.bf16.mxu1 %v9034_v42  ;;  %v9035_v61 = vrot.slane %v12299_v44, 3  ;;  %v12301_v27 = vld [vmem:[#allocation6 + $0x10] ss:$0 sps:$4 sm:$0x33]   ;;  %v12344_v28 = vld [vmem:[%s17100_s12 + $0x178] sm:$0xff]  }
 0x6bf   : > { %v8674_v17 = vsel %vm3454_vm8, %v8671_v33, %v8673_v22  ;;  %v8903_v21 = vrot.slane %v12301_v27, 2  ;;  %v12337_v33 = vld [vmem:[%s17100_s12 + $0x80] sm:$0xff]  }
 0x6c0   : > { %11932 = vmatpush3.bf16.msra.mxu1 %v12284_v36  ;;  %11886 = vmatmul.mubr.bf16.vlgmr.msra.gmra.mxu0 %v8674_v17  ;;  %v9036_v63 = vsel %vm4387_vm5, %v9033_v45, %v9035_v61  ;;  %v12328_v36 = vld [vmem:[%s17100_s12 + $0x40] sm:$0xff]  }
 0x6c1   : > { %11933 = vmatprep.subr.bf16.mxu1 %v12287_v40  ;;  %11910 = vmatpush3.bf16.msra.mxu0 %v12285_v12  ;;  %v8904_v15 = vsel %vm3966_vm1, %v8901_v11, %v8903_v21  ;;  %v12311_v12 = vld [vmem:[%s17100_s12 + $0xb0] sm:$0xff]  }
 0x6c2   : > { %11925 = vmatprep.mubr.bf16.mxu0 %v8902_v10  ;;  %11911 = vmatprep.subr.bf16.mxu0 %v12288_v24 }
 0x6c4   : > { %11934 = vmatpush3.bf16.msra.mxu1 %v12287_v40 }
 0x6c5   : > { %11935 = vmatprep.subr.bf16.mxu1 %v12289_v41  ;;  %11912 = vmatpush3.bf16.msra.mxu0 %v12288_v24 }
 0x6c6   : > { %11913 = vmatprep.subr.bf16.mxu0 %v12290_v47 }
 0x6c8   : > { %11936 = vmatpush3.bf16.msra.mxu1 %v12289_v41 }
 0x6c9   : > { %11937 = vmatprep.subr.bf16.mxu1 %v12291_v32  ;;  %11914 = vmatpush3.bf16.msra.mxu0 %v12290_v47 }
 0x6ca   : > { %11915 = vmatprep.subr.bf16.mxu0 %v12292_v4 }
 0x6cc   : > { %11938 = vmatpush3.bf16.msra.mxu1 %v12291_v32 }
 0x6cd   : > { %11939 = vmatprep.subr.bf16.mxu1 %v12293_v26  ;;  %11916 = vmatpush3.bf16.msra.mxu0 %v12292_v4  ;;  %v10671_v4 = vld [vmem:[%s17099_s11] ss:$0 sm:$0xff] }
 0x6ce   : > { %11917 = vmatprep.subr.bf16.mxu0 %v12294_v35 }
 0x6d0   : > { %11940 = vmatpush3.bf16.msra.mxu1 %v12293_v26 }
 0x6d1   : > { %11941 = vmatprep.subr.bf16.mxu1 %v12295_v59  ;;  %11918 = vmatpush3.bf16.msra.mxu0 %v12294_v35 }
 0x6d2   : > { %11919 = vmatprep.subr.bf16.mxu0 %v12296_v0 }
 0x6d4   : > { %11942 = vmatpush3.bf16.msra.mxu1 %v12295_v59 }
 0x6d5   : > { %11943 = vmatprep.subr.bf16.mxu1 %v12297_v18  ;;  %11920 = vmatpush3.bf16.msra.mxu0 %v12296_v0 }
 0x6d6   : > { %11921 = vmatprep.subr.bf16.mxu0 %v12298_v51 }
 0x6d8   : > { %11944 = vmatpush3.bf16.msra.mxu1 %v12297_v18 }
 0x6d9   : > { %11922 = vmatpush3.bf16.msra.mxu0 %v12298_v51  ;;  %11521 = vmatprep.subr.bf16.mxu1 %v12302_v29 }
 0x6da   : > { %11923 = vmatprep.subr.bf16.mxu0 %v12300_v55 }
 0x6db   : > { %11946 = vmatmul.mubr.bf16.vlgmr.msra.gmra.mxu1 %v9036_v63 }
 0x6dc   : > { %11522 = vmatpush3.bf16.msra.mxu1 %v12303_v57 }
 0x6dd   : > { %11924 = vmatpush3.bf16.msra.mxu0 %v12300_v55  ;;  %11523 = vmatprep.subr.bf16.mxu1 %v12304_v43 }
 0x6de   : > { %11493 = vmatprep.subr.bf16.mxu0 %v12305_v49 }
 0x6e0   : > { %11926 = vmatmul.mubr.bf16.vlgmr.msra.gmra.mxu0 %v8904_v15  ;;  %11524 = vmatpush3.bf16.msra.mxu1 %v12306_v25 }
 0x6e1   : > { %11494 = vmatpush3.bf16.msra.mxu0 %v12307_v34  ;;  %11525 = vmatprep.subr.bf16.mxu1 %v12308_v48 }
 0x6e2   : > { %11495 = vmatprep.subr.bf16.mxu0 %v12309_v30 }
 0x6e4   : > { %11526 = vmatpush3.bf16.msra.mxu1 %v12310_v46 }
 0x6e5   : > { %11496 = vmatpush3.bf16.msra.mxu0 %v12311_v12  ;;  %11527 = vmatprep.subr.bf16.mxu1 %v12312_v62 }
 0x6e6   : > { %11497 = vmatprep.subr.bf16.mxu0 %v12313_v9 }
 0x6e8   : > { %11528 = vmatpush3.bf16.msra.mxu1 %v12314_v31 }
 0x6e9   : > { %11498 = vmatpush3.bf16.msra.mxu0 %v12315_v20  ;;  %11529 = vmatprep.subr.bf16.mxu1 %v12316_v37 }
 0x6ea   : > { %11499 = vmatprep.subr.bf16.mxu0 %v12317_v23 }
 0x6ec   : > { %11530 = vmatpush3.bf16.msra.mxu1 %v12318_v19 }
 0x6ed   : > { %11500 = vmatpush3.bf16.msra.mxu0 %v12319_v2  ;;  %11531 = vmatprep.subr.bf16.mxu1 %v12320_v39 }
 0x6ee   : > { %11501 = vmatprep.subr.bf16.mxu0 %v12321_v13 }
 0x6f0   : > { %11532 = vmatpush3.bf16.msra.mxu1 %v12322_v60 }
 0x6f1   : > { %11502 = vmatpush3.bf16.msra.mxu0 %v12323_v54  ;;  %11533 = vmatprep.subr.bf16.mxu1 %v12324_v58 }
 0x6f2   : > { %11503 = vmatprep.subr.bf16.mxu0 %v12325_v8 }
 0x6f4   : > { %11534 = vmatpush3.bf16.msra.mxu1 %v12326_v1 }
 0x6f5   : > { %11504 = vmatpush3.bf16.msra.mxu0 %v12327_v50  ;;  %11535 = vmatprep.subr.bf16.mxu1 %v12328_v36 }
 0x6f6   : > { %11505 = vmatprep.subr.bf16.mxu0 %v12329_v5 }
 0x6f8   : > { %11536 = vmatpush3.bf16.msra.mxu1 %v12330_v7 }
 0x6f9   : > { %11506 = vmatpush3.bf16.msra.mxu0 %v12331_v38  ;;  %11577 = vmatprep.subr.bf16.mxu1 %v12334_v16 }
 0x6fa   : > { %11507 = vmatprep.subr.bf16.mxu0 %v12335_v3 }
 0x6fd   : > { %11508 = vmatpush3.bf16.msra.mxu0 %v12337_v33 }
 0x6fe   : > { %11549 = vmatprep.subr.bf16.mxu0 %v12344_v28 }
 0x77b   : > { %v11907_v45 = vpop.f32.mrf.mxu1 }
 0x77d   : > { %v8861_v52 = vpop.f32.mrf.mxu1 }
 0x77f   : > { %v11908_v11 = vpop.f32.mrf.mxu1 }
 0x780   : > { %v11887_v53 = vpop.f32.mrf.mxu0 }
 0x781   : > { %v8864_v22 = vpop.f32.mrf.mxu1  ;;  %v8870_v17 = vadd.f32 %v11907_v45, %v11887_v53 }
 0x782   : > { %v8759_v42 = vpop.f32.mrf.mxu0 }
 0x783   : > { %v8862_v41 = vadd.f32 %v8861_v52, %v8759_v42 }
 0x784   : > { %v11888_v40 = vpop.f32.mrf.mxu0 }
 0x785   : > { %v8873_v35 = vadd.f32 %v11908_v11, %v11888_v40 }
 0x786   : > { %v8762_v24 = vpop.f32.mrf.mxu0 }
 0x787   : > { %v8865_v27 = vadd.f32 %v8864_v22, %v8762_v24 }
 0x79b   : > { %v11947_v56 = vpop.f32.mrf.mxu1 }
 0x79d   : > { %v9121_v47 = vpop.f32.mrf.mxu1 }
 0x79f   : > { %v11948_v44 = vpop.f32.mrf.mxu1 }
 0x7a0   : > { %v11927_v10 = vpop.f32.mrf.mxu0 }
 0x7a1   : > { %v9006_v32 = vadd.f32 %v11927_v10, %v8870_v17  ;;  %v9124_v43 = vpop.f32.mrf.mxu1  ;;  %v12355_v10 = vld [vmem:[%s17100_s12 + $0x168] sm:$0xff]  }
 0x7a2   : > { %v8989_v26 = vpop.f32.mrf.mxu0 }
 0x7a3   : > { %v9138_v59 = vadd.f32 %v11947_v56, %v9006_v32  ;;  %v9004_v0 = vadd.f32 %v8989_v26, %v8862_v41  ;;  %v9237_v26 = vld [vmem:[#allocation7] sm:$0xe] }
 0x7a4   : > { %v11928_v18 = vpop.f32.mrf.mxu0 }
 0x7a5   : > { %v9149_v51 = vadd.f32 %v10671_v4, %v9138_v59  ;;  %v9136_v61 = vadd.f32 %v9121_v47, %v9004_v0  ;;  %v9007_v55 = vadd.f32 %v11928_v18, %v8873_v35 }
 0x7a6   : > { %v8992_v63 = vpop.f32.mrf.mxu0 }
 0x7a7   : > { %v9157_v21 = vmul.f32 0.70710677, %v9149_v51  ;;  %v9147_v15 = vadd.f32 %v10671_v4, %v9136_v61  ;;  %v9139_v29 = vadd.f32 %v11948_v44, %v9007_v55  ;;  %v9005_v57 = vadd.f32 %v8992_v63, %v8865_v27  ;;  %v9265_v27 = vld [vmem:[#allocation7 + $0x24] sm:$0x1] }
 0x7a8   : > { %v9153_v46 = vmul.f32 0.5, %v9149_v51  ;;  %v12363_v51 = vld [vmem:[%s17100_s12 + $0x198] sm:$0xff]  }
 0x7a9   : > { %12653 = verf.f32 %v9157_v21  ;;  %v9155_v49 = vmul.f32 0.70710677, %v9147_v15  ;;  %v9150_v34 = vadd.f32 %v10671_v4, %v9139_v29  ;;  %v9137_v30 = vadd.f32 %v9124_v43, %v9005_v57 }
 0x7aa   : > { %v9151_v31 = vmul.f32 0.5, %v9147_v15 }
 0x7ab   : > { %12655 = verf.f32 %v9155_v49  ;;  %v9158_v25 = vmul.f32 0.70710677, %v9150_v34  ;;  %v9148_v48 = vadd.f32 %v10671_v4, %v9137_v30  ;;  %v9154_v54 = vmul.f32 0.5, %v9150_v34 }
 0x7ad   : > { %12657 = verf.f32 %v9158_v25  ;;  %v9156_v12 = vmul.f32 0.70710677, %v9148_v48  ;;  %v9152_v1 = vmul.f32 0.5, %v9148_v48 }
 0x7af   : > { %12659 = verf.f32 %v9156_v12 }
 0x7b6   : > { %v12654_v9 = vpop.eup %12653 }
 0x7b7   : > { %v9165_v62 = vadd.f32 1.0, %v12654_v9 }
 0x7b8   : > { %v12656_v20 = vpop.eup %12655 }
 0x7b9   : > { %v9169_v23 = vmul.f32 %v9165_v62, %v9153_v46  ;;  %v9163_v37 = vadd.f32 1.0, %v12656_v20 }
 0x7ba   : > { %v12658_v2 = vpop.eup %12657 }
 0x7bb   : > { %v10831_v13 = vpack.c.bf16 %v9169_v23, %v9169_v23  ;;  %v9167_v19 = vmul.f32 %v9163_v37, %v9151_v31  ;;  %v9166_v39 = vadd.f32 1.0, %v12658_v2  ;;  %v12336_v2 = vld [vmem:[%s17100_s12 + $0x1b8] sm:$0xff]  }
 0x7bc   : > { %v12660_v8 = vpop.eup %12659 }
 0x7bd   : > { %v9213_v60 = vshrl.u32 %v10831_v13, 16  ;;  %v9216_v58 = vshll.u32 %v10831_v13, 16  ;;  %v10829_v50 = vpack.c.bf16 %v9167_v19, %v9167_v19  ;;  %v9170_v5 = vmul.f32 %v9166_v39, %v9154_v54 }
 0x7be   : > { %v9164_v36 = vadd.f32 1.0, %v12660_v8  ;;  %v9249_v7 = vrot.slane %v10831_v13, 7  ;;  %v12341_v13 = vld [vmem:[%s17100_s12 + $0x1f0] sm:$0xff]  }
 0x7bf   : > { %v9215_v38 = vrot.slane %v9213_v60, 6  ;;  %v9218_v3 = vrot.slane %v9216_v58, 7  ;;  %v9194_v16 = vshrl.u32 %v10829_v50, 16  ;;  %v9197_v33 = vshll.u32 %v10829_v50, 16 }
 0x7c0   : > { %v9244_v28 = vrot.slane %v10829_v50, 7  ;;  %v10832_v45 = vpack.c.bf16 %v9170_v5, %v9170_v5  ;;  %v9168_v53 = vmul.f32 %v9164_v36, %v9152_v1  ;;  %v9251_v56 = vrot.slane %v9249_v7, 4  ;;  %v12345_v36 = vld [vmem:[%s17100_s12 + $0x1b0] sm:$0xff]  }
 0x7c1   : > { %v9196_v52 = vrot.slane %v9194_v16, 6  ;;  %v9219_v42 = vor.u32 %v9218_v3, %v9215_v38  ;;  %v9199_v11 = vrot.slane %v9197_v33, 7  ;;  %v12346_v38 = vld [vmem:[%s17100_s12 + $0x138] sm:$0xff]   ;;  %v12348_v33 = vld [vmem:[%s17100_s12 + $0x1e8] sm:$0xff]  }
 0x7c2   : > { %9260 = vst [vmem:[#allocation7 + $0x4] sm:$0xe] %v9244_v28  ;;  %v9223_v40 = vshrl.u32 %v10832_v45, 16  ;;  %v9226_v22 = vshll.u32 %v10832_v45, 16  ;;  %v9252_v24 = vrot.slane %v10832_v45, 7  ;;  %v10830_v17 = vpack.c.bf16 %v9168_v53, %v9168_v53  ;;  %v12349_v45 = vld [vmem:[%s17100_s12 + $0x170] sm:$0xff]  }
 0x7c3   : > { %v9200_v41 = vor.u32 %v9199_v11, %v9196_v52  ;;  %v9245_v47 = vrot.slane %v9244_v28, 4  ;;  %v9221_v44 = vrot.slane %v9219_v42, 4  ;;  %v12350_v11 = vld [vmem:[%s17100_s12 + $0x1a8] sm:$0xff]  }
 0x7c4   : > { %v9225_v32 = vrot.slane %v9223_v40, 6  ;;  %v9228_v4 = vrot.slane %v9226_v22, 7  ;;  %v9253_v35 = vsel %vm16643_vm0, %v9251_v56, %v9252_v24  ;;  %v9254_v59 = vrot.slane %v9252_v24, 4  ;;  %v12351_v40 = vld [vmem:[%s17100_s12 + $0x130] sm:$0xff]  }
 0x7c5   : > { %v9203_v0 = vshrl.u32 %v10830_v17, 16  ;;  %v9206_v18 = vshll.u32 %v10830_v17, 16  ;;  %v9238_v61 = vsel %vm14825_vm12, %v9200_v41, %v9237_v26  ;;  %9263 = vst [vmem:[#allocation7 + $0x1c] sm:$0xf] %v9253_v35  ;;  %v9246_v63 = vrot.slane %v10830_v17, 7  ;;  %v12354_v17 = vld [vmem:[%s17100_s12 + $0x1e0] sm:$0xff]  }
 0x7c6   : > { %v9229_v55 = vor.u32 %v9228_v4, %v9225_v32  ;;  %9239 = vst [vmem:[#allocation7] sm:$0xe] %v9238_v61  ;;  %v9266_v21 = vsel %vm16872_vm6, %v9254_v59, %v9265_v27  ;;  %v9201_v30 = vrot.slane %v9200_v41, 4  ;;  %v12358_v4 = vld [vmem:[%s17100_s12 + $0x128] sm:$0xff]   ;;  %v12361_v59 = vld [vmem:[%s17100_s12 + $0x1d8] sm:$0xff]   ;;  %v12364_v61 = vld [vmem:[%s17100_s12 + $0x120] sm:$0xff]  }
 0x7c7   : > { %v9205_v15 = vrot.slane %v9203_v0, 6  ;;  %v9208_v29 = vrot.slane %v9206_v18, 7  ;;  %9267 = vst [vmem:[#allocation7 + $0x24] sm:$0x1] %v9266_v21  ;;  %v9247_v49 = vsel %vm16643_vm0, %v9245_v47, %v9246_v63  ;;  %v9248_v34 = vrot.slane %v9246_v63, 4  ;;  %v12356_v47 = vld [vmem:[%s17100_s12 + $0x1a0] sm:$0xff]  }
 0x7c8   : > { %v9230_v57 = vsel %vm13297_vm7, %v9221_v44, %v9229_v55  ;;  %v9231_v43 = vrot.slane %v9229_v55, 4  ;;  %9261 = vst [vmem:[#allocation7 + $0xc] sm:$0xf] %v9247_v49  ;;  %v12362_v18 = vld [vmem:[%s17100_s12 + $0x160] sm:$0xff]   ;;  %v12365_v55 = vld [vmem:[%s17100_s12 + $0x1d0] sm:$0xff]   ;;  %v12366_v27 = vld [vmem:[%s17100_s12 + $0x158] sm:$0xff]  }
 0x7c9   : > { %9242 = vst [vmem:[#allocation7 + $0x18] sm:$0xf] %v9230_v57  ;;  %v9209_v25 = vor.u32 %v9208_v29, %v9205_v15  ;;  %v9250_v48 = vsel %vm16643_vm0, %v9248_v34, %v9249_v7  ;;  %v12367_v63 = vld [vmem:[%s17100_s12 + $0x190] sm:$0xff]   ;;  %v12368_v21 = vld [vmem:[%s17100_s12 + $0x118] sm:$0xff]   ;;  %v12369_v15 = vld [vmem:[%s17100_s12 + $0x1c8] sm:$0xff]  }
 0x7ca   : > { %9243 = vst [vmem:[#allocation7 + $0x20] sm:$0x1] %v9231_v43  ;;  %9262 = vst [vmem:[#allocation7 + $0x14] sm:$0xf] %v9250_v48  ;;  %v12370_v29 = vld [vmem:[%s17100_s12 + $0x150] sm:$0xff]   ;;  %v12371_v57 = vld [vmem:[%s17100_s12 + $0x188] sm:$0xff]  }
 0x7cb   : > { %v9210_v12 = vsel %vm13297_vm7, %v9201_v30, %v9209_v25  ;;  %v9211_v9 = vrot.slane %v9209_v25, 4  ;;  %v12372_v43 = vld [vmem:[%s17100_s12 + $0x110] sm:$0xff]   ;;  %v12373_v49 = vld [vmem:[%s17100_s12 + $0x1c0] sm:$0xff]   ;;  %v12374_v34 = vld [vmem:[%s17100_s12 + $0x148] sm:$0xff]  }
 0x7cc   : > { %9240 = vst [vmem:[#allocation7 + $0x8] sm:$0xf] %v9210_v12  ;;  %v12375_v48 = vld [vmem:[%s17100_s12 + $0x180] sm:$0xff]   ;;  %v12376_v12 = vld [vmem:[%s17100_s12 + $0x108] sm:$0xff]  }
 0x7cd   : > { %v9220_v46 = vsel %vm13297_vm7, %v9211_v9, %v9219_v42  ;;  %v9268_v62 = vld [vmem:[#allocation7] sm:$0xff] }
 0x7ce   : > { %9241 = vst [vmem:[#allocation7 + $0x10] sm:$0xf] %v9220_v46  ;;  %v9304_v23 = vld [vmem:[#allocation7] sm:$0xee] }
 0x7cf   : > { %v16910_v1 = vld [vmem:[#allocation7] sm:$0x88] }
 0x7d0   : > { %v16929_v52 = vld [vmem:[#allocation7] sm:$0xcc] }
 0x7d1   : > { %v9305_v31 = vld [vmem:[#allocation7 + $0x20] sm:$0x11]  ;;  %v16906_v54 = vld [vmem:[#allocation7 + $0x14] ss:$8 sps:$4 sm:$0xff]  }
 0x7d2   : > { %v10681_v58 = vcombine.high %v9305_v31, %v9305_v31  ;;  %v9363_v50 = vrot.slane %v16906_v54, 1  ;;  %v10680_v53 = vcombine.low %v9305_v31, %v9305_v31  ;;  %v9927_v56 = vrot.slane %v16906_v54, 3  ;;  %v9880_v25 = vld [vmem:[#allocation7 + $0x20] sm:$0x77] }
 0x7d3   : > { %v16892_v20 = vld [vmem:[#allocation7 + $0x8] sm:$0xff]  ;;  %v9720_v35 = vrot.slane %v16906_v54, 2  ;;  %v12377_v9 = vld [vmem:[%s17100_s12 + $0x140] sm:$0xff]   ;;  %v10739_v46 = vcombine.high %v9880_v25, %v9880_v25 }
 0x7d4   : > { %v10698_v37 = vcombine.low %v9268_v62, %v16892_v20  ;;  %v10699_v14 = vcombine.high %v9268_v62, %v16892_v20  ;;  %v10676_v6 = vcombine.low %v9304_v23, %v16892_v20  ;;  %v10677_v19 = vcombine.high %v9304_v23, %v16892_v20 }
 0x7d5   : > { %v16904_v39 = vld [vmem:[#allocation7 + $0x10] ss:$8 sps:$4 sm:$0xff]   ;;  %v10737_v3 = vcombine.high %v16910_v1, %v16892_v20  ;;  %v9367_v28 = vrot.slane %v10681_v58, 1  ;;  %v10717_v24 = vcombine.high %v16929_v52, %v16892_v20  ;;  %v9365_v32 = vrot.slane %v10680_v53, 1 }
 0x7d6   : > { %9655 = vmatprep.mubr.bf16.mxu1 %v10699_v14  ;;  %v9359_v8 = vrot.slane %v10676_v6, 1  ;;  %v9362_v60 = vrot.slane %v10677_v19, 1  ;;  %v9360_v5 = vrot.slane %v16904_v39, 1  ;;  %v10736_v30 = vcombine.low %v16910_v1, %v16892_v20  ;;  %v12379_v14 = vld [vmem:[%s17100_s12 + $0x100] sm:$0xff]  }
 0x7d7   : > { %9656 = vmatmul.mubr.bf16.vlgmr.msra.gmra.mxu1 %v10698_v37  ;;  %v9368_v42 = vsel %vm3454_vm8, %v9363_v50, %v9367_v28  ;;  %v9926_v22 = vrot.slane %v10737_v3, 3  ;;  %v9719_v26 = vrot.slane %v10717_v24, 2  ;;  %v10716_v23 = vcombine.low %v16929_v52, %v16892_v20  ;;  %v9673_v37 = vld [vmem:[#allocation7 + $0x20] sm:$0x33] }
 0x7d8   : > { %11578 = vmatpush3.bf16.msra.mxu1 %v12336_v2  ;;  %9663 = vmatprep.mubr.bf16.mxu1 %v16906_v54  ;;  %v9364_v7 = vsel %vm3454_vm8, %v9362_v60, %v9363_v50  ;;  %v9361_v16 = vsel %vm3454_vm8, %v9359_v8, %v9360_v5  ;;  %v9366_v0 = vsel %vm3454_vm8, %v9360_v5, %v9365_v32  ;;  %v9923_v62 = vrot.slane %v10736_v30, 3 }
 0x7d9   : > { %11579 = vmatprep.subr.bf16.mxu1 %v12341_v13  ;;  %9501 = vmatprep.mubr.bf16.mxu0 %v9364_v7  ;;  %v9928_v41 = vsel %vm4387_vm5, %v9926_v22, %v9927_v56  ;;  %v9721_v44 = vsel %vm3966_vm1, %v9719_v26, %v9720_v35  ;;  %v9924_v31 = vrot.slane %v16904_v39, 3  ;;  %v9931_v2 = vrot.slane %v10739_v46, 3 }
 0x7da   : > { %9502 = vmatmul.mubr.bf16.vlgmr.msra.gmra.mxu0 %v9361_v16  ;;  %v10719_v13 = vcombine.high %v9673_v37, %v9673_v37  ;;  %v9716_v6 = vrot.slane %v10716_v23, 2  ;;  %v9717_v8 = vrot.slane %v16904_v39, 2  ;;  %v10738_v60 = vcombine.low %v9880_v25, %v9880_v25 }
 0x7db   : > { %11550 = vmatpush3.bf16.msra.mxu0 %v12346_v38  ;;  %9509 = vmatprep.mubr.bf16.mxu0 %v9368_v42  ;;  %v9925_v19 = vsel %vm4387_vm5, %v9923_v62, %v9924_v31  ;;  %v9932_v20 = vsel %vm4387_vm5, %v9927_v56, %v9931_v2 }
 0x7dc   : > { %11580 = vmatpush3.bf16.msra.mxu1 %v12345_v36  ;;  %11551 = vmatprep.subr.bf16.mxu0 %v12349_v45  ;;  %v9724_v58 = vrot.slane %v10719_v13, 2  ;;  %v9718_v50 = vsel %vm3966_vm1, %v9716_v6, %v9717_v8  ;;  %v9929_v1 = vrot.slane %v10738_v60, 3  ;;  %v10718_v36 = vcombine.low %v9673_v37, %v9673_v37 }
 0x7dd   : > { %11581 = vmatprep.subr.bf16.mxu1 %v12348_v33 }
 0x7de   : > { %v9725_v5 = vsel %vm3966_vm1, %v9720_v35, %v9724_v58  ;;  %v9722_v38 = vrot.slane %v10718_v36, 2 }
 0x7df   : > { %9664 = vmatmul.mubr.bf16.gmra.mxu1 %v16904_v39  ;;  %11552 = vmatpush3.bf16.msra.mxu0 %v12351_v40  ;;  %v9930_v39 = vsel %vm4387_vm5, %v9924_v31, %v9929_v1 }
 0x7e0   : > { %11582 = vmatpush3.bf16.msra.mxu1 %v12350_v11  ;;  %10065 = vmatprep.mubr.bf16.mxu1 %v9928_v41  ;;  %v9723_v3 = vsel %vm3966_vm1, %v9717_v8, %v9722_v38 }
 0x7e1   : > { %11583 = vmatprep.subr.bf16.mxu1 %v12354_v17  ;;  %11553 = vmatprep.subr.bf16.mxu0 %v12355_v10 }
 0x7e2   : > { %9510 = vmatmul.mubr.bf16.gmra.mxu0 %v9366_v0 }
 0x7e3   : > { %11554 = vmatpush3.bf16.msra.mxu0 %v12358_v4  ;;  %9858 = vmatprep.mubr.bf16.mxu0 %v9721_v44 }
 0x7e4   : > { %11584 = vmatpush3.bf16.msra.mxu1 %v12356_v47  ;;  %11555 = vmatprep.subr.bf16.mxu0 %v12362_v18 }
 0x7e5   : > { %11585 = vmatprep.subr.bf16.mxu1 %v12361_v59 }
 0x7e7   : > { %11556 = vmatpush3.bf16.msra.mxu0 %v12364_v61 }
 0x7e8   : > { %11586 = vmatpush3.bf16.msra.mxu1 %v12363_v51  ;;  %11557 = vmatprep.subr.bf16.mxu0 %v12366_v27 }
 0x7e9   : > { %11587 = vmatprep.subr.bf16.mxu1 %v12365_v55 }
 0x7eb   : > { %11558 = vmatpush3.bf16.msra.mxu0 %v12368_v21 }
 0x7ec   : > { %11588 = vmatpush3.bf16.msra.mxu1 %v12367_v63  ;;  %11559 = vmatprep.subr.bf16.mxu0 %v12370_v29 }
 0x7ed   : > { %11589 = vmatprep.subr.bf16.mxu1 %v12369_v15  ;;  %v10756_v15 = vld [vmem:[%s17101_s13] ss:$0 sm:$0xff] }
 0x7ef   : > { %11560 = vmatpush3.bf16.msra.mxu0 %v12372_v43 }
 0x7f0   : > { %11590 = vmatpush3.bf16.msra.mxu1 %v12371_v57  ;;  %11561 = vmatprep.subr.bf16.mxu0 %v12374_v34 }
 0x7f1   : > { %11591 = vmatprep.subr.bf16.mxu1 %v12373_v49 }
 0x7f3   : > { %11562 = vmatpush3.bf16.msra.mxu0 %v12376_v12 }
 0x7f4   : > { %11592 = vmatpush3.bf16.msra.mxu1 %v12375_v48  ;;  %11563 = vmatprep.subr.bf16.mxu0 %v12377_v9 }
 0x7f7   : > { %10066 = vmatmul.mubr.bf16.vlgmr.msra.gmra.mxu1 %v9925_v19  ;;  %11564 = vmatpush3.bf16.msra.mxu0 %v12379_v14 }
 0x7f8   : > { %10073 = vmatprep.mubr.bf16.mxu1 %v9932_v20 }
 0x7fa   : > { %9859 = vmatmul.mubr.bf16.vlgmr.msra.gmra.mxu0 %v9718_v50 }
 0x7fb   : > { %9866 = vmatprep.mubr.bf16.mxu0 %v9725_v5 }
 0x7ff   : > { %10074 = vmatmul.mubr.bf16.gmra.mxu1 %v9930_v39 }
 0x802   : > { %9867 = vmatmul.mubr.bf16.gmra.mxu0 %v9723_v3 }
 0x897   : > { %v11537_v7 = vpop.f32.mrf.mxu1 }
 0x899   : > { %v11538_v16 = vpop.f32.mrf.mxu1 }
 0x89a   : > { %v11509_v33 = vpop.f32.mrf.mxu0  ;;  %v11539_v35 = vadd.f32 %v11538_v16, %v11537_v7 }
 0x89b   : > { %v11540_v28 = vpop.f32.mrf.mxu1 }
 0x89c   : > { %v11510_v45 = vpop.f32.mrf.mxu0 }
 0x89d   : > { %v11541_v53 = vpop.f32.mrf.mxu1  ;;  %v11511_v32 = vadd.f32 %v11510_v45, %v11509_v33 }
 0x89e   : > { %v11512_v52 = vpop.f32.mrf.mxu0  ;;  %v11542_v27 = vadd.f32 %v11541_v53, %v11540_v28 }
 0x89f   : > { %v11543_v54 = vpop.f32.mrf.mxu1  ;;  %v9658_v18 = vadd.f32 %v11539_v35, %v11511_v32 }
 0x8a0   : > { %v11513_v42 = vpop.f32.mrf.mxu0 }
 0x8a1   : > { %v11544_v11 = vpop.f32.mrf.mxu1  ;;  %v11514_v44 = vadd.f32 %v11513_v42, %v11512_v52 }
 0x8a2   : > { %v11515_v40 = vpop.f32.mrf.mxu0  ;;  %v11545_v46 = vadd.f32 %v11544_v11, %v11543_v54 }
 0x8a3   : > { %v11546_v22 = vpop.f32.mrf.mxu1  ;;  %v9661_v43 = vadd.f32 %v11542_v27, %v11514_v44 }
 0x8a4   : > { %v11516_v56 = vpop.f32.mrf.mxu0 }
 0x8a5   : > { %v11547_v24 = vpop.f32.mrf.mxu1  ;;  %v11517_v30 = vadd.f32 %v11516_v56, %v11515_v40 }
 0x8a6   : > { %v11518_v17 = vpop.f32.mrf.mxu0  ;;  %v11548_v19 = vadd.f32 %v11547_v24, %v11546_v22 }
 0x8a7   : > { %v9666_v2 = vadd.f32 %v11545_v46, %v11517_v30 }
 0x8a8   : > { %v11519_v41 = vpop.f32.mrf.mxu0 }
 0x8a9   : > { %v11520_v31 = vadd.f32 %v11519_v41, %v11518_v17 }
 0x8ab   : > { %v9669_v5 = vadd.f32 %v11548_v19, %v11520_v31 }
 0x8b7   : > { %v11593_v10 = vpop.f32.mrf.mxu1 }
 0x8b9   : > { %v11594_v47 = vpop.f32.mrf.mxu1 }
 0x8ba   : > { %v11565_v26 = vpop.f32.mrf.mxu0  ;;  %v11595_v63 = vadd.f32 %v11594_v47, %v11593_v10 }
 0x8bb   : > { %v11596_v4 = vpop.f32.mrf.mxu1 }
 0x8bc   : > { %v11566_v0 = vpop.f32.mrf.mxu0 }
 0x8bd   : > { %v11597_v59 = vpop.f32.mrf.mxu1  ;;  %v11567_v51 = vadd.f32 %v11566_v0, %v11565_v26 }
 0x8be   : > { %v11568_v55 = vpop.f32.mrf.mxu0  ;;  %v11598_v48 = vadd.f32 %v11597_v59, %v11596_v4 }
 0x8bf   : > { %v11599_v61 = vpop.f32.mrf.mxu1  ;;  %v9875_v21 = vadd.f32 %v11567_v51, %v9658_v18 }
 0x8c0   : > { %v11569_v57 = vpop.f32.mrf.mxu0 }
 0x8c1   : > { %v11600_v29 = vpop.f32.mrf.mxu1  ;;  %v10082_v49 = vadd.f32 %v11595_v63, %v9875_v21  ;;  %v11570_v34 = vadd.f32 %v11569_v57, %v11568_v55 }
 0x8c2   : > { %v11571_v25 = vpop.f32.mrf.mxu0  ;;  %v11601_v20 = vadd.f32 %v11600_v29, %v11599_v61 }
 0x8c3   : > { %v10093_v12 = vadd.f32 %v10756_v15, %v10082_v49  ;;  %v9876_v9 = vadd.f32 %v11570_v34, %v9661_v43  ;;  %v11602_v62 = vpop.f32.mrf.mxu1 }
 0x8c4   : > { %v11572_v23 = vpop.f32.mrf.mxu0 }
 0x8c5   : > { %v10101_v37 = vmul.f32 0.70710677, %v10093_v12  ;;  %v10083_v14 = vadd.f32 %v11598_v48, %v9876_v9  ;;  %v11573_v13 = vadd.f32 %v11572_v23, %v11571_v25  ;;  %v11603_v60 = vpop.f32.mrf.mxu1  ;;  %v10097_v52 = vmul.f32 0.5, %v10093_v12 }
 0x8c6   : > { %v11574_v6 = vpop.f32.mrf.mxu0  ;;  %v11604_v38 = vadd.f32 %v11603_v60, %v11602_v62 }
 0x8c7   : > { %12661 = verf.f32 %v10101_v37  ;;  %v10094_v8 = vadd.f32 %v10756_v15, %v10083_v14  ;;  %v9877_v58 = vadd.f32 %v11573_v13, %v9666_v2 }
 0x8c8   : > { %v11575_v50 = vpop.f32.mrf.mxu0 }
 0x8c9   : > { %v10102_v1 = vmul.f32 0.70710677, %v10094_v8  ;;  %v11576_v36 = vadd.f32 %v11575_v50, %v11574_v6  ;;  %v10084_v39 = vadd.f32 %v11601_v20, %v9877_v58  ;;  %v10098_v40 = vmul.f32 0.5, %v10094_v8 }
 0x8cb   : > { %12663 = verf.f32 %v10102_v1  ;;  %v9878_v3 = vadd.f32 %v11576_v36, %v9669_v5  ;;  %v10095_v7 = vadd.f32 %v10756_v15, %v10084_v39 }
 0x8cd   : > { %v10085_v16 = vadd.f32 %v11604_v38, %v9878_v3  ;;  %v10103_v33 = vmul.f32 0.70710677, %v10095_v7  ;;  %v10099_v17 = vmul.f32 0.5, %v10095_v7 }
 0x8cf   : > { %v10096_v28 = vadd.f32 %v10756_v15, %v10085_v16  ;;  %12665 = verf.f32 %v10103_v33 }
 0x8d1   : > { %v10104_v45 = vmul.f32 0.70710677, %v10096_v28  ;;  %v10100_v4 = vmul.f32 0.5, %v10096_v28 }
 0x8d3   : > { %12667 = verf.f32 %v10104_v45 }
 0x8d4   : > { %v12662_v53 = vpop.eup %12661 }
 0x8d5   : > { %v10109_v54 = vadd.f32 1.0, %v12662_v53 }
 0x8d7   : > { %v10113_v42 = vmul.f32 %v10109_v54, %v10097_v52 }
 0x8d8   : > { %v12664_v11 = vpop.eup %12663 }
 0x8d9   : > { %10119 = vst [vmem:[#allocation3 + $0x1] sm:$0xff] %v10113_v42  ;;  %v10110_v22 = vadd.f32 1.0, %v12664_v11 }
 0x8db   : > { %v10114_v56 = vmul.f32 %v10110_v22, %v10098_v40 }
 0x8dc   : > { %v12666_v24 = vpop.eup %12665 }
 0x8dd   : > { %10120 = vst [vmem:[#allocation3 + $0x9] sm:$0xff] %v10114_v56  ;;  %v10111_v10 = vadd.f32 1.0, %v12666_v24 }
 0x8df   : > { %v10115_v47 = vmul.f32 %v10111_v10, %v10099_v17 }
 0x8e0   : > { %v12668_v41 = vpop.eup %12667  ;;  %v10123_v32 = vld [vmem:[#allocation3] sm:$0xff] }
 0x8e1   : > { %v10112_v26 = vadd.f32 1.0, %v12668_v41  ;;  %v10131_v35 = vmax.f32 %v10123_v32, %v10113_v42  ;;  %10121 = vst [vmem:[#allocation3 + $0x11] sm:$0xff] %v10115_v47 }
 0x8e3   : > { %v10116_v59 = vmul.f32 %v10112_v26, %v10100_v4  ;;  %10135 = vst [vmem:[#allocation5] sm:$0xff] %v10131_v35 }
 0x8e4   : > { %v10124_v0 = vld [vmem:[#allocation3 + $0x8] sm:$0xff] }
 0x8e5   : > { %10122 = vst [vmem:[#allocation3 + $0x19] sm:$0x7f] %v10116_v59  ;;  %v10132_v18 = vmax.f32 %v10124_v0, %v10114_v56 }
 0x8e7   : > { %10136 = vst [vmem:[#allocation5 + $0x8] sm:$0xff] %v10132_v18 }
 0x8e8   : > { %v10125_v44 = vld [vmem:[#allocation3 + $0x10] sm:$0xff] }
 0x8e9   : > { %v10133_v51 = vmax.f32 %v10125_v44, %v10115_v47 }
 0x8eb   : > { %10137 = vst [vmem:[#allocation5 + $0x10] sm:$0xff] %v10133_v51 }
 0x8ec   : > { %v10126_v61 = vld [vmem:[#allocation3 + $0x18] sm:$0x7f] }
 0x8ed   : > { %v10130_v55 = vld [vmem:[#allocation3 + $0x19] sm:$0x7f] }
 0x8ee   : > { %v10134_v27 = vmax.f32 %v10126_v61, %v10130_v55  ;;  %v10139_v63 = vld [vmem:[#allocation5] ss:$2 sm:$0xff] }
 0x8ef   : > { %10142 = vst [vmem:[%s16246_s21 + $0x40] sm:$0xff] %v10139_v63 }
 0x8f0   : > { %10138 = vst [vmem:[#allocation5 + $0x18] sm:$0x7f] %v10134_v27 }
 0x8f7   : > { %v10141_v21 = vld [vmem:[#allocation5 + $0x10] ss:$2 sm:$0xff] }
 0x8f8   : > { %10143 = vst [vmem:[%s16246_s21 + $0x48] sm:$0xff] %v10141_v21 }
 0x8f9   : > { %12689 = shalt.err (!%p12686_p3)
}
 0x8fa   : > { %s12690_s21 = scalar_lea.hbm %s17041_s25, 1280  ;;  %s12694_s20 = scalar_lea.hbm %s17102_s14, 2560 }
 0x8fb   : > { %p12691_p4 = scmp.ne.s32.totalorder %s17041_s25, %s12690_s21  ;;  %p12695_p9 = scmp.lt.s32.totalorder %s17041_s25, %s17102_s14 }
 0x8fc   : > { %p12696_p10 = scmp.lt.s32.totalorder %s12694_s20, %s12690_s21 }
 0x8fd   : > { %p12692_p7 = pnand %p12691_p4, %p12857_p5 }
 0x8fe   : > { %p12697_p11 = por %p12696_p10, %p12695_p9 }
 0x8ff   : > { %p12693_p8 = pneg %p12692_p7 }
 0x901   : > { %p12698_p12 = pnand %p12697_p11, %p12693_p8 }
 0x903   : > { %12701 = shalt.err (!%p12698_p12)
}
 0x904   : > { %s12742_s2 = smov 128   ;;  %s12743_s17 = smov 8  }
 0x905   : > { %11953 = dma.vmem_to_hbm [thread:$0]  (%p12857_p5), %s17043_s28, 1280, %s17041_s25, %s17048_s0, %s12742_s2, %s12742_s2, %s12743_s17  }
 0x906 PF: > { %p11959_p13 = scmp.ge.s32.totalorder %s12736_s16, 2  ;;  %s10173_s15 = sand.u32 1, %s12724_s29  }
 0x907   : > { %s10174_s26 = scalar_lea.sflag [#allocation9], %s10173_s15 }
 0x908   : > { %p11956_p0 = pnand %p11959_p13, %p12861_p6 }
 0x90a   : > { %p11957_p1 = pneg %p11956_p0 }
 0x90c   : > { %12719 = dma.done.wait (%p11957_p1), %s10174_s26, 1280  }
 0x90d   : > { %12721 = vsyncadd (%p11957_p1), %s10174_s26, 4294966016  ;;  %s17293_s21 = sld [smem:[#allocation11_spill]]  ;;  %p24_p2 = scmp.ge.s32.totalorder %s12844_s19, 4  }
 0x90e   : > { %s17294_s15 = sld [smem:[#allocation12_spill]]  ;;  %s17295_s29 = smov %s12728_s30 }
 0x90f   : > { %s17297_s16 = smov %s12844_s19  ;;  %26 = sbr.rel (!%p24_p2) target bundleno = 7 (0x7), region = 153 }
 0x913   : > { %s17296_s30 = smov %s17293_s21 }
 0x914   :  { %10179 = vsyncpa [#allocation9], 1 }
 0x915   :  { %10181 = vsyncpa [#allocation9 + $0x1], 1 }

</bundles_post_ra>
